<compile_context>
chip_gen: v5e
topology: v5e:2x2
jax: 0.10.0
libtpu: 0.0.40
codegen_flags: <defaults>
</compile_context>

<pallas_src>
import functools

import jax
import jax.numpy as jnp
from jax.experimental import pallas as pl
from jax.experimental.pallas import tpu as pltpu

_MASK_FILL = -1e4   # matches PyTorch masked_fill(mask == 0, -1e4)
_LN_EPS = 1e-5      # VITS LayerNorm eps

# Stacked-per-layer parameter order (kernel argument order must match).
_WEIGHT_NAMES = (
    "sa_wqkv", "sa_bqkv", "sa_wo", "sa_bo", "ln0_g", "ln0_b",
    "ca_wq", "ca_bq", "ca_wkv", "ca_bkv", "ca_wo", "ca_bo", "ln1_g", "ln1_b",
    "ffn_w1", "ffn_b1", "ffn_w2", "ffn_b2", "ln2_g", "ln2_b",
)
_MATMUL_WEIGHTS = {"sa_wqkv", "sa_wo", "ca_wq", "ca_wkv", "ca_wo", "ffn_w1", "ffn_w2"}


# ------------------------- fused whole-decoder kernel -------------------------

def _decoder_kernel(x_ref, xm_ref, h_ref, hmt_ref,
                    sa_wqkv, sa_bqkv, sa_wo, sa_bo, ln0_g, ln0_b,
                    ca_wq, ca_bq, ca_wkv, ca_bkv, ca_wo, ca_bo, ln1_g, ln1_b,
                    ffn_w1, ffn_b1, ffn_w2, ffn_b2, ln2_g, ln2_b,
                    o_ref, *, n_layers, n_heads, kernel_size, head_pad):
    cdt = sa_wqkv.dtype                        # matmul feed dtype (bf16 by default)
    x = x_ref[0].astype(jnp.float32)           # [Tt, C]
    m = xm_ref[0]                              # [Tt, 1]   x_mask
    henc = h_ref[0].astype(cdt)                # [Ts, C]   encoder output (loaded once)
    hm = hmt_ref[0]                            # [1, Ts]   h_mask (transposed)
    Tt = x.shape[0]
    K = kernel_size
    DP = head_pad                              # per-head width padded to 128 lanes
    HDP = n_heads * DP

    # module boundary: x = x * x_mask (fused into the kernel)
    x = x * m

    # attention masks, built once in-kernel (no HBM mask tensors)
    row = jax.lax.broadcasted_iota(jnp.int32, (Tt, Tt), 0)
    col = jax.lax.broadcasted_iota(jnp.int32, (Tt, Tt), 1)
    causal_keep = row >= col                               # subsequent_mask
    encdec_keep = (m > 0.5) & (hm > 0.5)                   # x_mask[t] * h_mask[s]

    def attend(q, k, v, keep):
        # q:[Tq,HDP]  k,v:[Tk,HDP] (cdt, 128-lane-padded heads)  keep:[Tq,Tk] bool.
        # Head loop is a small static unroll; all slices are 128-lane aligned, the score
        # contraction is a full 128-deep MXU pass, the concat is of aligned 128-wide blocks.
        outs = []
        for hh in range(n_heads):
            sl = slice(hh * DP, (hh + 1) * DP)
            s = jax.lax.dot_general(q[:, sl], k[:, sl], (((1,), (1,)), ((), ())),
                                    preferred_element_type=jnp.float32)
            s = jnp.where(keep, s, jnp.float32(_MASK_FILL))
            p = jnp.exp(s - jnp.max(s, axis=-1, keepdims=True))
            p = p / jnp.sum(p, axis=-1, keepdims=True)     # exact softmax (parity)
            outs.append(jnp.dot(p.astype(cdt), v[:, sl],
                                preferred_element_type=jnp.float32))
        return jnp.concatenate(outs, axis=-1).astype(cdt)  # [Tq, HDP]

    def layer_norm(z, g, b):
        mu = jnp.mean(z, axis=-1, keepdims=True)
        var = jnp.mean(jnp.square(z - mu), axis=-1, keepdims=True)
        return (z - mu) * jax.lax.rsqrt(var + _LN_EPS) * g + b

    def causal_conv(z, w_ref, l, bias):
        # Conv1d with causal left-pad K-1 as K accumulated matmuls: activations stay [T, Cin]
        # (no [T, K*Cin] lane-concat im2col).  zp[kk + t] == z[t - (K-1-kk)].
        T = z.shape[0]
        acc = jnp.dot(z, w_ref[l, K - 1], preferred_element_type=jnp.float32) + bias
        if K > 1:
            zp = jnp.concatenate(
                [jnp.zeros((K - 1, z.shape[1]), z.dtype), z], axis=0)
            for kk in range(K - 1):
                acc = acc + jnp.dot(zp[kk:kk + T], w_ref[l, kk],
                                    preferred_element_type=jnp.float32)
        return acc

    # TODO(synk): nn.Dropout with p_dropout=0.0 is the identity; omitted.
    # TODO(synk): proximal_bias / window_size relative attention are not used by Decoder
    #             with its defaults (proximal_bias=False, window_size=None); not implemented.
    # TODO(synk): for very long sequences on v7x, tile the FFN over T and use an online
    #             softmax over Ts; whole-sequence blocks are fine at these sizes.
    for l in range(n_layers):                 # static unroll: x stays resident in VMEM
        # -------- self attention (causal) + residual + LayerNorm --------
        xc = x.astype(cdt)
        qkv = (jnp.dot(xc, sa_wqkv[l], preferred_element_type=jnp.float32)
               + sa_bqkv[l]).astype(cdt)                         # [Tt, 3*HDP]
        att = attend(qkv[:, :HDP], qkv[:, HDP:2 * HDP], qkv[:, 2 * HDP:], causal_keep)
        y = jnp.dot(att, sa_wo[l], preferred_element_type=jnp.float32) + sa_bo[l]
        x = layer_norm(x + y, ln0_g[l], ln0_b[l])

        # -------- encoder-decoder attention + residual + LayerNorm --------
        xc = x.astype(cdt)
        q = (jnp.dot(xc, ca_wq[l], preferred_element_type=jnp.float32)
             + ca_bq[l]).astype(cdt)                             # [Tt, HDP]
        kv = (jnp.dot(henc, ca_wkv[l], preferred_element_type=jnp.float32)
              + ca_bkv[l]).astype(cdt)                           # [Ts, 2*HDP]
        att = attend(q, kv[:, :HDP], kv[:, HDP:], encdec_keep)
        y = jnp.dot(att, ca_wo[l], preferred_element_type=jnp.float32) + ca_bo[l]
        x = layer_norm(x + y, ln1_g[l], ln1_b[l])

        # -------- causal FFN + residual + LayerNorm ([T,F] never leaves VMEM) --------
        h1 = causal_conv((x * m).astype(cdt), ffn_w1, l, ffn_b1[l])
        h1 = jnp.maximum(h1, 0.0)                                # activation=None -> relu
        y = causal_conv((h1 * m).astype(cdt), ffn_w2, l, ffn_b2[l])
        y = y * m
        x = layer_norm(x + y, ln2_g[l], ln2_b[l])

    o_ref[0] = (x * m).astype(o_ref.dtype)


# ------------------------- pallas_call wrapper -------------------------

def _replicated_spec(a):
    zeros = (0,) * a.ndim
    return pl.BlockSpec(a.shape, lambda b: zeros)   # whole array, replicated over batch grid
    # TODO(synk): on v7x consider pipeline_mode=pl.Buffered(1) for these weight blocks to
    #             avoid double-buffering them in a 64 MiB VMEM budget.


def _cost_estimate(B, L, Tt, Ts, C, F, K, H, DP, args):
    HDP = H * DP
    per_layer_flops = (
        2 * Tt * C * (3 * HDP)           # self-attn fused QKV projection
        + H * (2 * Tt * Tt * DP) * 2     # self-attn scores + PV
        + 2 * Tt * HDP * C               # self-attn out-proj
        + 2 * Tt * C * HDP               # enc-dec Q
        + 2 * Ts * C * (2 * HDP)         # enc-dec fused KV
        + H * (2 * Tt * Ts * DP) * 2     # enc-dec scores + PV
        + 2 * Tt * HDP * C               # enc-dec out-proj
        + 2 * Tt * (K * C) * F           # FFN conv1
        + 2 * Tt * (K * F) * C           # FFN conv2
    )
    per_layer_trans = H * (Tt * Tt + Tt * Ts) + 3 * Tt
    bytes_accessed = (sum(int(a.size) * a.dtype.itemsize for a in args)
                      + B * Tt * C * 4)  # output
    return pl.CostEstimate(flops=int(B * L * per_layer_flops),
                           transcendentals=int(B * L * per_layer_trans),
                           bytes_accessed=int(bytes_accessed))


def decoder_forward(x, x_mask, h, h_mask, params, n_heads, kernel_size):
    """x: [B,Tt,C] decoder input, h: [B,Ts,C] encoder output, masks: [B,T,1] (0/1)."""
    B, Tt, C = x.shape
    Ts = h.shape[1]
    L = params["sa_wqkv"].shape[0]
    HDP = params["sa_wo"].shape[1]
    DP = HDP // n_heads
    F = params["ffn_b1"].shape[-1]
    h_mask_t = jnp.swapaxes(h_mask, 1, 2)          # [B,1,Ts] for in-kernel mask build

    weights = [params[name] for name in _WEIGHT_NAMES]
    args = [x, x_mask, h, h_mask_t] + weights

    in_specs = ([pl.BlockSpec((1, Tt, C), lambda b: (b, 0, 0)),
                 pl.BlockSpec((1, Tt, 1), lambda b: (b, 0, 0)),
                 pl.BlockSpec((1, Ts, C), lambda b: (b, 0, 0)),
                 pl.BlockSpec((1, 1, Ts), lambda b: (b, 0, 0))]
                + [_replicated_spec(w) for w in weights])

    kern = functools.partial(_decoder_kernel, n_layers=L, n_heads=n_heads,
                             kernel_size=kernel_size, head_pad=DP)

    return pl.pallas_call(
        kern,
        out_shape=jax.ShapeDtypeStruct((B, Tt, C), x.dtype),
        grid=(B,),
        in_specs=in_specs,
        out_specs=pl.BlockSpec((1, Tt, C), lambda b: (b, 0, 0)),
        compiler_params=pltpu.CompilerParams(
            dimension_semantics=("parallel",),
            vmem_limit_bytes=32 * 1024 * 1024),
        cost_estimate=_cost_estimate(B, L, Tt, Ts, C, F, kernel_size, n_heads, DP, args),
    )(*args)


# ------------------------- deterministic init -------------------------

def _round_up(v, m):
    return ((v + m - 1) // m) * m


def _pad_head_cols(w, n_heads, dk, dp):
    # [Cin, H*dk] -> [Cin, H*dp] with zero-padded per-head tails (128-lane head slots).
    c = w.shape[0]
    out = jnp.zeros((c, n_heads, dp), w.dtype)
    out = out.at[:, :, :dk].set(w.reshape(c, n_heads, dk))
    return out.reshape(c, n_heads * dp)


def _pad_head_rows(w, n_heads, dk, dp):
    # [H*dk, Cout] -> [H*dp, Cout] with zero rows at padded head positions.
    c = w.shape[1]
    out = jnp.zeros((n_heads, dp, c), w.dtype)
    out = out.at[:, :dk, :].set(w.reshape(n_heads, dk, c))
    return out.reshape(n_heads * dp, c)


def init_params(key, hidden, filt, n_heads, n_layers, kernel_size,
                matmul_dtype=jnp.bfloat16):
    C, F, K, H = hidden, filt, kernel_size, n_heads
    dk = C // H
    dp = _round_up(dk, 128)
    hdp = H * dp
    scale = dk ** -0.5

    def nrm(k, shape, s):
        return jax.random.normal(k, shape, jnp.float32) * s

    layers = []
    for _ in range(n_layers):
        key, *ks = jax.random.split(key, 10)
        zc = jnp.zeros((1, C), jnp.float32)
        ones = jnp.ones((1, C), jnp.float32)

        # self-attention; proximal_init=True -> conv_k copies conv_q (weight+bias),
        # the 1/sqrt(dk) scale is folded into the Q block only (biases are zero).
        wq_s = nrm(ks[0], (C, C), C ** -0.5)
        wk_s = wq_s
        wv_s = nrm(ks[1], (C, C), C ** -0.5)
        wo_s = nrm(ks[2], (C, C), C ** -0.5)

        wq_c = nrm(ks[3], (C, C), C ** -0.5)
        wk_c = nrm(ks[4], (C, C), C ** -0.5)
        wv_c = nrm(ks[5], (C, C), C ** -0.5)
        wo_c = nrm(ks[6], (C, C), C ** -0.5)

        layers.append(dict(
            sa_wqkv=jnp.concatenate(
                [_pad_head_cols(wq_s * scale, H, dk, dp),
                 _pad_head_cols(wk_s, H, dk, dp),
                 _pad_head_cols(wv_s, H, dk, dp)], axis=1),        # [C, 3*H*128]
            sa_bqkv=jnp.zeros((1, 3 * hdp), jnp.float32),
            sa_wo=_pad_head_rows(wo_s, H, dk, dp),                 # [H*128, C]
            sa_bo=zc, ln0_g=ones, ln0_b=zc,
            ca_wq=_pad_head_cols(wq_c * scale, H, dk, dp),
            ca_bq=jnp.zeros((1, hdp), jnp.float32),
            ca_wkv=jnp.concatenate(
                [_pad_head_cols(wk_c, H, dk, dp),
                 _pad_head_cols(wv_c, H, dk, dp)], axis=1),        # [C, 2*H*128]
            ca_bkv=jnp.zeros((1, 2 * hdp), jnp.float32),
            ca_wo=_pad_head_rows(wo_c, H, dk, dp),
            ca_bo=zc, ln1_g=ones, ln1_b=zc,
            ffn_w1=nrm(ks[7], (K, C, F), (C * K) ** -0.5),         # [K, Cin, Cout] taps
            ffn_b1=jnp.zeros((1, F), jnp.float32),
            ffn_w2=nrm(ks[8], (K, F, C), (F * K) ** -0.5),
            ffn_b2=zc, ln2_g=ones, ln2_b=zc,
        ))

    params = {}
    for name in _WEIGHT_NAMES:
        arr = jnp.stack([lyr[name] for lyr in layers], axis=0)     # stacked over layers
        if name in _MATMUL_WEIGHTS:
            arr = arr.astype(matmul_dtype)                         # bf16 MXU feeds
        params[name] = arr
    return params


if __name__ == "__main__":
    B, Tt, Ts = 2, 16, 12
    hidden, filt, n_heads, n_layers, kernel_size = 32, 64, 4, 2, 3

    key = jax.random.PRNGKey(0)
    kx, kh, kp = jax.random.split(key, 3)
    params = init_params(kp, hidden, filt, n_heads, n_layers, kernel_size)

    x = jax.random.normal(kx, (B, Tt, hidden), jnp.float32)
    h = jax.random.normal(kh, (B, Ts, hidden), jnp.float32)
    x_len = jnp.array([Tt, Tt - 4])
    h_len = jnp.array([Ts, Ts - 3])
    x_mask = (jnp.arange(Tt)[None, :] < x_len[:, None]).astype(jnp.float32)[..., None]
    h_mask = (jnp.arange(Ts)[None, :] < h_len[:, None]).astype(jnp.float32)[..., None]

    fwd = jax.jit(functools.partial(decoder_forward, n_heads=n_heads,
                                    kernel_size=kernel_size))
    out = fwd(x, x_mask, h, h_mask, params)
    jax.block_until_ready(out)

    assert out.shape == (B, Tt, hidden)
    assert bool(jnp.all(jnp.isfinite(out)))
    print("KERNEL_OK")
</pallas_src>

<mosaic_0001>
module attributes {stable_mosaic.version = 11 : i64} {
  func.func @_decoder_kernel(%arg0: i32, %arg1: memref<1x16x32xf32, #tpu.memory_space<vmem>>, %arg2: memref<1x16x1xf32, #tpu.memory_space<vmem>>, %arg3: memref<1x12x32xf32, #tpu.memory_space<vmem>>, %arg4: memref<1x1x12xf32, #tpu.memory_space<vmem>>, %arg5: memref<2x32x1536xbf16, #tpu.memory_space<vmem>>, %arg6: memref<2x1x1536xf32, #tpu.memory_space<vmem>>, %arg7: memref<2x512x32xbf16, #tpu.memory_space<vmem>>, %arg8: memref<2x1x32xf32, #tpu.memory_space<vmem>>, %arg9: memref<2x1x32xf32, #tpu.memory_space<vmem>>, %arg10: memref<2x1x32xf32, #tpu.memory_space<vmem>>, %arg11: memref<2x32x512xbf16, #tpu.memory_space<vmem>>, %arg12: memref<2x1x512xf32, #tpu.memory_space<vmem>>, %arg13: memref<2x32x1024xbf16, #tpu.memory_space<vmem>>, %arg14: memref<2x1x1024xf32, #tpu.memory_space<vmem>>, %arg15: memref<2x512x32xbf16, #tpu.memory_space<vmem>>, %arg16: memref<2x1x32xf32, #tpu.memory_space<vmem>>, %arg17: memref<2x1x32xf32, #tpu.memory_space<vmem>>, %arg18: memref<2x1x32xf32, #tpu.memory_space<vmem>>, %arg19: memref<2x3x32x64xbf16, #tpu.memory_space<vmem>>, %arg20: memref<2x1x64xf32, #tpu.memory_space<vmem>>, %arg21: memref<2x3x64x32xbf16, #tpu.memory_space<vmem>>, %arg22: memref<2x1x32xf32, #tpu.memory_space<vmem>>, %arg23: memref<2x1x32xf32, #tpu.memory_space<vmem>>, %arg24: memref<2x1x32xf32, #tpu.memory_space<vmem>>, %arg25: memref<1x16x32xf32, #tpu.memory_space<vmem>>) attributes {dimension_semantics = [#tpu.dimension_semantics<parallel>], iteration_bounds = array<i64: 2>, scalar_prefetch = 0 : i64, scratch_operands = 0 : i64, tpu.core_type = #tpu.core_type<tc>, window_params = [{transform_indices = @transform_0, window_bounds = array<i64: 1, 16, 32>}, {transform_indices = @transform_1, window_bounds = array<i64: 1, 16, 1>}, {transform_indices = @transform_2, window_bounds = array<i64: 1, 12, 32>}, {transform_indices = @transform_3, window_bounds = array<i64: 1, 1, 12>}, {pipeline_mode = #tpu.pipeline_mode<synchronous>, transform_indices = @transform_4, window_bounds = array<i64: 2, 32, 1536>}, {pipeline_mode = #tpu.pipeline_mode<synchronous>, transform_indices = @transform_5, window_bounds = array<i64: 2, 1, 1536>}, {pipeline_mode = #tpu.pipeline_mode<synchronous>, transform_indices = @transform_6, window_bounds = array<i64: 2, 512, 32>}, {pipeline_mode = #tpu.pipeline_mode<synchronous>, transform_indices = @transform_7, window_bounds = array<i64: 2, 1, 32>}, {pipeline_mode = #tpu.pipeline_mode<synchronous>, transform_indices = @transform_8, window_bounds = array<i64: 2, 1, 32>}, {pipeline_mode = #tpu.pipeline_mode<synchronous>, transform_indices = @transform_9, window_bounds = array<i64: 2, 1, 32>}, {pipeline_mode = #tpu.pipeline_mode<synchronous>, transform_indices = @transform_10, window_bounds = array<i64: 2, 32, 512>}, {pipeline_mode = #tpu.pipeline_mode<synchronous>, transform_indices = @transform_11, window_bounds = array<i64: 2, 1, 512>}, {pipeline_mode = #tpu.pipeline_mode<synchronous>, transform_indices = @transform_12, window_bounds = array<i64: 2, 32, 1024>}, {pipeline_mode = #tpu.pipeline_mode<synchronous>, transform_indices = @transform_13, window_bounds = array<i64: 2, 1, 1024>}, {pipeline_mode = #tpu.pipeline_mode<synchronous>, transform_indices = @transform_14, window_bounds = array<i64: 2, 512, 32>}, {pipeline_mode = #tpu.pipeline_mode<synchronous>, transform_indices = @transform_15, window_bounds = array<i64: 2, 1, 32>}, {pipeline_mode = #tpu.pipeline_mode<synchronous>, transform_indices = @transform_16, window_bounds = array<i64: 2, 1, 32>}, {pipeline_mode = #tpu.pipeline_mode<synchronous>, transform_indices = @transform_17, window_bounds = array<i64: 2, 1, 32>}, {pipeline_mode = #tpu.pipeline_mode<synchronous>, transform_indices = @transform_18, window_bounds = array<i64: 2, 3, 32, 64>}, {pipeline_mode = #tpu.pipeline_mode<synchronous>, transform_indices = @transform_19, window_bounds = array<i64: 2, 1, 64>}, {pipeline_mode = #tpu.pipeline_mode<synchronous>, transform_indices = @transform_20, window_bounds = array<i64: 2, 3, 64, 32>}, {pipeline_mode = #tpu.pipeline_mode<synchronous>, transform_indices = @transform_21, window_bounds = array<i64: 2, 1, 32>}, {pipeline_mode = #tpu.pipeline_mode<synchronous>, transform_indices = @transform_22, window_bounds = array<i64: 2, 1, 32>}, {pipeline_mode = #tpu.pipeline_mode<synchronous>, transform_indices = @transform_23, window_bounds = array<i64: 2, 1, 32>}, {transform_indices = @transform_24, window_bounds = array<i64: 1, 16, 32>}]} {
    %c0 = arith.constant 0 : index
    %c0_0 = arith.constant 0 : index
    %c0_1 = arith.constant 0 : index
    %0 = vector.load %arg1[%c0, %c0_0, %c0_1] : memref<1x16x32xf32, #tpu.memory_space<vmem>>, vector<1x16x32xf32>
    %1 = vector.shape_cast %0 : vector<1x16x32xf32> to vector<16x32xf32>
    %c0_2 = arith.constant 0 : index
    %c0_3 = arith.constant 0 : index
    %c0_4 = arith.constant 0 : index
    %2 = vector.load %arg2[%c0_2, %c0_3, %c0_4] : memref<1x16x1xf32, #tpu.memory_space<vmem>>, vector<1x16x1xf32>
    %3 = vector.shape_cast %2 : vector<1x16x1xf32> to vector<16x1xf32>
    %c0_5 = arith.constant 0 : index
    %c0_6 = arith.constant 0 : index
    %c0_7 = arith.constant 0 : index
    %4 = vector.load %arg3[%c0_5, %c0_6, %c0_7] : memref<1x12x32xf32, #tpu.memory_space<vmem>>, vector<1x12x32xf32>
    %5 = vector.shape_cast %4 : vector<1x12x32xf32> to vector<12x32xf32>
    %6 = arith.truncf %5 : vector<12x32xf32> to vector<12x32xbf16>
    %c0_8 = arith.constant 0 : index
    %c0_9 = arith.constant 0 : index
    %c0_10 = arith.constant 0 : index
    %7 = vector.load %arg4[%c0_8, %c0_9, %c0_10] : memref<1x1x12xf32, #tpu.memory_space<vmem>>, vector<1x1x12xf32>
    %8 = vector.shape_cast %7 : vector<1x1x12xf32> to vector<1x12xf32>
    %9 = vector.broadcast %3 : vector<16x1xf32> to vector<16x32xf32>
    %10 = arith.mulf %1, %9 : vector<16x32xf32>
    %11 = tpu.iota {dimensions = array<i32: 0>} : vector<16x16xi32>
    %12 = tpu.iota {dimensions = array<i32: 1>} : vector<16x16xi32>
    %13 = arith.cmpi sge, %11, %12 : vector<16x16xi32>
    %cst = arith.constant 5.000000e-01 : f32
    %14 = vector.broadcast %cst : f32 to vector<16x1xf32>
    %15 = arith.cmpf ogt, %3, %14 : vector<16x1xf32>
    %cst_11 = arith.constant 5.000000e-01 : f32
    %16 = vector.broadcast %cst_11 : f32 to vector<1x12xf32>
    %17 = arith.cmpf ogt, %8, %16 : vector<1x12xf32>
    %18 = vector.broadcast %15 : vector<16x1xi1> to vector<16x12xi1>
    %19 = vector.broadcast %17 : vector<1x12xi1> to vector<16x12xi1>
    %20 = arith.andi %18, %19 : vector<16x12xi1>
    %21 = arith.truncf %10 : vector<16x32xf32> to vector<16x32xbf16>
    %c0_12 = arith.constant 0 : index
    %c0_13 = arith.constant 0 : index
    %c0_14 = arith.constant 0 : index
    %22 = vector.load %arg5[%c0_12, %c0_13, %c0_14] : memref<2x32x1536xbf16, #tpu.memory_space<vmem>>, vector<1x32x1536xbf16>
    %23 = vector.shape_cast %22 : vector<1x32x1536xbf16> to vector<32x1536xbf16>
    %cst_15 = arith.constant dense<0.000000e+00> : vector<16x1536xf32>
    %24 = tpu.matmul %21, %23, %cst_15 {dimension_numbers = #tpu.dot_dimension_numbers<[1], [0], [0], [1], [0, 0, 1, 1], [], []>} : vector<16x32xbf16>, vector<32x1536xbf16>, vector<16x1536xf32> -> vector<16x1536xf32>
    %c0_16 = arith.constant 0 : index
    %c0_17 = arith.constant 0 : index
    %c0_18 = arith.constant 0 : index
    %25 = vector.load %arg6[%c0_16, %c0_17, %c0_18] : memref<2x1x1536xf32, #tpu.memory_space<vmem>>, vector<1x1x1536xf32>
    %26 = vector.shape_cast %25 : vector<1x1x1536xf32> to vector<1x1536xf32>
    %27 = vector.broadcast %26 : vector<1x1536xf32> to vector<16x1536xf32>
    %28 = arith.addf %24, %27 : vector<16x1536xf32>
    %29 = arith.truncf %28 : vector<16x1536xf32> to vector<16x1536xbf16>
    %30 = vector.extract_strided_slice %29 {offsets = [0, 0], sizes = [16, 512], strides = [1, 1]} : vector<16x1536xbf16> to vector<16x512xbf16>
    %31 = vector.extract_strided_slice %29 {offsets = [0, 512], sizes = [16, 512], strides = [1, 1]} : vector<16x1536xbf16> to vector<16x512xbf16>
    %32 = vector.extract_strided_slice %29 {offsets = [0, 1024], sizes = [16, 512], strides = [1, 1]} : vector<16x1536xbf16> to vector<16x512xbf16>
    %33 = vector.extract_strided_slice %30 {offsets = [0, 0], sizes = [16, 128], strides = [1, 1]} : vector<16x512xbf16> to vector<16x128xbf16>
    %34 = vector.extract_strided_slice %31 {offsets = [0, 0], sizes = [16, 128], strides = [1, 1]} : vector<16x512xbf16> to vector<16x128xbf16>
    %cst_19 = arith.constant dense<0.000000e+00> : vector<16x16xf32>
    %35 = tpu.matmul %33, %34, %cst_19 {dimension_numbers = #tpu.dot_dimension_numbers<[1], [1], [0], [0], [0, 0, 1, 0], [], []>} : vector<16x128xbf16>, vector<16x128xbf16>, vector<16x16xf32> -> vector<16x16xf32>
    %cst_20 = arith.constant -1.000000e+04 : f32
    %36 = vector.broadcast %cst_20 : f32 to vector<16x16xf32>
    %37 = arith.select %13, %35, %36 : vector<16x16xi1>, vector<16x16xf32>
    %cst_21 = arith.constant dense<0xFF800000> : vector<16xf32>
    %38 = vector.multi_reduction <maximumf>, %37, %cst_21 [1] : vector<16x16xf32> to vector<16xf32>
    %39 = vector.shape_cast %38 : vector<16xf32> to vector<16x1xf32>
    %40 = vector.broadcast %39 : vector<16x1xf32> to vector<16x16xf32>
    %41 = arith.subf %37, %40 : vector<16x16xf32>
    %42 = math.exp %41 : vector<16x16xf32>
    %cst_22 = arith.constant dense<0.000000e+00> : vector<16xf32>
    %43 = vector.multi_reduction <add>, %42, %cst_22 [1] : vector<16x16xf32> to vector<16xf32>
    %44 = vector.shape_cast %43 : vector<16xf32> to vector<16x1xf32>
    %45 = vector.broadcast %44 : vector<16x1xf32> to vector<16x16xf32>
    %46 = arith.divf %42, %45 : vector<16x16xf32>
    %47 = arith.truncf %46 : vector<16x16xf32> to vector<16x16xbf16>
    %48 = vector.extract_strided_slice %32 {offsets = [0, 0], sizes = [16, 128], strides = [1, 1]} : vector<16x512xbf16> to vector<16x128xbf16>
    %cst_23 = arith.constant dense<0.000000e+00> : vector<16x128xf32>
    %49 = tpu.matmul %47, %48, %cst_23 {dimension_numbers = #tpu.dot_dimension_numbers<[1], [0], [0], [1], [0, 0, 1, 1], [], []>} : vector<16x16xbf16>, vector<16x128xbf16>, vector<16x128xf32> -> vector<16x128xf32>
    %50 = vector.extract_strided_slice %30 {offsets = [0, 128], sizes = [16, 128], strides = [1, 1]} : vector<16x512xbf16> to vector<16x128xbf16>
    %51 = vector.extract_strided_slice %31 {offsets = [0, 128], sizes = [16, 128], strides = [1, 1]} : vector<16x512xbf16> to vector<16x128xbf16>
    %cst_24 = arith.constant dense<0.000000e+00> : vector<16x16xf32>
    %52 = tpu.matmul %50, %51, %cst_24 {dimension_numbers = #tpu.dot_dimension_numbers<[1], [1], [0], [0], [0, 0, 1, 0], [], []>} : vector<16x128xbf16>, vector<16x128xbf16>, vector<16x16xf32> -> vector<16x16xf32>
    %cst_25 = arith.constant -1.000000e+04 : f32
    %53 = vector.broadcast %cst_25 : f32 to vector<16x16xf32>
    %54 = arith.select %13, %52, %53 : vector<16x16xi1>, vector<16x16xf32>
    %cst_26 = arith.constant dense<0xFF800000> : vector<16xf32>
    %55 = vector.multi_reduction <maximumf>, %54, %cst_26 [1] : vector<16x16xf32> to vector<16xf32>
    %56 = vector.shape_cast %55 : vector<16xf32> to vector<16x1xf32>
    %57 = vector.broadcast %56 : vector<16x1xf32> to vector<16x16xf32>
    %58 = arith.subf %54, %57 : vector<16x16xf32>
    %59 = math.exp %58 : vector<16x16xf32>
    %cst_27 = arith.constant dense<0.000000e+00> : vector<16xf32>
    %60 = vector.multi_reduction <add>, %59, %cst_27 [1] : vector<16x16xf32> to vector<16xf32>
    %61 = vector.shape_cast %60 : vector<16xf32> to vector<16x1xf32>
    %62 = vector.broadcast %61 : vector<16x1xf32> to vector<16x16xf32>
    %63 = arith.divf %59, %62 : vector<16x16xf32>
    %64 = arith.truncf %63 : vector<16x16xf32> to vector<16x16xbf16>
    %65 = vector.extract_strided_slice %32 {offsets = [0, 128], sizes = [16, 128], strides = [1, 1]} : vector<16x512xbf16> to vector<16x128xbf16>
    %cst_28 = arith.constant dense<0.000000e+00> : vector<16x128xf32>
    %66 = tpu.matmul %64, %65, %cst_28 {dimension_numbers = #tpu.dot_dimension_numbers<[1], [0], [0], [1], [0, 0, 1, 1], [], []>} : vector<16x16xbf16>, vector<16x128xbf16>, vector<16x128xf32> -> vector<16x128xf32>
    %67 = vector.extract_strided_slice %30 {offsets = [0, 256], sizes = [16, 128], strides = [1, 1]} : vector<16x512xbf16> to vector<16x128xbf16>
    %68 = vector.extract_strided_slice %31 {offsets = [0, 256], sizes = [16, 128], strides = [1, 1]} : vector<16x512xbf16> to vector<16x128xbf16>
    %cst_29 = arith.constant dense<0.000000e+00> : vector<16x16xf32>
    %69 = tpu.matmul %67, %68, %cst_29 {dimension_numbers = #tpu.dot_dimension_numbers<[1], [1], [0], [0], [0, 0, 1, 0], [], []>} : vector<16x128xbf16>, vector<16x128xbf16>, vector<16x16xf32> -> vector<16x16xf32>
    %cst_30 = arith.constant -1.000000e+04 : f32
    %70 = vector.broadcast %cst_30 : f32 to vector<16x16xf32>
    %71 = arith.select %13, %69, %70 : vector<16x16xi1>, vector<16x16xf32>
    %cst_31 = arith.constant dense<0xFF800000> : vector<16xf32>
    %72 = vector.multi_reduction <maximumf>, %71, %cst_31 [1] : vector<16x16xf32> to vector<16xf32>
    %73 = vector.shape_cast %72 : vector<16xf32> to vector<16x1xf32>
    %74 = vector.broadcast %73 : vector<16x1xf32> to vector<16x16xf32>
    %75 = arith.subf %71, %74 : vector<16x16xf32>
    %76 = math.exp %75 : vector<16x16xf32>
    %cst_32 = arith.constant dense<0.000000e+00> : vector<16xf32>
    %77 = vector.multi_reduction <add>, %76, %cst_32 [1] : vector<16x16xf32> to vector<16xf32>
    %78 = vector.shape_cast %77 : vector<16xf32> to vector<16x1xf32>
    %79 = vector.broadcast %78 : vector<16x1xf32> to vector<16x16xf32>
    %80 = arith.divf %76, %79 : vector<16x16xf32>
    %81 = arith.truncf %80 : vector<16x16xf32> to vector<16x16xbf16>
    %82 = vector.extract_strided_slice %32 {offsets = [0, 256], sizes = [16, 128], strides = [1, 1]} : vector<16x512xbf16> to vector<16x128xbf16>
    %cst_33 = arith.constant dense<0.000000e+00> : vector<16x128xf32>
    %83 = tpu.matmul %81, %82, %cst_33 {dimension_numbers = #tpu.dot_dimension_numbers<[1], [0], [0], [1], [0, 0, 1, 1], [], []>} : vector<16x16xbf16>, vector<16x128xbf16>, vector<16x128xf32> -> vector<16x128xf32>
    %84 = vector.extract_strided_slice %30 {offsets = [0, 384], sizes = [16, 128], strides = [1, 1]} : vector<16x512xbf16> to vector<16x128xbf16>
    %85 = vector.extract_strided_slice %31 {offsets = [0, 384], sizes = [16, 128], strides = [1, 1]} : vector<16x512xbf16> to vector<16x128xbf16>
    %cst_34 = arith.constant dense<0.000000e+00> : vector<16x16xf32>
    %86 = tpu.matmul %84, %85, %cst_34 {dimension_numbers = #tpu.dot_dimension_numbers<[1], [1], [0], [0], [0, 0, 1, 0], [], []>} : vector<16x128xbf16>, vector<16x128xbf16>, vector<16x16xf32> -> vector<16x16xf32>
    %cst_35 = arith.constant -1.000000e+04 : f32
    %87 = vector.broadcast %cst_35 : f32 to vector<16x16xf32>
    %88 = arith.select %13, %86, %87 : vector<16x16xi1>, vector<16x16xf32>
    %cst_36 = arith.constant dense<0xFF800000> : vector<16xf32>
    %89 = vector.multi_reduction <maximumf>, %88, %cst_36 [1] : vector<16x16xf32> to vector<16xf32>
    %90 = vector.shape_cast %89 : vector<16xf32> to vector<16x1xf32>
    %91 = vector.broadcast %90 : vector<16x1xf32> to vector<16x16xf32>
    %92 = arith.subf %88, %91 : vector<16x16xf32>
    %93 = math.exp %92 : vector<16x16xf32>
    %cst_37 = arith.constant dense<0.000000e+00> : vector<16xf32>
    %94 = vector.multi_reduction <add>, %93, %cst_37 [1] : vector<16x16xf32> to vector<16xf32>
    %95 = vector.shape_cast %94 : vector<16xf32> to vector<16x1xf32>
    %96 = vector.broadcast %95 : vector<16x1xf32> to vector<16x16xf32>
    %97 = arith.divf %93, %96 : vector<16x16xf32>
    %98 = arith.truncf %97 : vector<16x16xf32> to vector<16x16xbf16>
    %99 = vector.extract_strided_slice %32 {offsets = [0, 384], sizes = [16, 128], strides = [1, 1]} : vector<16x512xbf16> to vector<16x128xbf16>
    %cst_38 = arith.constant dense<0.000000e+00> : vector<16x128xf32>
    %100 = tpu.matmul %98, %99, %cst_38 {dimension_numbers = #tpu.dot_dimension_numbers<[1], [0], [0], [1], [0, 0, 1, 1], [], []>} : vector<16x16xbf16>, vector<16x128xbf16>, vector<16x128xf32> -> vector<16x128xf32>
    %101 = tpu.concatenate %49, %66, %83, %100 in 1 : vector<16x128xf32>, vector<16x128xf32>, vector<16x128xf32>, vector<16x128xf32> -> vector<16x512xf32>
    %102 = arith.truncf %101 : vector<16x512xf32> to vector<16x512xbf16>
    %c0_39 = arith.constant 0 : index
    %c0_40 = arith.constant 0 : index
    %c0_41 = arith.constant 0 : index
    %103 = vector.load %arg7[%c0_39, %c0_40, %c0_41] : memref<2x512x32xbf16, #tpu.memory_space<vmem>>, vector<1x512x32xbf16>
    %104 = vector.shape_cast %103 : vector<1x512x32xbf16> to vector<512x32xbf16>
    %cst_42 = arith.constant dense<0.000000e+00> : vector<16x32xf32>
    %105 = tpu.matmul %102, %104, %cst_42 {dimension_numbers = #tpu.dot_dimension_numbers<[1], [0], [0], [1], [0, 0, 1, 1], [], []>} : vector<16x512xbf16>, vector<512x32xbf16>, vector<16x32xf32> -> vector<16x32xf32>
    %c0_43 = arith.constant 0 : index
    %c0_44 = arith.constant 0 : index
    %c0_45 = arith.constant 0 : index
    %106 = vector.load %arg8[%c0_43, %c0_44, %c0_45] : memref<2x1x32xf32, #tpu.memory_space<vmem>>, vector<1x1x32xf32>
    %107 = vector.shape_cast %106 : vector<1x1x32xf32> to vector<1x32xf32>
    %108 = vector.broadcast %107 : vector<1x32xf32> to vector<16x32xf32>
    %109 = arith.addf %105, %108 : vector<16x32xf32>
    %110 = arith.addf %10, %109 : vector<16x32xf32>
    %c0_46 = arith.constant 0 : index
    %c0_47 = arith.constant 0 : index
    %c0_48 = arith.constant 0 : index
    %111 = vector.load %arg9[%c0_46, %c0_47, %c0_48] : memref<2x1x32xf32, #tpu.memory_space<vmem>>, vector<1x1x32xf32>
    %112 = vector.shape_cast %111 : vector<1x1x32xf32> to vector<1x32xf32>
    %c0_49 = arith.constant 0 : index
    %c0_50 = arith.constant 0 : index
    %c0_51 = arith.constant 0 : index
    %113 = vector.load %arg10[%c0_49, %c0_50, %c0_51] : memref<2x1x32xf32, #tpu.memory_space<vmem>>, vector<1x1x32xf32>
    %114 = vector.shape_cast %113 : vector<1x1x32xf32> to vector<1x32xf32>
    %cst_52 = arith.constant dense<0.000000e+00> : vector<16xf32>
    %115 = vector.multi_reduction <add>, %110, %cst_52 [1] : vector<16x32xf32> to vector<16xf32>
    %116 = vector.shape_cast %115 : vector<16xf32> to vector<16x1xf32>
    %cst_53 = arith.constant 3.200000e+01 : f32
    %117 = vector.broadcast %cst_53 : f32 to vector<16x1xf32>
    %118 = arith.divf %116, %117 : vector<16x1xf32>
    %119 = vector.broadcast %118 : vector<16x1xf32> to vector<16x32xf32>
    %120 = arith.subf %110, %119 : vector<16x32xf32>
    %121 = arith.mulf %120, %120 : vector<16x32xf32>
    %cst_54 = arith.constant dense<0.000000e+00> : vector<16xf32>
    %122 = vector.multi_reduction <add>, %121, %cst_54 [1] : vector<16x32xf32> to vector<16xf32>
    %123 = vector.shape_cast %122 : vector<16xf32> to vector<16x1xf32>
    %cst_55 = arith.constant 3.200000e+01 : f32
    %124 = vector.broadcast %cst_55 : f32 to vector<16x1xf32>
    %125 = arith.divf %123, %124 : vector<16x1xf32>
    %126 = vector.broadcast %118 : vector<16x1xf32> to vector<16x32xf32>
    %127 = arith.subf %110, %126 : vector<16x32xf32>
    %cst_56 = arith.constant 9.99999974E-6 : f32
    %128 = vector.broadcast %cst_56 : f32 to vector<16x1xf32>
    %129 = arith.addf %125, %128 : vector<16x1xf32>
    %130 = math.rsqrt %129 : vector<16x1xf32>
    %131 = vector.broadcast %130 : vector<16x1xf32> to vector<16x32xf32>
    %132 = arith.mulf %127, %131 : vector<16x32xf32>
    %133 = vector.broadcast %112 : vector<1x32xf32> to vector<16x32xf32>
    %134 = arith.mulf %132, %133 : vector<16x32xf32>
    %135 = vector.broadcast %114 : vector<1x32xf32> to vector<16x32xf32>
    %136 = arith.addf %134, %135 : vector<16x32xf32>
    %137 = arith.truncf %136 : vector<16x32xf32> to vector<16x32xbf16>
    %c0_57 = arith.constant 0 : index
    %c0_58 = arith.constant 0 : index
    %c0_59 = arith.constant 0 : index
    %138 = vector.load %arg11[%c0_57, %c0_58, %c0_59] : memref<2x32x512xbf16, #tpu.memory_space<vmem>>, vector<1x32x512xbf16>
    %139 = vector.shape_cast %138 : vector<1x32x512xbf16> to vector<32x512xbf16>
    %cst_60 = arith.constant dense<0.000000e+00> : vector<16x512xf32>
    %140 = tpu.matmul %137, %139, %cst_60 {dimension_numbers = #tpu.dot_dimension_numbers<[1], [0], [0], [1], [0, 0, 1, 1], [], []>} : vector<16x32xbf16>, vector<32x512xbf16>, vector<16x512xf32> -> vector<16x512xf32>
    %c0_61 = arith.constant 0 : index
    %c0_62 = arith.constant 0 : index
    %c0_63 = arith.constant 0 : index
    %141 = vector.load %arg12[%c0_61, %c0_62, %c0_63] : memref<2x1x512xf32, #tpu.memory_space<vmem>>, vector<1x1x512xf32>
    %142 = vector.shape_cast %141 : vector<1x1x512xf32> to vector<1x512xf32>
    %143 = vector.broadcast %142 : vector<1x512xf32> to vector<16x512xf32>
    %144 = arith.addf %140, %143 : vector<16x512xf32>
    %145 = arith.truncf %144 : vector<16x512xf32> to vector<16x512xbf16>
    %c0_64 = arith.constant 0 : index
    %c0_65 = arith.constant 0 : index
    %c0_66 = arith.constant 0 : index
    %146 = vector.load %arg13[%c0_64, %c0_65, %c0_66] : memref<2x32x1024xbf16, #tpu.memory_space<vmem>>, vector<1x32x1024xbf16>
    %147 = vector.shape_cast %146 : vector<1x32x1024xbf16> to vector<32x1024xbf16>
    %cst_67 = arith.constant dense<0.000000e+00> : vector<12x1024xf32>
    %148 = tpu.matmul %6, %147, %cst_67 {dimension_numbers = #tpu.dot_dimension_numbers<[1], [0], [0], [1], [0, 0, 1, 1], [], []>} : vector<12x32xbf16>, vector<32x1024xbf16>, vector<12x1024xf32> -> vector<12x1024xf32>
    %c0_68 = arith.constant 0 : index
    %c0_69 = arith.constant 0 : index
    %c0_70 = arith.constant 0 : index
    %149 = vector.load %arg14[%c0_68, %c0_69, %c0_70] : memref<2x1x1024xf32, #tpu.memory_space<vmem>>, vector<1x1x1024xf32>
    %150 = vector.shape_cast %149 : vector<1x1x1024xf32> to vector<1x1024xf32>
    %151 = vector.broadcast %150 : vector<1x1024xf32> to vector<12x1024xf32>
    %152 = arith.addf %148, %151 : vector<12x1024xf32>
    %153 = arith.truncf %152 : vector<12x1024xf32> to vector<12x1024xbf16>
    %154 = vector.extract_strided_slice %153 {offsets = [0, 0], sizes = [12, 512], strides = [1, 1]} : vector<12x1024xbf16> to vector<12x512xbf16>
    %155 = vector.extract_strided_slice %153 {offsets = [0, 512], sizes = [12, 512], strides = [1, 1]} : vector<12x1024xbf16> to vector<12x512xbf16>
    %156 = vector.extract_strided_slice %145 {offsets = [0, 0], sizes = [16, 128], strides = [1, 1]} : vector<16x512xbf16> to vector<16x128xbf16>
    %157 = vector.extract_strided_slice %154 {offsets = [0, 0], sizes = [12, 128], strides = [1, 1]} : vector<12x512xbf16> to vector<12x128xbf16>
    %cst_71 = arith.constant dense<0.000000e+00> : vector<16x12xf32>
    %158 = tpu.matmul %156, %157, %cst_71 {dimension_numbers = #tpu.dot_dimension_numbers<[1], [1], [0], [0], [0, 0, 1, 0], [], []>} : vector<16x128xbf16>, vector<12x128xbf16>, vector<16x12xf32> -> vector<16x12xf32>
    %cst_72 = arith.constant -1.000000e+04 : f32
    %159 = vector.broadcast %cst_72 : f32 to vector<16x12xf32>
    %160 = arith.select %20, %158, %159 : vector<16x12xi1>, vector<16x12xf32>
    %cst_73 = arith.constant dense<0xFF800000> : vector<16xf32>
    %161 = vector.multi_reduction <maximumf>, %160, %cst_73 [1] : vector<16x12xf32> to vector<16xf32>
    %162 = vector.shape_cast %161 : vector<16xf32> to vector<16x1xf32>
    %163 = vector.broadcast %162 : vector<16x1xf32> to vector<16x12xf32>
    %164 = arith.subf %160, %163 : vector<16x12xf32>
    %165 = math.exp %164 : vector<16x12xf32>
    %cst_74 = arith.constant dense<0.000000e+00> : vector<16xf32>
    %166 = vector.multi_reduction <add>, %165, %cst_74 [1] : vector<16x12xf32> to vector<16xf32>
    %167 = vector.shape_cast %166 : vector<16xf32> to vector<16x1xf32>
    %168 = vector.broadcast %167 : vector<16x1xf32> to vector<16x12xf32>
    %169 = arith.divf %165, %168 : vector<16x12xf32>
    %170 = arith.truncf %169 : vector<16x12xf32> to vector<16x12xbf16>
    %171 = vector.extract_strided_slice %155 {offsets = [0, 0], sizes = [12, 128], strides = [1, 1]} : vector<12x512xbf16> to vector<12x128xbf16>
    %cst_75 = arith.constant dense<0.000000e+00> : vector<16x128xf32>
    %172 = tpu.matmul %170, %171, %cst_75 {dimension_numbers = #tpu.dot_dimension_numbers<[1], [0], [0], [1], [0, 0, 1, 1], [], []>} : vector<16x12xbf16>, vector<12x128xbf16>, vector<16x128xf32> -> vector<16x128xf32>
    %173 = vector.extract_strided_slice %145 {offsets = [0, 128], sizes = [16, 128], strides = [1, 1]} : vector<16x512xbf16> to vector<16x128xbf16>
    %174 = vector.extract_strided_slice %154 {offsets = [0, 128], sizes = [12, 128], strides = [1, 1]} : vector<12x512xbf16> to vector<12x128xbf16>
    %cst_76 = arith.constant dense<0.000000e+00> : vector<16x12xf32>
    %175 = tpu.matmul %173, %174, %cst_76 {dimension_numbers = #tpu.dot_dimension_numbers<[1], [1], [0], [0], [0, 0, 1, 0], [], []>} : vector<16x128xbf16>, vector<12x128xbf16>, vector<16x12xf32> -> vector<16x12xf32>
    %cst_77 = arith.constant -1.000000e+04 : f32
    %176 = vector.broadcast %cst_77 : f32 to vector<16x12xf32>
    %177 = arith.select %20, %175, %176 : vector<16x12xi1>, vector<16x12xf32>
    %cst_78 = arith.constant dense<0xFF800000> : vector<16xf32>
    %178 = vector.multi_reduction <maximumf>, %177, %cst_78 [1] : vector<16x12xf32> to vector<16xf32>
    %179 = vector.shape_cast %178 : vector<16xf32> to vector<16x1xf32>
    %180 = vector.broadcast %179 : vector<16x1xf32> to vector<16x12xf32>
    %181 = arith.subf %177, %180 : vector<16x12xf32>
    %182 = math.exp %181 : vector<16x12xf32>
    %cst_79 = arith.constant dense<0.000000e+00> : vector<16xf32>
    %183 = vector.multi_reduction <add>, %182, %cst_79 [1] : vector<16x12xf32> to vector<16xf32>
    %184 = vector.shape_cast %183 : vector<16xf32> to vector<16x1xf32>
    %185 = vector.broadcast %184 : vector<16x1xf32> to vector<16x12xf32>
    %186 = arith.divf %182, %185 : vector<16x12xf32>
    %187 = arith.truncf %186 : vector<16x12xf32> to vector<16x12xbf16>
    %188 = vector.extract_strided_slice %155 {offsets = [0, 128], sizes = [12, 128], strides = [1, 1]} : vector<12x512xbf16> to vector<12x128xbf16>
    %cst_80 = arith.constant dense<0.000000e+00> : vector<16x128xf32>
    %189 = tpu.matmul %187, %188, %cst_80 {dimension_numbers = #tpu.dot_dimension_numbers<[1], [0], [0], [1], [0, 0, 1, 1], [], []>} : vector<16x12xbf16>, vector<12x128xbf16>, vector<16x128xf32> -> vector<16x128xf32>
    %190 = vector.extract_strided_slice %145 {offsets = [0, 256], sizes = [16, 128], strides = [1, 1]} : vector<16x512xbf16> to vector<16x128xbf16>
    %191 = vector.extract_strided_slice %154 {offsets = [0, 256], sizes = [12, 128], strides = [1, 1]} : vector<12x512xbf16> to vector<12x128xbf16>
    %cst_81 = arith.constant dense<0.000000e+00> : vector<16x12xf32>
    %192 = tpu.matmul %190, %191, %cst_81 {dimension_numbers = #tpu.dot_dimension_numbers<[1], [1], [0], [0], [0, 0, 1, 0], [], []>} : vector<16x128xbf16>, vector<12x128xbf16>, vector<16x12xf32> -> vector<16x12xf32>
    %cst_82 = arith.constant -1.000000e+04 : f32
    %193 = vector.broadcast %cst_82 : f32 to vector<16x12xf32>
    %194 = arith.select %20, %192, %193 : vector<16x12xi1>, vector<16x12xf32>
    %cst_83 = arith.constant dense<0xFF800000> : vector<16xf32>
    %195 = vector.multi_reduction <maximumf>, %194, %cst_83 [1] : vector<16x12xf32> to vector<16xf32>
    %196 = vector.shape_cast %195 : vector<16xf32> to vector<16x1xf32>
    %197 = vector.broadcast %196 : vector<16x1xf32> to vector<16x12xf32>
    %198 = arith.subf %194, %197 : vector<16x12xf32>
    %199 = math.exp %198 : vector<16x12xf32>
    %cst_84 = arith.constant dense<0.000000e+00> : vector<16xf32>
    %200 = vector.multi_reduction <add>, %199, %cst_84 [1] : vector<16x12xf32> to vector<16xf32>
    %201 = vector.shape_cast %200 : vector<16xf32> to vector<16x1xf32>
    %202 = vector.broadcast %201 : vector<16x1xf32> to vector<16x12xf32>
    %203 = arith.divf %199, %202 : vector<16x12xf32>
    %204 = arith.truncf %203 : vector<16x12xf32> to vector<16x12xbf16>
    %205 = vector.extract_strided_slice %155 {offsets = [0, 256], sizes = [12, 128], strides = [1, 1]} : vector<12x512xbf16> to vector<12x128xbf16>
    %cst_85 = arith.constant dense<0.000000e+00> : vector<16x128xf32>
    %206 = tpu.matmul %204, %205, %cst_85 {dimension_numbers = #tpu.dot_dimension_numbers<[1], [0], [0], [1], [0, 0, 1, 1], [], []>} : vector<16x12xbf16>, vector<12x128xbf16>, vector<16x128xf32> -> vector<16x128xf32>
    %207 = vector.extract_strided_slice %145 {offsets = [0, 384], sizes = [16, 128], strides = [1, 1]} : vector<16x512xbf16> to vector<16x128xbf16>
    %208 = vector.extract_strided_slice %154 {offsets = [0, 384], sizes = [12, 128], strides = [1, 1]} : vector<12x512xbf16> to vector<12x128xbf16>
    %cst_86 = arith.constant dense<0.000000e+00> : vector<16x12xf32>
    %209 = tpu.matmul %207, %208, %cst_86 {dimension_numbers = #tpu.dot_dimension_numbers<[1], [1], [0], [0], [0, 0, 1, 0], [], []>} : vector<16x128xbf16>, vector<12x128xbf16>, vector<16x12xf32> -> vector<16x12xf32>
    %cst_87 = arith.constant -1.000000e+04 : f32
    %210 = vector.broadcast %cst_87 : f32 to vector<16x12xf32>
    %211 = arith.select %20, %209, %210 : vector<16x12xi1>, vector<16x12xf32>
    %cst_88 = arith.constant dense<0xFF800000> : vector<16xf32>
    %212 = vector.multi_reduction <maximumf>, %211, %cst_88 [1] : vector<16x12xf32> to vector<16xf32>
    %213 = vector.shape_cast %212 : vector<16xf32> to vector<16x1xf32>
    %214 = vector.broadcast %213 : vector<16x1xf32> to vector<16x12xf32>
    %215 = arith.subf %211, %214 : vector<16x12xf32>
    %216 = math.exp %215 : vector<16x12xf32>
    %cst_89 = arith.constant dense<0.000000e+00> : vector<16xf32>
    %217 = vector.multi_reduction <add>, %216, %cst_89 [1] : vector<16x12xf32> to vector<16xf32>
    %218 = vector.shape_cast %217 : vector<16xf32> to vector<16x1xf32>
    %219 = vector.broadcast %218 : vector<16x1xf32> to vector<16x12xf32>
    %220 = arith.divf %216, %219 : vector<16x12xf32>
    %221 = arith.truncf %220 : vector<16x12xf32> to vector<16x12xbf16>
    %222 = vector.extract_strided_slice %155 {offsets = [0, 384], sizes = [12, 128], strides = [1, 1]} : vector<12x512xbf16> to vector<12x128xbf16>
    %cst_90 = arith.constant dense<0.000000e+00> : vector<16x128xf32>
    %223 = tpu.matmul %221, %222, %cst_90 {dimension_numbers = #tpu.dot_dimension_numbers<[1], [0], [0], [1], [0, 0, 1, 1], [], []>} : vector<16x12xbf16>, vector<12x128xbf16>, vector<16x128xf32> -> vector<16x128xf32>
    %224 = tpu.concatenate %172, %189, %206, %223 in 1 : vector<16x128xf32>, vector<16x128xf32>, vector<16x128xf32>, vector<16x128xf32> -> vector<16x512xf32>
    %225 = arith.truncf %224 : vector<16x512xf32> to vector<16x512xbf16>
    %c0_91 = arith.constant 0 : index
    %c0_92 = arith.constant 0 : index
    %c0_93 = arith.constant 0 : index
    %226 = vector.load %arg15[%c0_91, %c0_92, %c0_93] : memref<2x512x32xbf16, #tpu.memory_space<vmem>>, vector<1x512x32xbf16>
    %227 = vector.shape_cast %226 : vector<1x512x32xbf16> to vector<512x32xbf16>
    %cst_94 = arith.constant dense<0.000000e+00> : vector<16x32xf32>
    %228 = tpu.matmul %225, %227, %cst_94 {dimension_numbers = #tpu.dot_dimension_numbers<[1], [0], [0], [1], [0, 0, 1, 1], [], []>} : vector<16x512xbf16>, vector<512x32xbf16>, vector<16x32xf32> -> vector<16x32xf32>
    %c0_95 = arith.constant 0 : index
    %c0_96 = arith.constant 0 : index
    %c0_97 = arith.constant 0 : index
    %229 = vector.load %arg16[%c0_95, %c0_96, %c0_97] : memref<2x1x32xf32, #tpu.memory_space<vmem>>, vector<1x1x32xf32>
    %230 = vector.shape_cast %229 : vector<1x1x32xf32> to vector<1x32xf32>
    %231 = vector.broadcast %230 : vector<1x32xf32> to vector<16x32xf32>
    %232 = arith.addf %228, %231 : vector<16x32xf32>
    %233 = arith.addf %136, %232 : vector<16x32xf32>
    %c0_98 = arith.constant 0 : index
    %c0_99 = arith.constant 0 : index
    %c0_100 = arith.constant 0 : index
    %234 = vector.load %arg17[%c0_98, %c0_99, %c0_100] : memref<2x1x32xf32, #tpu.memory_space<vmem>>, vector<1x1x32xf32>
    %235 = vector.shape_cast %234 : vector<1x1x32xf32> to vector<1x32xf32>
    %c0_101 = arith.constant 0 : index
    %c0_102 = arith.constant 0 : index
    %c0_103 = arith.constant 0 : index
    %236 = vector.load %arg18[%c0_101, %c0_102, %c0_103] : memref<2x1x32xf32, #tpu.memory_space<vmem>>, vector<1x1x32xf32>
    %237 = vector.shape_cast %236 : vector<1x1x32xf32> to vector<1x32xf32>
    %cst_104 = arith.constant dense<0.000000e+00> : vector<16xf32>
    %238 = vector.multi_reduction <add>, %233, %cst_104 [1] : vector<16x32xf32> to vector<16xf32>
    %239 = vector.shape_cast %238 : vector<16xf32> to vector<16x1xf32>
    %cst_105 = arith.constant 3.200000e+01 : f32
    %240 = vector.broadcast %cst_105 : f32 to vector<16x1xf32>
    %241 = arith.divf %239, %240 : vector<16x1xf32>
    %242 = vector.broadcast %241 : vector<16x1xf32> to vector<16x32xf32>
    %243 = arith.subf %233, %242 : vector<16x32xf32>
    %244 = arith.mulf %243, %243 : vector<16x32xf32>
    %cst_106 = arith.constant dense<0.000000e+00> : vector<16xf32>
    %245 = vector.multi_reduction <add>, %244, %cst_106 [1] : vector<16x32xf32> to vector<16xf32>
    %246 = vector.shape_cast %245 : vector<16xf32> to vector<16x1xf32>
    %cst_107 = arith.constant 3.200000e+01 : f32
    %247 = vector.broadcast %cst_107 : f32 to vector<16x1xf32>
    %248 = arith.divf %246, %247 : vector<16x1xf32>
    %249 = vector.broadcast %241 : vector<16x1xf32> to vector<16x32xf32>
    %250 = arith.subf %233, %249 : vector<16x32xf32>
    %cst_108 = arith.constant 9.99999974E-6 : f32
    %251 = vector.broadcast %cst_108 : f32 to vector<16x1xf32>
    %252 = arith.addf %248, %251 : vector<16x1xf32>
    %253 = math.rsqrt %252 : vector<16x1xf32>
    %254 = vector.broadcast %253 : vector<16x1xf32> to vector<16x32xf32>
    %255 = arith.mulf %250, %254 : vector<16x32xf32>
    %256 = vector.broadcast %235 : vector<1x32xf32> to vector<16x32xf32>
    %257 = arith.mulf %255, %256 : vector<16x32xf32>
    %258 = vector.broadcast %237 : vector<1x32xf32> to vector<16x32xf32>
    %259 = arith.addf %257, %258 : vector<16x32xf32>
    %260 = vector.broadcast %3 : vector<16x1xf32> to vector<16x32xf32>
    %261 = arith.mulf %259, %260 : vector<16x32xf32>
    %262 = arith.truncf %261 : vector<16x32xf32> to vector<16x32xbf16>
    %c0_109 = arith.constant 0 : index
    %c0_110 = arith.constant 0 : index
    %c0_111 = arith.constant 0 : index
    %263 = vector.load %arg20[%c0_109, %c0_110, %c0_111] : memref<2x1x64xf32, #tpu.memory_space<vmem>>, vector<1x1x64xf32>
    %264 = vector.shape_cast %263 : vector<1x1x64xf32> to vector<1x64xf32>
    %c0_112 = arith.constant 0 : index
    %c2 = arith.constant 2 : index
    %c0_113 = arith.constant 0 : index
    %c0_114 = arith.constant 0 : index
    %265 = vector.load %arg19[%c0_112, %c2, %c0_113, %c0_114] : memref<2x3x32x64xbf16, #tpu.memory_space<vmem>>, vector<1x1x32x64xbf16>
    %266 = vector.shape_cast %265 : vector<1x1x32x64xbf16> to vector<32x64xbf16>
    %cst_115 = arith.constant dense<0.000000e+00> : vector<16x64xf32>
    %267 = tpu.matmul %262, %266, %cst_115 {dimension_numbers = #tpu.dot_dimension_numbers<[1], [0], [0], [1], [0, 0, 1, 1], [], []>} : vector<16x32xbf16>, vector<32x64xbf16>, vector<16x64xf32> -> vector<16x64xf32>
    %268 = vector.broadcast %264 : vector<1x64xf32> to vector<16x64xf32>
    %269 = arith.addf %267, %268 : vector<16x64xf32>
    %cst_116 = arith.constant 0.000000e+00 : bf16
    %270 = vector.broadcast %cst_116 : bf16 to vector<2x32xbf16>
    %271 = tpu.concatenate %270, %262 in 0 : vector<2x32xbf16>, vector<16x32xbf16> -> vector<18x32xbf16>
    %272 = vector.extract_strided_slice %271 {offsets = [0, 0], sizes = [16, 32], strides = [1, 1]} : vector<18x32xbf16> to vector<16x32xbf16>
    %c0_117 = arith.constant 0 : index
    %c0_118 = arith.constant 0 : index
    %c0_119 = arith.constant 0 : index
    %c0_120 = arith.constant 0 : index
    %273 = vector.load %arg19[%c0_117, %c0_118, %c0_119, %c0_120] : memref<2x3x32x64xbf16, #tpu.memory_space<vmem>>, vector<1x1x32x64xbf16>
    %274 = vector.shape_cast %273 : vector<1x1x32x64xbf16> to vector<32x64xbf16>
    %cst_121 = arith.constant dense<0.000000e+00> : vector<16x64xf32>
    %275 = tpu.matmul %272, %274, %cst_121 {dimension_numbers = #tpu.dot_dimension_numbers<[1], [0], [0], [1], [0, 0, 1, 1], [], []>} : vector<16x32xbf16>, vector<32x64xbf16>, vector<16x64xf32> -> vector<16x64xf32>
    %276 = arith.addf %269, %275 : vector<16x64xf32>
    %277 = vector.extract_strided_slice %271 {offsets = [1, 0], sizes = [16, 32], strides = [1, 1]} : vector<18x32xbf16> to vector<16x32xbf16>
    %c0_122 = arith.constant 0 : index
    %c1 = arith.constant 1 : index
    %c0_123 = arith.constant 0 : index
    %c0_124 = arith.constant 0 : index
    %278 = vector.load %arg19[%c0_122, %c1, %c0_123, %c0_124] : memref<2x3x32x64xbf16, #tpu.memory_space<vmem>>, vector<1x1x32x64xbf16>
    %279 = vector.shape_cast %278 : vector<1x1x32x64xbf16> to vector<32x64xbf16>
    %cst_125 = arith.constant dense<0.000000e+00> : vector<16x64xf32>
    %280 = tpu.matmul %277, %279, %cst_125 {dimension_numbers = #tpu.dot_dimension_numbers<[1], [0], [0], [1], [0, 0, 1, 1], [], []>} : vector<16x32xbf16>, vector<32x64xbf16>, vector<16x64xf32> -> vector<16x64xf32>
    %281 = arith.addf %276, %280 : vector<16x64xf32>
    %cst_126 = arith.constant 0.000000e+00 : f32
    %282 = vector.broadcast %cst_126 : f32 to vector<16x64xf32>
    %283 = arith.maximumf %281, %282 : vector<16x64xf32>
    %284 = vector.broadcast %3 : vector<16x1xf32> to vector<16x64xf32>
    %285 = arith.mulf %283, %284 : vector<16x64xf32>
    %286 = arith.truncf %285 : vector<16x64xf32> to vector<16x64xbf16>
    %c0_127 = arith.constant 0 : index
    %c0_128 = arith.constant 0 : index
    %c0_129 = arith.constant 0 : index
    %287 = vector.load %arg22[%c0_127, %c0_128, %c0_129] : memref<2x1x32xf32, #tpu.memory_space<vmem>>, vector<1x1x32xf32>
    %288 = vector.shape_cast %287 : vector<1x1x32xf32> to vector<1x32xf32>
    %c0_130 = arith.constant 0 : index
    %c2_131 = arith.constant 2 : index
    %c0_132 = arith.constant 0 : index
    %c0_133 = arith.constant 0 : index
    %289 = vector.load %arg21[%c0_130, %c2_131, %c0_132, %c0_133] : memref<2x3x64x32xbf16, #tpu.memory_space<vmem>>, vector<1x1x64x32xbf16>
    %290 = vector.shape_cast %289 : vector<1x1x64x32xbf16> to vector<64x32xbf16>
    %cst_134 = arith.constant dense<0.000000e+00> : vector<16x32xf32>
    %291 = tpu.matmul %286, %290, %cst_134 {dimension_numbers = #tpu.dot_dimension_numbers<[1], [0], [0], [1], [0, 0, 1, 1], [], []>} : vector<16x64xbf16>, vector<64x32xbf16>, vector<16x32xf32> -> vector<16x32xf32>
    %292 = vector.broadcast %288 : vector<1x32xf32> to vector<16x32xf32>
    %293 = arith.addf %291, %292 : vector<16x32xf32>
    %cst_135 = arith.constant 0.000000e+00 : bf16
    %294 = vector.broadcast %cst_135 : bf16 to vector<2x64xbf16>
    %295 = tpu.concatenate %294, %286 in 0 : vector<2x64xbf16>, vector<16x64xbf16> -> vector<18x64xbf16>
    %296 = vector.extract_strided_slice %295 {offsets = [0, 0], sizes = [16, 64], strides = [1, 1]} : vector<18x64xbf16> to vector<16x64xbf16>
    %c0_136 = arith.constant 0 : index
    %c0_137 = arith.constant 0 : index
    %c0_138 = arith.constant 0 : index
    %c0_139 = arith.constant 0 : index
    %297 = vector.load %arg21[%c0_136, %c0_137, %c0_138, %c0_139] : memref<2x3x64x32xbf16, #tpu.memory_space<vmem>>, vector<1x1x64x32xbf16>
    %298 = vector.shape_cast %297 : vector<1x1x64x32xbf16> to vector<64x32xbf16>
    %cst_140 = arith.constant dense<0.000000e+00> : vector<16x32xf32>
    %299 = tpu.matmul %296, %298, %cst_140 {dimension_numbers = #tpu.dot_dimension_numbers<[1], [0], [0], [1], [0, 0, 1, 1], [], []>} : vector<16x64xbf16>, vector<64x32xbf16>, vector<16x32xf32> -> vector<16x32xf32>
    %300 = arith.addf %293, %299 : vector<16x32xf32>
    %301 = vector.extract_strided_slice %295 {offsets = [1, 0], sizes = [16, 64], strides = [1, 1]} : vector<18x64xbf16> to vector<16x64xbf16>
    %c0_141 = arith.constant 0 : index
    %c1_142 = arith.constant 1 : index
    %c0_143 = arith.constant 0 : index
    %c0_144 = arith.constant 0 : index
    %302 = vector.load %arg21[%c0_141, %c1_142, %c0_143, %c0_144] : memref<2x3x64x32xbf16, #tpu.memory_space<vmem>>, vector<1x1x64x32xbf16>
    %303 = vector.shape_cast %302 : vector<1x1x64x32xbf16> to vector<64x32xbf16>
    %cst_145 = arith.constant dense<0.000000e+00> : vector<16x32xf32>
    %304 = tpu.matmul %301, %303, %cst_145 {dimension_numbers = #tpu.dot_dimension_numbers<[1], [0], [0], [1], [0, 0, 1, 1], [], []>} : vector<16x64xbf16>, vector<64x32xbf16>, vector<16x32xf32> -> vector<16x32xf32>
    %305 = arith.addf %300, %304 : vector<16x32xf32>
    %306 = vector.broadcast %3 : vector<16x1xf32> to vector<16x32xf32>
    %307 = arith.mulf %305, %306 : vector<16x32xf32>
    %308 = arith.addf %259, %307 : vector<16x32xf32>
    %c0_146 = arith.constant 0 : index
    %c0_147 = arith.constant 0 : index
    %c0_148 = arith.constant 0 : index
    %309 = vector.load %arg23[%c0_146, %c0_147, %c0_148] : memref<2x1x32xf32, #tpu.memory_space<vmem>>, vector<1x1x32xf32>
    %310 = vector.shape_cast %309 : vector<1x1x32xf32> to vector<1x32xf32>
    %c0_149 = arith.constant 0 : index
    %c0_150 = arith.constant 0 : index
    %c0_151 = arith.constant 0 : index
    %311 = vector.load %arg24[%c0_149, %c0_150, %c0_151] : memref<2x1x32xf32, #tpu.memory_space<vmem>>, vector<1x1x32xf32>
    %312 = vector.shape_cast %311 : vector<1x1x32xf32> to vector<1x32xf32>
    %cst_152 = arith.constant dense<0.000000e+00> : vector<16xf32>
    %313 = vector.multi_reduction <add>, %308, %cst_152 [1] : vector<16x32xf32> to vector<16xf32>
    %314 = vector.shape_cast %313 : vector<16xf32> to vector<16x1xf32>
    %cst_153 = arith.constant 3.200000e+01 : f32
    %315 = vector.broadcast %cst_153 : f32 to vector<16x1xf32>
    %316 = arith.divf %314, %315 : vector<16x1xf32>
    %317 = vector.broadcast %316 : vector<16x1xf32> to vector<16x32xf32>
    %318 = arith.subf %308, %317 : vector<16x32xf32>
    %319 = arith.mulf %318, %318 : vector<16x32xf32>
    %cst_154 = arith.constant dense<0.000000e+00> : vector<16xf32>
    %320 = vector.multi_reduction <add>, %319, %cst_154 [1] : vector<16x32xf32> to vector<16xf32>
    %321 = vector.shape_cast %320 : vector<16xf32> to vector<16x1xf32>
    %cst_155 = arith.constant 3.200000e+01 : f32
    %322 = vector.broadcast %cst_155 : f32 to vector<16x1xf32>
    %323 = arith.divf %321, %322 : vector<16x1xf32>
    %324 = vector.broadcast %316 : vector<16x1xf32> to vector<16x32xf32>
    %325 = arith.subf %308, %324 : vector<16x32xf32>
    %cst_156 = arith.constant 9.99999974E-6 : f32
    %326 = vector.broadcast %cst_156 : f32 to vector<16x1xf32>
    %327 = arith.addf %323, %326 : vector<16x1xf32>
    %328 = math.rsqrt %327 : vector<16x1xf32>
    %329 = vector.broadcast %328 : vector<16x1xf32> to vector<16x32xf32>
    %330 = arith.mulf %325, %329 : vector<16x32xf32>
    %331 = vector.broadcast %310 : vector<1x32xf32> to vector<16x32xf32>
    %332 = arith.mulf %330, %331 : vector<16x32xf32>
    %333 = vector.broadcast %312 : vector<1x32xf32> to vector<16x32xf32>
    %334 = arith.addf %332, %333 : vector<16x32xf32>
    %335 = arith.truncf %334 : vector<16x32xf32> to vector<16x32xbf16>
    %c1_157 = arith.constant 1 : index
    %c0_158 = arith.constant 0 : index
    %c0_159 = arith.constant 0 : index
    %336 = vector.load %arg5[%c1_157, %c0_158, %c0_159] : memref<2x32x1536xbf16, #tpu.memory_space<vmem>>, vector<1x32x1536xbf16>
    %337 = vector.shape_cast %336 : vector<1x32x1536xbf16> to vector<32x1536xbf16>
    %cst_160 = arith.constant dense<0.000000e+00> : vector<16x1536xf32>
    %338 = tpu.matmul %335, %337, %cst_160 {dimension_numbers = #tpu.dot_dimension_numbers<[1], [0], [0], [1], [0, 0, 1, 1], [], []>} : vector<16x32xbf16>, vector<32x1536xbf16>, vector<16x1536xf32> -> vector<16x1536xf32>
    %c1_161 = arith.constant 1 : index
    %c0_162 = arith.constant 0 : index
    %c0_163 = arith.constant 0 : index
    %339 = vector.load %arg6[%c1_161, %c0_162, %c0_163] : memref<2x1x1536xf32, #tpu.memory_space<vmem>>, vector<1x1x1536xf32>
    %340 = vector.shape_cast %339 : vector<1x1x1536xf32> to vector<1x1536xf32>
    %341 = vector.broadcast %340 : vector<1x1536xf32> to vector<16x1536xf32>
    %342 = arith.addf %338, %341 : vector<16x1536xf32>
    %343 = arith.truncf %342 : vector<16x1536xf32> to vector<16x1536xbf16>
    %344 = vector.extract_strided_slice %343 {offsets = [0, 0], sizes = [16, 512], strides = [1, 1]} : vector<16x1536xbf16> to vector<16x512xbf16>
    %345 = vector.extract_strided_slice %343 {offsets = [0, 512], sizes = [16, 512], strides = [1, 1]} : vector<16x1536xbf16> to vector<16x512xbf16>
    %346 = vector.extract_strided_slice %343 {offsets = [0, 1024], sizes = [16, 512], strides = [1, 1]} : vector<16x1536xbf16> to vector<16x512xbf16>
    %347 = vector.extract_strided_slice %344 {offsets = [0, 0], sizes = [16, 128], strides = [1, 1]} : vector<16x512xbf16> to vector<16x128xbf16>
    %348 = vector.extract_strided_slice %345 {offsets = [0, 0], sizes = [16, 128], strides = [1, 1]} : vector<16x512xbf16> to vector<16x128xbf16>
    %cst_164 = arith.constant dense<0.000000e+00> : vector<16x16xf32>
    %349 = tpu.matmul %347, %348, %cst_164 {dimension_numbers = #tpu.dot_dimension_numbers<[1], [1], [0], [0], [0, 0, 1, 0], [], []>} : vector<16x128xbf16>, vector<16x128xbf16>, vector<16x16xf32> -> vector<16x16xf32>
    %cst_165 = arith.constant -1.000000e+04 : f32
    %350 = vector.broadcast %cst_165 : f32 to vector<16x16xf32>
    %351 = arith.select %13, %349, %350 : vector<16x16xi1>, vector<16x16xf32>
    %cst_166 = arith.constant dense<0xFF800000> : vector<16xf32>
    %352 = vector.multi_reduction <maximumf>, %351, %cst_166 [1] : vector<16x16xf32> to vector<16xf32>
    %353 = vector.shape_cast %352 : vector<16xf32> to vector<16x1xf32>
    %354 = vector.broadcast %353 : vector<16x1xf32> to vector<16x16xf32>
    %355 = arith.subf %351, %354 : vector<16x16xf32>
    %356 = math.exp %355 : vector<16x16xf32>
    %cst_167 = arith.constant dense<0.000000e+00> : vector<16xf32>
    %357 = vector.multi_reduction <add>, %356, %cst_167 [1] : vector<16x16xf32> to vector<16xf32>
    %358 = vector.shape_cast %357 : vector<16xf32> to vector<16x1xf32>
    %359 = vector.broadcast %358 : vector<16x1xf32> to vector<16x16xf32>
    %360 = arith.divf %356, %359 : vector<16x16xf32>
    %361 = arith.truncf %360 : vector<16x16xf32> to vector<16x16xbf16>
    %362 = vector.extract_strided_slice %346 {offsets = [0, 0], sizes = [16, 128], strides = [1, 1]} : vector<16x512xbf16> to vector<16x128xbf16>
    %cst_168 = arith.constant dense<0.000000e+00> : vector<16x128xf32>
    %363 = tpu.matmul %361, %362, %cst_168 {dimension_numbers = #tpu.dot_dimension_numbers<[1], [0], [0], [1], [0, 0, 1, 1], [], []>} : vector<16x16xbf16>, vector<16x128xbf16>, vector<16x128xf32> -> vector<16x128xf32>
    %364 = vector.extract_strided_slice %344 {offsets = [0, 128], sizes = [16, 128], strides = [1, 1]} : vector<16x512xbf16> to vector<16x128xbf16>
    %365 = vector.extract_strided_slice %345 {offsets = [0, 128], sizes = [16, 128], strides = [1, 1]} : vector<16x512xbf16> to vector<16x128xbf16>
    %cst_169 = arith.constant dense<0.000000e+00> : vector<16x16xf32>
    %366 = tpu.matmul %364, %365, %cst_169 {dimension_numbers = #tpu.dot_dimension_numbers<[1], [1], [0], [0], [0, 0, 1, 0], [], []>} : vector<16x128xbf16>, vector<16x128xbf16>, vector<16x16xf32> -> vector<16x16xf32>
    %cst_170 = arith.constant -1.000000e+04 : f32
    %367 = vector.broadcast %cst_170 : f32 to vector<16x16xf32>
    %368 = arith.select %13, %366, %367 : vector<16x16xi1>, vector<16x16xf32>
    %cst_171 = arith.constant dense<0xFF800000> : vector<16xf32>
    %369 = vector.multi_reduction <maximumf>, %368, %cst_171 [1] : vector<16x16xf32> to vector<16xf32>
    %370 = vector.shape_cast %369 : vector<16xf32> to vector<16x1xf32>
    %371 = vector.broadcast %370 : vector<16x1xf32> to vector<16x16xf32>
    %372 = arith.subf %368, %371 : vector<16x16xf32>
    %373 = math.exp %372 : vector<16x16xf32>
    %cst_172 = arith.constant dense<0.000000e+00> : vector<16xf32>
    %374 = vector.multi_reduction <add>, %373, %cst_172 [1] : vector<16x16xf32> to vector<16xf32>
    %375 = vector.shape_cast %374 : vector<16xf32> to vector<16x1xf32>
    %376 = vector.broadcast %375 : vector<16x1xf32> to vector<16x16xf32>
    %377 = arith.divf %373, %376 : vector<16x16xf32>
    %378 = arith.truncf %377 : vector<16x16xf32> to vector<16x16xbf16>
    %379 = vector.extract_strided_slice %346 {offsets = [0, 128], sizes = [16, 128], strides = [1, 1]} : vector<16x512xbf16> to vector<16x128xbf16>
    %cst_173 = arith.constant dense<0.000000e+00> : vector<16x128xf32>
    %380 = tpu.matmul %378, %379, %cst_173 {dimension_numbers = #tpu.dot_dimension_numbers<[1], [0], [0], [1], [0, 0, 1, 1], [], []>} : vector<16x16xbf16>, vector<16x128xbf16>, vector<16x128xf32> -> vector<16x128xf32>
    %381 = vector.extract_strided_slice %344 {offsets = [0, 256], sizes = [16, 128], strides = [1, 1]} : vector<16x512xbf16> to vector<16x128xbf16>
    %382 = vector.extract_strided_slice %345 {offsets = [0, 256], sizes = [16, 128], strides = [1, 1]} : vector<16x512xbf16> to vector<16x128xbf16>
    %cst_174 = arith.constant dense<0.000000e+00> : vector<16x16xf32>
    %383 = tpu.matmul %381, %382, %cst_174 {dimension_numbers = #tpu.dot_dimension_numbers<[1], [1], [0], [0], [0, 0, 1, 0], [], []>} : vector<16x128xbf16>, vector<16x128xbf16>, vector<16x16xf32> -> vector<16x16xf32>
    %cst_175 = arith.constant -1.000000e+04 : f32
    %384 = vector.broadcast %cst_175 : f32 to vector<16x16xf32>
    %385 = arith.select %13, %383, %384 : vector<16x16xi1>, vector<16x16xf32>
    %cst_176 = arith.constant dense<0xFF800000> : vector<16xf32>
    %386 = vector.multi_reduction <maximumf>, %385, %cst_176 [1] : vector<16x16xf32> to vector<16xf32>
    %387 = vector.shape_cast %386 : vector<16xf32> to vector<16x1xf32>
    %388 = vector.broadcast %387 : vector<16x1xf32> to vector<16x16xf32>
    %389 = arith.subf %385, %388 : vector<16x16xf32>
    %390 = math.exp %389 : vector<16x16xf32>
    %cst_177 = arith.constant dense<0.000000e+00> : vector<16xf32>
    %391 = vector.multi_reduction <add>, %390, %cst_177 [1] : vector<16x16xf32> to vector<16xf32>
    %392 = vector.shape_cast %391 : vector<16xf32> to vector<16x1xf32>
    %393 = vector.broadcast %392 : vector<16x1xf32> to vector<16x16xf32>
    %394 = arith.divf %390, %393 : vector<16x16xf32>
    %395 = arith.truncf %394 : vector<16x16xf32> to vector<16x16xbf16>
    %396 = vector.extract_strided_slice %346 {offsets = [0, 256], sizes = [16, 128], strides = [1, 1]} : vector<16x512xbf16> to vector<16x128xbf16>
    %cst_178 = arith.constant dense<0.000000e+00> : vector<16x128xf32>
    %397 = tpu.matmul %395, %396, %cst_178 {dimension_numbers = #tpu.dot_dimension_numbers<[1], [0], [0], [1], [0, 0, 1, 1], [], []>} : vector<16x16xbf16>, vector<16x128xbf16>, vector<16x128xf32> -> vector<16x128xf32>
    %398 = vector.extract_strided_slice %344 {offsets = [0, 384], sizes = [16, 128], strides = [1, 1]} : vector<16x512xbf16> to vector<16x128xbf16>
    %399 = vector.extract_strided_slice %345 {offsets = [0, 384], sizes = [16, 128], strides = [1, 1]} : vector<16x512xbf16> to vector<16x128xbf16>
    %cst_179 = arith.constant dense<0.000000e+00> : vector<16x16xf32>
    %400 = tpu.matmul %398, %399, %cst_179 {dimension_numbers = #tpu.dot_dimension_numbers<[1], [1], [0], [0], [0, 0, 1, 0], [], []>} : vector<16x128xbf16>, vector<16x128xbf16>, vector<16x16xf32> -> vector<16x16xf32>
    %cst_180 = arith.constant -1.000000e+04 : f32
    %401 = vector.broadcast %cst_180 : f32 to vector<16x16xf32>
    %402 = arith.select %13, %400, %401 : vector<16x16xi1>, vector<16x16xf32>
    %cst_181 = arith.constant dense<0xFF800000> : vector<16xf32>
    %403 = vector.multi_reduction <maximumf>, %402, %cst_181 [1] : vector<16x16xf32> to vector<16xf32>
    %404 = vector.shape_cast %403 : vector<16xf32> to vector<16x1xf32>
    %405 = vector.broadcast %404 : vector<16x1xf32> to vector<16x16xf32>
    %406 = arith.subf %402, %405 : vector<16x16xf32>
    %407 = math.exp %406 : vector<16x16xf32>
    %cst_182 = arith.constant dense<0.000000e+00> : vector<16xf32>
    %408 = vector.multi_reduction <add>, %407, %cst_182 [1] : vector<16x16xf32> to vector<16xf32>
    %409 = vector.shape_cast %408 : vector<16xf32> to vector<16x1xf32>
    %410 = vector.broadcast %409 : vector<16x1xf32> to vector<16x16xf32>
    %411 = arith.divf %407, %410 : vector<16x16xf32>
    %412 = arith.truncf %411 : vector<16x16xf32> to vector<16x16xbf16>
    %413 = vector.extract_strided_slice %346 {offsets = [0, 384], sizes = [16, 128], strides = [1, 1]} : vector<16x512xbf16> to vector<16x128xbf16>
    %cst_183 = arith.constant dense<0.000000e+00> : vector<16x128xf32>
    %414 = tpu.matmul %412, %413, %cst_183 {dimension_numbers = #tpu.dot_dimension_numbers<[1], [0], [0], [1], [0, 0, 1, 1], [], []>} : vector<16x16xbf16>, vector<16x128xbf16>, vector<16x128xf32> -> vector<16x128xf32>
    %415 = tpu.concatenate %363, %380, %397, %414 in 1 : vector<16x128xf32>, vector<16x128xf32>, vector<16x128xf32>, vector<16x128xf32> -> vector<16x512xf32>
    %416 = arith.truncf %415 : vector<16x512xf32> to vector<16x512xbf16>
    %c1_184 = arith.constant 1 : index
    %c0_185 = arith.constant 0 : index
    %c0_186 = arith.constant 0 : index
    %417 = vector.load %arg7[%c1_184, %c0_185, %c0_186] : memref<2x512x32xbf16, #tpu.memory_space<vmem>>, vector<1x512x32xbf16>
    %418 = vector.shape_cast %417 : vector<1x512x32xbf16> to vector<512x32xbf16>
    %cst_187 = arith.constant dense<0.000000e+00> : vector<16x32xf32>
    %419 = tpu.matmul %416, %418, %cst_187 {dimension_numbers = #tpu.dot_dimension_numbers<[1], [0], [0], [1], [0, 0, 1, 1], [], []>} : vector<16x512xbf16>, vector<512x32xbf16>, vector<16x32xf32> -> vector<16x32xf32>
    %c1_188 = arith.constant 1 : index
    %c0_189 = arith.constant 0 : index
    %c0_190 = arith.constant 0 : index
    %420 = vector.load %arg8[%c1_188, %c0_189, %c0_190] : memref<2x1x32xf32, #tpu.memory_space<vmem>>, vector<1x1x32xf32>
    %421 = vector.shape_cast %420 : vector<1x1x32xf32> to vector<1x32xf32>
    %422 = vector.broadcast %421 : vector<1x32xf32> to vector<16x32xf32>
    %423 = arith.addf %419, %422 : vector<16x32xf32>
    %424 = arith.addf %334, %423 : vector<16x32xf32>
    %c1_191 = arith.constant 1 : index
    %c0_192 = arith.constant 0 : index
    %c0_193 = arith.constant 0 : index
    %425 = vector.load %arg9[%c1_191, %c0_192, %c0_193] : memref<2x1x32xf32, #tpu.memory_space<vmem>>, vector<1x1x32xf32>
    %426 = vector.shape_cast %425 : vector<1x1x32xf32> to vector<1x32xf32>
    %c1_194 = arith.constant 1 : index
    %c0_195 = arith.constant 0 : index
    %c0_196 = arith.constant 0 : index
    %427 = vector.load %arg10[%c1_194, %c0_195, %c0_196] : memref<2x1x32xf32, #tpu.memory_space<vmem>>, vector<1x1x32xf32>
    %428 = vector.shape_cast %427 : vector<1x1x32xf32> to vector<1x32xf32>
    %cst_197 = arith.constant dense<0.000000e+00> : vector<16xf32>
    %429 = vector.multi_reduction <add>, %424, %cst_197 [1] : vector<16x32xf32> to vector<16xf32>
    %430 = vector.shape_cast %429 : vector<16xf32> to vector<16x1xf32>
    %cst_198 = arith.constant 3.200000e+01 : f32
    %431 = vector.broadcast %cst_198 : f32 to vector<16x1xf32>
    %432 = arith.divf %430, %431 : vector<16x1xf32>
    %433 = vector.broadcast %432 : vector<16x1xf32> to vector<16x32xf32>
    %434 = arith.subf %424, %433 : vector<16x32xf32>
    %435 = arith.mulf %434, %434 : vector<16x32xf32>
    %cst_199 = arith.constant dense<0.000000e+00> : vector<16xf32>
    %436 = vector.multi_reduction <add>, %435, %cst_199 [1] : vector<16x32xf32> to vector<16xf32>
    %437 = vector.shape_cast %436 : vector<16xf32> to vector<16x1xf32>
    %cst_200 = arith.constant 3.200000e+01 : f32
    %438 = vector.broadcast %cst_200 : f32 to vector<16x1xf32>
    %439 = arith.divf %437, %438 : vector<16x1xf32>
    %440 = vector.broadcast %432 : vector<16x1xf32> to vector<16x32xf32>
    %441 = arith.subf %424, %440 : vector<16x32xf32>
    %cst_201 = arith.constant 9.99999974E-6 : f32
    %442 = vector.broadcast %cst_201 : f32 to vector<16x1xf32>
    %443 = arith.addf %439, %442 : vector<16x1xf32>
    %444 = math.rsqrt %443 : vector<16x1xf32>
    %445 = vector.broadcast %444 : vector<16x1xf32> to vector<16x32xf32>
    %446 = arith.mulf %441, %445 : vector<16x32xf32>
    %447 = vector.broadcast %426 : vector<1x32xf32> to vector<16x32xf32>
    %448 = arith.mulf %446, %447 : vector<16x32xf32>
    %449 = vector.broadcast %428 : vector<1x32xf32> to vector<16x32xf32>
    %450 = arith.addf %448, %449 : vector<16x32xf32>
    %451 = arith.truncf %450 : vector<16x32xf32> to vector<16x32xbf16>
    %c1_202 = arith.constant 1 : index
    %c0_203 = arith.constant 0 : index
    %c0_204 = arith.constant 0 : index
    %452 = vector.load %arg11[%c1_202, %c0_203, %c0_204] : memref<2x32x512xbf16, #tpu.memory_space<vmem>>, vector<1x32x512xbf16>
    %453 = vector.shape_cast %452 : vector<1x32x512xbf16> to vector<32x512xbf16>
    %cst_205 = arith.constant dense<0.000000e+00> : vector<16x512xf32>
    %454 = tpu.matmul %451, %453, %cst_205 {dimension_numbers = #tpu.dot_dimension_numbers<[1], [0], [0], [1], [0, 0, 1, 1], [], []>} : vector<16x32xbf16>, vector<32x512xbf16>, vector<16x512xf32> -> vector<16x512xf32>
    %c1_206 = arith.constant 1 : index
    %c0_207 = arith.constant 0 : index
    %c0_208 = arith.constant 0 : index
    %455 = vector.load %arg12[%c1_206, %c0_207, %c0_208] : memref<2x1x512xf32, #tpu.memory_space<vmem>>, vector<1x1x512xf32>
    %456 = vector.shape_cast %455 : vector<1x1x512xf32> to vector<1x512xf32>
    %457 = vector.broadcast %456 : vector<1x512xf32> to vector<16x512xf32>
    %458 = arith.addf %454, %457 : vector<16x512xf32>
    %459 = arith.truncf %458 : vector<16x512xf32> to vector<16x512xbf16>
    %c1_209 = arith.constant 1 : index
    %c0_210 = arith.constant 0 : index
    %c0_211 = arith.constant 0 : index
    %460 = vector.load %arg13[%c1_209, %c0_210, %c0_211] : memref<2x32x1024xbf16, #tpu.memory_space<vmem>>, vector<1x32x1024xbf16>
    %461 = vector.shape_cast %460 : vector<1x32x1024xbf16> to vector<32x1024xbf16>
    %cst_212 = arith.constant dense<0.000000e+00> : vector<12x1024xf32>
    %462 = tpu.matmul %6, %461, %cst_212 {dimension_numbers = #tpu.dot_dimension_numbers<[1], [0], [0], [1], [0, 0, 1, 1], [], []>} : vector<12x32xbf16>, vector<32x1024xbf16>, vector<12x1024xf32> -> vector<12x1024xf32>
    %c1_213 = arith.constant 1 : index
    %c0_214 = arith.constant 0 : index
    %c0_215 = arith.constant 0 : index
    %463 = vector.load %arg14[%c1_213, %c0_214, %c0_215] : memref<2x1x1024xf32, #tpu.memory_space<vmem>>, vector<1x1x1024xf32>
    %464 = vector.shape_cast %463 : vector<1x1x1024xf32> to vector<1x1024xf32>
    %465 = vector.broadcast %464 : vector<1x1024xf32> to vector<12x1024xf32>
    %466 = arith.addf %462, %465 : vector<12x1024xf32>
    %467 = arith.truncf %466 : vector<12x1024xf32> to vector<12x1024xbf16>
    %468 = vector.extract_strided_slice %467 {offsets = [0, 0], sizes = [12, 512], strides = [1, 1]} : vector<12x1024xbf16> to vector<12x512xbf16>
    %469 = vector.extract_strided_slice %467 {offsets = [0, 512], sizes = [12, 512], strides = [1, 1]} : vector<12x1024xbf16> to vector<12x512xbf16>
    %470 = vector.extract_strided_slice %459 {offsets = [0, 0], sizes = [16, 128], strides = [1, 1]} : vector<16x512xbf16> to vector<16x128xbf16>
    %471 = vector.extract_strided_slice %468 {offsets = [0, 0], sizes = [12, 128], strides = [1, 1]} : vector<12x512xbf16> to vector<12x128xbf16>
    %cst_216 = arith.constant dense<0.000000e+00> : vector<16x12xf32>
    %472 = tpu.matmul %470, %471, %cst_216 {dimension_numbers = #tpu.dot_dimension_numbers<[1], [1], [0], [0], [0, 0, 1, 0], [], []>} : vector<16x128xbf16>, vector<12x128xbf16>, vector<16x12xf32> -> vector<16x12xf32>
    %cst_217 = arith.constant -1.000000e+04 : f32
    %473 = vector.broadcast %cst_217 : f32 to vector<16x12xf32>
    %474 = arith.select %20, %472, %473 : vector<16x12xi1>, vector<16x12xf32>
    %cst_218 = arith.constant dense<0xFF800000> : vector<16xf32>
    %475 = vector.multi_reduction <maximumf>, %474, %cst_218 [1] : vector<16x12xf32> to vector<16xf32>
    %476 = vector.shape_cast %475 : vector<16xf32> to vector<16x1xf32>
    %477 = vector.broadcast %476 : vector<16x1xf32> to vector<16x12xf32>
    %478 = arith.subf %474, %477 : vector<16x12xf32>
    %479 = math.exp %478 : vector<16x12xf32>
    %cst_219 = arith.constant dense<0.000000e+00> : vector<16xf32>
    %480 = vector.multi_reduction <add>, %479, %cst_219 [1] : vector<16x12xf32> to vector<16xf32>
    %481 = vector.shape_cast %480 : vector<16xf32> to vector<16x1xf32>
    %482 = vector.broadcast %481 : vector<16x1xf32> to vector<16x12xf32>
    %483 = arith.divf %479, %482 : vector<16x12xf32>
    %484 = arith.truncf %483 : vector<16x12xf32> to vector<16x12xbf16>
    %485 = vector.extract_strided_slice %469 {offsets = [0, 0], sizes = [12, 128], strides = [1, 1]} : vector<12x512xbf16> to vector<12x128xbf16>
    %cst_220 = arith.constant dense<0.000000e+00> : vector<16x128xf32>
    %486 = tpu.matmul %484, %485, %cst_220 {dimension_numbers = #tpu.dot_dimension_numbers<[1], [0], [0], [1], [0, 0, 1, 1], [], []>} : vector<16x12xbf16>, vector<12x128xbf16>, vector<16x128xf32> -> vector<16x128xf32>
    %487 = vector.extract_strided_slice %459 {offsets = [0, 128], sizes = [16, 128], strides = [1, 1]} : vector<16x512xbf16> to vector<16x128xbf16>
    %488 = vector.extract_strided_slice %468 {offsets = [0, 128], sizes = [12, 128], strides = [1, 1]} : vector<12x512xbf16> to vector<12x128xbf16>
    %cst_221 = arith.constant dense<0.000000e+00> : vector<16x12xf32>
    %489 = tpu.matmul %487, %488, %cst_221 {dimension_numbers = #tpu.dot_dimension_numbers<[1], [1], [0], [0], [0, 0, 1, 0], [], []>} : vector<16x128xbf16>, vector<12x128xbf16>, vector<16x12xf32> -> vector<16x12xf32>
    %cst_222 = arith.constant -1.000000e+04 : f32
    %490 = vector.broadcast %cst_222 : f32 to vector<16x12xf32>
    %491 = arith.select %20, %489, %490 : vector<16x12xi1>, vector<16x12xf32>
    %cst_223 = arith.constant dense<0xFF800000> : vector<16xf32>
    %492 = vector.multi_reduction <maximumf>, %491, %cst_223 [1] : vector<16x12xf32> to vector<16xf32>
    %493 = vector.shape_cast %492 : vector<16xf32> to vector<16x1xf32>
    %494 = vector.broadcast %493 : vector<16x1xf32> to vector<16x12xf32>
    %495 = arith.subf %491, %494 : vector<16x12xf32>
    %496 = math.exp %495 : vector<16x12xf32>
    %cst_224 = arith.constant dense<0.000000e+00> : vector<16xf32>
    %497 = vector.multi_reduction <add>, %496, %cst_224 [1] : vector<16x12xf32> to vector<16xf32>
    %498 = vector.shape_cast %497 : vector<16xf32> to vector<16x1xf32>
    %499 = vector.broadcast %498 : vector<16x1xf32> to vector<16x12xf32>
    %500 = arith.divf %496, %499 : vector<16x12xf32>
    %501 = arith.truncf %500 : vector<16x12xf32> to vector<16x12xbf16>
    %502 = vector.extract_strided_slice %469 {offsets = [0, 128], sizes = [12, 128], strides = [1, 1]} : vector<12x512xbf16> to vector<12x128xbf16>
    %cst_225 = arith.constant dense<0.000000e+00> : vector<16x128xf32>
    %503 = tpu.matmul %501, %502, %cst_225 {dimension_numbers = #tpu.dot_dimension_numbers<[1], [0], [0], [1], [0, 0, 1, 1], [], []>} : vector<16x12xbf16>, vector<12x128xbf16>, vector<16x128xf32> -> vector<16x128xf32>
    %504 = vector.extract_strided_slice %459 {offsets = [0, 256], sizes = [16, 128], strides = [1, 1]} : vector<16x512xbf16> to vector<16x128xbf16>
    %505 = vector.extract_strided_slice %468 {offsets = [0, 256], sizes = [12, 128], strides = [1, 1]} : vector<12x512xbf16> to vector<12x128xbf16>
    %cst_226 = arith.constant dense<0.000000e+00> : vector<16x12xf32>
    %506 = tpu.matmul %504, %505, %cst_226 {dimension_numbers = #tpu.dot_dimension_numbers<[1], [1], [0], [0], [0, 0, 1, 0], [], []>} : vector<16x128xbf16>, vector<12x128xbf16>, vector<16x12xf32> -> vector<16x12xf32>
    %cst_227 = arith.constant -1.000000e+04 : f32
    %507 = vector.broadcast %cst_227 : f32 to vector<16x12xf32>
    %508 = arith.select %20, %506, %507 : vector<16x12xi1>, vector<16x12xf32>
    %cst_228 = arith.constant dense<0xFF800000> : vector<16xf32>
    %509 = vector.multi_reduction <maximumf>, %508, %cst_228 [1] : vector<16x12xf32> to vector<16xf32>
    %510 = vector.shape_cast %509 : vector<16xf32> to vector<16x1xf32>
    %511 = vector.broadcast %510 : vector<16x1xf32> to vector<16x12xf32>
    %512 = arith.subf %508, %511 : vector<16x12xf32>
    %513 = math.exp %512 : vector<16x12xf32>
    %cst_229 = arith.constant dense<0.000000e+00> : vector<16xf32>
    %514 = vector.multi_reduction <add>, %513, %cst_229 [1] : vector<16x12xf32> to vector<16xf32>
    %515 = vector.shape_cast %514 : vector<16xf32> to vector<16x1xf32>
    %516 = vector.broadcast %515 : vector<16x1xf32> to vector<16x12xf32>
    %517 = arith.divf %513, %516 : vector<16x12xf32>
    %518 = arith.truncf %517 : vector<16x12xf32> to vector<16x12xbf16>
    %519 = vector.extract_strided_slice %469 {offsets = [0, 256], sizes = [12, 128], strides = [1, 1]} : vector<12x512xbf16> to vector<12x128xbf16>
    %cst_230 = arith.constant dense<0.000000e+00> : vector<16x128xf32>
    %520 = tpu.matmul %518, %519, %cst_230 {dimension_numbers = #tpu.dot_dimension_numbers<[1], [0], [0], [1], [0, 0, 1, 1], [], []>} : vector<16x12xbf16>, vector<12x128xbf16>, vector<16x128xf32> -> vector<16x128xf32>
    %521 = vector.extract_strided_slice %459 {offsets = [0, 384], sizes = [16, 128], strides = [1, 1]} : vector<16x512xbf16> to vector<16x128xbf16>
    %522 = vector.extract_strided_slice %468 {offsets = [0, 384], sizes = [12, 128], strides = [1, 1]} : vector<12x512xbf16> to vector<12x128xbf16>
    %cst_231 = arith.constant dense<0.000000e+00> : vector<16x12xf32>
    %523 = tpu.matmul %521, %522, %cst_231 {dimension_numbers = #tpu.dot_dimension_numbers<[1], [1], [0], [0], [0, 0, 1, 0], [], []>} : vector<16x128xbf16>, vector<12x128xbf16>, vector<16x12xf32> -> vector<16x12xf32>
    %cst_232 = arith.constant -1.000000e+04 : f32
    %524 = vector.broadcast %cst_232 : f32 to vector<16x12xf32>
    %525 = arith.select %20, %523, %524 : vector<16x12xi1>, vector<16x12xf32>
    %cst_233 = arith.constant dense<0xFF800000> : vector<16xf32>
    %526 = vector.multi_reduction <maximumf>, %525, %cst_233 [1] : vector<16x12xf32> to vector<16xf32>
    %527 = vector.shape_cast %526 : vector<16xf32> to vector<16x1xf32>
    %528 = vector.broadcast %527 : vector<16x1xf32> to vector<16x12xf32>
    %529 = arith.subf %525, %528 : vector<16x12xf32>
    %530 = math.exp %529 : vector<16x12xf32>
    %cst_234 = arith.constant dense<0.000000e+00> : vector<16xf32>
    %531 = vector.multi_reduction <add>, %530, %cst_234 [1] : vector<16x12xf32> to vector<16xf32>
    %532 = vector.shape_cast %531 : vector<16xf32> to vector<16x1xf32>
    %533 = vector.broadcast %532 : vector<16x1xf32> to vector<16x12xf32>
    %534 = arith.divf %530, %533 : vector<16x12xf32>
    %535 = arith.truncf %534 : vector<16x12xf32> to vector<16x12xbf16>
    %536 = vector.extract_strided_slice %469 {offsets = [0, 384], sizes = [12, 128], strides = [1, 1]} : vector<12x512xbf16> to vector<12x128xbf16>
    %cst_235 = arith.constant dense<0.000000e+00> : vector<16x128xf32>
    %537 = tpu.matmul %535, %536, %cst_235 {dimension_numbers = #tpu.dot_dimension_numbers<[1], [0], [0], [1], [0, 0, 1, 1], [], []>} : vector<16x12xbf16>, vector<12x128xbf16>, vector<16x128xf32> -> vector<16x128xf32>
    %538 = tpu.concatenate %486, %503, %520, %537 in 1 : vector<16x128xf32>, vector<16x128xf32>, vector<16x128xf32>, vector<16x128xf32> -> vector<16x512xf32>
    %539 = arith.truncf %538 : vector<16x512xf32> to vector<16x512xbf16>
    %c1_236 = arith.constant 1 : index
    %c0_237 = arith.constant 0 : index
    %c0_238 = arith.constant 0 : index
    %540 = vector.load %arg15[%c1_236, %c0_237, %c0_238] : memref<2x512x32xbf16, #tpu.memory_space<vmem>>, vector<1x512x32xbf16>
    %541 = vector.shape_cast %540 : vector<1x512x32xbf16> to vector<512x32xbf16>
    %cst_239 = arith.constant dense<0.000000e+00> : vector<16x32xf32>
    %542 = tpu.matmul %539, %541, %cst_239 {dimension_numbers = #tpu.dot_dimension_numbers<[1], [0], [0], [1], [0, 0, 1, 1], [], []>} : vector<16x512xbf16>, vector<512x32xbf16>, vector<16x32xf32> -> vector<16x32xf32>
    %c1_240 = arith.constant 1 : index
    %c0_241 = arith.constant 0 : index
    %c0_242 = arith.constant 0 : index
    %543 = vector.load %arg16[%c1_240, %c0_241, %c0_242] : memref<2x1x32xf32, #tpu.memory_space<vmem>>, vector<1x1x32xf32>
    %544 = vector.shape_cast %543 : vector<1x1x32xf32> to vector<1x32xf32>
    %545 = vector.broadcast %544 : vector<1x32xf32> to vector<16x32xf32>
    %546 = arith.addf %542, %545 : vector<16x32xf32>
    %547 = arith.addf %450, %546 : vector<16x32xf32>
    %c1_243 = arith.constant 1 : index
    %c0_244 = arith.constant 0 : index
    %c0_245 = arith.constant 0 : index
    %548 = vector.load %arg17[%c1_243, %c0_244, %c0_245] : memref<2x1x32xf32, #tpu.memory_space<vmem>>, vector<1x1x32xf32>
    %549 = vector.shape_cast %548 : vector<1x1x32xf32> to vector<1x32xf32>
    %c1_246 = arith.constant 1 : index
    %c0_247 = arith.constant 0 : index
    %c0_248 = arith.constant 0 : index
    %550 = vector.load %arg18[%c1_246, %c0_247, %c0_248] : memref<2x1x32xf32, #tpu.memory_space<vmem>>, vector<1x1x32xf32>
    %551 = vector.shape_cast %550 : vector<1x1x32xf32> to vector<1x32xf32>
    %cst_249 = arith.constant dense<0.000000e+00> : vector<16xf32>
    %552 = vector.multi_reduction <add>, %547, %cst_249 [1] : vector<16x32xf32> to vector<16xf32>
    %553 = vector.shape_cast %552 : vector<16xf32> to vector<16x1xf32>
    %cst_250 = arith.constant 3.200000e+01 : f32
    %554 = vector.broadcast %cst_250 : f32 to vector<16x1xf32>
    %555 = arith.divf %553, %554 : vector<16x1xf32>
    %556 = vector.broadcast %555 : vector<16x1xf32> to vector<16x32xf32>
    %557 = arith.subf %547, %556 : vector<16x32xf32>
    %558 = arith.mulf %557, %557 : vector<16x32xf32>
    %cst_251 = arith.constant dense<0.000000e+00> : vector<16xf32>
    %559 = vector.multi_reduction <add>, %558, %cst_251 [1] : vector<16x32xf32> to vector<16xf32>
    %560 = vector.shape_cast %559 : vector<16xf32> to vector<16x1xf32>
    %cst_252 = arith.constant 3.200000e+01 : f32
    %561 = vector.broadcast %cst_252 : f32 to vector<16x1xf32>
    %562 = arith.divf %560, %561 : vector<16x1xf32>
    %563 = vector.broadcast %555 : vector<16x1xf32> to vector<16x32xf32>
    %564 = arith.subf %547, %563 : vector<16x32xf32>
    %cst_253 = arith.constant 9.99999974E-6 : f32
    %565 = vector.broadcast %cst_253 : f32 to vector<16x1xf32>
    %566 = arith.addf %562, %565 : vector<16x1xf32>
    %567 = math.rsqrt %566 : vector<16x1xf32>
    %568 = vector.broadcast %567 : vector<16x1xf32> to vector<16x32xf32>
    %569 = arith.mulf %564, %568 : vector<16x32xf32>
    %570 = vector.broadcast %549 : vector<1x32xf32> to vector<16x32xf32>
    %571 = arith.mulf %569, %570 : vector<16x32xf32>
    %572 = vector.broadcast %551 : vector<1x32xf32> to vector<16x32xf32>
    %573 = arith.addf %571, %572 : vector<16x32xf32>
    %574 = vector.broadcast %3 : vector<16x1xf32> to vector<16x32xf32>
    %575 = arith.mulf %573, %574 : vector<16x32xf32>
    %576 = arith.truncf %575 : vector<16x32xf32> to vector<16x32xbf16>
    %c1_254 = arith.constant 1 : index
    %c0_255 = arith.constant 0 : index
    %c0_256 = arith.constant 0 : index
    %577 = vector.load %arg20[%c1_254, %c0_255, %c0_256] : memref<2x1x64xf32, #tpu.memory_space<vmem>>, vector<1x1x64xf32>
    %578 = vector.shape_cast %577 : vector<1x1x64xf32> to vector<1x64xf32>
    %c1_257 = arith.constant 1 : index
    %c2_258 = arith.constant 2 : index
    %c0_259 = arith.constant 0 : index
    %c0_260 = arith.constant 0 : index
    %579 = vector.load %arg19[%c1_257, %c2_258, %c0_259, %c0_260] : memref<2x3x32x64xbf16, #tpu.memory_space<vmem>>, vector<1x1x32x64xbf16>
    %580 = vector.shape_cast %579 : vector<1x1x32x64xbf16> to vector<32x64xbf16>
    %cst_261 = arith.constant dense<0.000000e+00> : vector<16x64xf32>
    %581 = tpu.matmul %576, %580, %cst_261 {dimension_numbers = #tpu.dot_dimension_numbers<[1], [0], [0], [1], [0, 0, 1, 1], [], []>} : vector<16x32xbf16>, vector<32x64xbf16>, vector<16x64xf32> -> vector<16x64xf32>
    %582 = vector.broadcast %578 : vector<1x64xf32> to vector<16x64xf32>
    %583 = arith.addf %581, %582 : vector<16x64xf32>
    %cst_262 = arith.constant 0.000000e+00 : bf16
    %584 = vector.broadcast %cst_262 : bf16 to vector<2x32xbf16>
    %585 = tpu.concatenate %584, %576 in 0 : vector<2x32xbf16>, vector<16x32xbf16> -> vector<18x32xbf16>
    %586 = vector.extract_strided_slice %585 {offsets = [0, 0], sizes = [16, 32], strides = [1, 1]} : vector<18x32xbf16> to vector<16x32xbf16>
    %c1_263 = arith.constant 1 : index
    %c0_264 = arith.constant 0 : index
    %c0_265 = arith.constant 0 : index
    %c0_266 = arith.constant 0 : index
    %587 = vector.load %arg19[%c1_263, %c0_264, %c0_265, %c0_266] : memref<2x3x32x64xbf16, #tpu.memory_space<vmem>>, vector<1x1x32x64xbf16>
    %588 = vector.shape_cast %587 : vector<1x1x32x64xbf16> to vector<32x64xbf16>
    %cst_267 = arith.constant dense<0.000000e+00> : vector<16x64xf32>
    %589 = tpu.matmul %586, %588, %cst_267 {dimension_numbers = #tpu.dot_dimension_numbers<[1], [0], [0], [1], [0, 0, 1, 1], [], []>} : vector<16x32xbf16>, vector<32x64xbf16>, vector<16x64xf32> -> vector<16x64xf32>
    %590 = arith.addf %583, %589 : vector<16x64xf32>
    %591 = vector.extract_strided_slice %585 {offsets = [1, 0], sizes = [16, 32], strides = [1, 1]} : vector<18x32xbf16> to vector<16x32xbf16>
    %c1_268 = arith.constant 1 : index
    %c1_269 = arith.constant 1 : index
    %c0_270 = arith.constant 0 : index
    %c0_271 = arith.constant 0 : index
    %592 = vector.load %arg19[%c1_268, %c1_269, %c0_270, %c0_271] : memref<2x3x32x64xbf16, #tpu.memory_space<vmem>>, vector<1x1x32x64xbf16>
    %593 = vector.shape_cast %592 : vector<1x1x32x64xbf16> to vector<32x64xbf16>
    %cst_272 = arith.constant dense<0.000000e+00> : vector<16x64xf32>
    %594 = tpu.matmul %591, %593, %cst_272 {dimension_numbers = #tpu.dot_dimension_numbers<[1], [0], [0], [1], [0, 0, 1, 1], [], []>} : vector<16x32xbf16>, vector<32x64xbf16>, vector<16x64xf32> -> vector<16x64xf32>
    %595 = arith.addf %590, %594 : vector<16x64xf32>
    %cst_273 = arith.constant 0.000000e+00 : f32
    %596 = vector.broadcast %cst_273 : f32 to vector<16x64xf32>
    %597 = arith.maximumf %595, %596 : vector<16x64xf32>
    %598 = vector.broadcast %3 : vector<16x1xf32> to vector<16x64xf32>
    %599 = arith.mulf %597, %598 : vector<16x64xf32>
    %600 = arith.truncf %599 : vector<16x64xf32> to vector<16x64xbf16>
    %c1_274 = arith.constant 1 : index
    %c0_275 = arith.constant 0 : index
    %c0_276 = arith.constant 0 : index
    %601 = vector.load %arg22[%c1_274, %c0_275, %c0_276] : memref<2x1x32xf32, #tpu.memory_space<vmem>>, vector<1x1x32xf32>
    %602 = vector.shape_cast %601 : vector<1x1x32xf32> to vector<1x32xf32>
    %c1_277 = arith.constant 1 : index
    %c2_278 = arith.constant 2 : index
    %c0_279 = arith.constant 0 : index
    %c0_280 = arith.constant 0 : index
    %603 = vector.load %arg21[%c1_277, %c2_278, %c0_279, %c0_280] : memref<2x3x64x32xbf16, #tpu.memory_space<vmem>>, vector<1x1x64x32xbf16>
    %604 = vector.shape_cast %603 : vector<1x1x64x32xbf16> to vector<64x32xbf16>
    %cst_281 = arith.constant dense<0.000000e+00> : vector<16x32xf32>
    %605 = tpu.matmul %600, %604, %cst_281 {dimension_numbers = #tpu.dot_dimension_numbers<[1], [0], [0], [1], [0, 0, 1, 1], [], []>} : vector<16x64xbf16>, vector<64x32xbf16>, vector<16x32xf32> -> vector<16x32xf32>
    %606 = vector.broadcast %602 : vector<1x32xf32> to vector<16x32xf32>
    %607 = arith.addf %605, %606 : vector<16x32xf32>
    %cst_282 = arith.constant 0.000000e+00 : bf16
    %608 = vector.broadcast %cst_282 : bf16 to vector<2x64xbf16>
    %609 = tpu.concatenate %608, %600 in 0 : vector<2x64xbf16>, vector<16x64xbf16> -> vector<18x64xbf16>
    %610 = vector.extract_strided_slice %609 {offsets = [0, 0], sizes = [16, 64], strides = [1, 1]} : vector<18x64xbf16> to vector<16x64xbf16>
    %c1_283 = arith.constant 1 : index
    %c0_284 = arith.constant 0 : index
    %c0_285 = arith.constant 0 : index
    %c0_286 = arith.constant 0 : index
    %611 = vector.load %arg21[%c1_283, %c0_284, %c0_285, %c0_286] : memref<2x3x64x32xbf16, #tpu.memory_space<vmem>>, vector<1x1x64x32xbf16>
    %612 = vector.shape_cast %611 : vector<1x1x64x32xbf16> to vector<64x32xbf16>
    %cst_287 = arith.constant dense<0.000000e+00> : vector<16x32xf32>
    %613 = tpu.matmul %610, %612, %cst_287 {dimension_numbers = #tpu.dot_dimension_numbers<[1], [0], [0], [1], [0, 0, 1, 1], [], []>} : vector<16x64xbf16>, vector<64x32xbf16>, vector<16x32xf32> -> vector<16x32xf32>
    %614 = arith.addf %607, %613 : vector<16x32xf32>
    %615 = vector.extract_strided_slice %609 {offsets = [1, 0], sizes = [16, 64], strides = [1, 1]} : vector<18x64xbf16> to vector<16x64xbf16>
    %c1_288 = arith.constant 1 : index
    %c1_289 = arith.constant 1 : index
    %c0_290 = arith.constant 0 : index
    %c0_291 = arith.constant 0 : index
    %616 = vector.load %arg21[%c1_288, %c1_289, %c0_290, %c0_291] : memref<2x3x64x32xbf16, #tpu.memory_space<vmem>>, vector<1x1x64x32xbf16>
    %617 = vector.shape_cast %616 : vector<1x1x64x32xbf16> to vector<64x32xbf16>
    %cst_292 = arith.constant dense<0.000000e+00> : vector<16x32xf32>
    %618 = tpu.matmul %615, %617, %cst_292 {dimension_numbers = #tpu.dot_dimension_numbers<[1], [0], [0], [1], [0, 0, 1, 1], [], []>} : vector<16x64xbf16>, vector<64x32xbf16>, vector<16x32xf32> -> vector<16x32xf32>
    %619 = arith.addf %614, %618 : vector<16x32xf32>
    %620 = vector.broadcast %3 : vector<16x1xf32> to vector<16x32xf32>
    %621 = arith.mulf %619, %620 : vector<16x32xf32>
    %622 = arith.addf %573, %621 : vector<16x32xf32>
    %c1_293 = arith.constant 1 : index
    %c0_294 = arith.constant 0 : index
    %c0_295 = arith.constant 0 : index
    %623 = vector.load %arg23[%c1_293, %c0_294, %c0_295] : memref<2x1x32xf32, #tpu.memory_space<vmem>>, vector<1x1x32xf32>
    %624 = vector.shape_cast %623 : vector<1x1x32xf32> to vector<1x32xf32>
    %c1_296 = arith.constant 1 : index
    %c0_297 = arith.constant 0 : index
    %c0_298 = arith.constant 0 : index
    %625 = vector.load %arg24[%c1_296, %c0_297, %c0_298] : memref<2x1x32xf32, #tpu.memory_space<vmem>>, vector<1x1x32xf32>
    %626 = vector.shape_cast %625 : vector<1x1x32xf32> to vector<1x32xf32>
    %cst_299 = arith.constant dense<0.000000e+00> : vector<16xf32>
    %627 = vector.multi_reduction <add>, %622, %cst_299 [1] : vector<16x32xf32> to vector<16xf32>
    %628 = vector.shape_cast %627 : vector<16xf32> to vector<16x1xf32>
    %cst_300 = arith.constant 3.200000e+01 : f32
    %629 = vector.broadcast %cst_300 : f32 to vector<16x1xf32>
    %630 = arith.divf %628, %629 : vector<16x1xf32>
    %631 = vector.broadcast %630 : vector<16x1xf32> to vector<16x32xf32>
    %632 = arith.subf %622, %631 : vector<16x32xf32>
    %633 = arith.mulf %632, %632 : vector<16x32xf32>
    %cst_301 = arith.constant dense<0.000000e+00> : vector<16xf32>
    %634 = vector.multi_reduction <add>, %633, %cst_301 [1] : vector<16x32xf32> to vector<16xf32>
    %635 = vector.shape_cast %634 : vector<16xf32> to vector<16x1xf32>
    %cst_302 = arith.constant 3.200000e+01 : f32
    %636 = vector.broadcast %cst_302 : f32 to vector<16x1xf32>
    %637 = arith.divf %635, %636 : vector<16x1xf32>
    %638 = vector.broadcast %630 : vector<16x1xf32> to vector<16x32xf32>
    %639 = arith.subf %622, %638 : vector<16x32xf32>
    %cst_303 = arith.constant 9.99999974E-6 : f32
    %640 = vector.broadcast %cst_303 : f32 to vector<16x1xf32>
    %641 = arith.addf %637, %640 : vector<16x1xf32>
    %642 = math.rsqrt %641 : vector<16x1xf32>
    %643 = vector.broadcast %642 : vector<16x1xf32> to vector<16x32xf32>
    %644 = arith.mulf %639, %643 : vector<16x32xf32>
    %645 = vector.broadcast %624 : vector<1x32xf32> to vector<16x32xf32>
    %646 = arith.mulf %644, %645 : vector<16x32xf32>
    %647 = vector.broadcast %626 : vector<1x32xf32> to vector<16x32xf32>
    %648 = arith.addf %646, %647 : vector<16x32xf32>
    %649 = vector.broadcast %3 : vector<16x1xf32> to vector<16x32xf32>
    %650 = arith.mulf %648, %649 : vector<16x32xf32>
    %c0_304 = arith.constant 0 : index
    %c0_305 = arith.constant 0 : index
    %c0_306 = arith.constant 0 : index
    %651 = vector.load %arg25[%c0_304, %c0_305, %c0_306] : memref<1x16x32xf32, #tpu.memory_space<vmem>>, vector<1x16x32xf32>
    %652 = vector.shape_cast %651 : vector<1x16x32xf32> to vector<16x32xf32>
    %653 = vector.shape_cast %650 : vector<16x32xf32> to vector<1x16x32xf32>
    tpu.vector_store %arg25[%c0_304, %c0_305, %c0_306], %653 {strides = array<i32>} : memref<1x16x32xf32, #tpu.memory_space<vmem>>, vector<1x16x32xf32>,
    return
  }
  func.func @transform_0(%arg0: i32) -> (i32, i32, i32) {
    %c0_i32 = arith.constant 0 : i32
    %c0_i32_0 = arith.constant 0 : i32
    %c0_i32_1 = arith.constant 0 : i32
    return %arg0, %c0_i32, %c0_i32_0 : i32, i32, i32
  }
  func.func @transform_1(%arg0: i32) -> (i32, i32, i32) {
    %c0_i32 = arith.constant 0 : i32
    %c0_i32_0 = arith.constant 0 : i32
    %c0_i32_1 = arith.constant 0 : i32
    return %arg0, %c0_i32, %c0_i32_0 : i32, i32, i32
  }
  func.func @transform_2(%arg0: i32) -> (i32, i32, i32) {
    %c0_i32 = arith.constant 0 : i32
    %c0_i32_0 = arith.constant 0 : i32
    %c0_i32_1 = arith.constant 0 : i32
    return %arg0, %c0_i32, %c0_i32_0 : i32, i32, i32
  }
  func.func @transform_3(%arg0: i32) -> (i32, i32, i32) {
    %c0_i32 = arith.constant 0 : i32
    %c0_i32_0 = arith.constant 0 : i32
    %c0_i32_1 = arith.constant 0 : i32
    return %arg0, %c0_i32, %c0_i32_0 : i32, i32, i32
  }
  func.func @transform_4(%arg0: i32) -> (i32, i32, i32) {
    %c0_i32 = arith.constant 0 : i32
    %c0_i32_0 = arith.constant 0 : i32
    %c0_i32_1 = arith.constant 0 : i32
    %c0_i32_2 = arith.constant 0 : i32
    return %c0_i32, %c0_i32_0, %c0_i32_1 : i32, i32, i32
  }
  func.func @transform_5(%arg0: i32) -> (i32, i32, i32) {
    %c0_i32 = arith.constant 0 : i32
    %c0_i32_0 = arith.constant 0 : i32
    %c0_i32_1 = arith.constant 0 : i32
    %c0_i32_2 = arith.constant 0 : i32
    return %c0_i32, %c0_i32_0, %c0_i32_1 : i32, i32, i32
  }
  func.func @transform_6(%arg0: i32) -> (i32, i32, i32) {
    %c0_i32 = arith.constant 0 : i32
    %c0_i32_0 = arith.constant 0 : i32
    %c0_i32_1 = arith.constant 0 : i32
    %c0_i32_2 = arith.constant 0 : i32
    return %c0_i32, %c0_i32_0, %c0_i32_1 : i32, i32, i32
  }
  func.func @transform_7(%arg0: i32) -> (i32, i32, i32) {
    %c0_i32 = arith.constant 0 : i32
    %c0_i32_0 = arith.constant 0 : i32
    %c0_i32_1 = arith.constant 0 : i32
    %c0_i32_2 = arith.constant 0 : i32
    return %c0_i32, %c0_i32_0, %c0_i32_1 : i32, i32, i32
  }
  func.func @transform_8(%arg0: i32) -> (i32, i32, i32) {
    %c0_i32 = arith.constant 0 : i32
    %c0_i32_0 = arith.constant 0 : i32
    %c0_i32_1 = arith.constant 0 : i32
    %c0_i32_2 = arith.constant 0 : i32
    return %c0_i32, %c0_i32_0, %c0_i32_1 : i32, i32, i32
  }
  func.func @transform_9(%arg0: i32) -> (i32, i32, i32) {
    %c0_i32 = arith.constant 0 : i32
    %c0_i32_0 = arith.constant 0 : i32
    %c0_i32_1 = arith.constant 0 : i32
    %c0_i32_2 = arith.constant 0 : i32
    return %c0_i32, %c0_i32_0, %c0_i32_1 : i32, i32, i32
  }
  func.func @transform_10(%arg0: i32) -> (i32, i32, i32) {
    %c0_i32 = arith.constant 0 : i32
    %c0_i32_0 = arith.constant 0 : i32
    %c0_i32_1 = arith.constant 0 : i32
    %c0_i32_2 = arith.constant 0 : i32
    return %c0_i32, %c0_i32_0, %c0_i32_1 : i32, i32, i32
  }
  func.func @transform_11(%arg0: i32) -> (i32, i32, i32) {
    %c0_i32 = arith.constant 0 : i32
    %c0_i32_0 = arith.constant 0 : i32
    %c0_i32_1 = arith.constant 0 : i32
    %c0_i32_2 = arith.constant 0 : i32
    return %c0_i32, %c0_i32_0, %c0_i32_1 : i32, i32, i32
  }
  func.func @transform_12(%arg0: i32) -> (i32, i32, i32) {
    %c0_i32 = arith.constant 0 : i32
    %c0_i32_0 = arith.constant 0 : i32
    %c0_i32_1 = arith.constant 0 : i32
    %c0_i32_2 = arith.constant 0 : i32
    return %c0_i32, %c0_i32_0, %c0_i32_1 : i32, i32, i32
  }
  func.func @transform_13(%arg0: i32) -> (i32, i32, i32) {
    %c0_i32 = arith.constant 0 : i32
    %c0_i32_0 = arith.constant 0 : i32
    %c0_i32_1 = arith.constant 0 : i32
    %c0_i32_2 = arith.constant 0 : i32
    return %c0_i32, %c0_i32_0, %c0_i32_1 : i32, i32, i32
  }
  func.func @transform_14(%arg0: i32) -> (i32, i32, i32) {
    %c0_i32 = arith.constant 0 : i32
    %c0_i32_0 = arith.constant 0 : i32
    %c0_i32_1 = arith.constant 0 : i32
    %c0_i32_2 = arith.constant 0 : i32
    return %c0_i32, %c0_i32_0, %c0_i32_1 : i32, i32, i32
  }
  func.func @transform_15(%arg0: i32) -> (i32, i32, i32) {
    %c0_i32 = arith.constant 0 : i32
    %c0_i32_0 = arith.constant 0 : i32
    %c0_i32_1 = arith.constant 0 : i32
    %c0_i32_2 = arith.constant 0 : i32
    return %c0_i32, %c0_i32_0, %c0_i32_1 : i32, i32, i32
  }
  func.func @transform_16(%arg0: i32) -> (i32, i32, i32) {
    %c0_i32 = arith.constant 0 : i32
    %c0_i32_0 = arith.constant 0 : i32
    %c0_i32_1 = arith.constant 0 : i32
    %c0_i32_2 = arith.constant 0 : i32
    return %c0_i32, %c0_i32_0, %c0_i32_1 : i32, i32, i32
  }
  func.func @transform_17(%arg0: i32) -> (i32, i32, i32) {
    %c0_i32 = arith.constant 0 : i32
    %c0_i32_0 = arith.constant 0 : i32
    %c0_i32_1 = arith.constant 0 : i32
    %c0_i32_2 = arith.constant 0 : i32
    return %c0_i32, %c0_i32_0, %c0_i32_1 : i32, i32, i32
  }
  func.func @transform_18(%arg0: i32) -> (i32, i32, i32, i32) {
    %c0_i32 = arith.constant 0 : i32
    %c0_i32_0 = arith.constant 0 : i32
    %c0_i32_1 = arith.constant 0 : i32
    %c0_i32_2 = arith.constant 0 : i32
    %c0_i32_3 = arith.constant 0 : i32
    return %c0_i32, %c0_i32_0, %c0_i32_1, %c0_i32_2 : i32, i32, i32, i32
  }
  func.func @transform_19(%arg0: i32) -> (i32, i32, i32) {
    %c0_i32 = arith.constant 0 : i32
    %c0_i32_0 = arith.constant 0 : i32
    %c0_i32_1 = arith.constant 0 : i32
    %c0_i32_2 = arith.constant 0 : i32
    return %c0_i32, %c0_i32_0, %c0_i32_1 : i32, i32, i32
  }
  func.func @transform_20(%arg0: i32) -> (i32, i32, i32, i32) {
    %c0_i32 = arith.constant 0 : i32
    %c0_i32_0 = arith.constant 0 : i32
    %c0_i32_1 = arith.constant 0 : i32
    %c0_i32_2 = arith.constant 0 : i32
    %c0_i32_3 = arith.constant 0 : i32
    return %c0_i32, %c0_i32_0, %c0_i32_1, %c0_i32_2 : i32, i32, i32, i32
  }
  func.func @transform_21(%arg0: i32) -> (i32, i32, i32) {
    %c0_i32 = arith.constant 0 : i32
    %c0_i32_0 = arith.constant 0 : i32
    %c0_i32_1 = arith.constant 0 : i32
    %c0_i32_2 = arith.constant 0 : i32
    return %c0_i32, %c0_i32_0, %c0_i32_1 : i32, i32, i32
  }
  func.func @transform_22(%arg0: i32) -> (i32, i32, i32) {
    %c0_i32 = arith.constant 0 : i32
    %c0_i32_0 = arith.constant 0 : i32
    %c0_i32_1 = arith.constant 0 : i32
    %c0_i32_2 = arith.constant 0 : i32
    return %c0_i32, %c0_i32_0, %c0_i32_1 : i32, i32, i32
  }
  func.func @transform_23(%arg0: i32) -> (i32, i32, i32) {
    %c0_i32 = arith.constant 0 : i32
    %c0_i32_0 = arith.constant 0 : i32
    %c0_i32_1 = arith.constant 0 : i32
    %c0_i32_2 = arith.constant 0 : i32
    return %c0_i32, %c0_i32_0, %c0_i32_1 : i32, i32, i32
  }
  func.func @transform_24(%arg0: i32) -> (i32, i32, i32) {
    %c0_i32 = arith.constant 0 : i32
    %c0_i32_0 = arith.constant 0 : i32
    %c0_i32_1 = arith.constant 0 : i32
    return %arg0, %c0_i32, %c0_i32_0 : i32, i32, i32
  }
}

</mosaic_0001>

<bundles_post_ra>
// kernel: decoder_forward.1
= control target key start
LH: loop header
LB: loop body
LE: loop exit
PB: predicated region body
PF: predicated region fallthrough
CT: control target
= control target key end

     0   :  { %s10549_s0 = inlined_call_operand.vmem [shape: f32[2,16,32], index: 0, kind: input, shape index: {}]   ;;  %s10550_s1 = inlined_call_operand.vmem [shape: f32[2,16,1], index: 1, kind: input, shape index: {}]   ;;  %s10551_s2 = inlined_call_operand.vmem [shape: f32[2,12,32], index: 2, kind: input, shape index: {}]   ;;  %s10552_s3 = inlined_call_operand.vmem [shape: f32[2,1,12], index: 3, kind: input, shape index: {}]   ;;  %s10553_s4 = inlined_call_operand.vmem [shape: bf16[2,32,1536], index: 4, kind: input, shape index: {}]   ;;  %s10554_s5 = inlined_call_operand.vmem [shape: f32[2,1,1536], index: 5, kind: input, shape index: {}]   ;;  %s10555_s6 = inlined_call_operand.vmem [shape: bf16[2,512,32], index: 6, kind: input, shape index: {}]   ;;  %s10556_s7 = inlined_call_operand.vmem [shape: f32[2,1,32], index: 7, kind: input, shape index: {}]   ;;  %s10557_s8 = inlined_call_operand.vmem [shape: f32[2,1,32], index: 8, kind: input, shape index: {}]   ;;  %s10558_s9 = inlined_call_operand.vmem [shape: f32[2,1,32], index: 9, kind: input, shape index: {}]   ;;  %s10559_s10 = inlined_call_operand.vmem [shape: bf16[2,32,512], index: 10, kind: input, shape index: {}]   ;;  %s10560_s11 = inlined_call_operand.vmem [shape: f32[2,1,512], index: 11, kind: input, shape index: {}]   ;;  %s10561_s12 = inlined_call_operand.vmem [shape: bf16[2,32,1024], index: 12, kind: input, shape index: {}]   ;;  %s10562_s13 = inlined_call_operand.vmem [shape: f32[2,1,1024], index: 13, kind: input, shape index: {}]   ;;  %s10563_s14 = inlined_call_operand.vmem [shape: bf16[2,512,32], index: 14, kind: input, shape index: {}]   ;;  %s10564_s15 = inlined_call_operand.vmem [shape: f32[2,1,32], index: 15, kind: input, shape index: {}]   ;;  %s10565_s16 = inlined_call_operand.vmem [shape: f32[2,1,32], index: 16, kind: input, shape index: {}]   ;;  %s10566_s17 = inlined_call_operand.vmem [shape: f32[2,1,32], index: 17, kind: input, shape index: {}]   ;;  %s10567_s18 = inlined_call_operand.vmem [shape: bf16[2,3,32,64], index: 18, kind: input, shape index: {}]   ;;  %s10568_s19 = inlined_call_operand.vmem [shape: f32[2,1,64], index: 19, kind: input, shape index: {}]   ;;  %s10569_s20 = inlined_call_operand.vmem [shape: bf16[2,3,64,32], index: 20, kind: input, shape index: {}]   ;;  %s10570_s21 = inlined_call_operand.vmem [shape: f32[2,1,32], index: 21, kind: input, shape index: {}]   ;;  %s10571_s22 = inlined_call_operand.vmem [shape: f32[2,1,32], index: 22, kind: input, shape index: {}]   ;;  %s10572_s23 = inlined_call_operand.vmem [shape: f32[2,1,32], index: 23, kind: input, shape index: {}]   ;;  %s10573_s24 = inlined_call_operand.hbm [shape: f32[2,16,32], index: 24, kind: output, shape index: {}]  }
   0x1   :  { %10597 = sst [smem:[#allocation14_spill]] %s10549_s0 }
   0x2   :  { %10598 = sst [smem:[#allocation15_spill]] %s10550_s1 }
   0x3   :  { %10599 = sst [smem:[#allocation16_spill]] %s10551_s2 }
   0x4   :  { %10600 = sst [smem:[#allocation17_spill]] %s10552_s3 }
   0x5   :  { %10601 = sst [smem:[#allocation18_spill]] %s10553_s4 }
   0x6   :  { %10602 = sst [smem:[#allocation19_spill]] %s10554_s5 }
   0x7   :  { %10603 = sst [smem:[#allocation20_spill]] %s10555_s6 }
   0x8   :  { %10604 = sst [smem:[#allocation21_spill]] %s10556_s7 }
   0x9   :  { %10605 = sst [smem:[#allocation22_spill]] %s10557_s8 }
   0xa   :  { %10606 = sst [smem:[#allocation23_spill]] %s10558_s9 }
   0xb   :  { %10607 = sst [smem:[#allocation24_spill]] %s10559_s10 }
   0xc   :  { %10608 = sst [smem:[#allocation25_spill]] %s10560_s11 }
   0xd   :  { %10609 = sst [smem:[#allocation26_spill]] %s10573_s24 }
   0xe   :  { %29 = vsyncpa [#allocation3], 0 }
   0xf   :  { %31 = vsyncpa [#allocation3 + $0x1], 0  ;;  %s8293_s5 = smov 0   ;;  %s8295_s26 = smov 0  }
  0x10   :  { %s8297_s27 = smov 0   ;;  %s8299_s28 = smov 0  }
  0x11 LB: > { %10610 = sst [smem:[#allocation5_spill]] %s8150_s5  ;;  %s8314_s6 = sadd.s32 4294967295, %s8162_s28   ;;  %s8162_s28 = sphi %s8299_s28, %s10707_s28   ;;  %s8158_s27 = sphi %s8297_s27, %s10710_s27   ;;  %s8154_s26 = sphi %s8295_s26, %s10709_s26   ;;  %s8150_s5 = sphi %s8293_s5, %s10708_s5  }
  0x12   : > { %10611 = sst [smem:[#allocation6_spill]] %s8154_s26  ;;  %s6233_s2 = sadd.s32 4294967294, %s8162_s28  }
  0x13   : > { %10612 = sst [smem:[#allocation7_spill]] %s8158_s27  ;;  %s8318_s29 = sadd.s32 1, %s8162_s28  }
  0x14   : > { %10613 = sst [smem:[#allocation8_spill]] %s8162_s28  ;;  %s568_s0 = sadd.s32 1, %s8158_s27 }
  0x15   : > { %10614 = sst [smem:[#allocation9_spill]] %s8314_s6  ;;  %s565_s7 = ssub.s32 %s8162_s28, %s8318_s29 }
  0x16   : > { %10615 = sst [smem:[#allocation10_spill]] %s8318_s29  ;;  %p578_p0 = scmp.ne.s32.totalorder %s8158_s27, %s8154_s26 }
  0x17   : > { %p566_p1 = scmp.eq.s32.totalorder %s565_s7, 0  ;;  %p579_p2 = scmp.eq.s32.totalorder %s8314_s6, 1 }
  0x18   : > { %p584_p3 = scmp.ne.s32.totalorder %s8154_s26, %s8150_s5  ;;  %p585_p4 = scmp.eq.s32.totalorder %s6233_s2, 1 }
  0x19   : > { %s8329_s30 = scalar_select %p566_p1, %s8158_s27, %s568_s0  }
  0x1a   : > { %p8331_p5 = por %p579_p2, %p578_p0  ;;  %p8335_p6 = por %p585_p4, %p584_p3 }
  0x1b   : > { %10616 = sst [smem:[#allocation11_spill]] %s8329_s30  ;;  %p6236_p7 = scmp.ge.s32.totalorder %s8162_s28, 1 }
  0x1c   : > { %s10617_s3 = scalar_select %p8331_p5, 1, 0 }
  0x1d   : > { %s10619_s25 = scalar_select %p8335_p6, 1, 0 }
  0x1e   : > { %10618 = sst [smem:[#allocation12_spill]] %s10617_s3  ;;  %p693_p8 = scmp.lt.s32.totalorder %s8162_s28, 3 }
  0x1f   : > { %10620 = sst [smem:[#allocation13_spill]] %s10619_s25 }
  0x20   : > { %p694_p9 = pnand %p6236_p7, %p693_p8 }
  0x21   : > { %p772_p10 = scmp.lt.s32.totalorder (!%p694_p9), %s8314_s6, 1  ;;  %s10621_s0 = sld [smem:[#allocation15_spill]] (!%p694_p9) }
  0x22   : > { %697 = sbr.rel (%p694_p9) target bundleno = 5952 (0x1740), region = 116  ;;  %s10622_s29 = sld [smem:[#allocation18_spill]] (!%p694_p9) }
  0x23   : > { %s10623_s27 = sld [smem:[#allocation14_spill]] (!%p694_p9) }
  0x24   : > { %s10632_s24 = sld [smem:[#allocation20_spill]] (!%p694_p9) }
  0x25   : > { %s10638_s10 = sld [smem:[#allocation24_spill]] (!%p694_p9) }
  0x26   : > { %s10643_s9 = sld [smem:[#allocation23_spill]] (!%p694_p9) }
  0x27   : > { %v8164_v0 = vmov 0   ;;  %s8345_s8 = scalar_select %p772_p10, %s8314_s6, 1  ;;  %vm1009_vm0 = vcmask 261120   ;;  %vm1221_vm2 = vcmask 130048  }
  0x28   : > { %7922 = vset.pattern.permute.xlu0 %v8164_v0  ;;  %7923 = vset.pattern.permute.xlu1 %v8164_v0  ;;  %v6294_v3 = vld [vmem:[%s10622_s29 + $0x60] sm:$0xf]  ;;  %v7636_v4 = vld [vmem:[%s10622_s29 + $0x8c] sm:$0xf0]  ;;  %v7630_v5 = vld [vmem:[%s10622_s29 + $0x64] sm:$0xf] }
  0x29   : > { %s8348_s4 = sshll.u32 %s8345_s8, 4  ;;  %v6295_v6 = vor.u32 %v7636_v4, %v6294_v3  ;;  %v6296_v7 = vld [vmem:[%s10622_s29 + $0x90] sm:$0xf0]  ;;  %v6302_v8 = vld [vmem:[%s10622_s29 + $0x68] sm:$0xf]  ;;  %s10644_s25 = sld [smem:[#allocation16_spill]] }
  0x2a   : > { %s8354_s7 = scalar_lea.vmem %s10621_s0, %s8348_s4  ;;  %v7637_v9 = vld [vmem:[%s10622_s29 + $0x94] sm:$0xf0]  ;;  %v6299_v10 = vor.u32 %v7630_v5, %v6296_v7  ;;  %v7631_v12 = vld [vmem:[%s10622_s29 + $0x6c] sm:$0xf]  ;;  %v6304_v13 = vld [vmem:[%s10622_s29 + $0x98] sm:$0xf0]  ;;  %s776_s5 = scalar_lea.vmem %s10623_s27, %s8348_s4 }
  0x2b   : > { %v793_v1 = vld [vmem:[%s8354_s7] sm:$0xff]  ;;  %v794_v2 = vld [vmem:[%s8354_s7 + $0x8] sm:$0xff]  ;;  %v6303_v11 = vor.u32 %v7637_v9, %v6302_v8  ;;  %1019 = vmatpush.bf16.msra.mxu0 %v6295_v6  ;;  %v6307_v14 = vor.u32 %v7631_v12, %v6304_v13  ;;  %v7624_v16 = vld [vmem:[%s10622_s29 + $0x2c] sm:$0xf0]  ;;  %s10624_s27 = sld [smem:[#allocation19_spill]] }
  0x2c   : > { %801 = vperm.xlu0 %7922, %v793_v1   ;;  %1033 = vmatpush.bf16.msra.mxu1 %v6299_v10  ;;  %v6246_v15 = vld [vmem:[%s10622_s29] sm:$0xf]  ;;  %v7618_v17 = vld [vmem:[%s10622_s29 + $0x4] sm:$0xf]  ;;  %v6248_v19 = vld [vmem:[%s10622_s29 + $0x30] sm:$0xf0] }
  0x2d   : > { %1047 = vmatpush.bf16.msra.mxu2 %v6303_v11  ;;  %1061 = vmatpush.bf16.msra.mxu3 %v6307_v14  ;;  %v6247_v18 = vor.u32 %v7624_v16, %v6246_v15  ;;  %v6254_v20 = vld [vmem:[%s10622_s29 + $0x8] sm:$0xf]  ;;  %v7625_v21 = vld [vmem:[%s10622_s29 + $0x34] sm:$0xf0]  ;;  %v6251_v22 = vor.u32 %v7618_v17, %v6248_v19  ;;  %v7619_v24 = vld [vmem:[%s10622_s29 + $0xc] sm:$0xf] }
  0x2e   : > { %v6255_v23 = vor.u32 %v7625_v21, %v6254_v20  ;;  %v6256_v25 = vld [vmem:[%s10622_s29 + $0x38] sm:$0xf0]  ;;  %v6310_v27 = vld [vmem:[%s10622_s29 + $0x70] sm:$0xf]  ;;  %v7638_v28 = vld [vmem:[%s10622_s29 + $0x9c] sm:$0xf0] }
  0x2f   : > { %1020 = vmatpush.bf16.msra.mxu0 %v6247_v18  ;;  %v6259_v26 = vor.u32 %v7619_v24, %v6256_v25  ;;  %v7632_v29 = vld [vmem:[%s10622_s29 + $0x74] sm:$0xf]  ;;  %v6311_v30 = vor.u32 %v7638_v28, %v6310_v27  ;;  %v6312_v31 = vld [vmem:[%s10622_s29 + $0xa0] sm:$0xf0]  ;;  %v6318_v32 = vld [vmem:[%s10622_s29 + $0x78] sm:$0xf] }
  0x30   : > { %1034 = vmatpush.bf16.msra.mxu1 %v6251_v22  ;;  %v7639_v33 = vld [vmem:[%s10622_s29 + $0xa4] sm:$0xf0]  ;;  %v6315_v34 = vor.u32 %v7632_v29, %v6312_v31  ;;  %v7633_v36 = vld [vmem:[%s10622_s29 + $0x7c] sm:$0xf]  ;;  %v6320_v37 = vld [vmem:[%s10622_s29 + $0xa8] sm:$0xf0] }
  0x31   : > { %1048 = vmatpush.bf16.msra.mxu2 %v6255_v23  ;;  %1062 = vmatpush.bf16.msra.mxu3 %v6259_v26  ;;  %v6319_v35 = vor.u32 %v7639_v33, %v6318_v32  ;;  %v6262_v38 = vld [vmem:[%s10622_s29 + $0x10] sm:$0xf]  ;;  %v6323_v39 = vor.u32 %v7633_v36, %v6320_v37  ;;  %v7626_v40 = vld [vmem:[%s10622_s29 + $0x3c] sm:$0xf0]  ;;  %v7620_v41 = vld [vmem:[%s10622_s29 + $0x14] sm:$0xf]  ;;  %s10625_s30 = smov %s10624_s27 }
  0x32   : > { %v6264_v42 = vld [vmem:[%s10622_s29 + $0x40] sm:$0xf0]  ;;  %v6263_v43 = vor.u32 %v7626_v40, %v6262_v38  ;;  %v6270_v45 = vld [vmem:[%s10622_s29 + $0x18] sm:$0xf]  ;;  %v7627_v46 = vld [vmem:[%s10622_s29 + $0x44] sm:$0xf0] }
  0x33   : > { %1075 = vmatpush.bf16.msrb.mxu0 %v6311_v30  ;;  %v6267_v44 = vor.u32 %v7620_v41, %v6264_v42  ;;  %v7621_v47 = vld [vmem:[%s10622_s29 + $0x1c] sm:$0xf]  ;;  %v6271_v48 = vor.u32 %v7627_v46, %v6270_v45  ;;  %v6272_v49 = vld [vmem:[%s10622_s29 + $0x48] sm:$0xf0]  ;;  %v791_v52 = vld [vmem:[%s776_s5] sm:$0xff]  ;;  %s10637_s0 = sld [smem:[#allocation21_spill]] }
  0x34   : > { %806 = vperm.xlu0 %7922, %v794_v2   ;;  %1089 = vmatpush.bf16.msrb.mxu1 %v6315_v34  ;;  %v6275_v50 = vor.u32 %v7621_v47, %v6272_v49  ;;  %v792_v53 = vld [vmem:[%s776_s5 + $0x8] sm:$0xff]  ;;  %v6326_v54 = vld [vmem:[%s10622_s29 + $0x80] sm:$0xf]  ;;  %v7640_v55 = vld [vmem:[%s10622_s29 + $0xac] sm:$0xf0]  ;;  %s10645_s11 = sld [smem:[#allocation25_spill]] }
  0x35   : > { %1103 = vmatpush.bf16.msrb.mxu2 %v6319_v35  ;;  %1117 = vmatpush.bf16.msrb.mxu3 %v6323_v39  ;;  %v7634_v57 = vld [vmem:[%s10622_s29 + $0x84] sm:$0xf]  ;;  %v6328_v58 = vld [vmem:[%s10622_s29 + $0xb0] sm:$0xf0]  ;;  %v6334_v59 = vld [vmem:[%s10622_s29 + $0x88] sm:$0xf]  ;;  %v6327_v3 = vor.u32 %v7640_v55, %v6326_v54 }
  0x36   : > { %v7641_v62 = vld [vmem:[%s10622_s29 + $0xb4] sm:$0xf0]  ;;  %v7635_v63 = vld [vmem:[%s10622_s29 + $0x8c] sm:$0xf]  ;;  %v6336_v1 = vld [vmem:[%s10622_s29 + $0xb8] sm:$0xf0]  ;;  %v6331_v4 = vor.u32 %v7634_v57, %v6328_v58 }
  0x37   : > { %1076 = vmatpush.bf16.msrb.mxu0 %v6263_v43  ;;  %v6278_v5 = vld [vmem:[%s10622_s29 + $0x20] sm:$0xf]  ;;  %v7628_v6 = vld [vmem:[%s10622_s29 + $0x4c] sm:$0xf0]  ;;  %v6335_v7 = vor.u32 %v7641_v62, %v6334_v59  ;;  %v6339_v8 = vor.u32 %v7635_v63, %v6336_v1  ;;  %v7622_v9 = vld [vmem:[%s10622_s29 + $0x24] sm:$0xf] }
  0x38   : > { %1090 = vmatpush.bf16.msrb.mxu1 %v6267_v44  ;;  %v6280_v10 = vld [vmem:[%s10622_s29 + $0x50] sm:$0xf0]  ;;  %v6286_v11 = vld [vmem:[%s10622_s29 + $0x28] sm:$0xf]  ;;  %v7629_v12 = vld [vmem:[%s10622_s29 + $0x54] sm:$0xf0]  ;;  %v6279_v15 = vor.u32 %v7628_v6, %v6278_v5 }
  0x39   : > { %1104 = vmatpush.bf16.msrb.mxu2 %v6271_v48  ;;  %1118 = vmatpush.bf16.msrb.mxu3 %v6275_v50  ;;  %v7623_v13 = vld [vmem:[%s10622_s29 + $0x2c] sm:$0xf]  ;;  %v6288_v14 = vld [vmem:[%s10622_s29 + $0x58] sm:$0xf0]  ;;  %v6283_v16 = vor.u32 %v7622_v9, %v6280_v10  ;;  %v6287_v17 = vor.u32 %v7629_v12, %v6286_v11  ;;  %v8541_v27 = vld [vmem:[%s10624_s27] sm:$0xff]  ;;  %s10641_s27 = sld [smem:[#allocation22_spill]] }
  0x3a   : > { %v6291_v18 = vor.u32 %v7623_v13, %v6288_v14  ;;  %v869_v30 = vperm.slane %v8541_v27, 4  ;;  %v870_v31 = vperm.slane %v8541_v27, 5  ;;  %v865_v36 = vperm.slane %v8541_v27, 0  ;;  %v8552_v58 = vld [vmem:[%s10625_s30 + $0x8] sm:$0xf]  ;;  %s10663_s26 = sld [smem:[#allocation20_spill]] }
  0x3b   : > { %v866_v37 = vperm.slane %v8541_v27, 1  ;;  %v871_v38 = vperm.slane %v8541_v27, 6  ;;  %v872_v39 = vperm.slane %v8541_v27, 7  ;;  %v873_v9 = vperm.slane %v8552_v58, 0  ;;  %s10701_s5 = sld [smem:[#allocation9_spill]] }
  0x3c   : > { %v874_v10 = vperm.slane %v8552_v58, 1  ;;  %s10702_s1 = sld [smem:[#allocation26_spill]] }
  0x40   : > { %s10664_s3 = smov %s10663_s26 }
  0x9e   : > { %v8454_v51 = vpop.permute.xlu0 %801 }
  0x9f   : > { %v8478_v60 = vmul.f32 %v8454_v51, %v791_v52 }
  0xa6   : > { %v8466_v56 = vpop.permute.xlu0 %806 }
  0xa7   : > { %v8481_v61 = vmul.f32 %v8466_v56, %v792_v53 }
  0xa9   : > { %v836_v2 = vpack.c.bf16 %v8481_v61, %v8478_v60 }
  0xab   : > { %6340 = vmatmul.msk.bf16.vlgmr.msra.gmra.mxu0 %vm1009_vm0, %v836_v2  ;;  %6341 = vmatmul.msk.bf16.vlgmr.msra.gmra.mxu1 %vm1009_vm0, %v836_v2 }
  0xac   : > { %6342 = vmatmul.msk.bf16.vlgmr.msra.gmra.mxu2 %vm1009_vm0, %v836_v2  ;;  %6343 = vmatmul.msk.bf16.vlgmr.msra.gmra.mxu3 %vm1009_vm0, %v836_v2 }
  0xad   : > { %1131 = vmatpush.bf16.msra.mxu0 %v6327_v3  ;;  %1145 = vmatpush.bf16.msra.mxu1 %v6331_v4 }
  0xae   : > { %1159 = vmatpush.bf16.msra.mxu2 %v6335_v7  ;;  %1173 = vmatpush.bf16.msra.mxu3 %v6339_v8 }
  0xb1   : > { %1132 = vmatpush.bf16.msra.mxu0 %v6279_v15  ;;  %1146 = vmatpush.bf16.msra.mxu1 %v6283_v16 }
  0xb2   : > { %1160 = vmatpush.bf16.msra.mxu2 %v6287_v17  ;;  %1174 = vmatpush.bf16.msra.mxu3 %v6291_v18 }
  0xbb   : > { %6344 = vmatmul.msk.bf16.vlgmr.msrb.gmra.mxu0 %vm1009_vm0, %v836_v2  ;;  %6345 = vmatmul.msk.bf16.vlgmr.msrb.gmra.mxu1 %vm1009_vm0, %v836_v2 }
  0xbc   : > { %6346 = vmatmul.msk.bf16.vlgmr.msrb.gmra.mxu2 %vm1009_vm0, %v836_v2  ;;  %6347 = vmatmul.msk.bf16.vlgmr.msrb.gmra.mxu3 %vm1009_vm0, %v836_v2 }
  0xcb   : > { %6348 = vmatmul.msk.bf16.vlgmr.msra.gmra.mxu0 %vm1009_vm0, %v836_v2  ;;  %6349 = vmatmul.msk.bf16.vlgmr.msra.gmra.mxu1 %vm1009_vm0, %v836_v2 }
  0xcc   : > { %6350 = vmatmul.msk.bf16.vlgmr.msra.gmra.mxu2 %vm1009_vm0, %v836_v2  ;;  %6351 = vmatmul.msk.bf16.vlgmr.msra.gmra.mxu3 %vm1009_vm0, %v836_v2 }
 0x128   : > { %v1022_v19 = vpop.f32.mrf.mxu0  ;;  %v1036_v20 = vpop.f32.mrf.mxu1 }
 0x129   : > { %v1023_v48 = vadd.f32 %v1022_v19, %v865_v36  ;;  %v1037_v49 = vadd.f32 %v1036_v20, %v866_v37 }
 0x12b   : > { %v1181_v8 = vpack.c.bf16 %v1037_v49, %v1023_v48 }
 0x12d   : > { %v1195_v18 = vunpack.c.l.b16 %v1181_v8  ;;  %v1294_v19 = vunpack.c.h.b16 %v1181_v8 }
 0x12f   : > { %v8530_v21 = vpop.f32.mrf.mxu2  ;;  %v8532_v22 = vpop.f32.mrf.mxu3 }
 0x130   : > { %v1024_v23 = vpop.f32.mrf.mxu0  ;;  %v1038_v24 = vpop.f32.mrf.mxu1 }
 0x131   : > { %v1025_v45 = vadd.f32 %v1024_v23, %v865_v36  ;;  %v1039_v46 = vadd.f32 %v1038_v24, %v866_v37  ;;  %v876_v36 = vperm.slane %v8552_v58, 3 }
 0x133   : > { %v1187_v59 = vpack.c.bf16 %v1039_v46, %v1025_v45 }
 0x135   : > { %v1196_v12 = vunpack.c.l.b16 %v1187_v59  ;;  %v1295_v13 = vunpack.c.h.b16 %v1187_v59 }
 0x137   : > { %v8534_v25 = vpop.f32.mrf.mxu2  ;;  %v8536_v26 = vpop.f32.mrf.mxu3 }
 0x138   : > { %v1078_v28 = vpop.f32.mrf.mxu0  ;;  %v1092_v29 = vpop.f32.mrf.mxu1 }
 0x139   : > { %v1079_v32 = vadd.f32 %v1078_v28, %v869_v30  ;;  %v1093_v33 = vadd.f32 %v1092_v29, %v870_v31 }
 0x13b   : > { %v1183_v42 = vpack.c.bf16 %v1093_v33, %v1079_v32  ;;  %v1296_v32 = vpack.c.b16 %v1295_v13, %v1294_v19  ;;  %v867_v33 = vperm.slane %v8541_v27, 2 }
 0x13d   : > { %v1201_v53 = vunpack.c.l.b16 %v1183_v42  ;;  %v1298_v54 = vunpack.c.h.b16 %v1183_v42  ;;  %v1053_v42 = vadd.f32 %v8534_v25, %v867_v33 }
 0x13f   : > { %v1106_v34 = vpop.f32.mrf.mxu2  ;;  %v1120_v35 = vpop.f32.mrf.mxu3 }
 0x140   : > { %v1080_v40 = vpop.f32.mrf.mxu0  ;;  %v1094_v41 = vpop.f32.mrf.mxu1  ;;  %v1107_v50 = vadd.f32 %v1106_v34, %v871_v38  ;;  %v1121_v52 = vadd.f32 %v1120_v35, %v872_v39  ;;  %v868_v34 = vperm.slane %v8541_v27, 3  ;;  %v875_v35 = vperm.slane %v8552_v58, 2 }
 0x141   : > { %v1081_v43 = vadd.f32 %v1080_v40, %v869_v30  ;;  %v1095_v44 = vadd.f32 %v1094_v41, %v870_v31  ;;  %v1197_v31 = vpack.c.b16 %v1196_v12, %v1195_v18  ;;  %v1051_v27 = vadd.f32 %v8530_v21, %v867_v33 }
 0x142   : > { %v1184_v3 = vpack.c.bf16 %v1121_v52, %v1107_v50  ;;  %v1065_v45 = vadd.f32 %v8532_v22, %v868_v34 }
 0x143   : > { %v1189_v47 = vpack.c.bf16 %v1095_v44, %v1081_v43  ;;  %v1067_v43 = vadd.f32 %v8536_v26, %v868_v34 }
 0x144   : > { %v1396_v14 = vunpack.c.l.b16 %v1184_v3  ;;  %v1492_v15 = vunpack.c.h.b16 %v1184_v3  ;;  %v1182_v26 = vpack.c.bf16 %v1065_v45, %v1051_v27 }
 0x145   : > { %v1202_v55 = vunpack.c.l.b16 %v1189_v47  ;;  %v1299_v57 = vunpack.c.h.b16 %v1189_v47 }
 0x147   : > { %v1108_v62 = vpop.f32.mrf.mxu2  ;;  %v1122_v63 = vpop.f32.mrf.mxu3  ;;  %v1203_v1 = vpack.c.b16 %v1202_v55, %v1201_v53  ;;  %v1300_v2 = vpack.c.b16 %v1299_v57, %v1298_v54  ;;  %v1188_v53 = vpack.c.bf16 %v1067_v43, %v1053_v42 }
 0x148   : > { %v1109_v4 = vadd.f32 %v1108_v62, %v871_v38  ;;  %v1123_v5 = vadd.f32 %v1122_v63, %v872_v39  ;;  %v1134_v6 = vpop.f32.mrf.mxu0  ;;  %v1148_v7 = vpop.f32.mrf.mxu1 }
 0x149   : > { %1212 = vmatpush.bf16.xpose.msrb.mxu0 %v1203_v1  ;;  %1309 = vmatpush.bf16.xpose.msrb.mxu2 %v1300_v2  ;;  %v1135_v20 = vadd.f32 %v1134_v6, %v873_v9  ;;  %v1149_v23 = vadd.f32 %v1148_v7, %v874_v10  ;;  %v1391_v63 = vunpack.c.l.b16 %v1188_v53  ;;  %v1489_v22 = vunpack.c.h.b16 %v1188_v53 }
 0x14a   : > { %v1190_v11 = vpack.c.bf16 %v1123_v5, %v1109_v4  ;;  %v1390_v5 = vunpack.c.l.b16 %v1182_v26  ;;  %v1488_v6 = vunpack.c.h.b16 %v1182_v26 }
 0x14b   : > { %v1185_v39 = vpack.c.bf16 %v1149_v23, %v1135_v20 }
 0x14c   : > { %v1397_v16 = vunpack.c.l.b16 %v1190_v11  ;;  %v1493_v17 = vunpack.c.h.b16 %v1190_v11  ;;  %v811_v11 = vlaneseq }
 0x14d   : > { %v1273_v48 = vunpack.c.l.b16 %v1185_v39  ;;  %v1367_v49 = vunpack.c.h.b16 %v1185_v39 }
 0x14e   : > { %v1398_v24 = vpack.c.b16 %v1397_v16, %v1396_v14  ;;  %v1494_v28 = vpack.c.b16 %v1493_v17, %v1492_v15  ;;  %v812_v12 = vshrl.u32 %v811_v11, 7  ;;  %v815_v13 = vand.u32 127, %v811_v11 }
 0x14f   : > { %v1162_v29 = vpop.f32.mrf.mxu2  ;;  %v1176_v30 = vpop.f32.mrf.mxu3 }
 0x150   : > { %v1136_v37 = vpop.f32.mrf.mxu0  ;;  %v1150_v38 = vpop.f32.mrf.mxu1  ;;  %1213 = vmatmul.bf16.vlgmr.msrb.gmra.mxu0 %v1197_v31  ;;  %1310 = vmatmul.bf16.vlgmr.msrb.gmra.mxu2 %v1296_v32  ;;  %v1163_v46 = vadd.f32 %v1162_v29, %v875_v35  ;;  %v1177_v47 = vadd.f32 %v1176_v30, %v876_v36  ;;  %vm8564_vm1 = vcmp.ge.s32.totalorder %v812_v12, %v815_v13  ;;  %v813_v18 = vadd.s32 8, %v812_v12 }
 0x151   : > { %1407 = vmatpush.bf16.xpose.msra.mxu0 %v1398_v24  ;;  %1503 = vmatpush.bf16.xpose.msra.mxu2 %v1494_v28  ;;  %v1137_v40 = vadd.f32 %v1136_v37, %v873_v9  ;;  %v1151_v41 = vadd.f32 %v1150_v38, %v874_v10  ;;  %v1392_v9 = vpack.c.b16 %v1391_v63, %v1390_v5 }
 0x152   : > { %v1186_v59 = vpack.c.bf16 %v1177_v47, %v1163_v46  ;;  %v1490_v10 = vpack.c.b16 %v1489_v22, %v1488_v6  ;;  %vm8571_vm3 = vcmp.ge.s32.totalorder %v813_v18, %v815_v13 }
 0x153   : > { %v1191_v44 = vpack.c.bf16 %v1151_v41, %v1137_v40 }
 0x154   : > { %v1467_v1 = vunpack.c.l.b16 %v1186_v59  ;;  %v1561_v2 = vunpack.c.h.b16 %v1186_v59 }
 0x155   : > { %v1274_v50 = vunpack.c.l.b16 %v1191_v44  ;;  %v1368_v52 = vunpack.c.h.b16 %v1191_v44 }
 0x157   : > { %v1164_v54 = vpop.f32.mrf.mxu2  ;;  %v1178_v55 = vpop.f32.mrf.mxu3  ;;  %v1275_v57 = vpack.c.b16 %v1274_v50, %v1273_v48  ;;  %v1369_v58 = vpack.c.b16 %v1368_v52, %v1367_v49 }
 0x158   : > { %v1165_v25 = vadd.f32 %v1164_v54, %v875_v35  ;;  %v1179_v62 = vadd.f32 %v1178_v55, %v876_v36 }
 0x159   : > { %1287 = vmatpush.bf16.msrb.mxu1 %v1275_v57  ;;  %1381 = vmatpush.bf16.msrb.mxu3 %v1369_v58 }
 0x15a   : > { %v1192_v21 = vpack.c.bf16 %v1179_v62, %v1165_v25 }
 0x15c   : > { %v1468_v3 = vunpack.c.l.b16 %v1192_v21  ;;  %v1562_v4 = vunpack.c.h.b16 %v1192_v21 }
 0x15e   : > { %v1469_v7 = vpack.c.b16 %v1468_v3, %v1467_v1  ;;  %v1563_v8 = vpack.c.b16 %v1562_v4, %v1561_v2 }
 0x160   : > { %1481 = vmatpush.bf16.msra.mxu1 %v1469_v7  ;;  %1575 = vmatpush.bf16.msra.mxu3 %v1563_v8 }
 0x161   : > { %1408 = vmatmul.bf16.vlgmr.msra.gmra.mxu0 %v1392_v9  ;;  %1504 = vmatmul.bf16.vlgmr.msra.gmra.mxu2 %v1490_v10 }
 0x1cd   : > { %v1214_v15 = vpop.f32.mrf.mxu0 }
 0x1ce   : > { %v1219_v16 = vsel %vm8564_vm1, %v1214_v15, -10000.0 }
 0x1cf   : > { %v1222_v17 = vsel %vm1221_vm2, %v1219_v16, -inf }
 0x1d0   : > { %1223 = vmax.xlane.f32.xlu2 %v1222_v17 }
 0x1d3   : > { %v1311_v19 = vpop.f32.mrf.mxu2 }
 0x1d4   : > { %v1316_v23 = vsel %vm8564_vm1, %v1311_v19, -10000.0 }
 0x1d5   : > { %v1216_v24 = vpop.f32.mrf.mxu0  ;;  %v1318_v28 = vsel %vm1221_vm2, %v1316_v23, -inf }
 0x1d6   : > { %1319 = vmax.xlane.f32.xlu1 %v1318_v28  ;;  %v1220_v29 = vsel %vm8571_vm3, %v1216_v24, -10000.0 }
 0x1d7   : > { %v1225_v30 = vsel %vm1221_vm2, %v1220_v29, -inf }
 0x1d8   : > { %1226 = vmax.xlane.f32.xlu2 %v1225_v30 }
 0x1db   : > { %v1313_v31 = vpop.f32.mrf.mxu2 }
 0x1dc   : > { %v1317_v32 = vsel %vm8571_vm3, %v1313_v31, -10000.0 }
 0x1dd   : > { %v1321_v34 = vsel %vm1221_vm2, %v1317_v32, -inf }
 0x1de   : > { %v1409_v33 = vpop.f32.mrf.mxu0  ;;  %1322 = vmax.xlane.f32.xlu1 %v1321_v34 }
 0x1df   : > { %v1414_v35 = vsel %vm8564_vm1, %v1409_v33, -10000.0 }
 0x1e0   : > { %v1416_v36 = vsel %vm1221_vm2, %v1414_v35, -inf }
 0x1e1   : > { %1417 = vmax.xlane.f32.xlu2 %v1416_v36 }
 0x1e4   : > { %v1505_v37 = vpop.f32.mrf.mxu2 }
 0x1e5   : > { %v1510_v38 = vsel %vm8564_vm1, %v1505_v37, -10000.0 }
 0x1e6   : > { %v1512_v39 = vsel %vm1221_vm2, %v1510_v38, -inf  ;;  %v1411_v43 = vpop.f32.mrf.mxu0 }
 0x1e7   : > { %1513 = vmax.xlane.f32.xlu0 %v1512_v39  ;;  %v1415_v44 = vsel %vm8571_vm3, %v1411_v43, -10000.0 }
 0x1e8   : > { %v1419_v27 = vsel %vm1221_vm2, %v1415_v44, -inf }
 0x1ec   : > { %v1507_v40 = vpop.f32.mrf.mxu2 }
 0x1ed   : > { %v1511_v41 = vsel %vm8571_vm3, %v1507_v40, -10000.0 }
 0x1ee   : > { %v1515_v42 = vsel %vm1221_vm2, %v1511_v41, -inf }
 0x1ef   : > { %1516 = vmax.xlane.f32.xlu1 %v1515_v42 }
 0x1f7   : > { %1420 = vmax.xlane.f32.xlu1 %v1419_v27 }
 0x243   : > { %v1224_v45 = vpop.xlane.xlu2 %1223 }
 0x244   : > { %v1228_v48 = vsub.f32 %v1219_v16, %v1224_v45 }
 0x246   : > { %v1230_v52 = vmul.f32 1.442695, %v1228_v48 }
 0x249   : > { %v1320_v46 = vpop.xlane.xlu1 %1319 }
 0x24a   : > { %v1324_v47 = vsub.f32 %v1316_v23, %v1320_v46 }
 0x24b   : > { %v1227_v50 = vpop.xlane.xlu2 %1226 }
 0x24c   : > { %v1326_v49 = vmul.f32 1.442695, %v1324_v47  ;;  %v1229_v57 = vsub.f32 %v1220_v29, %v1227_v50 }
 0x24e   : > { %7944 = vpow2.f32 %v1326_v49  ;;  %v1232_v25 = vmul.f32 1.442695, %v1229_v57  ;;  %v7649_v57 = vld [vmem:[%s10632_s24 + $0x38] sm:$0xff] }
 0x24f   : > { %7946 = vpow2.f32 %v1230_v52  ;;  %1846 = vmatpush.bf16.msrb.mxu0 %v7649_v57 }
 0x251   : > { %v1323_v53 = vpop.xlane.xlu1 %1322 }
 0x252   : > { %v1325_v54 = vsub.f32 %v1317_v32, %v1323_v53 }
 0x254   : > { %v8596_v55 = vpop.eup %7944  ;;  %v1328_v58 = vmul.f32 1.442695, %v1325_v54  ;;  %v1418_v62 = vpop.xlane.xlu2 %1417 }
 0x255   : > { %v1330_v59 = vsel %vm1221_vm2, %v8596_v55, 0.0  ;;  %v8600_v21 = vpop.eup %7946  ;;  %v1422_v1 = vsub.f32 %v1414_v35, %v1418_v62 }
 0x256   : > { %7948 = vpow2.f32 %v1328_v58  ;;  %1331 = vadd.xlane.f32.xlu2 %v1330_v59  ;;  %v1234_v4 = vsel %vm1221_vm2, %v8600_v21, 0.0 }
 0x257   : > { %7950 = vpow2.f32 %v1232_v25  ;;  %v1424_v5 = vmul.f32 1.442695, %v1422_v1 }
 0x25a   : > { %v1514_v26 = vpop.xlane.xlu0 %1513 }
 0x25b   : > { %v1518_v63 = vsub.f32 %v1510_v38, %v1514_v26 }
 0x25c   : > { %v8602_v22 = vpop.eup %7948 }
 0x25d   : > { %v1520_v2 = vmul.f32 1.442695, %v1518_v63  ;;  %v1333_v3 = vsel %vm1221_vm2, %v8602_v22, 0.0  ;;  %v8608_v7 = vpop.eup %7950 }
 0x25e   : > { %1334 = vadd.xlane.f32.xlu1 %v1333_v3  ;;  %1235 = vadd.xlane.f32.xlu2 %v1234_v4  ;;  %v1237_v12 = vsel %vm1221_vm2, %v8608_v7, 0.0 }
 0x25f   : > { %7952 = vpow2.f32 %v1520_v2  ;;  %v7648_v2 = vld [vmem:[%s10632_s24 + $0x30] sm:$0xff] }
 0x260   : > { %7954 = vpow2.f32 %v1424_v5  ;;  %1847 = vmatpush.bf16.msrb.mxu0 %v7648_v2 }
 0x262   : > { %v1517_v6 = vpop.xlane.xlu1 %1516 }
 0x263   : > { %v1519_v8 = vsub.f32 %v1511_v41, %v1517_v6 }
 0x265   : > { %v8610_v9 = vpop.eup %7952  ;;  %v1522_v10 = vmul.f32 1.442695, %v1519_v8 }
 0x266   : > { %v1524_v11 = vsel %vm1221_vm2, %v8610_v9, 0.0  ;;  %1238 = vadd.xlane.f32.xlu1 %v1237_v12  ;;  %v8616_v15 = vpop.eup %7954 }
 0x267   : > { %7956 = vpow2.f32 %v1522_v10  ;;  %1525 = vadd.xlane.f32.xlu2 %v1524_v11  ;;  %v1428_v23 = vsel %vm1221_vm2, %v8616_v15, 0.0 }
 0x26a   : > { %v1421_v13 = vpop.xlane.xlu1 %1420 }
 0x26b   : > { %v1423_v16 = vsub.f32 %v1415_v44, %v1421_v13  ;;  %v7665_v13 = vld [vmem:[%s10632_s24 + $0xb8] sm:$0xff] }
 0x26c   : > { %1874 = vmatpush.bf16.msrb.mxu2 %v7665_v13 }
 0x26d   : > { %v8618_v17 = vpop.eup %7956  ;;  %v1426_v18 = vmul.f32 1.442695, %v1423_v16 }
 0x26e   : > { %v1527_v19 = vsel %vm1221_vm2, %v8618_v17, 0.0 }
 0x26f   : > { %7958 = vpow2.f32 %v1426_v18  ;;  %1528 = vadd.xlane.f32.xlu1 %v1527_v19  ;;  %1429 = vadd.xlane.f32.xlu2 %v1428_v23 }
 0x275   : > { %v8624_v24 = vpop.eup %7958 }
 0x276   : > { %v1431_v28 = vsel %vm1221_vm2, %v8624_v24, 0.0 }
 0x277   : > { %1432 = vadd.xlane.f32.xlu1 %v1431_v28 }
 0x2c9   : > { %v1332_v29 = vpop.xlane.xlu2 %1331 }
 0x2ca   : > { %7960 = vrcp.f32 %v1332_v29  ;;  %v1347_v42 = vand.u32 2147483648, %v1332_v29  ;;  %vm1341_vm5 = vweird.f32 %v1332_v29  ;;  %v1345_v44 = vand.u32 2147483647, %v1332_v29 }
 0x2cc   : > { %v1348_v52 = vor.u32 1.1754944e-38, %v1347_v42  ;;  %vm1346_vm8 = vcmp.eq.f32.partialorder %v1345_v44, 8.507059e+37 }
 0x2d0   : > { %v7961_v30 = vpop.eup %7960 }
 0x2d1   : > { %v1337_v31 = vmul.f32 %v7961_v30, %v1332_v29  ;;  %v1335_v32 = vpop.xlane.xlu1 %1334  ;;  %v8628_v33 = vpop.xlane.xlu2 %1235  ;;  %vm1342_vm4 = vweird.f32 %v7961_v30 }
 0x2d2   : > { %7962 = vrcp.f32 %v1335_v32  ;;  %vm8640_vm6 = vmor %vm1341_vm5, %vm1342_vm4  ;;  %v1360_v46 = vand.u32 2147483647, %v1335_v32  ;;  %v1362_v47 = vand.u32 2147483648, %v1335_v32  ;;  %vm1356_vm9 = vweird.f32 %v1335_v32 }
 0x2d3   : > { %v1338_v34 = vsub.f32 1.0, %v1337_v31  ;;  %7964 = vrcp.f32 %v8628_v33  ;;  %v1249_v5 = vand.u32 2147483647, %v8628_v33  ;;  %v1251_v6 = vand.u32 2147483648, %v8628_v33  ;;  %v7673_v31 = vld [vmem:[%s10632_s24 + $0xf8] sm:$0xff] }
 0x2d4   : > { %vm1361_vm11 = vcmp.eq.f32.partialorder %v1360_v46, 8.507059e+37  ;;  %v1363_v25 = vor.u32 1.1754944e-38, %v1362_v47  ;;  %vm1245_vm13 = vweird.f32 %v8628_v33 }
 0x2d5   : > { %v1339_v35 = vmul.f32 %v7961_v30, %v1338_v34  ;;  %vm1250_vm4 = vcmp.eq.f32.partialorder %v1249_v5, 8.507059e+37 }
 0x2d7   : > { %v1340_v38 = vadd.f32 %v7961_v30, %v1339_v35 }
 0x2d8   : > { %v7963_v36 = vpop.eup %7962 }
 0x2d9   : > { %v8631_v37 = vpop.eup %7964  ;;  %v1352_v39 = vmul.f32 %v7963_v36, %v1335_v32  ;;  %v8633_v40 = vpop.xlane.xlu1 %1238  ;;  %v1344_v49 = vsel %vm8640_vm6, %v7961_v30, %v1340_v38  ;;  %vm1357_vm7 = vweird.f32 %v7963_v36  ;;  %v1252_v30 = vor.u32 1.1754944e-38, %v1251_v6 }
 0x2da   : > { %v8635_v41 = vpop.xlane.xlu2 %1525  ;;  %v1241_v43 = vmul.f32 %v8631_v37, %v8628_v33  ;;  %7966 = vrcp.f32 %v8633_v40  ;;  %v1349_v59 = vsel %vm1346_vm8, %v1348_v52, %v1344_v49  ;;  %vm1358_vm10 = vmor %vm1356_vm9, %vm1357_vm7  ;;  %vm1246_vm12 = vweird.f32 %v8631_v37 }
 0x2db   : > { %v1353_v27 = vsub.f32 1.0, %v1352_v39  ;;  %7968 = vrcp.f32 %v8635_v41  ;;  %v1350_v16 = vmul.f32 %v8596_v55, %v1349_v59  ;;  %vm8676_vm14 = vmor %vm1245_vm13, %vm1246_vm12  ;;  %v1266_v19 = vand.u32 2147483648, %v8633_v40  ;;  %v7647_v55 = vld [vmem:[%s10632_s24 + $0x28] sm:$0xff] }
 0x2dc   : > { %v1242_v48 = vsub.f32 1.0, %v1241_v43  ;;  %vm1260_vm5 = vweird.f32 %v8633_v40  ;;  %1848 = vmatpush.bf16.msrb.mxu0 %v7647_v55  ;;  %vm1535_vm9 = vweird.f32 %v8635_v41 }
 0x2dd   : > { %v1354_v50 = vmul.f32 %v7963_v36, %v1353_v27  ;;  %v1541_v27 = vand.u32 2147483648, %v8635_v41 }
 0x2de   : > { %v1243_v53 = vmul.f32 %v8631_v37, %v1242_v48  ;;  %v1539_v48 = vand.u32 2147483647, %v8635_v41 }
 0x2df   : > { %v1355_v54 = vadd.f32 %v7963_v36, %v1354_v50  ;;  %v1542_v59 = vor.u32 1.1754944e-38, %v1541_v27  ;;  %v7650_v27 = vld [vmem:[%s10632_s24 + $0x40] sm:$0xff]  ;;  %v7668_v50 = vld [vmem:[%s10632_s24 + $0xd0] sm:$0xff] }
 0x2e0   : > { %v7967_v58 = vpop.eup %7966  ;;  %v1244_v26 = vadd.f32 %v8631_v37, %v1243_v53  ;;  %vm1540_vm12 = vcmp.eq.f32.partialorder %v1539_v48, 8.507059e+37  ;;  %v7669_v48 = vld [vmem:[%s10632_s24 + $0xd8] sm:$0xff] }
 0x2e1   : > { %v1359_v62 = vsel %vm1358_vm10, %v7963_v36, %v1355_v54  ;;  %v1256_v63 = vmul.f32 %v7967_v58, %v8633_v40  ;;  %v8659_v3 = vpop.eup %7968  ;;  %vm1261_vm15 = vweird.f32 %v7967_v58 }
 0x2e2   : > { %v8654_v1 = vpop.xlane.xlu1 %1528  ;;  %v1364_v4 = vsel %vm1361_vm11, %v1363_v25, %v1359_v62  ;;  %v8664_v8 = vpop.xlane.xlu2 %1429  ;;  %v1531_v12 = vmul.f32 %v8659_v3, %v8635_v41  ;;  %v1248_v23 = vsel %vm8676_vm14, %v8631_v37, %v1244_v26  ;;  %vm1262_vm6 = vmor %vm1260_vm5, %vm1261_vm15  ;;  %v1267_v37 = vor.u32 1.1754944e-38, %v1266_v19 }
 0x2e3   : > { %7970 = vrcp.f32 %v8654_v1  ;;  %v1365_v10 = vmul.f32 %v8602_v22, %v1364_v4  ;;  %v1257_v11 = vsub.f32 1.0, %v1256_v63  ;;  %v1264_v22 = vand.u32 2147483647, %v8633_v40  ;;  %v7646_v40 = vld [vmem:[%s10632_s24 + $0x20] sm:$0xff]  ;;  %v7656_v4 = vld [vmem:[%s10632_s24 + $0x70] sm:$0xff] }
 0x2e4   : > { %v1532_v29 = vsub.f32 1.0, %v1531_v12  ;;  %7972 = vrcp.f32 %v8664_v8  ;;  %v1253_v36 = vsel %vm1250_vm4, %v1252_v30, %v1248_v23  ;;  %vm1536_vm8 = vweird.f32 %v8659_v3  ;;  %1849 = vmatpush.bf16.msrb.mxu0 %v7646_v40  ;;  %v7655_v23 = vld [vmem:[%s10632_s24 + $0x68] sm:$0xff] }
 0x2e5   : > { %v1258_v28 = vmul.f32 %v7967_v58, %v1257_v11  ;;  %v1366_v34 = vpack.c.bf16 %v1365_v10, %v1350_v16  ;;  %vm1265_vm7 = vcmp.eq.f32.partialorder %v1264_v22, 8.507059e+37  ;;  %v1254_v46 = vmul.f32 %v8600_v21, %v1253_v36  ;;  %vm8712_vm10 = vmor %vm1535_vm9, %vm1536_vm8  ;;  %v7657_v21 = vld [vmem:[%s10632_s24 + $0x78] sm:$0xff]  ;;  %v7643_v40 = vld [vmem:[%s10632_s24 + $0x8] sm:$0xff] }
 0x2e6   : > { %v1533_v33 = vmul.f32 %v8659_v3, %v1532_v29  ;;  %v1554_v52 = vand.u32 2147483647, %v8654_v1  ;;  %v1556_v53 = vand.u32 2147483648, %v8654_v1  ;;  %vm1550_vm13 = vweird.f32 %v8654_v1  ;;  %v7653_v36 = vld [vmem:[%s10632_s24 + $0x58] sm:$0xff] }
 0x2e7   : > { %v1259_v32 = vadd.f32 %v7967_v58, %v1258_v28  ;;  %6353 = vmatmul.msk.bf16.vlgmr.msrb.gmra.mxu3 %vm1221_vm2, %v1366_v34  ;;  %vm1439_vm5 = vweird.f32 %v8664_v8  ;;  %v1445_v11 = vand.u32 2147483648, %v8664_v8  ;;  %v1443_v16 = vand.u32 2147483647, %v8664_v8 }
 0x2e8   : > { %v1534_v39 = vadd.f32 %v8659_v3, %v1533_v33  ;;  %1888 = vmatpush.bf16.msrb.mxu3 %v7673_v31  ;;  %v1557_v2 = vor.u32 1.1754944e-38, %v1556_v53  ;;  %vm1555_vm15 = vcmp.eq.f32.partialorder %v1554_v52, 8.507059e+37  ;;  %v7654_v31 = vld [vmem:[%s10632_s24 + $0x60] sm:$0xff]  ;;  %v7660_v52 = vld [vmem:[%s10632_s24 + $0x90] sm:$0xff]  ;;  %v7667_v53 = vld [vmem:[%s10632_s24 + $0xc8] sm:$0xff] }
 0x2e9   : > { %v7971_v35 = vpop.eup %7970  ;;  %v1263_v38 = vsel %vm1262_vm6, %v7967_v58, %v1259_v32  ;;  %v7645_v58 = vld [vmem:[%s10632_s24 + $0x18] sm:$0xff]  ;;  %vm1444_vm8 = vcmp.eq.f32.partialorder %v1443_v16, 8.507059e+37 }
 0x2ea   : > { %v1546_v42 = vmul.f32 %v7971_v35, %v8654_v1  ;;  %v8699_v43 = vpop.xlane.xlu1 %1432  ;;  %v1268_v44 = vsel %vm1265_vm7, %v1267_v37, %v1263_v38  ;;  %v7973_v45 = vpop.eup %7972  ;;  %vm1551_vm11 = vweird.f32 %v7971_v35  ;;  %1850 = vmatpush.bf16.msrb.mxu0 %v7645_v58  ;;  %v7652_v38 = vld [vmem:[%s10632_s24 + $0x50] sm:$0xff] }
 0x2eb   : > { %7974 = vrcp.f32 %v8699_v43  ;;  %v1269_v47 = vmul.f32 %v8608_v7, %v1268_v44  ;;  %v1435_v54 = vmul.f32 %v7973_v45, %v8664_v8  ;;  %v1538_v7 = vsel %vm8712_vm10, %v8659_v3, %v1534_v39  ;;  %vm1552_vm14 = vmor %vm1550_vm13, %vm1551_vm11  ;;  %v7672_v39 = vld [vmem:[%s10632_s24 + $0xf0] sm:$0xff]  ;;  %v7663_v44 = vld [vmem:[%s10632_s24 + $0xa8] sm:$0xff] }
 0x2ec   : > { %v1547_v49 = vsub.f32 1.0, %v1546_v42  ;;  %v1543_v63 = vsel %vm1540_vm12, %v1542_v59, %v1538_v7  ;;  %vm1440_vm4 = vweird.f32 %v7973_v45  ;;  %v1458_v22 = vand.u32 2147483647, %v8699_v43  ;;  %1889 = vmatpush.bf16.msrb.mxu3 %v7672_v39  ;;  %v7651_v42 = vld [vmem:[%s10632_s24 + $0x48] sm:$0xff]  ;;  %v7658_v7 = vld [vmem:[%s10632_s24 + $0x80] sm:$0xff] }
 0x2ed   : > { %v1270_v57 = vpack.c.bf16 %v1269_v47, %v1254_v46  ;;  %v1436_v25 = vsub.f32 1.0, %v1435_v54  ;;  %v1544_v12 = vmul.f32 %v8610_v9, %v1543_v63  ;;  %vm1441_vm6 = vmor %vm1439_vm5, %vm1440_vm4  ;;  %v1460_v19 = vand.u32 2147483648, %v8699_v43  ;;  %v7642_v46 = vld [vmem:[%s10632_s24] sm:$0xff]  ;;  %v7659_v54 = vld [vmem:[%s10632_s24 + $0x88] sm:$0xff] }
 0x2ee   : > { %v1548_v41 = vmul.f32 %v7971_v35, %v1547_v49  ;;  %v1446_v9 = vor.u32 1.1754944e-38, %v1445_v11  ;;  %vm1454_vm9 = vweird.f32 %v8699_v43  ;;  %vm1459_vm11 = vcmp.eq.f32.partialorder %v1458_v22, 8.507059e+37  ;;  %v7662_v47 = vld [vmem:[%s10632_s24 + $0xa0] sm:$0xff]  ;;  %v7661_v49 = vld [vmem:[%s10632_s24 + $0x98] sm:$0xff] }
 0x2ef   : > { %6352 = vmatmul.msk.bf16.vlgmr.msrb.gmra.mxu1 %vm1221_vm2, %v1270_v57  ;;  %v1437_v3 = vmul.f32 %v7973_v45, %v1436_v25  ;;  %v1461_v30 = vor.u32 1.1754944e-38, %v1460_v19 }
 0x2f0   : > { %v1549_v62 = vadd.f32 %v7971_v35, %v1548_v41  ;;  %1860 = vmatpush.bf16.msrb.mxu1 %v7657_v21  ;;  %v7666_v21 = vld [vmem:[%s10632_s24 + $0xc0] sm:$0xff] }
 0x2f1   : > { %v7975_v26 = vpop.eup %7974  ;;  %v1438_v1 = vadd.f32 %v7973_v45, %v1437_v3 }
 0x2f2   : > { %v1553_v5 = vsel %vm1552_vm14, %v7971_v35, %v1549_v62  ;;  %v1450_v6 = vmul.f32 %v7975_v26, %v8699_v43  ;;  %vm1455_vm7 = vweird.f32 %v7975_v26  ;;  %v7671_v43 = vld [vmem:[%s10632_s24 + $0xe8] sm:$0xff] }
 0x2f3   : > { %v1558_v10 = vsel %vm1555_vm15, %v1557_v2, %v1553_v5  ;;  %v1442_v28 = vsel %vm1441_vm6, %v7973_v45, %v1438_v1  ;;  %vm1456_vm10 = vmor %vm1454_vm9, %vm1455_vm7  ;;  %1890 = vmatpush.bf16.msrb.mxu3 %v7671_v43  ;;  %v7670_v45 = vld [vmem:[%s10632_s24 + $0xe0] sm:$0xff]  ;;  %vm2412_vm9 = vcmask 1045504  }
 0x2f4   : > { %v1559_v13 = vmul.f32 %v8618_v17, %v1558_v10  ;;  %v1451_v18 = vsub.f32 1.0, %v1450_v6  ;;  %1861 = vmatpush.bf16.msrb.mxu1 %v7656_v4  ;;  %v1447_v8 = vsel %vm1444_vm8, %v1446_v9, %v1442_v28  ;;  %v7924_v10 = vld [vmem:[%s10637_s0] ss:$0 sm:$0xff]  ;;  %s786_s0 = scalar_lea.vmem %s10644_s25, %s8348_s4 }
 0x2f5   : > { %v1448_v34 = vmul.f32 %v8616_v15, %v1447_v8  ;;  %v7644_v15 = vld [vmem:[%s10632_s24 + $0x10] sm:$0xff] }
 0x2f6   : > { %v1452_v29 = vmul.f32 %v7975_v26, %v1451_v18  ;;  %v1560_v55 = vpack.c.bf16 %v1559_v13, %v1544_v12  ;;  %1851 = vmatpush.bf16.msrb.mxu0 %v7644_v15 }
 0x2f7   : > { %1891 = vmatpush.bf16.msrb.mxu3 %v7670_v45 }
 0x2f8   : > { %v1453_v17 = vadd.f32 %v7975_v26, %v1452_v29  ;;  %1862 = vmatpush.bf16.msrb.mxu1 %v7655_v23  ;;  %6355 = vmatmul.msk.bf16.vlgmr.msra.gmra.mxu3 %vm1221_vm2, %v1560_v55 }
 0x2fa   : > { %v1457_v32 = vsel %vm1456_vm10, %v7975_v26, %v1453_v17  ;;  %1852 = vmatpush.bf16.msrb.mxu0 %v7643_v40 }
 0x2fb   : > { %v1462_v33 = vsel %vm1459_vm11, %v1461_v30, %v1457_v32  ;;  %1892 = vmatpush.bf16.msrb.mxu3 %v7669_v48 }
 0x2fc   : > { %v1463_v35 = vmul.f32 %v8624_v24, %v1462_v33  ;;  %1863 = vmatpush.bf16.msrb.mxu1 %v7654_v31  ;;  %v7664_v24 = vld [vmem:[%s10632_s24 + $0xb0] sm:$0xff]  ;;  %s10646_s24 = sld [smem:[#allocation17_spill]] }
 0x2fd   : > { %1875 = vmatpush.bf16.msrb.mxu2 %v7664_v24 }
 0x2fe   : > { %v1464_v37 = vpack.c.bf16 %v1463_v35, %v1448_v34  ;;  %1853 = vmatpush.bf16.msrb.mxu0 %v7642_v46  ;;  %v8098_v34 = vld [vmem:[%s8354_s7] sm:$0xff] }
 0x2ff   : > { %1893 = vmatpush.bf16.msrb.mxu3 %v7668_v50  ;;  %vm818_vm12 = vcmp.gt.f32.partialorder %v8098_v34, 0.5 }
 0x300   : > { %6354 = vmatmul.msk.bf16.vlgmr.msra.gmra.mxu1 %vm1221_vm2, %v1464_v37  ;;  %v821_v35 = vsel %vm818_vm12, 1, %v8164_v0 }
 0x301   : > { %1864 = vmatpush.bf16.msrb.mxu1 %v7653_v36  ;;  %1876 = vmatpush.bf16.msrb.mxu2 %v7663_v44 }
 0x302   : > { %s789_s4 = scalar_lea.vmem %s10646_s24, %s8345_s8  ;;  %s7878_s24 = sshll.u32 %s10701_s5, 4 }
 0x303   : > { %1894 = vmatpush.bf16.msrb.mxu3 %v7667_v53  ;;  %v7680_v53 = vld [vmem:[%s10638_s10 + $0x2c] sm:$0xf0]  ;;  %s6134_s2 = scalar_lea.hbm %s10702_s1, %s7878_s24  ;;  %s8120_s8 = scalar_lea.hbm %s10702_s1, 32 }
 0x305   : > { %1865 = vmatpush.bf16.msrb.mxu1 %v7652_v38  ;;  %1877 = vmatpush.bf16.msrb.mxu2 %v7662_v47 }
 0x307   : > { %1895 = vmatpush.bf16.msrb.mxu3 %v7666_v21 }
 0x309   : > { %1866 = vmatpush.bf16.msrb.mxu1 %v7651_v42  ;;  %1878 = vmatpush.bf16.msrb.mxu2 %v7661_v49 }
 0x30d   : > { %1867 = vmatpush.bf16.msrb.mxu1 %v7650_v27  ;;  %1879 = vmatpush.bf16.msrb.mxu2 %v7660_v52  ;;  %v6502_v52 = vld [vmem:[%s10638_s10 + $0x20] sm:$0xf] }
 0x30e   : > { %v6503_v21 = vor.u32 %v7680_v53, %v6502_v52  ;;  %v6564_v52 = vld [vmem:[%s10561_s12 + $0x68] sm:$0xf0]  ;;  %v6530_v53 = vld [vmem:[%s10561_s12 + $0x8] sm:$0xf] }
 0x310   : > { %2035 = vmatpush.bf16.msra.mxu0 %v6503_v21  ;;  %v7687_v21 = vld [vmem:[%s10561_s12 + $0x24] sm:$0xf0] }
 0x311   : > { %1880 = vmatpush.bf16.msrb.mxu2 %v7659_v54  ;;  %v7678_v54 = vld [vmem:[%s10638_s10 + $0x24] sm:$0xf] }
 0x315   : > { %1881 = vmatpush.bf16.msrb.mxu2 %v7658_v7  ;;  %v6504_v7 = vld [vmem:[%s10638_s10 + $0x30] sm:$0xf0] }
 0x36a   : > { %v1383_v41 = vpop.f32.mrf.mxu3 }
 0x36c   : > { %v1289_v57 = vpop.f32.mrf.mxu1 }
 0x372   : > { %v1385_v58 = vpop.f32.mrf.mxu3 }
 0x373   : > { %v1583_v25 = vpack.c.bf16 %v1385_v58, %v1383_v41  ;;  %v6510_v41 = vld [vmem:[%s10638_s10 + $0x28] sm:$0xf] }
 0x374   : > { %v1291_v59 = vpop.f32.mrf.mxu1 }
 0x375   : > { %v1582_v62 = vpack.c.bf16 %v1291_v59, %v1289_v57  ;;  %1868 = vmatmul.bf16.vlgmr.msrb.gmra.mxu1 %v1583_v25  ;;  %v7681_v57 = vld [vmem:[%s10638_s10 + $0x34] sm:$0xf0]  ;;  %v6507_v59 = vor.u32 %v7678_v54, %v6504_v7  ;;  %v7683_v7 = vld [vmem:[%s10561_s12 + $0xc] sm:$0xf] }
 0x376   : > { %v6511_v25 = vor.u32 %v7681_v57, %v6510_v41  ;;  %v6532_v41 = vld [vmem:[%s10561_s12 + $0x28] sm:$0xf0] }
 0x377   : > { %1854 = vmatmul.bf16.vlgmr.msrb.gmra.mxu0 %v1582_v62  ;;  %v7679_v62 = vld [vmem:[%s10638_s10 + $0x2c] sm:$0xf]  ;;  %2049 = vmatpush.bf16.msra.mxu1 %v6507_v59  ;;  %v7925_v59 = vld [vmem:[%s10641_s27] ss:$0 sm:$0xff] }
 0x378   : > { %2063 = vmatpush.bf16.msra.mxu2 %v6511_v25 }
 0x37b   : > { %v1577_v26 = vpop.f32.mrf.mxu3 }
 0x37d   : > { %v1483_v63 = vpop.f32.mrf.mxu1 }
 0x383   : > { %v1579_v2 = vpop.f32.mrf.mxu3 }
 0x384   : > { %v1585_v4 = vpack.c.bf16 %v1579_v2, %v1577_v26  ;;  %v6512_v26 = vld [vmem:[%s10638_s10 + $0x38] sm:$0xf0]  ;;  %v6486_v2 = vld [vmem:[%s10638_s10] sm:$0xf] }
 0x385   : > { %v1485_v3 = vpop.f32.mrf.mxu1 }
 0x386   : > { %v1584_v5 = vpack.c.bf16 %v1485_v3, %v1483_v63  ;;  %1896 = vmatmul.bf16.vlgmr.msrb.gmra.mxu3 %v1585_v4  ;;  %v6515_v63 = vor.u32 %v7679_v62, %v6512_v26  ;;  %v7676_v3 = vld [vmem:[%s10638_s10 + $0xc] sm:$0xf0]  ;;  %v7674_v4 = vld [vmem:[%s10638_s10 + $0x4] sm:$0xf]  ;;  %v6535_v62 = vor.u32 %v7683_v7, %v6532_v41 }
 0x388   : > { %1882 = vmatmul.bf16.vlgmr.msrb.gmra.mxu2 %v1584_v5  ;;  %v6487_v5 = vor.u32 %v7676_v3, %v6486_v2  ;;  %2077 = vmatpush.bf16.msra.mxu3 %v6515_v63  ;;  %v7926_v2 = vld [vmem:[%s10643_s9] ss:$0 sm:$0xff] }
 0x38a   : > { %2036 = vmatpush.bf16.msra.mxu0 %v6487_v5 }
 0x3f2   : > { %v1869_v11 = vpop.f32.mrf.mxu1 }
 0x3f4   : > { %v1855_v6 = vpop.f32.mrf.mxu0 }
 0x3f5   : > { %v1856_v1 = vadd.f32 %v7924_v10, %v1855_v6  ;;  %v6488_v6 = vld [vmem:[%s10638_s10 + $0x10] sm:$0xf0] }
 0x3f7   : > { %v1870_v13 = vadd.f32 %v1869_v11, %v1856_v1  ;;  %v7677_v1 = vld [vmem:[%s10638_s10 + $0x14] sm:$0xf0]  ;;  %v6491_v11 = vor.u32 %v7674_v4, %v6488_v6 }
 0x3f9   : > { %2050 = vmatpush.bf16.msra.mxu1 %v6491_v11 }
 0x3fa   : > { %v1871_v29 = vpop.f32.mrf.mxu1 }
 0x3fc   : > { %v1857_v12 = vpop.f32.mrf.mxu0 }
 0x3fd   : > { %v1858_v19 = vadd.f32 %v7924_v10, %v1857_v12  ;;  %v6494_v10 = vld [vmem:[%s10638_s10 + $0x8] sm:$0xf] }
 0x3fe   : > { %v6495_v12 = vor.u32 %v7677_v1, %v6494_v10  ;;  %v796_v1 = vld [vmem:[%s786_s0 + $0x8] sm:$0xf] }
 0x3ff   : > { %v1872_v55 = vadd.f32 %v1871_v29, %v1858_v19  ;;  %v6554_v19 = vld [vmem:[%s10561_s12 + $0x40] sm:$0xf] }
 0x400   : > { %2064 = vmatpush.bf16.msra.mxu2 %v6495_v12  ;;  %v6578_v12 = vld [vmem:[%s10561_s12 + $0x58] sm:$0xf] }
 0x409   : > { %v1897_v16 = vpop.f32.mrf.mxu3 }
 0x40b   : > { %v1883_v18 = vpop.f32.mrf.mxu2 }
 0x40c   : > { %v1884_v22 = vadd.f32 %v1883_v18, %v1870_v13  ;;  %v7675_v13 = vld [vmem:[%s10638_s10 + $0xc] sm:$0xf] }
 0x40e   : > { %v1898_v23 = vadd.f32 %v1897_v16, %v1884_v22  ;;  %v6496_v16 = vld [vmem:[%s10638_s10 + $0x18] sm:$0xf0]  ;;  %s10642_s10 = smov %s10641_s27  ;;  %s10700_s27 = sld [smem:[#allocation6_spill]] }
 0x40f   : > { %v6499_v18 = vor.u32 %v7675_v13, %v6496_v16  ;;  %v7697_v13 = vld [vmem:[%s10561_s12 + $0x74] sm:$0xf0]  ;;  %v7693_v16 = vld [vmem:[%s10561_s12 + $0x5c] sm:$0xf] }
 0x410   : > { %v1902_v28 = vadd.f32 %v1898_v23, %v8478_v60  ;;  %v8165_v60 = vmov 32.0   ;;  %v7694_v23 = vld [vmem:[%s10561_s12 + $0x5c] sm:$0xf0] }
 0x411   : > { %v1899_v30 = vpop.f32.mrf.mxu3  ;;  %7976 = vrcp.f32 %v8165_v60  ;;  %2078 = vmatpush.bf16.msra.mxu3 %v6499_v18  ;;  %v6579_v18 = vor.u32 %v7697_v13, %v6578_v12 }
 0x412   : > { %v1906_v9 = vsel %vm1009_vm0, %v1902_v28, 0.0 }
 0x413   : > { %v1885_v17 = vpop.f32.mrf.mxu2  ;;  %1907 = vadd.xlane.f32.xlu2 %v1906_v9  ;;  %v6556_v9 = vld [vmem:[%s10561_s12 + $0x60] sm:$0xf0] }
 0x414   : > { %v1886_v8 = vadd.f32 %v1885_v17, %v1872_v55  ;;  %v6555_v55 = vor.u32 %v7694_v23, %v6554_v19  ;;  %v6522_v17 = vld [vmem:[%s10561_s12] sm:$0xf]  ;;  %v6546_v23 = vld [vmem:[%s10561_s12 + $0x18] sm:$0xf]  ;;  %s769_s25 = sand.u32 1, %s10700_s27  }
 0x415   : > { %s6237_s6 = sshll.u32 %s769_s25, 4  ;;  %s6123_s5 = scalar_lea.sflag [#allocation3], %s769_s25 }
 0x416   : > { %v1900_v31 = vadd.f32 %v1899_v30, %v1886_v8  ;;  %v7686_v8 = vld [vmem:[%s10561_s12 + $0x1c] sm:$0xf0]  ;;  %2212 = vmatpush.bf16.msrb.mxu0 %v6555_v55  ;;  %s771_s28 = scalar_lea.vmem [#allocation2], %s6237_s6 }
 0x417   : > { %v7977_v36 = vpop.eup %7976 }
 0x418   : > { %v1903_v32 = vadd.f32 %v1900_v31, %v8481_v61  ;;  %v1913_v37 = vmul.f32 32.0, %v7977_v36  ;;  %vm1917_vm13 = vweird.f32 %v7977_v36  ;;  %v7682_v31 = vld [vmem:[%s10561_s12 + $0x4] sm:$0xf] }
 0x41a   : > { %v1909_v33 = vsel %vm1009_vm0, %v1903_v32, 0.0  ;;  %v1914_v38 = vsub.f32 1.0, %v1913_v37 }
 0x41b   : > { %1910 = vadd.xlane.f32.xlu0 %v1909_v33 }
 0x41c   : > { %v1915_v39 = vmul.f32 %v7977_v36, %v1914_v38 }
 0x41e   : > { %v1916_v15 = vadd.f32 %v7977_v36, %v1915_v39 }
 0x420   : > { %v8824_v24 = vsel %vm1917_vm13, %v7977_v36, %v1916_v15  ;;  %vm2354_vm13 = vcmask 97280  }
 0x42f   : > { %824 = vperm.xlu0 %7922, %v821_v35   ;;  %v6523_v35 = vor.u32 %v7686_v8, %v6522_v17  ;;  %v6570_v8 = vld [vmem:[%s10561_s12 + $0x50] sm:$0xf] }
 0x431   : > { %2213 = vmatpush.bf16.msrb.mxu0 %v6523_v35  ;;  %v6538_v35 = vld [vmem:[%s10561_s12 + $0x10] sm:$0xf] }
 0x486   : > { %v1908_v42 = vpop.xlane.xlu2 %1907 }
 0x487   : > { %v1919_v61 = vmul.f32 %v8824_v24, %v1908_v42 }
 0x489   : > { %v8827_v43 = vsub.f32 %v1902_v28, %v1919_v61  ;;  %v7690_v28 = vld [vmem:[%s10561_s12 + $0x44] sm:$0xf] }
 0x48a   : > { %v6559_v30 = vor.u32 %v7690_v28, %v6556_v9  ;;  %v7689_v28 = vld [vmem:[%s10561_s12 + $0x34] sm:$0xf0]  ;;  %v6548_v9 = vld [vmem:[%s10561_s12 + $0x38] sm:$0xf0] }
 0x48b   : > { %v1923_v40 = vmul.f32 %v8827_v43, %v8827_v43  ;;  %v6547_v55 = vor.u32 %v7689_v28, %v6546_v23 }
 0x48c   : > { %2226 = vmatpush.bf16.msrb.mxu1 %v6559_v30  ;;  %v7696_v30 = vld [vmem:[%s10561_s12 + $0x6c] sm:$0xf0] }
 0x48d   : > { %v1925_v44 = vsel %vm1009_vm0, %v1923_v40, 0.0 }
 0x48e   : > { %v1911_v27 = vpop.xlane.xlu0 %1910  ;;  %1926 = vadd.xlane.f32.xlu1 %v1925_v44 }
 0x48f   : > { %v1920_v45 = vmul.f32 %v8824_v24, %v1911_v27  ;;  %v6562_v27 = vld [vmem:[%s10561_s12 + $0x48] sm:$0xf] }
 0x491   : > { %v8833_v46 = vsub.f32 %v1903_v32, %v1920_v45  ;;  %v6524_v32 = vld [vmem:[%s10561_s12 + $0x20] sm:$0xf0]  ;;  %v7695_v45 = vld [vmem:[%s10561_s12 + $0x64] sm:$0xf0] }
 0x492   : > { %v6527_v36 = vor.u32 %v7682_v31, %v6524_v32  ;;  %v7692_v31 = vld [vmem:[%s10561_s12 + $0x54] sm:$0xf]  ;;  %v6571_v32 = vor.u32 %v7696_v30, %v6570_v8 }
 0x493   : > { %v1924_v47 = vmul.f32 %v8833_v46, %v8833_v46 }
 0x494   : > { %2227 = vmatpush.bf16.msrb.mxu1 %v6527_v36 }
 0x495   : > { %v1928_v48 = vsel %vm1009_vm0, %v1924_v47, 0.0  ;;  %v7691_v47 = vld [vmem:[%s10561_s12 + $0x4c] sm:$0xf] }
 0x496   : > { %1929 = vadd.xlane.f32.xlu2 %v1928_v48  ;;  %v6567_v54 = vor.u32 %v7691_v47, %v6564_v52 }
 0x498   : > { %2254 = vmatpush.bf16.msrb.mxu3 %v6567_v54  ;;  %v9048_v54 = vld [vmem:[%s10645_s11] sm:$0xf] }
 0x499   : > { %v1978_v41 = vperm.slane %v9048_v54, 0 }
 0x49c   : > { %2255 = vmatpush.bf16.msrb.mxu3 %v6535_v62 }
 0x501   : > { %v1927_v49 = vpop.xlane.xlu1 %1926 }
 0x502   : > { %v1931_v50 = vmul.f32 %v1927_v49, %v8824_v24 }
 0x504   : > { %v1933_v58 = vadd.f32 1e-05, %v1931_v50  ;;  %v6563_v50 = vor.u32 %v7695_v45, %v6562_v27  ;;  %v9037_v45 = vld [vmem:[%s10562_s13] sm:$0xff] }
 0x505   : > { %v2107_v52 = vperm.slane %v9037_v45, 0 }
 0x506   : > { %7978 = vrsqrt.f32 %v1933_v58  ;;  %vm1941_vm15 = vweird.f32 %v1933_v58  ;;  %2240 = vmatpush.bf16.msrb.mxu2 %v6563_v50 }
 0x509   : > { %v1930_v22 = vpop.xlane.xlu2 %1929 }
 0x50a   : > { %v1932_v29 = vmul.f32 %v1930_v22, %v8824_v24  ;;  %v6580_v22 = vld [vmem:[%s10561_s12 + $0x78] sm:$0xf0] }
 0x50b   : > { %v6583_v19 = vor.u32 %v7693_v16, %v6580_v22 }
 0x50c   : > { %v7979_v33 = vpop.eup %7978  ;;  %v1934_v34 = vadd.f32 1e-05, %v1932_v29  ;;  %v7685_v29 = vld [vmem:[%s10561_s12 + $0x1c] sm:$0xf] }
 0x50d   : > { %v1936_v60 = vmul.f32 %v7979_v33, %v1933_v58  ;;  %vm1942_vm14 = vweird.f32 %v7979_v33  ;;  %v6531_v58 = vor.u32 %v7687_v21, %v6530_v53  ;;  %v6551_v17 = vor.u32 %v7685_v29, %v6548_v9 }
 0x50e   : > { %7980 = vrsqrt.f32 %v1934_v34  ;;  %vm8912_vm4 = vmor %vm1941_vm15, %vm1942_vm14  ;;  %vm1951_vm6 = vweird.f32 %v1934_v34  ;;  %v2108_v53 = vperm.slane %v9037_v45, 1 }
 0x50f   : > { %v1937_v37 = vmul.f32 %v7979_v33, %v1936_v60  ;;  %2241 = vmatpush.bf16.msrb.mxu2 %v6531_v58  ;;  %v7688_v60 = vld [vmem:[%s10561_s12 + $0x2c] sm:$0xf0]  ;;  %v2109_v58 = vperm.slane %v9037_v45, 2 }
 0x510   : > { %v6539_v36 = vor.u32 %v7688_v60, %v6538_v35 }
 0x511   : > { %v1938_v38 = vmul.f32 0.5, %v1937_v37  ;;  %v7684_v37 = vld [vmem:[%s10561_s12 + $0x14] sm:$0xf] }
 0x513   : > { %v1939_v39 = vsub.f32 1.5, %v1938_v38  ;;  %v6540_v38 = vld [vmem:[%s10561_s12 + $0x30] sm:$0xf0] }
 0x514   : > { %v7981_v15 = vpop.eup %7980 }
 0x515   : > { %v1940_v42 = vmul.f32 %v7979_v33, %v1939_v39  ;;  %v1946_v61 = vmul.f32 %v7981_v15, %v1934_v34  ;;  %vm1952_vm5 = vweird.f32 %v7981_v15  ;;  %v6543_v39 = vor.u32 %v7684_v37, %v6540_v38 }
 0x516   : > { %vm1953_vm7 = vmor %vm1951_vm6, %vm1952_vm5 }
 0x517   : > { %v1947_v44 = vmul.f32 %v7981_v15, %v1946_v61  ;;  %v1944_v48 = vsel %vm8912_vm4, %v7979_v33, %v1940_v42  ;;  %v6572_v33 = vld [vmem:[%s10561_s12 + $0x70] sm:$0xf0] }
 0x518   : > { %v1955_v25 = vmul.f32 %v1944_v48, %v8827_v43  ;;  %v6575_v34 = vor.u32 %v7692_v31, %v6572_v33 }
 0x519   : > { %v1948_v49 = vmul.f32 0.5, %v1947_v44 }
 0x51a   : > { %v1960_v3 = vmul.f32 %v7925_v59, %v1955_v25 }
 0x51b   : > { %v1949_v57 = vsub.f32 1.5, %v1948_v49 }
 0x51c   : > { %v8950_v6 = vadd.f32 %v7926_v2, %v1960_v3 }
 0x51d   : > { %v1950_v26 = vmul.f32 %v7981_v15, %v1949_v57  ;;  %v1979_v57 = vperm.slane %v9048_v54, 1 }
 0x51f   : > { %v1954_v63 = vsel %vm1953_vm7, %v7981_v15, %v1950_v26 }
 0x520   : > { %v1956_v4 = vmul.f32 %v1954_v63, %v8833_v46  ;;  %v795_v46 = vld [vmem:[%s786_s0] sm:$0xff]  ;;  %s6137_s0 = sshll.u32 %s6134_s2, 4  ;;  %s6138_s0 = int_to_ptr.hbm [resolvable:$true] %s6137_s0 }
 0x521   : > { %v8964_v11 = vpack.c.bf16 %v796_v1, %v795_v46 }
 0x522   : > { %v1961_v5 = vmul.f32 %v7925_v59, %v1956_v4  ;;  %v2110_v59 = vperm.slane %v9037_v45, 3  ;;  %v8099_v4 = vld [vmem:[%s8354_s7 + $0x8] sm:$0xff]  ;;  %s10676_s7 = sld [smem:[#allocation24_spill]] }
 0x523   : > { %vm819_vm8 = vcmp.gt.f32.partialorder %v8099_v4, 0.5  ;;  %v2111_v4 = vperm.slane %v9037_v45, 4 }
 0x524   : > { %v8952_v43 = vadd.f32 %v7926_v2, %v1961_v5  ;;  %v822_v1 = vsel %vm819_vm8, 1, %v8164_v0 }
 0x525   : > { %827 = vperm.xlu1 %7923, %v822_v1  }
 0x526   : > { %v1967_v10 = vpack.c.bf16 %v8952_v43, %v8950_v6 }
 0x528   : > { %6516 = vmatmul.msk.bf16.vlgmr.msra.gmra.mxu0 %vm1009_vm0, %v1967_v10  ;;  %6517 = vmatmul.msk.bf16.vlgmr.msra.gmra.mxu1 %vm1009_vm0, %v1967_v10 }
 0x529   : > { %6518 = vmatmul.msk.bf16.vlgmr.msra.gmra.mxu2 %vm1009_vm0, %v1967_v10  ;;  %6519 = vmatmul.msk.bf16.vlgmr.msra.gmra.mxu3 %vm1009_vm0, %v1967_v10 }
 0x52a   : > { %2296 = vmatpush.bf16.msra.mxu2 %v6579_v18  ;;  %2310 = vmatpush.bf16.msra.mxu3 %v6583_v19 }
 0x52b   : > { %2268 = vmatpush.bf16.msra.mxu0 %v6571_v32  ;;  %2282 = vmatpush.bf16.msra.mxu1 %v6575_v34 }
 0x52e   : > { %2297 = vmatpush.bf16.msra.mxu2 %v6547_v55  ;;  %2311 = vmatpush.bf16.msra.mxu3 %v6551_v17 }
 0x52f   : > { %2269 = vmatpush.bf16.msra.mxu0 %v6539_v36  ;;  %2283 = vmatpush.bf16.msra.mxu1 %v6543_v39 }
 0x538   : > { %6584 = vmatmul.msk.bf16.vlgmr.msrb.gmra.mxu0 %vm1009_vm0, %v8964_v11  ;;  %6585 = vmatmul.msk.bf16.vlgmr.msrb.gmra.mxu1 %vm1009_vm0, %v8964_v11 }
 0x539   : > { %6586 = vmatmul.msk.bf16.vlgmr.msrb.gmra.mxu2 %vm1009_vm0, %v8964_v11  ;;  %6587 = vmatmul.msk.bf16.vlgmr.msrb.gmra.mxu3 %vm1009_vm0, %v8964_v11 }
 0x548   : > { %6588 = vmatmul.msk.bf16.vlgmr.msra.gmra.mxu0 %vm1009_vm0, %v8964_v11  ;;  %6589 = vmatmul.msk.bf16.vlgmr.msra.gmra.mxu1 %vm1009_vm0, %v8964_v11 }
 0x549   : > { %6590 = vmatmul.msk.bf16.vlgmr.msra.gmra.mxu2 %vm1009_vm0, %v8964_v11  ;;  %6591 = vmatmul.msk.bf16.vlgmr.msra.gmra.mxu3 %vm1009_vm0, %v8964_v11 }
 0x5a5   : > { %v2038_v15 = vpop.f32.mrf.mxu0  ;;  %v2052_v42 = vpop.f32.mrf.mxu1 }
 0x5a6   : > { %v2039_v18 = vadd.f32 %v2038_v15, %v1978_v41  ;;  %v2053_v22 = vadd.f32 %v2052_v42, %v1979_v57 }
 0x5a8   : > { %v2085_v32 = vpack.c.bf16 %v2053_v22, %v2039_v18 }
 0x5aa   : > { %v2328_v39 = vunpack.c.l.b16 %v2085_v32  ;;  %v2430_v15 = vunpack.c.h.b16 %v2085_v32 }
 0x5ac   : > { %v9030_v61 = vpop.f32.mrf.mxu2  ;;  %v9032_v40 = vpop.f32.mrf.mxu3 }
 0x5ad   : > { %v2040_v44 = vpop.f32.mrf.mxu0  ;;  %v2054_v27 = vpop.f32.mrf.mxu1 }
 0x5ae   : > { %v2041_v26 = vadd.f32 %v2040_v44, %v1978_v41  ;;  %v2055_v63 = vadd.f32 %v2054_v27, %v1979_v57 }
 0x5b0   : > { %v2087_v19 = vpack.c.bf16 %v2055_v63, %v2041_v26 }
 0x5b2   : > { %v2329_v35 = vunpack.c.l.b16 %v2087_v19  ;;  %v2431_v60 = vunpack.c.h.b16 %v2087_v19 }
 0x5b4   : > { %v9039_v47 = vpop.f32.mrf.mxu2  ;;  %v9041_v48 = vpop.f32.mrf.mxu3  ;;  %v2330_v27 = vpack.c.b16 %v2329_v35, %v2328_v39 }
 0x5b5   : > { %v2215_v49 = vpop.f32.mrf.mxu0  ;;  %v2229_v50 = vpop.f32.mrf.mxu1 }
 0x5b6   : > { %v2216_v21 = vadd.f32 %v2215_v49, %v2107_v52  ;;  %v2230_v7 = vadd.f32 %v2229_v50, %v2108_v53  ;;  %v2432_v49 = vpack.c.b16 %v2431_v60, %v2430_v15 }
 0x5b8   : > { %v2318_v5 = vpack.c.bf16 %v2230_v7, %v2216_v21  ;;  %v1981_v21 = vperm.slane %v9048_v54, 3 }
 0x5ba   : > { %v2334_v23 = vunpack.c.l.b16 %v2318_v5  ;;  %v2434_v28 = vunpack.c.h.b16 %v2318_v5  ;;  %v2083_v41 = vadd.f32 %v9041_v48, %v1981_v21 }
 0x5bc   : > { %v2243_v25 = vpop.f32.mrf.mxu2  ;;  %v2257_v62 = vpop.f32.mrf.mxu3 }
 0x5bd   : > { %v2217_v2 = vpop.f32.mrf.mxu0  ;;  %v2231_v3 = vpop.f32.mrf.mxu1  ;;  %v2244_v12 = vadd.f32 %v2243_v25, %v2109_v58  ;;  %v2258_v13 = vadd.f32 %v2257_v62, %v2110_v59 }
 0x5be   : > { %v2218_v10 = vadd.f32 %v2217_v2, %v2107_v52  ;;  %v2232_v46 = vadd.f32 %v2231_v3, %v2108_v53  ;;  %v1980_v53 = vperm.slane %v9048_v54, 2 }
 0x5bf   : > { %v2319_v9 = vpack.c.bf16 %v2258_v13, %v2244_v12 }
 0x5c0   : > { %v2322_v16 = vpack.c.bf16 %v2232_v46, %v2218_v10  ;;  %v2069_v7 = vadd.f32 %v9039_v47, %v1980_v53  ;;  %v2067_v57 = vadd.f32 %v9030_v61, %v1980_v53  ;;  %v2112_v47 = vperm.slane %v9037_v45, 5 }
 0x5c1   : > { %v2534_v36 = vunpack.c.l.b16 %v2319_v9  ;;  %v2632_v37 = vunpack.c.h.b16 %v2319_v9  ;;  %v2113_v61 = vperm.slane %v9037_v45, 6 }
 0x5c2   : > { %v2335_v29 = vunpack.c.l.b16 %v2322_v16  ;;  %v2435_v55 = vunpack.c.h.b16 %v2322_v16 }
 0x5c4   : > { %v2336_v17 = vpack.c.b16 %v2335_v29, %v2334_v23  ;;  %v2436_v8 = vpack.c.b16 %v2435_v55, %v2434_v28  ;;  %v2245_v30 = vpop.f32.mrf.mxu2  ;;  %v2259_v31 = vpop.f32.mrf.mxu3 }
 0x5c5   : > { %v2246_v33 = vadd.f32 %v2245_v30, %v2109_v58  ;;  %v2260_v34 = vadd.f32 %v2259_v31, %v2110_v59  ;;  %v2081_v58 = vadd.f32 %v9032_v40, %v1981_v21  ;;  %v2088_v59 = vpack.c.bf16 %v2083_v41, %v2069_v7  ;;  %v2271_v5 = vpop.f32.mrf.mxu0  ;;  %v2285_v48 = vpop.f32.mrf.mxu1 }
 0x5c6   : > { %2345 = vmatpush.bf16.xpose.msrb.mxu0 %v2336_v17  ;;  %2445 = vmatpush.bf16.xpose.msrb.mxu2 %v2436_v8  ;;  %v2114_v40 = vperm.slane %v9037_v45, 7  ;;  %v2272_v1 = vadd.f32 %v2271_v5, %v2111_v4  ;;  %v2286_v12 = vadd.f32 %v2285_v48, %v2112_v47  ;;  %v825_v7 = vpop.permute.xlu0 %824 }
 0x5c7   : > { %v2323_v38 = vpack.c.bf16 %v2260_v34, %v2246_v33  ;;  %v2086_v25 = vpack.c.bf16 %v2081_v58, %v2067_v57  ;;  %v2529_v62 = vunpack.c.l.b16 %v2088_v59  ;;  %v2629_v26 = vunpack.c.h.b16 %v2088_v59 }
 0x5c8   : > { %v2320_v18 = vpack.c.bf16 %v2286_v12, %v2272_v1  ;;  %vm829_vm12 = vcmp.eq.s32.totalorder %v825_v7, 1 }
 0x5c9   : > { %v2535_v42 = vunpack.c.l.b16 %v2323_v38  ;;  %v2633_v44 = vunpack.c.h.b16 %v2323_v38  ;;  %v2528_v63 = vunpack.c.l.b16 %v2086_v25  ;;  %v2628_v2 = vunpack.c.h.b16 %v2086_v25  ;;  %v828_v25 = vpop.permute.xlu1 %827 }
 0x5ca   : > { %v2406_v30 = vunpack.c.l.b16 %v2320_v18  ;;  %v2503_v31 = vunpack.c.h.b16 %v2320_v18  ;;  %vm830_vm15 = vcmp.eq.s32.totalorder %v828_v25, 1 }
 0x5cb   : > { %v2536_v50 = vpack.c.b16 %v2535_v42, %v2534_v36  ;;  %v2634_v52 = vpack.c.b16 %v2633_v44, %v2632_v37  ;;  %v2530_v3 = vpack.c.b16 %v2529_v62, %v2528_v63  ;;  %v2630_v54 = vpack.c.b16 %v2629_v26, %v2628_v2 }
 0x5cc   : > { %v2299_v10 = vpop.f32.mrf.mxu2  ;;  %v2313_v46 = vpop.f32.mrf.mxu3 }
 0x5cd   : > { %2346 = vmatmul.bf16.vlgmr.msrb.gmra.mxu0 %v2330_v27  ;;  %2446 = vmatmul.bf16.vlgmr.msrb.gmra.mxu2 %v2432_v49  ;;  %v2300_v13 = vadd.f32 %v2299_v10, %v2113_v61  ;;  %v2314_v16 = vadd.f32 %v2313_v46, %v2114_v40  ;;  %v2273_v22 = vpop.f32.mrf.mxu0  ;;  %v2287_v28 = vpop.f32.mrf.mxu1 }
 0x5ce   : > { %2545 = vmatpush.bf16.xpose.msra.mxu0 %v2536_v50  ;;  %2643 = vmatpush.bf16.xpose.msra.mxu2 %v2634_v52  ;;  %v2274_v23 = vadd.f32 %v2273_v22, %v2111_v4  ;;  %v2288_v55 = vadd.f32 %v2287_v28, %v2112_v47  ;;  %v798_v52 = vld [vmem:[%s789_s4] sm:$0x1] }
 0x5cf   : > { %v2321_v19 = vpack.c.bf16 %v2314_v16, %v2300_v13  ;;  %vm820_vm10 = vcmp.gt.f32.partialorder %v798_v52, 0.5 }
 0x5d0   : > { %v2324_v32 = vpack.c.bf16 %v2288_v55, %v2274_v23  ;;  %v831_v53 = vsel %vm820_vm10, 1, %v8164_v0 }
 0x5d1   : > { %v2605_v33 = vunpack.c.l.b16 %v2321_v19  ;;  %v2701_v45 = vunpack.c.h.b16 %v2321_v19  ;;  %v832_v21 = vperm.slane %v831_v53, 0 }
 0x5d2   : > { %v2407_v35 = vunpack.c.l.b16 %v2324_v32  ;;  %v2504_v60 = vunpack.c.h.b16 %v2324_v32 }
 0x5d3   : > { %vm833_vm11 = vcmp.eq.s32.totalorder %v832_v21, 1 }
 0x5d4   : > { %v2301_v29 = vpop.f32.mrf.mxu2  ;;  %v2315_v17 = vpop.f32.mrf.mxu3  ;;  %v2408_v38 = vpack.c.b16 %v2407_v35, %v2406_v30  ;;  %v2505_v39 = vpack.c.b16 %v2504_v60, %v2503_v31  ;;  %vm9075_vm14 = vmand %vm829_vm12, %vm833_vm11 }
 0x5d5   : > { %v2302_v9 = vadd.f32 %v2301_v29, %v2113_v61  ;;  %v2316_v8 = vadd.f32 %v2315_v17, %v2114_v40  ;;  %vm9085_vm4 = vmand %vm830_vm15, %vm833_vm11 }
 0x5d6   : > { %v2414_v44 = vsel %vm2412_vm9, %v2408_v38, 0  ;;  %v2510_v27 = vsel %vm2412_vm9, %v2505_v39, 0 }
 0x5d7   : > { %v2325_v34 = vpack.c.bf16 %v2316_v8, %v2302_v9  ;;  %2423 = vmatpush.bf16.msrb.mxu1 %v2414_v44  ;;  %2519 = vmatpush.bf16.msrb.mxu3 %v2510_v27 }
 0x5d9   : > { %v2606_v36 = vunpack.c.l.b16 %v2325_v34  ;;  %v2702_v37 = vunpack.c.h.b16 %v2325_v34 }
 0x5db   : > { %v2607_v15 = vpack.c.b16 %v2606_v36, %v2605_v33  ;;  %v2703_v42 = vpack.c.b16 %v2702_v37, %v2701_v45 }
 0x5dd   : > { %2546 = vmatmul.bf16.vlgmr.msra.gmra.mxu0 %v2530_v3  ;;  %2644 = vmatmul.bf16.vlgmr.msra.gmra.mxu2 %v2630_v54  ;;  %v2612_v49 = vsel %vm2412_vm9, %v2607_v15, 0  ;;  %v2708_v50 = vsel %vm2412_vm9, %v2703_v42, 0 }
 0x5de   : > { %2621 = vmatpush.bf16.msra.mxu1 %v2612_v49  ;;  %2717 = vmatpush.bf16.msra.mxu3 %v2708_v50 }
 0x64a   : > { %v2347_v57 = vpop.f32.mrf.mxu0 }
 0x64b   : > { %v2352_v58 = vsel %vm9075_vm14, %v2347_v57, -10000.0 }
 0x64c   : > { %v2355_v59 = vsel %vm2354_vm13, %v2352_v58, -inf }
 0x64d   : > { %2356 = vmax.xlane.f32.xlu0 %v2355_v59 }
 0x650   : > { %v2447_v62 = vpop.f32.mrf.mxu2 }
 0x651   : > { %v2452_v0 = vsel %vm9075_vm14, %v2447_v62, -10000.0 }
 0x652   : > { %v2454_v26 = vsel %vm2354_vm13, %v2452_v0, -inf  ;;  %v2349_v2 = vpop.f32.mrf.mxu0 }
 0x653   : > { %2455 = vmax.xlane.f32.xlu2 %v2454_v26  ;;  %v2353_v3 = vsel %vm9085_vm4, %v2349_v2, -10000.0 }
 0x654   : > { %v2358_v4 = vsel %vm2354_vm13, %v2353_v3, -inf }
 0x658   : > { %v2449_v54 = vpop.f32.mrf.mxu2 }
 0x659   : > { %v2453_v5 = vsel %vm9085_vm4, %v2449_v54, -10000.0 }
 0x65a   : > { %v2457_v48 = vsel %vm2354_vm13, %v2453_v5, -inf  ;;  %v2547_v46 = vpop.f32.mrf.mxu0 }
 0x65b   : > { %2359 = vmax.xlane.f32.xlu2 %v2358_v4  ;;  %v2552_v13 = vsel %vm9075_vm14, %v2547_v46, -10000.0 }
 0x65c   : > { %v2554_v16 = vsel %vm2354_vm13, %v2552_v13, -inf }
 0x660   : > { %v2645_v47 = vpop.f32.mrf.mxu2 }
 0x661   : > { %v2650_v61 = vsel %vm9075_vm14, %v2645_v47, -10000.0 }
 0x662   : > { %v2652_v12 = vsel %vm2354_vm13, %v2650_v61, -inf  ;;  %v2549_v18 = vpop.f32.mrf.mxu0 }
 0x663   : > { %2458 = vmax.xlane.f32.xlu2 %v2457_v48  ;;  %v2553_v22 = vsel %vm9085_vm4, %v2549_v18, -10000.0 }
 0x664   : > { %v2557_v19 = vsel %vm2354_vm13, %v2553_v22, -inf }
 0x668   : > { %v2647_v10 = vpop.f32.mrf.mxu2 }
 0x669   : > { %v2651_v40 = vsel %vm9085_vm4, %v2647_v10, -10000.0 }
 0x66a   : > { %v2655_v1 = vsel %vm2354_vm13, %v2651_v40, -inf }
 0x66b   : > { %2656 = vmax.xlane.f32.xlu1 %v2655_v1  ;;  %2653 = vmax.xlane.f32.xlu2 %v2652_v12 }
 0x673   : > { %2555 = vmax.xlane.f32.xlu2 %v2554_v16 }
 0x67b   : > { %2558 = vmax.xlane.f32.xlu2 %v2557_v19 }
 0x6c0   : > { %v2357_v23 = vpop.xlane.xlu0 %2356 }
 0x6c1   : > { %v2361_v55 = vsub.f32 %v2352_v58, %v2357_v23 }
 0x6c3   : > { %v2363_v17 = vmul.f32 1.442695, %v2361_v55 }
 0x6c6   : > { %v2456_v28 = vpop.xlane.xlu2 %2455 }
 0x6c7   : > { %v2460_v29 = vsub.f32 %v2452_v0, %v2456_v28 }
 0x6c9   : > { %v2462_v9 = vmul.f32 1.442695, %v2460_v29 }
 0x6cb   : > { %7982 = vpow2.f32 %v2462_v9 }
 0x6cc   : > { %7984 = vpow2.f32 %v2363_v17 }
 0x6ce   : > { %v2360_v8 = vpop.xlane.xlu2 %2359 }
 0x6cf   : > { %v2362_v34 = vsub.f32 %v2353_v3, %v2360_v8 }
 0x6d1   : > { %v9107_v30 = vpop.eup %7982  ;;  %v2365_v36 = vmul.f32 1.442695, %v2362_v34 }
 0x6d2   : > { %v2466_v31 = vsel %vm2354_vm13, %v9107_v30, 0.0  ;;  %v9111_v33 = vpop.eup %7984 }
 0x6d3   : > { %2467 = vadd.xlane.f32.xlu2 %v2466_v31  ;;  %v2367_v60 = vsel %vm2354_vm13, %v9111_v33, 0.0 }
 0x6d6   : > { %v2459_v32 = vpop.xlane.xlu2 %2458 }
 0x6d7   : > { %v2461_v45 = vsub.f32 %v2453_v5, %v2459_v32 }
 0x6d9   : > { %v2464_v35 = vmul.f32 1.442695, %v2461_v45 }
 0x6db   : > { %7986 = vpow2.f32 %v2464_v35  ;;  %2368 = vadd.xlane.f32.xlu2 %v2367_v60 }
 0x6dc   : > { %7988 = vpow2.f32 %v2365_v36 }
 0x6de   : > { %v2657_v37 = vpop.xlane.xlu1 %2656  ;;  %v2654_v38 = vpop.xlane.xlu2 %2653 }
 0x6df   : > { %v2659_v39 = vsub.f32 %v2651_v40, %v2657_v37  ;;  %v2658_v15 = vsub.f32 %v2650_v61, %v2654_v38 }
 0x6e1   : > { %v9115_v42 = vpop.eup %7986  ;;  %v2662_v44 = vmul.f32 1.442695, %v2659_v39  ;;  %v2660_v27 = vmul.f32 1.442695, %v2658_v15 }
 0x6e2   : > { %v2469_v49 = vsel %vm2354_vm13, %v9115_v42, 0.0  ;;  %v9119_v52 = vpop.eup %7988 }
 0x6e3   : > { %7990 = vpow2.f32 %v2662_v44  ;;  %2470 = vadd.xlane.f32.xlu0 %v2469_v49  ;;  %v2370_v59 = vsel %vm2354_vm13, %v9119_v52, 0.0  ;;  %v7705_v49 = vld [vmem:[%s10563_s14 + $0x38] sm:$0xff] }
 0x6e4   : > { %7992 = vpow2.f32 %v2660_v27  ;;  %2988 = vmatpush.bf16.msrb.mxu0 %v7705_v49 }
 0x6e6   : > { %v2556_v50 = vpop.xlane.xlu2 %2555 }
 0x6e7   : > { %v2560_v53 = vsub.f32 %v2552_v13, %v2556_v50 }
 0x6e9   : > { %v9121_v21 = vpop.eup %7990  ;;  %v2562_v7 = vmul.f32 1.442695, %v2560_v53 }
 0x6ea   : > { %v9123_v57 = vpop.eup %7992  ;;  %v2667_v58 = vsel %vm2354_vm13, %v9121_v21, 0.0 }
 0x6eb   : > { %7994 = vpow2.f32 %v2562_v7  ;;  %2668 = vadd.xlane.f32.xlu1 %v2667_v58  ;;  %2371 = vadd.xlane.f32.xlu0 %v2370_v59  ;;  %v2664_v25 = vsel %vm2354_vm13, %v9123_v57, 0.0 }
 0x6ec   : > { %2665 = vadd.xlane.f32.xlu2 %v2664_v25 }
 0x6ee   : > { %v2559_v62 = vpop.xlane.xlu2 %2558 }
 0x6ef   : > { %v2561_v0 = vsub.f32 %v2553_v22, %v2559_v62 }
 0x6f1   : > { %v9131_v26 = vpop.eup %7994  ;;  %v2564_v2 = vmul.f32 1.442695, %v2561_v0 }
 0x6f2   : > { %v2566_v3 = vsel %vm2354_vm13, %v9131_v26, 0.0 }
 0x6f3   : > { %7996 = vpow2.f32 %v2564_v2  ;;  %2567 = vadd.xlane.f32.xlu0 %v2566_v3  ;;  %v7704_v2 = vld [vmem:[%s10563_s14 + $0x30] sm:$0xff] }
 0x6f4   : > { %2989 = vmatpush.bf16.msrb.mxu0 %v7704_v2 }
 0x6f9   : > { %v9135_v54 = vpop.eup %7996 }
 0x6fa   : > { %v2569_v4 = vsel %vm2354_vm13, %v9135_v54, 0.0 }
 0x6fb   : > { %2570 = vadd.xlane.f32.xlu2 %v2569_v4 }
 0x746   : > { %v2468_v5 = vpop.xlane.xlu2 %2467 }
 0x747   : > { %7998 = vrcp.f32 %v2468_v5  ;;  %vm2477_vm6 = vweird.f32 %v2468_v5  ;;  %v2483_v29 = vand.u32 2147483648, %v2468_v5  ;;  %v2481_v17 = vand.u32 2147483647, %v2468_v5 }
 0x749   : > { %v2484_v60 = vor.u32 1.1754944e-38, %v2483_v29  ;;  %vm2482_vm12 = vcmp.eq.f32.partialorder %v2481_v17, 8.507059e+37 }
 0x74d   : > { %v7999_v47 = vpop.eup %7998 }
 0x74e   : > { %v2369_v48 = vpop.xlane.xlu2 %2368  ;;  %v2473_v61 = vmul.f32 %v7999_v47, %v2468_v5  ;;  %vm2478_vm5 = vweird.f32 %v7999_v47 }
 0x74f   : > { %8000 = vrcp.f32 %v2369_v48  ;;  %vm9146_vm7 = vmor %vm2477_vm6, %vm2478_vm5  ;;  %vm2378_vm11 = vweird.f32 %v2369_v48  ;;  %v2384_v36 = vand.u32 2147483648, %v2369_v48  ;;  %v2382_v38 = vand.u32 2147483647, %v2369_v48 }
 0x750   : > { %v2474_v40 = vsub.f32 1.0, %v2473_v61 }
 0x751   : > { %v2385_v25 = vor.u32 1.1754944e-38, %v2384_v36 }
 0x752   : > { %v2475_v12 = vmul.f32 %v7999_v47, %v2474_v40  ;;  %v7729_v40 = vld [vmem:[%s10563_s14 + $0xf8] sm:$0xff] }
 0x754   : > { %v2476_v18 = vadd.f32 %v7999_v47, %v2475_v12 }
 0x755   : > { %v8001_v10 = vpop.eup %8000 }
 0x756   : > { %v2374_v46 = vmul.f32 %v8001_v10, %v2369_v48  ;;  %v2471_v1 = vpop.xlane.xlu0 %2470  ;;  %v2480_v31 = vsel %vm9146_vm7, %v7999_v47, %v2476_v18  ;;  %vm2379_vm8 = vweird.f32 %v8001_v10 }
 0x757   : > { %8002 = vrcp.f32 %v2471_v1  ;;  %v2496_v32 = vand.u32 2147483647, %v2471_v1  ;;  %v2498_v45 = vand.u32 2147483648, %v2471_v1  ;;  %vm9154_vm15 = vmor %vm2378_vm11, %vm2379_vm8  ;;  %vm2492_vm5 = vweird.f32 %v2471_v1 }
 0x758   : > { %v2375_v13 = vsub.f32 1.0, %v2374_v46  ;;  %v2485_v44 = vsel %vm2482_vm12, %v2484_v60, %v2480_v31  ;;  %vm2383_vm8 = vcmp.eq.f32.partialorder %v2382_v38, 8.507059e+37  ;;  %v7721_v46 = vld [vmem:[%s10563_s14 + $0xb8] sm:$0xff]  ;;  %v7698_v60 = vld [vmem:[%s10563_s14] sm:$0xff] }
 0x759   : > { %v2499_v27 = vor.u32 1.1754944e-38, %v2498_v45  ;;  %vm2497_vm7 = vcmp.eq.f32.partialorder %v2496_v32, 8.507059e+37  ;;  %v2486_v4 = vmul.f32 %v9107_v30, %v2485_v44  ;;  %3016 = vmatpush.bf16.msrb.mxu2 %v7721_v46  ;;  %v7727_v32 = vld [vmem:[%s10563_s14 + $0xe8] sm:$0xff] }
 0x75a   : > { %v2376_v22 = vmul.f32 %v8001_v10, %v2375_v13 }
 0x75c   : > { %v2377_v34 = vadd.f32 %v8001_v10, %v2376_v22  ;;  %v7703_v22 = vld [vmem:[%s10563_s14 + $0x28] sm:$0xff] }
 0x75d   : > { %v8003_v16 = vpop.eup %8002  ;;  %2990 = vmatpush.bf16.msrb.mxu0 %v7703_v22 }
 0x75e   : > { %v2488_v19 = vmul.f32 %v8003_v16, %v2471_v1  ;;  %v9139_v23 = vpop.xlane.xlu1 %2668  ;;  %v9141_v28 = vpop.xlane.xlu0 %2371  ;;  %vm2493_vm10 = vweird.f32 %v8003_v16  ;;  %v2381_v53 = vsel %vm9154_vm15, %v8001_v10, %v2377_v34 }
 0x75f   : > { %8004 = vrcp.f32 %v9139_v23  ;;  %v9144_v55 = vpop.xlane.xlu2 %2665  ;;  %vm2494_vm6 = vmor %vm2492_vm5, %vm2493_vm10  ;;  %v2386_v48 = vsel %vm2383_vm8, %v2385_v25, %v2381_v53  ;;  %vm2690_vm10 = vweird.f32 %v9139_v23  ;;  %v2694_v1 = vand.u32 2147483647, %v9139_v23 }
 0x760   : > { %v2489_v8 = vsub.f32 1.0, %v2488_v19  ;;  %8006 = vrcp.f32 %v9141_v28  ;;  %v2696_v29 = vand.u32 2147483648, %v9139_v23  ;;  %vm2393_vm15 = vweird.f32 %v9141_v28 }
 0x761   : > { %8008 = vrcp.f32 %v9144_v55  ;;  %v2681_v31 = vand.u32 2147483648, %v9144_v55  ;;  %v2387_v38 = vmul.f32 %v9111_v33, %v2386_v48  ;;  %v7713_v33 = vld [vmem:[%s10563_s14 + $0x78] sm:$0xff] }
 0x762   : > { %v2490_v35 = vmul.f32 %v8003_v16, %v2489_v8 }
 0x763   : > { %v2682_v53 = vor.u32 1.1754944e-38, %v2681_v31  ;;  %v7707_v31 = vld [vmem:[%s10563_s14 + $0x48] sm:$0xff] }
 0x764   : > { %v2491_v39 = vadd.f32 %v8003_v16, %v2490_v35 }
 0x765   : > { %v9158_v15 = vpop.eup %8004 }
 0x766   : > { %v8007_v50 = vpop.eup %8006  ;;  %v2495_v7 = vsel %vm2494_vm6, %v8003_v16, %v2491_v39  ;;  %v2686_v58 = vmul.f32 %v9158_v15, %v9139_v23  ;;  %v9167_v59 = vpop.xlane.xlu0 %2567  ;;  %v2397_v16 = vand.u32 2147483647, %v9141_v28  ;;  %vm2691_vm12 = vweird.f32 %v9158_v15 }
 0x767   : > { %v2500_v62 = vsel %vm2497_vm7, %v2499_v27, %v2495_v7  ;;  %v2389_v0 = vmul.f32 %v8007_v50, %v9141_v28  ;;  %8010 = vrcp.f32 %v9167_v59  ;;  %v8009_v3 = vpop.eup %8008  ;;  %vm2394_vm11 = vweird.f32 %v8007_v50  ;;  %vm9212_vm8 = vmor %vm2690_vm10, %vm2691_vm12 }
 0x768   : > { %v2501_v5 = vmul.f32 %v9115_v42, %v2500_v62  ;;  %v2687_v47 = vsub.f32 1.0, %v2686_v58  ;;  %v2671_v10 = vmul.f32 %v8009_v3, %v9144_v55  ;;  %v2399_v42 = vand.u32 2147483648, %v9141_v28  ;;  %vm9200_vm6 = vmor %vm2393_vm15, %vm2394_vm11  ;;  %v7701_v62 = vld [vmem:[%s10563_s14 + $0x18] sm:$0xff] }
 0x769   : > { %v2390_v61 = vsub.f32 1.0, %v2389_v0  ;;  %vm2676_vm5 = vweird.f32 %v8009_v3  ;;  %vm2675_vm7 = vweird.f32 %v9144_v55  ;;  %v2679_v28 = vand.u32 2147483647, %v9144_v55  ;;  %v7702_v55 = vld [vmem:[%s10563_s14 + $0x20] sm:$0xff] }
 0x76a   : > { %v2688_v30 = vmul.f32 %v9158_v15, %v2687_v47  ;;  %v2502_v12 = vpack.c.bf16 %v2501_v5, %v2486_v4  ;;  %v2672_v18 = vsub.f32 1.0, %v2671_v10  ;;  %v2400_v45 = vor.u32 1.1754944e-38, %v2399_v42  ;;  %vm2677_vm10 = vmor %vm2675_vm7, %vm2676_vm5  ;;  %2991 = vmatpush.bf16.msrb.mxu0 %v7702_v55  ;;  %v7712_v5 = vld [vmem:[%s10563_s14 + $0x70] sm:$0xff]  ;;  %v7717_v55 = vld [vmem:[%s10563_s14 + $0x98] sm:$0xff] }
 0x76b   : > { %v2391_v13 = vmul.f32 %v8007_v50, %v2390_v61  ;;  %vm2398_vm11 = vcmp.eq.f32.partialorder %v2397_v16, 8.507059e+37  ;;  %v2697_v27 = vor.u32 1.1754944e-38, %v2696_v29  ;;  %vm2695_vm12 = vcmp.eq.f32.partialorder %v2694_v1, 8.507059e+37  ;;  %v7710_v16 = vld [vmem:[%s10563_s14 + $0x60] sm:$0xff] }
 0x76c   : > { %v2689_v19 = vadd.f32 %v9158_v15, %v2688_v30  ;;  %6593 = vmatmul.msk.bf16.vlgmr.msrb.gmra.mxu3 %vm2354_vm13, %v2502_v12  ;;  %v2673_v8 = vmul.f32 %v8009_v3, %v2672_v18  ;;  %vm2680_vm15 = vcmp.eq.f32.partialorder %v2679_v28, 8.507059e+37  ;;  %v2583_v47 = vand.u32 2147483648, %v9167_v59  ;;  %v7711_v30 = vld [vmem:[%s10563_s14 + $0x68] sm:$0xff] }
 0x76d   : > { %v9196_v9 = vpop.eup %8010  ;;  %v2392_v17 = vadd.f32 %v8007_v50, %v2391_v13  ;;  %3030 = vmatpush.bf16.msrb.mxu3 %v7729_v40  ;;  %v2581_v48 = vand.u32 2147483647, %v9167_v59  ;;  %v7719_v28 = vld [vmem:[%s10563_s14 + $0xa8] sm:$0xff] }
 0x76e   : > { %v2573_v34 = vmul.f32 %v9196_v9, %v9167_v59  ;;  %v2571_v35 = vpop.xlane.xlu2 %2570  ;;  %v2674_v37 = vadd.f32 %v8009_v3, %v2673_v8  ;;  %v2693_v23 = vsel %vm9212_vm8, %v9158_v15, %v2689_v19  ;;  %vm2578_vm5 = vweird.f32 %v9196_v9  ;;  %2992 = vmatpush.bf16.msrb.mxu0 %v7701_v62  ;;  %v7728_v8 = vld [vmem:[%s10563_s14 + $0xf0] sm:$0xff] }
 0x76f   : > { %v2396_v36 = vsel %vm9200_vm6, %v8007_v50, %v2392_v17  ;;  %8012 = vrcp.f32 %v2571_v35  ;;  %v2698_v58 = vsel %vm2695_vm12, %v2697_v27, %v2693_v23  ;;  %vm2577_vm6 = vweird.f32 %v9167_v59  ;;  %v7708_v17 = vld [vmem:[%s10563_s14 + $0x50] sm:$0xff]  ;;  %v7722_v27 = vld [vmem:[%s10563_s14 + $0xc0] sm:$0xff] }
 0x770   : > { %v2401_v39 = vsel %vm2398_vm11, %v2400_v45, %v2396_v36  ;;  %v2574_v44 = vsub.f32 1.0, %v2573_v34  ;;  %v2678_v50 = vsel %vm2677_vm10, %v8009_v3, %v2674_v37  ;;  %vm2579_vm7 = vmor %vm2577_vm6, %vm2578_vm5  ;;  %v2598_v10 = vand.u32 2147483648, %v2571_v35  ;;  %v7699_v45 = vld [vmem:[%s10563_s14 + $0x8] sm:$0xff]  ;;  %v7706_v34 = vld [vmem:[%s10563_s14 + $0x40] sm:$0xff] }
 0x771   : > { %v2402_v49 = vmul.f32 %v9119_v52, %v2401_v39  ;;  %v2683_v25 = vsel %vm2680_vm15, %v2682_v53, %v2678_v50  ;;  %v2699_v52 = vmul.f32 %v9121_v21, %v2698_v58  ;;  %v2596_v21 = vand.u32 2147483647, %v2571_v35  ;;  %3031 = vmatpush.bf16.msrb.mxu3 %v7728_v8  ;;  %v7718_v36 = vld [vmem:[%s10563_s14 + $0xa0] sm:$0xff]  ;;  %v7725_v37 = vld [vmem:[%s10563_s14 + $0xd8] sm:$0xff]  ;;  %v7716_v23 = vld [vmem:[%s10563_s14 + $0x90] sm:$0xff] }
 0x772   : > { %v2575_v7 = vmul.f32 %v9196_v9, %v2574_v44  ;;  %v2684_v2 = vmul.f32 %v9123_v57, %v2683_v25  ;;  %v2584_v1 = vor.u32 1.1754944e-38, %v2583_v47  ;;  %vm2582_vm11 = vcmp.eq.f32.partialorder %v2581_v48, 8.507059e+37  ;;  %v7723_v39 = vld [vmem:[%s10563_s14 + $0xc8] sm:$0xff] }
 0x773   : > { %v2403_v15 = vpack.c.bf16 %v2402_v49, %v2387_v38  ;;  %vm2592_vm10 = vweird.f32 %v2571_v35  ;;  %v2599_v12 = vor.u32 1.1754944e-38, %v2598_v10  ;;  %vm2597_vm15 = vcmp.eq.f32.partialorder %v2596_v21, 8.507059e+37  ;;  %v7724_v38 = vld [vmem:[%s10563_s14 + $0xd0] sm:$0xff]  ;;  %v7715_v44 = vld [vmem:[%s10563_s14 + $0x88] sm:$0xff]  ;;  %v7714_v49 = vld [vmem:[%s10563_s14 + $0x80] sm:$0xff] }
 0x774   : > { %v2576_v3 = vadd.f32 %v9196_v9, %v2575_v7  ;;  %v2700_v46 = vpack.c.bf16 %v2699_v52, %v2684_v2 }
 0x775   : > { %v8013_v0 = vpop.eup %8012  ;;  %6592 = vmatmul.msk.bf16.vlgmr.msrb.gmra.mxu1 %vm2354_vm13, %v2403_v15  ;;  %3032 = vmatpush.bf16.msrb.mxu3 %v7727_v32 }
 0x776   : > { %v2588_v4 = vmul.f32 %v8013_v0, %v2571_v35  ;;  %3002 = vmatpush.bf16.msrb.mxu1 %v7713_v33  ;;  %v2580_v57 = vsel %vm2579_vm7, %v9196_v9, %v2576_v3  ;;  %vm2593_vm8 = vweird.f32 %v8013_v0  ;;  %v7709_v9 = vld [vmem:[%s10563_s14 + $0x58] sm:$0xff]  ;;  %v7726_v35 = vld [vmem:[%s10563_s14 + $0xe0] sm:$0xff] }
 0x777   : > { %v2585_v59 = vsel %vm2582_vm11, %v2584_v1, %v2580_v57  ;;  %vm2594_vm12 = vmor %vm2592_vm10, %vm2593_vm8 }
 0x778   : > { %v2589_v61 = vsub.f32 1.0, %v2588_v4  ;;  %v2586_v22 = vmul.f32 %v9131_v26, %v2585_v59  ;;  %v7700_v26 = vld [vmem:[%s10563_s14 + $0x10] sm:$0xff] }
 0x779   : > { %2993 = vmatpush.bf16.msrb.mxu0 %v7700_v26  ;;  %3033 = vmatpush.bf16.msrb.mxu3 %v7726_v35 }
 0x77a   : > { %v2590_v40 = vmul.f32 %v8013_v0, %v2589_v61  ;;  %3003 = vmatpush.bf16.msrb.mxu1 %v7712_v5  ;;  %v7927_v5 = vld [vmem:[%s10564_s15] ss:$0 sm:$0xff] }
 0x77c   : > { %v2591_v42 = vadd.f32 %v8013_v0, %v2590_v40  ;;  %6595 = vmatmul.msk.bf16.vlgmr.msra.gmra.mxu3 %vm2354_vm13, %v2700_v46 }
 0x77d   : > { %2994 = vmatpush.bf16.msrb.mxu0 %v7699_v45  ;;  %3034 = vmatpush.bf16.msrb.mxu3 %v7725_v37 }
 0x77e   : > { %v2595_v13 = vsel %vm2594_vm12, %v8013_v0, %v2591_v42  ;;  %3004 = vmatpush.bf16.msrb.mxu1 %v7711_v30  ;;  %vm10594_vm12 = vcmask 1040384  }
 0x77f   : > { %v2600_v18 = vsel %vm2597_vm15, %v2599_v12, %v2595_v13  ;;  %vm10593_vm15 = vsmask.f32 7424 }
 0x780   : > { %v2601_v19 = vmul.f32 %v9135_v54, %v2600_v18  ;;  %v7720_v54 = vld [vmem:[%s10563_s14 + $0xb0] sm:$0xff] }
 0x781   : > { %3017 = vmatpush.bf16.msrb.mxu2 %v7720_v54  ;;  %2995 = vmatpush.bf16.msrb.mxu0 %v7698_v60  ;;  %v7731_v60 = vld [vmem:[%s10567_s18 + $0x28] sm:$0xff] }
 0x782   : > { %v2602_v29 = vpack.c.bf16 %v2601_v19, %v2586_v22  ;;  %3005 = vmatpush.bf16.msrb.mxu1 %v7710_v16  ;;  %3035 = vmatpush.bf16.msrb.mxu3 %v7724_v38  ;;  %v7730_v38 = vld [vmem:[%s10567_s18 + $0x20] sm:$0xff] }
 0x785   : > { %6594 = vmatmul.msk.bf16.vlgmr.msra.gmra.mxu1 %vm2354_vm13, %v2602_v29  ;;  %3018 = vmatpush.bf16.msrb.mxu2 %v7719_v28 }
 0x786   : > { %3006 = vmatpush.bf16.msrb.mxu1 %v7709_v9  ;;  %3036 = vmatpush.bf16.msrb.mxu3 %v7723_v39 }
 0x787   : > { %3141 = vmatpush.bf16.msra.mxu0 %v7731_v60 }
 0x789   : > { %3019 = vmatpush.bf16.msrb.mxu2 %v7718_v36 }
 0x78a   : > { %3007 = vmatpush.bf16.msrb.mxu1 %v7708_v17  ;;  %3037 = vmatpush.bf16.msrb.mxu3 %v7722_v27  ;;  %v7732_v27 = vld [vmem:[%s10567_s18] sm:$0xff] }
 0x78b   : > { %3142 = vmatpush.bf16.msra.mxu0 %v7730_v38 }
 0x78d   : > { %3020 = vmatpush.bf16.msrb.mxu2 %v7717_v55  ;;  %v7733_v55 = vld [vmem:[%s10567_s18 + $0x8] sm:$0xff] }
 0x78e   : > { %3008 = vmatpush.bf16.msrb.mxu1 %v7707_v31 }
 0x791   : > { %3021 = vmatpush.bf16.msrb.mxu2 %v7716_v23 }
 0x792   : > { %3009 = vmatpush.bf16.msrb.mxu1 %v7706_v34 }
 0x795   : > { %3022 = vmatpush.bf16.msrb.mxu2 %v7715_v44 }
 0x796   : > { %3178 = vmatpush.bf16.msra.mxu1 %v7733_v55  ;;  %v7745_v55 = vld [vmem:[%s10569_s20 + $0x28] sm:$0xff] }
 0x799   : > { %3023 = vmatpush.bf16.msrb.mxu2 %v7714_v49 }
 0x79a   : > { %3179 = vmatpush.bf16.msra.mxu1 %v7732_v27 }
 0x7ef   : > { %v2521_v50 = vpop.f32.mrf.mxu3 }
 0x7f2   : > { %v2425_v53 = vpop.f32.mrf.mxu1 }
 0x7f7   : > { %v2523_v7 = vpop.f32.mrf.mxu3 }
 0x7f8   : > { %v2725_v33 = vpack.c.bf16 %v2523_v7, %v2521_v50 }
 0x7fa   : > { %v2427_v58 = vpop.f32.mrf.mxu1  ;;  %3010 = vmatmul.bf16.vlgmr.msrb.gmra.mxu1 %v2725_v33 }
 0x7fb   : > { %v2724_v25 = vpack.c.bf16 %v2427_v58, %v2425_v53  ;;  %v7735_v53 = vld [vmem:[%s10567_s18 + $0x18] sm:$0xff] }
 0x7fc   : > { %3225 = vmatpush.bf16.msra.mxu2 %v7735_v53 }
 0x7fd   : > { %2996 = vmatmul.bf16.vlgmr.msrb.gmra.mxu0 %v2724_v25 }
 0x7ff   : > { %v2719_v15 = vpop.f32.mrf.mxu3 }
 0x802   : > { %v2623_v62 = vpop.f32.mrf.mxu1 }
 0x807   : > { %v2721_v0 = vpop.f32.mrf.mxu3 }
 0x808   : > { %v2727_v52 = vpack.c.bf16 %v2721_v0, %v2719_v15  ;;  %v7734_v15 = vld [vmem:[%s10567_s18 + $0x10] sm:$0xff] }
 0x809   : > { %3226 = vmatpush.bf16.msra.mxu2 %v7734_v15 }
 0x80a   : > { %v2625_v2 = vpop.f32.mrf.mxu1  ;;  %3038 = vmatmul.bf16.vlgmr.msrb.gmra.mxu3 %v2727_v52 }
 0x80b   : > { %v2726_v3 = vpack.c.bf16 %v2625_v2, %v2623_v62  ;;  %v7928_v62 = vld [vmem:[%s10565_s16] ss:$0 sm:$0xff] }
 0x80d   : > { %3024 = vmatmul.bf16.vlgmr.msrb.gmra.mxu2 %v2726_v3 }
 0x877   : > { %v3011_v48 = vpop.f32.mrf.mxu1 }
 0x87a   : > { %v2997_v4 = vpop.f32.mrf.mxu0 }
 0x87b   : > { %v2998_v47 = vadd.f32 %v7927_v5, %v2997_v4  ;;  %v7929_v4 = vld [vmem:[%s10566_s17] ss:$0 sm:$0xff] }
 0x87d   : > { %v3012_v21 = vadd.f32 %v3011_v48, %v2998_v47 }
 0x87f   : > { %v3013_v42 = vpop.f32.mrf.mxu1 }
 0x882   : > { %v2999_v61 = vpop.f32.mrf.mxu0 }
 0x883   : > { %v3000_v46 = vadd.f32 %v7927_v5, %v2999_v61 }
 0x885   : > { %v3014_v59 = vadd.f32 %v3013_v42, %v3000_v46 }
 0x88d   : > { %v3039_v10 = vpop.f32.mrf.mxu3 }
 0x890   : > { %v3025_v57 = vpop.f32.mrf.mxu2 }
 0x891   : > { %v3026_v40 = vadd.f32 %v3025_v57, %v3012_v21 }
 0x893   : > { %v3040_v30 = vadd.f32 %v3039_v10, %v3026_v40 }
 0x895   : > { %v3044_v1 = vadd.f32 %v3040_v30, %v8950_v6  ;;  %v3041_v18 = vpop.f32.mrf.mxu3 }
 0x897   : > { %v3048_v12 = vsel %vm1009_vm0, %v3044_v1, 0.0 }
 0x898   : > { %v3027_v13 = vpop.f32.mrf.mxu2  ;;  %3049 = vadd.xlane.f32.xlu1 %v3048_v12 }
 0x899   : > { %v3028_v16 = vadd.f32 %v3027_v13, %v3014_v59 }
 0x89b   : > { %v3042_v22 = vadd.f32 %v3041_v18, %v3028_v16 }
 0x89d   : > { %v3045_v19 = vadd.f32 %v3042_v22, %v8952_v43 }
 0x89f   : > { %v3051_v29 = vsel %vm1009_vm0, %v3045_v19, 0.0 }
 0x8a0   : > { %3052 = vadd.xlane.f32.xlu0 %v3051_v29 }
 0x90b   : > { %v3050_v9 = vpop.xlane.xlu1 %3049 }
 0x90c   : > { %v3054_v17 = vmul.f32 %v3050_v9, %v8824_v24 }
 0x90e   : > { %v3056_v8 = vsub.f32 %v3044_v1, %v3054_v17 }
 0x910   : > { %v3058_v26 = vmul.f32 %v3056_v8, %v3056_v8 }
 0x912   : > { %v3060_v6 = vsel %vm1009_vm0, %v3058_v26, 0.0 }
 0x913   : > { %v3053_v54 = vpop.xlane.xlu0 %3052  ;;  %3061 = vadd.xlane.f32.xlu2 %v3060_v6  ;;  %v7739_v6 = vld [vmem:[%s10569_s20 + $0x58] sm:$0xff] }
 0x914   : > { %v3055_v31 = vmul.f32 %v3053_v54, %v8824_v24  ;;  %3291 = vmatpush.bf16.msra.mxu3 %v7739_v6  ;;  %v7743_v54 = vld [vmem:[%s10569_s20 + $0x18] sm:$0xff] }
 0x915   : > { %3342 = vmatpush.bf16.msrb.mxu0 %v7743_v54 }
 0x916   : > { %v3057_v32 = vsub.f32 %v3045_v19, %v3055_v31  ;;  %v7738_v31 = vld [vmem:[%s10569_s20 + $0x50] sm:$0xff] }
 0x918   : > { %v3059_v45 = vmul.f32 %v3057_v32, %v3057_v32  ;;  %3292 = vmatpush.bf16.msra.mxu3 %v7738_v31 }
 0x91a   : > { %v3063_v28 = vsel %vm1009_vm0, %v3059_v45, 0.0  ;;  %v7737_v45 = vld [vmem:[%s10569_s20 + $0x48] sm:$0xff] }
 0x91b   : > { %3064 = vadd.xlane.f32.xlu1 %v3063_v28  ;;  %v7747_v28 = vld [vmem:[%s10569_s20 + $0x38] sm:$0xff] }
 0x91c   : > { %3293 = vmatpush.bf16.msra.mxu3 %v7737_v45  ;;  %3404 = vmatpush.bf16.msrb.mxu1 %v7747_v28 }
 0x986   : > { %v3062_v43 = vpop.xlane.xlu2 %3061 }
 0x987   : > { %v3066_v34 = vmul.f32 %v3062_v43, %v8824_v24  ;;  %v7741_v43 = vld [vmem:[%s10569_s20 + $0x8] sm:$0xff] }
 0x989   : > { %v3068_v35 = vadd.f32 1e-05, %v3066_v34  ;;  %v7736_v34 = vld [vmem:[%s10569_s20 + $0x40] sm:$0xff] }
 0x98a   : > { %3294 = vmatpush.bf16.msra.mxu3 %v7736_v34 }
 0x98b   : > { %8014 = vrsqrt.f32 %v3068_v35  ;;  %vm3076_vm6 = vweird.f32 %v3068_v35 }
 0x98e   : > { %v3065_v36 = vpop.xlane.xlu1 %3064 }
 0x98f   : > { %v3067_v37 = vmul.f32 %v3065_v36, %v8824_v24  ;;  %v7740_v36 = vld [vmem:[%s10569_s20] sm:$0xff] }
 0x991   : > { %v8015_v23 = vpop.eup %8014  ;;  %v3069_v39 = vadd.f32 1e-05, %v3067_v37  ;;  %v7930_v37 = vld [vmem:[%s10568_s19] ss:$0 sm:$0xff] }
 0x992   : > { %v3071_v44 = vmul.f32 %v8015_v23, %v3068_v35  ;;  %vm3077_vm5 = vweird.f32 %v8015_v23  ;;  %v7746_v35 = vld [vmem:[%s10569_s20 + $0x30] sm:$0xff] }
 0x993   : > { %8016 = vrsqrt.f32 %v3069_v39  ;;  %vm3078_vm7 = vmor %vm3076_vm6, %vm3077_vm5  ;;  %vm3086_vm11 = vweird.f32 %v3069_v39  ;;  %3405 = vmatpush.bf16.msrb.mxu1 %v7746_v35  ;;  %vm10592_vm5 = vcmask 523264  }
 0x994   : > { %v3072_v49 = vmul.f32 %v8015_v23, %v3071_v44 }
 0x996   : > { %v3073_v50 = vmul.f32 0.5, %v3072_v49 }
 0x997   : > { %3406 = vmatpush.bf16.msrb.mxu1 %v7745_v55 }
 0x998   : > { %v3074_v7 = vsub.f32 1.5, %v3073_v50 }
 0x999   : > { %v8017_v33 = vpop.eup %8016 }
 0x99a   : > { %v3075_v58 = vmul.f32 %v8015_v23, %v3074_v7  ;;  %v3081_v25 = vmul.f32 %v8017_v33, %v3069_v39  ;;  %vm3087_vm8 = vweird.f32 %v8017_v33  ;;  %v7744_v39 = vld [vmem:[%s10569_s20 + $0x20] sm:$0xff] }
 0x99b   : > { %vm3088_vm10 = vmor %vm3086_vm11, %vm3087_vm8  ;;  %3407 = vmatpush.bf16.msrb.mxu1 %v7744_v39 }
 0x99c   : > { %v3079_v0 = vsel %vm3078_vm7, %v8015_v23, %v3075_v58  ;;  %v3082_v52 = vmul.f32 %v8017_v33, %v3081_v25 }
 0x99d   : > { %v3090_v2 = vmul.f32 %v3079_v0, %v3056_v8 }
 0x99e   : > { %v3083_v3 = vmul.f32 0.5, %v3082_v52 }
 0x99f   : > { %v3095_v5 = vmul.f32 %v7928_v62, %v3090_v2 }
 0x9a0   : > { %v3084_v47 = vsub.f32 1.5, %v3083_v3 }
 0x9a1   : > { %v9356_v61 = vadd.f32 %v7929_v4, %v3095_v5 }
 0x9a2   : > { %v3085_v48 = vmul.f32 %v8017_v33, %v3084_v47 }
 0x9a3   : > { %v3102_v57 = vmul.f32 %v9356_v61, %v8454_v51 }
 0x9a4   : > { %v3089_v21 = vsel %vm3088_vm10, %v8017_v33, %v3085_v48 }
 0x9a5   : > { %v3091_v10 = vmul.f32 %v3089_v21, %v3057_v32  ;;  %v3104_v30 = vpack.c.bf16 %v3102_v57, %v3102_v57  ;;  %v7742_v32 = vld [vmem:[%s10569_s20 + $0x10] sm:$0xff] }
 0x9a6   : > { %3343 = vmatpush.bf16.msrb.mxu0 %v7742_v32 }
 0x9a7   : > { %v3096_v40 = vmul.f32 %v7928_v62, %v3091_v10  ;;  %v3117_v59 = vunpack.c.l.b16 %v3104_v30 }
 0x9a9   : > { %v9360_v46 = vadd.f32 %v7929_v4, %v3096_v40 }
 0x9aa   : > { %3344 = vmatpush.bf16.msrb.mxu0 %v7741_v43 }
 0x9ab   : > { %v3103_v1 = vmul.f32 %v9360_v46, %v8466_v56 }
 0x9ad   : > { %v3105_v42 = vpack.c.bf16 %v3103_v1, %v3103_v1 }
 0x9ae   : > { %3345 = vmatpush.bf16.msrb.mxu0 %v7740_v36 }
 0x9af   : > { %v3118_v12 = vunpack.c.l.b16 %v3105_v42 }
 0x9b1   : > { %v3119_v13 = vpack.c.b16 %v3118_v12, %v3117_v59  ;;  %v7931_v12 = vld [vmem:[%s10570_s21] ss:$0 sm:$0xff] }
 0x9b3   : > { %6736 = vmatmul.msk.bf16.vlgmr.msra.gmra.mxu0 %vm1009_vm0, %v3119_v13  ;;  %v3149_v16 = vrot.slane %v3119_v13, 7 }
 0x9b5   : > { %v3153_v18 = vsel %vm10594_vm12, 0, %v3149_v16  ;;  %v3200_v19 = vshll.u32 %v3149_v16, 16 }
 0x9b6   : > { %6745 = vmatmul.msk.bf16.vlgmr.msra.gmra.mxu1 %vm1009_vm0, %v3153_v18  ;;  %v3196_v22 = vshll.u32 %v3153_v18, 16  ;;  %v3194_v29 = vshrl.u32 %v3153_v18, 16 }
 0x9b7   : > { %v3202_v8 = vrot.slane %v3200_v19, 1 }
 0x9b8   : > { %v3198_v9 = vrot.slane %v3196_v22, 1 }
 0x9ba   : > { %v3199_v17 = vor.u32 %v3198_v9, %v3194_v29 }
 0x9bc   : > { %v3203_v26 = vsel %vm10593_vm15, %v3199_v17, %v3202_v8 }
 0x9bd   : > { %6758 = vmatmul.msk.bf16.vlgmr.msra.gmra.mxu2 %vm1009_vm0, %v3203_v26 }
 0xa30   : > { %v3144_v60 = vpop.f32.mrf.mxu0 }
 0xa31   : > { %v3145_v23 = vadd.f32 %v7930_v37, %v3144_v60 }
 0xa33   : > { %v3181_v38 = vpop.f32.mrf.mxu1 }
 0xa34   : > { %v3186_v44 = vadd.f32 %v3181_v38, %v3145_v23 }
 0xa38   : > { %v3146_v27 = vpop.f32.mrf.mxu0 }
 0xa39   : > { %v3147_v53 = vadd.f32 %v7930_v37, %v3146_v27  ;;  %v6902_v27 = vld [vmem:[%s10622_s29 + $0x120] sm:$0xf] }
 0xa3b   : > { %v3183_v7 = vpop.f32.mrf.mxu1 }
 0xa3c   : > { %v3187_v58 = vadd.f32 %v3183_v7, %v3147_v53 }
 0xa40   : > { %v3228_v49 = vpop.f32.mrf.mxu2 }
 0xa41   : > { %v3233_v50 = vadd.f32 %v3228_v49, %v3186_v44  ;;  %v7766_v49 = vld [vmem:[%s10622_s29 + $0x14c] sm:$0xf0] }
 0xa42   : > { %v6903_v7 = vor.u32 %v7766_v49, %v6902_v27 }
 0xa43   : > { %v3235_v33 = vmax.f32 %v3233_v50, 0.0  ;;  %v7760_v50 = vld [vmem:[%s10622_s29 + $0x124] sm:$0xf] }
 0xa44   : > { %3660 = vmatpush.bf16.msrb.mxu2 %v6903_v7 }
 0xa45   : > { %v3237_v15 = vmul.f32 %v3235_v33, %v8454_v51  ;;  %v6904_v33 = vld [vmem:[%s10622_s29 + $0x150] sm:$0xf0] }
 0xa47   : > { %v3239_v52 = vpack.c.bf16 %v3237_v15, %v3237_v15  ;;  %v6907_v15 = vor.u32 %v7760_v50, %v6904_v33 }
 0xa48   : > { %v3230_v25 = vpop.f32.mrf.mxu2 }
 0xa49   : > { %v3234_v62 = vadd.f32 %v3230_v25, %v3187_v58  ;;  %v3256_v4 = vunpack.c.l.b16 %v3239_v52  ;;  %v6910_v58 = vld [vmem:[%s10622_s29 + $0x128] sm:$0xf]  ;;  %v7767_v25 = vld [vmem:[%s10622_s29 + $0x154] sm:$0xf0]  ;;  %v6912_v52 = vld [vmem:[%s10622_s29 + $0x158] sm:$0xf0]  ;;  %3674 = vmatpush.bf16.msrb.mxu3 %v6907_v15 }
 0xa4b   : > { %v3236_v0 = vmax.f32 %v3234_v62, 0.0  ;;  %v6911_v62 = vor.u32 %v7767_v25, %v6910_v58 }
 0xa4d   : > { %v3238_v2 = vmul.f32 %v3236_v0, %v8466_v56  ;;  %v7761_v0 = vld [vmem:[%s10622_s29 + $0x12c] sm:$0xf]  ;;  %3688 = vmatpush.bf16.msra.mxu0 %v6911_v62 }
 0xa4f   : > { %v3240_v3 = vpack.c.bf16 %v3238_v2, %v3238_v2 }
 0xa51   : > { %v3257_v5 = vunpack.c.l.b16 %v3240_v3  ;;  %v6915_v3 = vor.u32 %v7761_v0, %v6912_v52  ;;  %v7932_v52 = vld [vmem:[%s10571_s22] ss:$0 sm:$0xff] }
 0xa53   : > { %v3258_v47 = vpack.c.b16 %v3257_v5, %v3256_v4  ;;  %v6854_v4 = vld [vmem:[%s10622_s29 + $0xc0] sm:$0xf]  ;;  %v7754_v5 = vld [vmem:[%s10622_s29 + $0xec] sm:$0xf0]  ;;  %3702 = vmatpush.bf16.msra.mxu1 %v6915_v3 }
 0xa55   : > { %v3301_v48 = vrot.slane %v3258_v47, 7  ;;  %6783 = vmatmul.msk.bf16.vlgmr.msra.gmra.mxu3 %vm10592_vm5, %v3258_v47  ;;  %v7748_v47 = vld [vmem:[%s10622_s29 + $0xc4] sm:$0xf] }
 0xa57   : > { %v3303_v21 = vsel %vm10594_vm12, 0, %v3301_v48  ;;  %v3369_v10 = vshll.u32 %v3301_v48, 16  ;;  %v6855_v48 = vor.u32 %v7754_v5, %v6854_v4 }
 0xa58   : > { %6800 = vmatmul.msk.bf16.vlgmr.msrb.gmra.mxu0 %vm10592_vm5, %v3303_v21  ;;  %v3365_v57 = vshll.u32 %v3303_v21, 16  ;;  %v3363_v40 = vshrl.u32 %v3303_v21, 16  ;;  %v6856_v21 = vld [vmem:[%s10622_s29 + $0xf0] sm:$0xf0] }
 0xa59   : > { %v3371_v1 = vrot.slane %v3369_v10, 1  ;;  %v6862_v10 = vld [vmem:[%s10622_s29 + $0xc8] sm:$0xf]  ;;  %3661 = vmatpush.bf16.msrb.mxu2 %v6855_v48 }
 0xa5a   : > { %v3367_v30 = vrot.slane %v3365_v57, 1  ;;  %v7755_v57 = vld [vmem:[%s10622_s29 + $0xf4] sm:$0xf0] }
 0xa5c   : > { %v3368_v42 = vor.u32 %v3367_v30, %v3363_v40  ;;  %v6859_v40 = vor.u32 %v7748_v47, %v6856_v21  ;;  %v6863_v30 = vor.u32 %v7755_v57, %v6862_v10  ;;  %v6934_v10 = vld [vmem:[%s10622_s29 + $0x140] sm:$0xf]  ;;  %v7764_v57 = vld [vmem:[%s10622_s29 + $0x144] sm:$0xf] }
 0xa5e   : > { %v3372_v59 = vsel %vm10593_vm15, %v3368_v42, %v3371_v1  ;;  %v7749_v1 = vld [vmem:[%s10622_s29 + $0xcc] sm:$0xf]  ;;  %v6864_v42 = vld [vmem:[%s10622_s29 + $0xf8] sm:$0xf0]  ;;  %3675 = vmatpush.bf16.msrb.mxu3 %v6859_v40  ;;  %3689 = vmatpush.bf16.msra.mxu0 %v6863_v30  ;;  %v6936_v40 = vld [vmem:[%s10622_s29 + $0x170] sm:$0xf0] }
 0xa5f   : > { %6825 = vmatmul.msk.bf16.vlgmr.msrb.gmra.mxu1 %vm10592_vm5, %v3372_v59  ;;  %v6867_v59 = vor.u32 %v7749_v1, %v6864_v42  ;;  %v7771_v42 = vld [vmem:[%s10622_s29 + $0x174] sm:$0xf0] }
 0xa61   : > { %3703 = vmatpush.bf16.msra.mxu1 %v6867_v59  ;;  %v7765_v59 = vld [vmem:[%s10622_s29 + $0x14c] sm:$0xf] }
 0xad5   : > { %v3347_v13 = vpop.f32.mrf.mxu0 }
 0xad8   : > { %v3296_v16 = vpop.f32.mrf.mxu3 }
 0xad9   : > { %v3297_v18 = vadd.f32 %v7931_v12, %v3296_v16  ;;  %v7768_v16 = vld [vmem:[%s10622_s29 + $0x15c] sm:$0xf0] }
 0xadb   : > { %v3352_v22 = vadd.f32 %v3347_v13, %v3297_v18  ;;  %v6918_v13 = vld [vmem:[%s10622_s29 + $0x130] sm:$0xf]  ;;  %v7762_v18 = vld [vmem:[%s10622_s29 + $0x134] sm:$0xf] }
 0xadc   : > { %v3409_v19 = vpop.f32.mrf.mxu1 }
 0xadd   : > { %v3414_v29 = vadd.f32 %v3409_v19, %v3352_v22  ;;  %v3349_v6 = vpop.f32.mrf.mxu0  ;;  %v6919_v19 = vor.u32 %v7768_v16, %v6918_v13 }
 0xadf   : > { %v3416_v9 = vmul.f32 %v3414_v29, %v8454_v51  ;;  %v6920_v29 = vld [vmem:[%s10622_s29 + $0x160] sm:$0xf0]  ;;  %3716 = vmatpush.bf16.msra.mxu2 %v6919_v19  ;;  %v7758_v19 = vld [vmem:[%s10622_s29 + $0x10c] sm:$0xf0] }
 0xae0   : > { %v3298_v17 = vpop.f32.mrf.mxu3 }
 0xae1   : > { %v3299_v8 = vadd.f32 %v7931_v12, %v3298_v17  ;;  %v3418_v26 = vadd.f32 %v3416_v9, %v9356_v61  ;;  %v6926_v9 = vld [vmem:[%s10622_s29 + $0x138] sm:$0xf]  ;;  %v7769_v17 = vld [vmem:[%s10622_s29 + $0x164] sm:$0xf0] }
 0xae3   : > { %v3353_v54 = vadd.f32 %v3349_v6, %v3299_v8  ;;  %v3422_v31 = vsel %vm1009_vm0, %v3418_v26, 0.0  ;;  %v6923_v8 = vor.u32 %v7762_v18, %v6920_v29  ;;  %v7763_v6 = vld [vmem:[%s10622_s29 + $0x13c] sm:$0xf]  ;;  %v6939_v18 = vor.u32 %v7764_v57, %v6936_v40 }
 0xae4   : > { %v3411_v32 = vpop.f32.mrf.mxu1  ;;  %3423 = vadd.xlane.f32.xlu0 %v3422_v31  ;;  %v6870_v31 = vld [vmem:[%s10622_s29 + $0xd0] sm:$0xf] }
 0xae5   : > { %v3415_v45 = vadd.f32 %v3411_v32, %v3353_v54  ;;  %v6928_v54 = vld [vmem:[%s10622_s29 + $0x168] sm:$0xf0]  ;;  %3730 = vmatpush.bf16.msra.mxu3 %v6923_v8  ;;  %v6888_v8 = vld [vmem:[%s10622_s29 + $0x110] sm:$0xf0] }
 0xae7   : > { %v3417_v28 = vmul.f32 %v3415_v45, %v8466_v56 }
 0xae9   : > { %v3419_v43 = vadd.f32 %v3417_v28, %v9360_v46  ;;  %v6931_v28 = vor.u32 %v7763_v6, %v6928_v54  ;;  %v7759_v6 = vld [vmem:[%s10622_s29 + $0x114] sm:$0xf0]  ;;  %v7753_v54 = vld [vmem:[%s10622_s29 + $0xec] sm:$0xf] }
 0xaeb   : > { %v3425_v34 = vsel %vm1009_vm0, %v3419_v43, 0.0  ;;  %3758 = vmatpush.bf16.msrb.mxu1 %v6931_v28 }
 0xaec   : > { %3426 = vadd.xlane.f32.xlu2 %v3425_v34  ;;  %v7750_v34 = vld [vmem:[%s10622_s29 + $0xd4] sm:$0xf] }
 0xb57   : > { %v3424_v35 = vpop.xlane.xlu0 %3423 }
 0xb58   : > { %v3428_v60 = vmul.f32 %v3424_v35, %v8824_v24 }
 0xb5a   : > { %v9425_v36 = vsub.f32 %v3418_v26, %v3428_v60  ;;  %v6927_v26 = vor.u32 %v7769_v17, %v6926_v9  ;;  %v7752_v17 = vld [vmem:[%s10622_s29 + $0xe4] sm:$0xf] }
 0xb5c   : > { %v3432_v61 = vmul.f32 %v9425_v36, %v9425_v36  ;;  %3744 = vmatpush.bf16.msrb.mxu0 %v6927_v26  ;;  %v6894_v26 = vld [vmem:[%s10622_s29 + $0xe8] sm:$0xf] }
 0xb5d   : > { %v6895_v28 = vor.u32 %v7759_v6, %v6894_v26 }
 0xb5e   : > { %v3434_v37 = vsel %vm1009_vm0, %v3432_v61, 0.0  ;;  %v6872_v61 = vld [vmem:[%s10622_s29 + $0x100] sm:$0xf0] }
 0xb5f   : > { %v3427_v55 = vpop.xlane.xlu2 %3426  ;;  %3435 = vadd.xlane.f32.xlu1 %v3434_v37  ;;  %v6878_v37 = vld [vmem:[%s10622_s29 + $0xd8] sm:$0xf] }
 0xb60   : > { %v3429_v38 = vmul.f32 %v3427_v55, %v8824_v24  ;;  %v7757_v55 = vld [vmem:[%s10622_s29 + $0x104] sm:$0xf0] }
 0xb62   : > { %v9431_v23 = vsub.f32 %v3419_v43, %v3429_v38  ;;  %v7756_v43 = vld [vmem:[%s10622_s29 + $0xfc] sm:$0xf0]  ;;  %v6875_v38 = vor.u32 %v7750_v34, %v6872_v61 }
 0xb63   : > { %v6871_v60 = vor.u32 %v7756_v43, %v6870_v31  ;;  %v6896_v31 = vld [vmem:[%s10622_s29 + $0x118] sm:$0xf0] }
 0xb64   : > { %v3433_v46 = vmul.f32 %v9431_v23, %v9431_v23  ;;  %3731 = vmatpush.bf16.msra.mxu3 %v6875_v38  ;;  %v6899_v43 = vor.u32 %v7753_v54, %v6896_v31 }
 0xb65   : > { %3717 = vmatpush.bf16.msra.mxu2 %v6871_v60 }
 0xb66   : > { %v3437_v39 = vsel %vm1009_vm0, %v3433_v46, 0.0  ;;  %v6879_v46 = vor.u32 %v7757_v55, %v6878_v37 }
 0xb67   : > { %3438 = vadd.xlane.f32.xlu0 %v3437_v39  ;;  %v7751_v39 = vld [vmem:[%s10622_s29 + $0xdc] sm:$0xf] }
 0xb68   : > { %3745 = vmatpush.bf16.msrb.mxu0 %v6879_v46 }
 0xbd2   : > { %v3436_v44 = vpop.xlane.xlu1 %3435 }
 0xbd3   : > { %v3440_v53 = vmul.f32 %v3436_v44, %v8824_v24  ;;  %v6880_v44 = vld [vmem:[%s10622_s29 + $0x108] sm:$0xf0] }
 0xbd4   : > { %v6883_v49 = vor.u32 %v7751_v39, %v6880_v44 }
 0xbd5   : > { %v9461_v2 = vadd.f32 1e-05, %v3440_v53 }
 0xbd6   : > { %3759 = vmatpush.bf16.msrb.mxu1 %v6883_v49 }
 0xbd7   : > { %8018 = vrsqrt.f32 %v9461_v2  ;;  %vm3450_vm7 = vweird.f32 %v9461_v2 }
 0xbda   : > { %v3439_v12 = vpop.xlane.xlu0 %3438 }
 0xbdb   : > { %v3441_v22 = vmul.f32 %v3439_v12, %v8824_v24  ;;  %v6944_v12 = vld [vmem:[%s10622_s29 + $0x178] sm:$0xf0] }
 0xbdc   : > { %v6947_v9 = vor.u32 %v7765_v59, %v6944_v12 }
 0xbdd   : > { %v8019_v32 = vpop.eup %8018  ;;  %v3443_v45 = vadd.f32 1e-05, %v3441_v22  ;;  %v6886_v22 = vld [vmem:[%s10622_s29 + $0xe0] sm:$0xf] }
 0xbde   : > { %v3445_v35 = vmul.f32 %v8019_v32, %v9461_v2  ;;  %vm3451_vm6 = vweird.f32 %v8019_v32  ;;  %v7933_v2 = vld [vmem:[%s10572_s23] ss:$0 sm:$0xff] }
 0xbdf   : > { %8020 = vrsqrt.f32 %v3443_v45  ;;  %vm3452_vm8 = vmor %vm3450_vm7, %vm3451_vm6  ;;  %vm3460_vm10 = vweird.f32 %v3443_v45 }
 0xbe0   : > { %v3446_v27 = vmul.f32 %v8019_v32, %v3445_v35 }
 0xbe2   : > { %v3447_v50 = vmul.f32 0.5, %v3446_v27  ;;  %v9624_v27 = vld [vmem:[%s10625_s30 + $0xc] sm:$0xff] }
 0xbe4   : > { %v3448_v53 = vsub.f32 1.5, %v3447_v50 }
 0xbe5   : > { %v8021_v7 = vpop.eup %8020 }
 0xbe6   : > { %v3449_v33 = vmul.f32 %v8019_v32, %v3448_v53  ;;  %v3455_v58 = vmul.f32 %v8021_v7, %v3443_v45  ;;  %vm3461_vm11 = vweird.f32 %v8021_v7  ;;  %v6891_v45 = vor.u32 %v7752_v17, %v6888_v8 }
 0xbe7   : > { %vm3462_vm5 = vmor %vm3460_vm10, %vm3461_vm11  ;;  %v3511_v53 = vperm.slane %v9624_v27, 4 }
 0xbe8   : > { %v3456_v25 = vmul.f32 %v8021_v7, %v3455_v58  ;;  %v3453_v15 = vsel %vm3452_vm8, %v8019_v32, %v3449_v33  ;;  %v6887_v32 = vor.u32 %v7758_v19, %v6886_v22  ;;  %v3513_v33 = vperm.slane %v9624_v27, 6 }
 0xbe9   : > { %v3464_v3 = vmul.f32 %v3453_v15, %v9425_v36  ;;  %v7770_v36 = vld [vmem:[%s10622_s29 + $0x16c] sm:$0xf0]  ;;  %v3514_v58 = vperm.slane %v9624_v27, 7 }
 0xbea   : > { %v3457_v62 = vmul.f32 0.5, %v3456_v25  ;;  %v6935_v16 = vor.u32 %v7770_v36, %v6934_v10 }
 0xbeb   : > { %v3469_v47 = vmul.f32 %v7932_v52, %v3464_v3 }
 0xbec   : > { %v3458_v0 = vsub.f32 1.5, %v3457_v62 }
 0xbed   : > { %v9562_v30 = vadd.f32 %v7933_v2, %v3469_v47  ;;  %v3508_v47 = vperm.slane %v9624_v27, 1 }
 0xbee   : > { %v3459_v4 = vmul.f32 %v8021_v7, %v3458_v0 }
 0xbf0   : > { %v3463_v5 = vsel %vm3462_vm5, %v8021_v7, %v3459_v4  ;;  %v3512_v7 = vperm.slane %v9624_v27, 5 }
 0xbf1   : > { %v3465_v48 = vmul.f32 %v3463_v5, %v9431_v23  ;;  %v6942_v23 = vld [vmem:[%s10622_s29 + $0x148] sm:$0xf] }
 0xbf2   : > { %v6943_v29 = vor.u32 %v7771_v42, %v6942_v23 }
 0xbf3   : > { %v3470_v21 = vmul.f32 %v7932_v52, %v3465_v48 }
 0xbf5   : > { %v9564_v1 = vadd.f32 %v7933_v2, %v3470_v21  ;;  %v3507_v2 = vperm.slane %v9624_v27, 0 }
 0xbf7   : > { %v3476_v13 = vpack.c.bf16 %v9564_v1, %v9562_v30 }
 0xbf9   : > { %6948 = vmatmul.msk.bf16.vlgmr.msrb.gmra.mxu2 %vm1009_vm0, %v3476_v13  ;;  %6949 = vmatmul.msk.bf16.vlgmr.msrb.gmra.mxu3 %vm1009_vm0, %v3476_v13 }
 0xbfa   : > { %6950 = vmatmul.msk.bf16.vlgmr.msra.gmra.mxu0 %vm1009_vm0, %v3476_v13  ;;  %6951 = vmatmul.msk.bf16.vlgmr.msra.gmra.mxu1 %vm1009_vm0, %v3476_v13 }
 0xbfb   : > { %3772 = vmatpush.bf16.msrb.mxu2 %v6935_v16  ;;  %3786 = vmatpush.bf16.msrb.mxu3 %v6939_v18 }
 0xbfc   : > { %3800 = vmatpush.bf16.msra.mxu0 %v6943_v29  ;;  %3814 = vmatpush.bf16.msra.mxu1 %v6947_v9 }
 0xbff   : > { %3773 = vmatpush.bf16.msrb.mxu2 %v6887_v32  ;;  %3787 = vmatpush.bf16.msrb.mxu3 %v6891_v45  ;;  %v6851_v32 = vld [vmem:[%s10625_s30 + $0x14] sm:$0xf] }
 0xc00   : > { %3801 = vmatpush.bf16.msra.mxu0 %v6895_v28  ;;  %3815 = vmatpush.bf16.msra.mxu1 %v6899_v43 }
 0xc09   : > { %6952 = vmatmul.msk.bf16.vlgmr.msra.gmra.mxu2 %vm1009_vm0, %v3476_v13  ;;  %6953 = vmatmul.msk.bf16.vlgmr.msra.gmra.mxu3 %vm1009_vm0, %v3476_v13 }
 0xc0a   : > { %6954 = vmatmul.msk.bf16.vlgmr.msrb.gmra.mxu0 %vm1009_vm0, %v3476_v13  ;;  %6955 = vmatmul.msk.bf16.vlgmr.msrb.gmra.mxu1 %vm1009_vm0, %v3476_v13 }
 0xc19   : > { %6956 = vmatmul.msk.bf16.vlgmr.msrb.gmra.mxu2 %vm1009_vm0, %v3476_v13  ;;  %6957 = vmatmul.msk.bf16.vlgmr.msrb.gmra.mxu3 %vm1009_vm0, %v3476_v13 }
 0xc1a   : > { %6958 = vmatmul.msk.bf16.vlgmr.msra.gmra.mxu0 %vm1009_vm0, %v3476_v13  ;;  %6959 = vmatmul.msk.bf16.vlgmr.msra.gmra.mxu1 %vm1009_vm0, %v3476_v13 }
 0xc77   : > { %v9613_v34 = vpop.f32.mrf.mxu0  ;;  %v9615_v35 = vpop.f32.mrf.mxu1 }
 0xc7c   : > { %v3663_v60 = vpop.f32.mrf.mxu2  ;;  %v3677_v61 = vpop.f32.mrf.mxu3 }
 0xc7d   : > { %v3664_v18 = vadd.f32 %v3663_v60, %v3507_v2  ;;  %v3678_v22 = vadd.f32 %v3677_v61, %v3508_v47 }
 0xc7f   : > { %v9617_v37 = vpop.f32.mrf.mxu0  ;;  %v9619_v55 = vpop.f32.mrf.mxu1  ;;  %v3822_v43 = vpack.c.bf16 %v3678_v22, %v3664_v18 }
 0xc84   : > { %v3665_v38 = vpop.f32.mrf.mxu2  ;;  %v3679_v46 = vpop.f32.mrf.mxu3 }
 0xc85   : > { %v3666_v23 = vadd.f32 %v3665_v38, %v3507_v2  ;;  %v3680_v42 = vadd.f32 %v3679_v46, %v3508_v47 }
 0xc87   : > { %v3747_v39 = vpop.f32.mrf.mxu0  ;;  %v3761_v44 = vpop.f32.mrf.mxu1  ;;  %v3828_v6 = vpack.c.bf16 %v3680_v42, %v3666_v23 }
 0xc88   : > { %v3748_v4 = vadd.f32 %v3747_v39, %v3513_v33  ;;  %v3762_v5 = vadd.f32 %v3761_v44, %v3514_v58  ;;  %v3515_v39 = vperm.slane %v6851_v32, 0  ;;  %v3516_v44 = vperm.slane %v6851_v32, 1 }
 0xc8a   : > { %v3825_v59 = vpack.c.bf16 %v3762_v5, %v3748_v4 }
 0xc8c   : > { %v3719_v49 = vpop.f32.mrf.mxu2  ;;  %v3733_v50 = vpop.f32.mrf.mxu3  ;;  %v4036_v54 = vunpack.c.l.b16 %v3825_v59  ;;  %v4132_v31 = vunpack.c.h.b16 %v3825_v59 }
 0xc8d   : > { %v3720_v52 = vadd.f32 %v3719_v49, %v3511_v53  ;;  %v3734_v3 = vadd.f32 %v3733_v50, %v3512_v7  ;;  %v3837_v49 = vunpack.c.l.b16 %v3828_v6  ;;  %v3935_v50 = vunpack.c.h.b16 %v3828_v6 }
 0xc8f   : > { %v3749_v25 = vpop.f32.mrf.mxu0  ;;  %v3763_v15 = vpop.f32.mrf.mxu1  ;;  %v3824_v36 = vpack.c.bf16 %v3734_v3, %v3720_v52 }
 0xc90   : > { %v3750_v62 = vadd.f32 %v3749_v25, %v3513_v33  ;;  %v3764_v0 = vadd.f32 %v3763_v15, %v3514_v58  ;;  %v3836_v25 = vunpack.c.l.b16 %v3822_v43  ;;  %v3934_v15 = vunpack.c.h.b16 %v3822_v43 }
 0xc91   : > { %v3842_v9 = vunpack.c.l.b16 %v3824_v36  ;;  %v3938_v17 = vunpack.c.h.b16 %v3824_v36 }
 0xc92   : > { %v3831_v48 = vpack.c.bf16 %v3764_v0, %v3750_v62  ;;  %v3838_v4 = vpack.c.b16 %v3837_v49, %v3836_v25  ;;  %v3936_v5 = vpack.c.b16 %v3935_v50, %v3934_v15 }
 0xc94   : > { %v3721_v21 = vpop.f32.mrf.mxu2  ;;  %v3735_v10 = vpop.f32.mrf.mxu3  ;;  %v4037_v19 = vunpack.c.l.b16 %v3831_v48  ;;  %v4133_v29 = vunpack.c.h.b16 %v3831_v48  ;;  %v3509_v48 = vperm.slane %v9624_v27, 2 }
 0xc95   : > { %v3722_v57 = vadd.f32 %v3721_v21, %v3511_v53  ;;  %v3736_v40 = vadd.f32 %v3735_v10, %v3512_v7  ;;  %v3517_v53 = vperm.slane %v6851_v32, 2  ;;  %v3518_v7 = vperm.slane %v6851_v32, 3 }
 0xc96   : > { %v4038_v38 = vpack.c.b16 %v4037_v19, %v4036_v54  ;;  %v4134_v46 = vpack.c.b16 %v4133_v29, %v4132_v31  ;;  %v3510_v21 = vperm.slane %v9624_v27, 3  ;;  %v3694_v59 = vadd.f32 %v9617_v37, %v3509_v48 }
 0xc97   : > { %v3830_v12 = vpack.c.bf16 %v3736_v40, %v3722_v57  ;;  %v3803_v13 = vpop.f32.mrf.mxu0  ;;  %v3817_v16 = vpop.f32.mrf.mxu1 }
 0xc98   : > { %v3804_v2 = vadd.f32 %v3803_v13, %v3517_v53  ;;  %v3818_v47 = vadd.f32 %v3817_v16, %v3518_v7  ;;  %v3692_v13 = vadd.f32 %v9613_v34, %v3509_v48  ;;  %v3706_v16 = vadd.f32 %v9615_v35, %v3510_v21 }
 0xc99   : > { %v3843_v8 = vunpack.c.l.b16 %v3830_v12  ;;  %v3939_v26 = vunpack.c.h.b16 %v3830_v12  ;;  %v3708_v12 = vadd.f32 %v9619_v55, %v3510_v21 }
 0xc9a   : > { %v3827_v18 = vpack.c.bf16 %v3818_v47, %v3804_v2  ;;  %v3823_v37 = vpack.c.bf16 %v3706_v16, %v3692_v13 }
 0xc9b   : > { %v3844_v45 = vpack.c.b16 %v3843_v8, %v3842_v9  ;;  %v3940_v28 = vpack.c.b16 %v3939_v26, %v3938_v17  ;;  %v3829_v26 = vpack.c.bf16 %v3708_v12, %v3694_v59 }
 0xc9c   : > { %v3775_v60 = vpop.f32.mrf.mxu2  ;;  %v3789_v61 = vpop.f32.mrf.mxu3  ;;  %v4107_v6 = vunpack.c.l.b16 %v3827_v18  ;;  %v4201_v54 = vunpack.c.h.b16 %v3827_v18  ;;  %v4030_v35 = vunpack.c.l.b16 %v3823_v37  ;;  %v4128_v43 = vunpack.c.h.b16 %v3823_v37 }
 0xc9d   : > { %3853 = vmatpush.bf16.xpose.msra.mxu2 %v3844_v45  ;;  %3949 = vmatpush.bf16.xpose.msrb.mxu0 %v3940_v28  ;;  %v3776_v52 = vadd.f32 %v3775_v60, %v3515_v39  ;;  %v3790_v3 = vadd.f32 %v3789_v61, %v3516_v44  ;;  %v4031_v28 = vunpack.c.l.b16 %v3829_v26  ;;  %v4129_v34 = vunpack.c.h.b16 %v3829_v26 }
 0xc9f   : > { %v3805_v33 = vpop.f32.mrf.mxu0  ;;  %v3819_v58 = vpop.f32.mrf.mxu1  ;;  %v3826_v40 = vpack.c.bf16 %v3790_v3, %v3776_v52 }
 0xca0   : > { %v3806_v62 = vadd.f32 %v3805_v33, %v3517_v53  ;;  %v3820_v0 = vadd.f32 %v3819_v58, %v3518_v7 }
 0xca1   : > { %v3913_v29 = vunpack.c.l.b16 %v3826_v40  ;;  %v4007_v9 = vunpack.c.h.b16 %v3826_v40 }
 0xca2   : > { %v3833_v10 = vpack.c.bf16 %v3820_v0, %v3806_v62 }
 0xca4   : > { %v3777_v36 = vpop.f32.mrf.mxu2  ;;  %v3791_v57 = vpop.f32.mrf.mxu3  ;;  %3854 = vmatmul.bf16.vlgmr.msra.gmra.mxu2 %v3838_v4  ;;  %3950 = vmatmul.bf16.vlgmr.msrb.gmra.mxu0 %v3936_v5  ;;  %v4108_v19 = vunpack.c.l.b16 %v3833_v10  ;;  %v4202_v27 = vunpack.c.h.b16 %v3833_v10 }
 0xca5   : > { %4047 = vmatpush.bf16.xpose.msrb.mxu2 %v4038_v38  ;;  %4143 = vmatpush.bf16.xpose.msra.mxu0 %v4134_v46  ;;  %v3778_v23 = vadd.f32 %v3777_v36, %v3515_v39  ;;  %v3792_v42 = vadd.f32 %v3791_v57, %v3516_v44  ;;  %v4032_v38 = vpack.c.b16 %v4031_v28, %v4030_v35 }
 0xca6   : > { %v4109_v45 = vpack.c.b16 %v4108_v19, %v4107_v6  ;;  %v4203_v55 = vpack.c.b16 %v4202_v27, %v4201_v54  ;;  %v4130_v46 = vpack.c.b16 %v4129_v34, %v4128_v43 }
 0xca7   : > { %v3832_v22 = vpack.c.bf16 %v3792_v42, %v3778_v23 }
 0xca9   : > { %v3914_v17 = vunpack.c.l.b16 %v3832_v22  ;;  %v4008_v8 = vunpack.c.h.b16 %v3832_v22 }
 0xcab   : > { %v3915_v31 = vpack.c.b16 %v3914_v17, %v3913_v29  ;;  %v4009_v32 = vpack.c.b16 %v4008_v8, %v4007_v9 }
 0xcad   : > { %3927 = vmatpush.bf16.msra.mxu3 %v3915_v31  ;;  %4021 = vmatpush.bf16.msrb.mxu1 %v4009_v32 }
 0xcb1   : > { %4121 = vmatpush.bf16.msrb.mxu3 %v4109_v45  ;;  %4215 = vmatpush.bf16.msra.mxu1 %v4203_v55 }
 0xcb4   : > { %4048 = vmatmul.bf16.vlgmr.msrb.gmra.mxu2 %v4032_v38  ;;  %4144 = vmatmul.bf16.vlgmr.msra.gmra.mxu0 %v4130_v46 }
 0xd21   : > { %v3951_v60 = vpop.f32.mrf.mxu0 }
 0xd22   : > { %v3956_v61 = vsel %vm8564_vm1, %v3951_v60, -10000.0 }
 0xd23   : > { %v3958_v39 = vsel %vm1221_vm2, %v3956_v61, -inf }
 0xd24   : > { %3959 = vmax.xlane.f32.xlu0 %v3958_v39 }
 0xd27   : > { %v3855_v44 = vpop.f32.mrf.mxu2 }
 0xd28   : > { %v3860_v49 = vsel %vm8564_vm1, %v3855_v44, -10000.0 }
 0xd29   : > { %v3953_v50 = vpop.f32.mrf.mxu0  ;;  %v3862_v53 = vsel %vm1221_vm2, %v3860_v49, -inf }
 0xd2a   : > { %3863 = vmax.xlane.f32.xlu2 %v3862_v53  ;;  %v3957_v7 = vsel %vm8571_vm3, %v3953_v50, -10000.0 }
 0xd2b   : > { %v3961_v15 = vsel %vm1221_vm2, %v3957_v7, -inf }
 0xd2f   : > { %v3857_v33 = vpop.f32.mrf.mxu2 }
 0xd30   : > { %v3861_v58 = vsel %vm8571_vm3, %v3857_v33, -10000.0 }
 0xd31   : > { %v4145_v25 = vpop.f32.mrf.mxu0  ;;  %v3865_v62 = vsel %vm1221_vm2, %v3861_v58, -inf }
 0xd32   : > { %3962 = vmax.xlane.f32.xlu2 %v3961_v15  ;;  %3866 = vmax.xlane.f32.xlu1 %v3865_v62  ;;  %v4150_v0 = vsel %vm8564_vm1, %v4145_v25, -10000.0 }
 0xd33   : > { %v4152_v4 = vsel %vm1221_vm2, %v4150_v0, -inf }
 0xd37   : > { %v4049_v52 = vpop.f32.mrf.mxu2 }
 0xd38   : > { %v4054_v3 = vsel %vm8564_vm1, %v4049_v52, -10000.0 }
 0xd39   : > { %v4056_v5 = vsel %vm1221_vm2, %v4054_v3, -inf  ;;  %v4147_v2 = vpop.f32.mrf.mxu0 }
 0xd3a   : > { %4153 = vmax.xlane.f32.xlu2 %v4152_v4  ;;  %4057 = vmax.xlane.f32.xlu1 %v4056_v5  ;;  %v4151_v47 = vsel %vm8571_vm3, %v4147_v2, -10000.0 }
 0xd3b   : > { %v4155_v36 = vsel %vm1221_vm2, %v4151_v47, -inf }
 0xd3f   : > { %v4051_v48 = vpop.f32.mrf.mxu2 }
 0xd40   : > { %v4055_v21 = vsel %vm8571_vm3, %v4051_v48, -10000.0 }
 0xd41   : > { %v4059_v10 = vsel %vm1221_vm2, %v4055_v21, -inf }
 0xd42   : > { %4060 = vmax.xlane.f32.xlu0 %v4059_v10  ;;  %4156 = vmax.xlane.f32.xlu1 %v4155_v36 }
 0xd97   : > { %v3960_v14 = vpop.xlane.xlu0 %3959 }
 0xd98   : > { %v3964_v57 = vsub.f32 %v3956_v61, %v3960_v14 }
 0xd9a   : > { %v3966_v40 = vmul.f32 1.442695, %v3964_v57 }
 0xd9c   : > { %8022 = vpow2.f32 %v3966_v40  ;;  %v7787_v40 = vld [vmem:[%s10664_s3 + $0x178] sm:$0xff] }
 0xd9d   : > { %v3864_v23 = vpop.xlane.xlu2 %3863 }
 0xd9e   : > { %v3868_v42 = vsub.f32 %v3860_v49, %v3864_v23 }
 0xda0   : > { %v3870_v59 = vmul.f32 1.442695, %v3868_v42 }
 0xda2   : > { %v9665_v12 = vpop.eup %8022  ;;  %8024 = vpow2.f32 %v3870_v59 }
 0xda3   : > { %v3970_v20 = vsel %vm1221_vm2, %v9665_v12, 0.0 }
 0xda4   : > { %3971 = vadd.xlane.f32.xlu1 %v3970_v20 }
 0xda5   : > { %v3963_v18 = vpop.xlane.xlu2 %3962  ;;  %v3867_v22 = vpop.xlane.xlu1 %3866 }
 0xda6   : > { %v3965_v13 = vsub.f32 %v3957_v7, %v3963_v18  ;;  %v3869_v16 = vsub.f32 %v3861_v58, %v3867_v22  ;;  %v7779_v18 = vld [vmem:[%s10663_s26 + $0x138] sm:$0xff]  ;;  %s10675_s26 = sld [smem:[#allocation21_spill]] }
 0xda7   : > { %4488 = vmatpush.bf16.msra.mxu2 %v7779_v18 }
 0xda8   : > { %v9669_v19 = vpop.eup %8024  ;;  %v3968_v27 = vmul.f32 1.442695, %v3965_v13  ;;  %v3872_v29 = vmul.f32 1.442695, %v3869_v16 }
 0xda9   : > { %v3874_v9 = vsel %vm1221_vm2, %v9669_v19, 0.0 }
 0xdaa   : > { %8026 = vpow2.f32 %v3968_v27  ;;  %3875 = vadd.xlane.f32.xlu0 %v3874_v9 }
 0xdab   : > { %8028 = vpow2.f32 %v3872_v29 }
 0xdad   : > { %v4154_v17 = vpop.xlane.xlu2 %4153  ;;  %v4058_v8 = vpop.xlane.xlu1 %4057 }
 0xdae   : > { %v4158_v26 = vsub.f32 %v4150_v0, %v4154_v17  ;;  %v4062_v6 = vsub.f32 %v4054_v3, %v4058_v8  ;;  %v7778_v8 = vld [vmem:[%s10664_s3 + $0x130] sm:$0xff] }
 0xdaf   : > { %4489 = vmatpush.bf16.msra.mxu2 %v7778_v8 }
 0xdb0   : > { %v9673_v54 = vpop.eup %8026  ;;  %v4160_v31 = vmul.f32 1.442695, %v4158_v26  ;;  %v4064_v32 = vmul.f32 1.442695, %v4062_v6 }
 0xdb1   : > { %v9675_v37 = vpop.eup %8028  ;;  %v3973_v45 = vsel %vm1221_vm2, %v9673_v54, 0.0 }
 0xdb2   : > { %8030 = vpow2.f32 %v4160_v31  ;;  %3974 = vadd.xlane.f32.xlu0 %v3973_v45  ;;  %v3877_v55 = vsel %vm1221_vm2, %v9675_v37, 0.0 }
 0xdb3   : > { %8032 = vpow2.f32 %v4064_v32  ;;  %3878 = vadd.xlane.f32.xlu2 %v3877_v55 }
 0xdb5   : > { %v4061_v28 = vpop.xlane.xlu0 %4060  ;;  %v4157_v34 = vpop.xlane.xlu1 %4156 }
 0xdb6   : > { %v4063_v35 = vsub.f32 %v4055_v21, %v4061_v28  ;;  %v4159_v43 = vsub.f32 %v4151_v47, %v4157_v34 }
 0xdb8   : > { %v9681_v38 = vpop.eup %8030  ;;  %v4066_v46 = vmul.f32 1.442695, %v4063_v35  ;;  %v4162_v60 = vmul.f32 1.442695, %v4159_v43 }
 0xdb9   : > { %v9683_v61 = vpop.eup %8032  ;;  %v4164_v39 = vsel %vm1221_vm2, %v9681_v38, 0.0 }
 0xdba   : > { %8034 = vpow2.f32 %v4066_v46  ;;  %4165 = vadd.xlane.f32.xlu0 %v4164_v39  ;;  %v4068_v44 = vsel %vm1221_vm2, %v9683_v61, 0.0  ;;  %v7777_v39 = vld [vmem:[%s10664_s3 + $0x128] sm:$0xff] }
 0xdbb   : > { %8036 = vpow2.f32 %v4162_v60  ;;  %4069 = vadd.xlane.f32.xlu2 %v4068_v44  ;;  %4490 = vmatpush.bf16.msra.mxu2 %v7777_v39 }
 0xdc0   : > { %v9689_v49 = vpop.eup %8034 }
 0xdc1   : > { %v9691_v50 = vpop.eup %8036  ;;  %v4071_v53 = vsel %vm1221_vm2, %v9689_v49, 0.0 }
 0xdc2   : > { %4072 = vadd.xlane.f32.xlu1 %v4071_v53  ;;  %v4167_v7 = vsel %vm1221_vm2, %v9691_v50, 0.0 }
 0xdc3   : > { %4168 = vadd.xlane.f32.xlu2 %v4167_v7 }
 0xe17   : > { %v3972_v33 = vpop.xlane.xlu1 %3971 }
 0xe18   : > { %8038 = vrcp.f32 %v3972_v33  ;;  %v3985_v47 = vand.u32 2147483647, %v3972_v33  ;;  %v3987_v48 = vand.u32 2147483648, %v3972_v33  ;;  %vm3981_vm3 = vweird.f32 %v3972_v33 }
 0xe1a   : > { %vm9704_vm6 = vcmp.eq.f32.partialorder %v3985_v47, 8.507059e+37  ;;  %v3988_v42 = vor.u32 1.1754944e-38, %v3987_v48 }
 0xe1d   : > { %v3876_v58 = vpop.xlane.xlu0 %3875 }
 0xe1e   : > { %v8039_v25 = vpop.eup %8038  ;;  %8040 = vrcp.f32 %v3876_v58  ;;  %v3889_v36 = vand.u32 2147483647, %v3876_v58  ;;  %vm3885_vm8 = vweird.f32 %v3876_v58  ;;  %v3891_v9 = vand.u32 2147483648, %v3876_v58 }
 0xe1f   : > { %v3977_v15 = vmul.f32 %v8039_v25, %v3972_v33  ;;  %vm3982_vm1 = vweird.f32 %v8039_v25 }
 0xe20   : > { %vm9700_vm5 = vmor %vm3981_vm3, %vm3982_vm1  ;;  %vm9719_vm11 = vcmp.eq.f32.partialorder %v3889_v36, 8.507059e+37  ;;  %v3892_v46 = vor.u32 1.1754944e-38, %v3891_v9 }
 0xe21   : > { %v3978_v62 = vsub.f32 1.0, %v3977_v15 }
 0xe23   : > { %v3979_v4 = vmul.f32 %v8039_v25, %v3978_v62 }
 0xe24   : > { %v8041_v0 = vpop.eup %8040 }
 0xe25   : > { %v3881_v52 = vmul.f32 %v8041_v0, %v3876_v58  ;;  %v3975_v3 = vpop.xlane.xlu0 %3974  ;;  %v3980_v21 = vadd.f32 %v8039_v25, %v3979_v4  ;;  %vm3886_vm7 = vweird.f32 %v8041_v0 }
 0xe26   : > { %8042 = vrcp.f32 %v3975_v3  ;;  %v9697_v5 = vpop.xlane.xlu2 %3878  ;;  %v4000_v26 = vand.u32 2147483647, %v3975_v3  ;;  %v4002_v6 = vand.u32 2147483648, %v3975_v3  ;;  %vm9730_vm10 = vmor %vm3885_vm8, %vm3886_vm7 }
 0xe27   : > { %v3882_v2 = vsub.f32 1.0, %v3881_v52  ;;  %8044 = vrcp.f32 %v9697_v5  ;;  %v3984_v22 = vsel %vm9700_vm5, %v8039_v25, %v3980_v21  ;;  %v3906_v28 = vand.u32 2147483648, %v9697_v5  ;;  %v7776_v21 = vld [vmem:[%s10664_s3 + $0x120] sm:$0xff] }
 0xe28   : > { %v3989_v32 = vsel %vm9704_vm6, %v3988_v42, %v3984_v22  ;;  %v3904_v43 = vand.u32 2147483647, %v9697_v5  ;;  %vm3996_vm5 = vweird.f32 %v3975_v3  ;;  %vm3900_vm6 = vweird.f32 %v9697_v5  ;;  %4491 = vmatpush.bf16.msra.mxu2 %v7776_v21  ;;  %v7783_v21 = vld [vmem:[%s10664_s3 + $0x158] sm:$0xff] }
 0xe29   : > { %v3883_v10 = vmul.f32 %v8041_v0, %v3882_v2  ;;  %v3990_v53 = vmul.f32 %v9665_v12, %v3989_v32  ;;  %vm4001_vm8 = vcmp.eq.f32.partialorder %v4000_v26, 8.507059e+37  ;;  %v4003_v7 = vor.u32 1.1754944e-38, %v4002_v6 }
 0xe2a   : > { %v3907_v15 = vor.u32 1.1754944e-38, %v3906_v28 }
 0xe2b   : > { %v3884_v13 = vadd.f32 %v8041_v0, %v3883_v10 }
 0xe2c   : > { %v8043_v14 = vpop.eup %8042 }
 0xe2d   : > { %v8045_v57 = vpop.eup %8044  ;;  %v3992_v59 = vmul.f32 %v8043_v14, %v3975_v3  ;;  %v9708_v20 = vpop.xlane.xlu0 %4165  ;;  %vm3997_vm1 = vweird.f32 %v8043_v14  ;;  %v3888_v34 = vsel %vm9730_vm10, %v8041_v0, %v3884_v13  ;;  %v7786_v13 = vld [vmem:[%s10664_s3 + $0x170] sm:$0xff] }
 0xe2e   : > { %v3896_v16 = vmul.f32 %v8045_v57, %v9697_v5  ;;  %8046 = vrcp.f32 %v9708_v20  ;;  %v9717_v27 = vpop.xlane.xlu2 %4069  ;;  %vm3901_vm3 = vweird.f32 %v8045_v57  ;;  %vm3998_vm7 = vmor %vm3996_vm5, %vm3997_vm1  ;;  %v3893_v58 = vsel %vm9719_vm11, %v3892_v46, %v3888_v34 }
 0xe2f   : > { %v3993_v17 = vsub.f32 1.0, %v3992_v59  ;;  %8048 = vrcp.f32 %v9717_v27  ;;  %vm3902_vm10 = vmor %vm3900_vm6, %vm3901_vm3  ;;  %vm3905_vm1 = vcmp.eq.f32.partialorder %v3904_v43, 8.507059e+37  ;;  %v3894_v10 = vmul.f32 %v9669_v19, %v3893_v58 }
 0xe30   : > { %v3897_v31 = vsub.f32 1.0, %v3896_v16  ;;  %v4085_v18 = vand.u32 2147483648, %v9717_v27  ;;  %vm4175_vm11 = vweird.f32 %v9708_v20  ;;  %v4083_v6 = vand.u32 2147483647, %v9717_v27 }
 0xe31   : > { %v3994_v55 = vmul.f32 %v8043_v14, %v3993_v17  ;;  %v4181_v17 = vand.u32 2147483648, %v9708_v20 }
 0xe32   : > { %v3898_v35 = vmul.f32 %v8045_v57, %v3897_v31  ;;  %v4086_v45 = vor.u32 1.1754944e-38, %v4085_v18  ;;  %v7772_v18 = vld [vmem:[%s10664_s3 + $0x100] sm:$0xff] }
 0xe33   : > { %v3995_v60 = vadd.f32 %v8043_v14, %v3994_v55 }
 0xe34   : > { %v9742_v44 = vpop.eup %8046  ;;  %v3899_v33 = vadd.f32 %v8045_v57, %v3898_v35  ;;  %v7785_v35 = vld [vmem:[%s10664_s3 + $0x168] sm:$0xff] }
 0xe35   : > { %v3999_v25 = vsel %vm3998_vm7, %v8043_v14, %v3995_v60  ;;  %v4171_v62 = vmul.f32 %v9742_v44, %v9708_v20  ;;  %v9750_v0 = vpop.xlane.xlu1 %4072  ;;  %v9752_v52 = vpop.eup %8048  ;;  %vm4176_vm5 = vweird.f32 %v9742_v44  ;;  %vm4079_vm7 = vweird.f32 %v9717_v27 }
 0xe36   : > { %v4004_v3 = vsel %vm4001_vm8, %v4003_v7, %v3999_v25  ;;  %v3903_v12 = vsel %vm3902_vm10, %v8045_v57, %v3899_v33  ;;  %v9754_v4 = vpop.xlane.xlu2 %4168  ;;  %8050 = vrcp.f32 %v9750_v0  ;;  %v4075_v48 = vmul.f32 %v9752_v52, %v9717_v27  ;;  %vm9806_vm10 = vmor %vm4175_vm11, %vm4176_vm5 }
 0xe37   : > { %v4005_v5 = vmul.f32 %v9673_v54, %v4004_v3  ;;  %v3908_v2 = vsel %vm3905_vm1, %v3907_v15, %v3903_v12  ;;  %v4172_v47 = vsub.f32 1.0, %v4171_v62  ;;  %8052 = vrcp.f32 %v9754_v4  ;;  %v7803_v54 = vld [vmem:[%s10664_s3 + $0x1f8] sm:$0xff] }
 0xe38   : > { %v3909_v36 = vmul.f32 %v9675_v37, %v3908_v2  ;;  %v4076_v57 = vsub.f32 1.0, %v4075_v48  ;;  %v4179_v37 = vand.u32 2147483647, %v9708_v20  ;;  %vm4080_vm3 = vweird.f32 %v9752_v52 }
 0xe39   : > { %v4006_v14 = vpack.c.bf16 %v4005_v5, %v3990_v53  ;;  %v4173_v42 = vmul.f32 %v9742_v44, %v4172_v47  ;;  %vm9795_vm8 = vmor %vm4079_vm7, %vm4080_vm3  ;;  %v4196_v28 = vand.u32 2147483648, %v9754_v4  ;;  %v4100_v34 = vand.u32 2147483648, %v9750_v0 }
 0xe3a   : > { %v3910_v23 = vpack.c.bf16 %v3909_v36, %v3894_v10  ;;  %v4077_v59 = vmul.f32 %v9752_v52, %v4076_v57  ;;  %vm9789_vm6 = vcmp.eq.f32.partialorder %v4179_v37, 8.507059e+37  ;;  %v4098_v60 = vand.u32 2147483647, %v9750_v0  ;;  %v7774_v57 = vld [vmem:[%s10664_s3 + $0x110] sm:$0xff]  ;;  %v7799_v37 = vld [vmem:[%s10664_s3 + $0x1d8] sm:$0xff] }
 0xe3b   : > { %6961 = vmatmul.msk.bf16.vlgmr.msrb.gmra.mxu1 %vm1221_vm2, %v4006_v14  ;;  %v4174_v9 = vadd.f32 %v9742_v44, %v4173_v42  ;;  %v4194_v20 = vand.u32 2147483647, %v9754_v4  ;;  %v4182_v7 = vor.u32 1.1754944e-38, %v4181_v17  ;;  %vm4084_vm11 = vcmp.eq.f32.partialorder %v4083_v6, 8.507059e+37  ;;  %v7801_v14 = vld [vmem:[%s10664_s3 + $0x1e8] sm:$0xff]  ;;  %v7800_v42 = vld [vmem:[%s10664_s3 + $0x1e0] sm:$0xff] }
 0xe3c   : > { %v8051_v19 = vpop.eup %8050  ;;  %6960 = vmatmul.msk.bf16.vlgmr.msra.gmra.mxu3 %vm1221_vm2, %v3910_v23  ;;  %4530 = vmatpush.bf16.msrb.mxu1 %v7803_v54  ;;  %v4078_v29 = vadd.f32 %v9752_v52, %v4077_v59  ;;  %vm4094_vm5 = vweird.f32 %v9750_v0  ;;  %vm4190_vm7 = vweird.f32 %v9754_v4  ;;  %v4101_v15 = vor.u32 1.1754944e-38, %v4100_v34  ;;  %v7781_v54 = vld [vmem:[%s10664_s3 + $0x148] sm:$0xff]  ;;  %v7780_v23 = vld [vmem:[%s10664_s3 + $0x140] sm:$0xff] }
 0xe3d   : > { %v4090_v22 = vmul.f32 %v8051_v19, %v9750_v0  ;;  %4502 = vmatpush.bf16.msra.mxu3 %v7787_v40  ;;  %v8053_v16 = vpop.eup %8052  ;;  %vm4095_vm1 = vweird.f32 %v8051_v19  ;;  %v4178_v39 = vsel %vm9806_vm10, %v9742_v44, %v4174_v9  ;;  %v7784_v44 = vld [vmem:[%s10664_s3 + $0x160] sm:$0xff]  ;;  %vm4099_vm15 = vcmp.eq.f32.partialorder %v4098_v60, 8.507059e+37  ;;  %v7794_v40 = vld [vmem:[%s10664_s3 + $0x1b0] sm:$0xff]  ;;  %v7773_v59 = vld [vmem:[%s10664_s3 + $0x108] sm:$0xff] }
 0xe3e   : > { %v4186_v8 = vmul.f32 %v8053_v16, %v9754_v4  ;;  %v4082_v43 = vsel %vm9795_vm8, %v9752_v52, %v4078_v29  ;;  %vm4191_vm3 = vweird.f32 %v8053_v16  ;;  %vm4096_vm8 = vmor %vm4094_vm5, %vm4095_vm1  ;;  %v4183_v62 = vsel %vm9789_vm6, %v4182_v7, %v4178_v39  ;;  %v7797_v29 = vld [vmem:[%s10664_s3 + $0x1c8] sm:$0xff]  ;;  %v7790_v9 = vld [vmem:[%s10664_s3 + $0x190] sm:$0xff] }
 0xe3f   : > { %v4091_v31 = vsub.f32 1.0, %v4090_v22  ;;  %v4087_v58 = vsel %vm4084_vm11, %v4086_v45, %v4082_v43  ;;  %vm4192_vm10 = vmor %vm4190_vm7, %vm4191_vm3  ;;  %v4197_v52 = vor.u32 1.1754944e-38, %v4196_v28  ;;  %vm4195_vm12 = vcmp.eq.f32.partialorder %v4194_v20, 8.507059e+37  ;;  %v7792_v22 = vld [vmem:[%s10664_s3 + $0x1a0] sm:$0xff] }
 0xe40   : > { %v4187_v55 = vsub.f32 1.0, %v4186_v8  ;;  %v4088_v5 = vmul.f32 %v9683_v61, %v4087_v58  ;;  %v4184_v47 = vmul.f32 %v9681_v38, %v4183_v62  ;;  %v7782_v61 = vld [vmem:[%s10664_s3 + $0x150] sm:$0xff]  ;;  %v7796_v17 = vld [vmem:[%s10664_s3 + $0x1c0] sm:$0xff]  ;;  %v7789_v8 = vld [vmem:[%s10664_s3 + $0x188] sm:$0xff] }
 0xe41   : > { %4503 = vmatpush.bf16.msra.mxu3 %v7786_v13  ;;  %v4092_v46 = vmul.f32 %v8051_v19, %v4091_v31  ;;  %v7802_v38 = vld [vmem:[%s10664_s3 + $0x1f0] sm:$0xff]  ;;  %v7788_v6 = vld [vmem:[%s10664_s3 + $0x180] sm:$0xff] }
 0xe42   : > { %v4188_v53 = vmul.f32 %v8053_v16, %v4187_v55  ;;  %4531 = vmatpush.bf16.msrb.mxu1 %v7802_v38  ;;  %v7798_v13 = vld [vmem:[%s10664_s3 + $0x1d0] sm:$0xff] }
 0xe43   : > { %v4093_v33 = vadd.f32 %v8051_v19, %v4092_v46 }
 0xe44   : > { %v4189_v25 = vadd.f32 %v8053_v16, %v4188_v53  ;;  %v7934_v53 = vld [vmem:[%s10675_s26 + $0x1] ss:$0 sm:$0xff]  ;;  %s6135_s26 = sshll.u32 %s771_s28, 4  ;;  %s6136_s26 = int_to_ptr.vmem [resolvable:$true] %s6135_s26 }
 0xe45   : > { %4504 = vmatpush.bf16.msra.mxu3 %v7785_v35  ;;  %v4097_v3 = vsel %vm4096_vm8, %v8051_v19, %v4093_v33  ;;  %v7793_v19 = vld [vmem:[%s10664_s3 + $0x1a8] sm:$0xff] }
 0xe46   : > { %v4193_v12 = vsel %vm4192_vm10, %v8053_v16, %v4189_v25  ;;  %v4102_v0 = vsel %vm4099_vm15, %v4101_v15, %v4097_v3  ;;  %4532 = vmatpush.bf16.msrb.mxu1 %v7801_v14  ;;  %v7791_v16 = vld [vmem:[%s10664_s3 + $0x198] sm:$0xff] }
 0xe47   : > { %v4198_v4 = vsel %vm4195_vm12, %v4197_v52, %v4193_v12  ;;  %v4103_v2 = vmul.f32 %v9689_v49, %v4102_v0  ;;  %v7775_v49 = vld [vmem:[%s10664_s3 + $0x118] sm:$0xff] }
 0xe48   : > { %v4199_v48 = vmul.f32 %v9691_v50, %v4198_v4  ;;  %v7795_v50 = vld [vmem:[%s10664_s3 + $0x1b8] sm:$0xff]  ;;  %4492 = vmatpush.bf16.msra.mxu2 %v7775_v49 }
 0xe49   : > { %4505 = vmatpush.bf16.msra.mxu3 %v7784_v44  ;;  %v4104_v10 = vpack.c.bf16 %v4103_v2, %v4088_v5  ;;  %4516 = vmatpush.bf16.msrb.mxu0 %v7795_v50 }
 0xe4a   : > { %v4200_v36 = vpack.c.bf16 %v4199_v48, %v4184_v47  ;;  %4533 = vmatpush.bf16.msrb.mxu1 %v7800_v42  ;;  %v7810_v42 = vld [vmem:[%s10676_s7 + $0x6c] sm:$0xf0] }
 0xe4c   : > { %6962 = vmatmul.msk.bf16.vlgmr.msrb.gmra.mxu3 %vm1221_vm2, %v4104_v10  ;;  %6963 = vmatmul.msk.bf16.vlgmr.msra.gmra.mxu1 %vm1221_vm2, %v4200_v36 }
 0xe4d   : > { %4506 = vmatpush.bf16.msra.mxu3 %v7783_v21  ;;  %4493 = vmatpush.bf16.msra.mxu2 %v7774_v57 }
 0xe4e   : > { %4517 = vmatpush.bf16.msrb.mxu0 %v7794_v40  ;;  %4534 = vmatpush.bf16.msrb.mxu1 %v7799_v37 }
 0xe51   : > { %4507 = vmatpush.bf16.msra.mxu3 %v7782_v61  ;;  %4494 = vmatpush.bf16.msra.mxu2 %v7773_v59  ;;  %v7808_v59 = vld [vmem:[%s10676_s7 + $0x64] sm:$0xf] }
 0xe52   : > { %4518 = vmatpush.bf16.msrb.mxu0 %v7793_v19  ;;  %4535 = vmatpush.bf16.msrb.mxu1 %v7798_v13  ;;  %v7811_v13 = vld [vmem:[%s10676_s7 + $0x74] sm:$0xf0] }
 0xe55   : > { %4508 = vmatpush.bf16.msra.mxu3 %v7781_v54  ;;  %4495 = vmatpush.bf16.msra.mxu2 %v7772_v18  ;;  %v7188_v18 = vld [vmem:[%s10676_s7 + $0x70] sm:$0xf0] }
 0xe56   : > { %4519 = vmatpush.bf16.msrb.mxu0 %v7792_v22  ;;  %4536 = vmatpush.bf16.msrb.mxu1 %v7797_v29  ;;  %v7194_v22 = vld [vmem:[%s10676_s7 + $0x68] sm:$0xf] }
 0xe57   : > { %v7195_v29 = vor.u32 %v7811_v13, %v7194_v22  ;;  %v7233_v22 = vld [vmem:[%s10561_s12 + $0xa8] sm:$0xf0] }
 0xe59   : > { %4509 = vmatpush.bf16.msra.mxu3 %v7780_v23  ;;  %v7186_v23 = vld [vmem:[%s10676_s7 + $0x60] sm:$0xf] }
 0xe5a   : > { %4520 = vmatpush.bf16.msrb.mxu0 %v7791_v16  ;;  %4537 = vmatpush.bf16.msrb.mxu1 %v7796_v17  ;;  %v7187_v37 = vor.u32 %v7810_v42, %v7186_v23  ;;  %v7191_v16 = vor.u32 %v7808_v59, %v7188_v18  ;;  %v7196_v17 = vld [vmem:[%s10676_s7 + $0x78] sm:$0xf0]  ;;  %v7265_v42 = vld [vmem:[%s10561_s12 + $0xe8] sm:$0xf0]  ;;  %v7231_v59 = vld [vmem:[%s10561_s12 + $0x88] sm:$0xf] }
 0xe5b   : > { %v7813_v18 = vld [vmem:[%s10561_s12 + $0x8c] sm:$0xf] }
 0xe5c   : > { %4674 = vmatpush.bf16.msrb.mxu2 %v7187_v37  ;;  %v7817_v37 = vld [vmem:[%s10561_s12 + $0xa4] sm:$0xf0] }
 0xe5d   : > { %4688 = vmatpush.bf16.msrb.mxu3 %v7191_v16  ;;  %v7232_v16 = vor.u32 %v7817_v37, %v7231_v59 }
 0xe5e   : > { %4521 = vmatpush.bf16.msrb.mxu0 %v7790_v9  ;;  %v7809_v9 = vld [vmem:[%s10676_s7 + $0x6c] sm:$0xf] }
 0xe62   : > { %4522 = vmatpush.bf16.msrb.mxu0 %v7789_v8 }
 0xe66   : > { %4523 = vmatpush.bf16.msrb.mxu0 %v7788_v6  ;;  %v7170_v6 = vld [vmem:[%s10676_s7 + $0x40] sm:$0xf] }
 0xe6a   : > { %4702 = vmatpush.bf16.msra.mxu0 %v7195_v29  ;;  %v7935_v29 = vld [vmem:[%s10642_s10 + $0x1] ss:$0 sm:$0xff] }
 0xeb8   : > { %v4023_v26 = vpop.f32.mrf.mxu1 }
 0xebf   : > { %v3929_v31 = vpop.f32.mrf.mxu3 }
 0xec0   : > { %v4025_v32 = vpop.f32.mrf.mxu1 }
 0xec1   : > { %v4223_v45 = vpack.c.bf16 %v4025_v32, %v4023_v26  ;;  %v7199_v26 = vor.u32 %v7809_v9, %v7196_v17  ;;  %v7804_v32 = vld [vmem:[%s10676_s7 + $0x44] sm:$0xf]  ;;  %v7236_v17 = vor.u32 %v7813_v18, %v7233_v22 }
 0xec3   : > { %4510 = vmatmul.bf16.vlgmr.msra.gmra.mxu3 %v4223_v45  ;;  %4716 = vmatpush.bf16.msra.mxu1 %v7199_v26 }
 0xec7   : > { %v3931_v55 = vpop.f32.mrf.mxu3 }
 0xec8   : > { %v4222_v28 = vpack.c.bf16 %v3931_v55, %v3929_v31  ;;  %v7806_v31 = vld [vmem:[%s10676_s7 + $0x4c] sm:$0xf0]  ;;  %v7172_v55 = vld [vmem:[%s10676_s7 + $0x50] sm:$0xf0] }
 0xec9   : > { %v4217_v34 = vpop.f32.mrf.mxu1  ;;  %v7171_v45 = vor.u32 %v7806_v31, %v7170_v6  ;;  %v7936_v6 = vld [vmem:[%s10643_s9 + $0x1] ss:$0 sm:$0xff] }
 0xeca   : > { %4496 = vmatmul.bf16.vlgmr.msra.gmra.mxu2 %v4222_v28  ;;  %v7178_v28 = vld [vmem:[%s10676_s7 + $0x48] sm:$0xf] }
 0xecb   : > { %4675 = vmatpush.bf16.msrb.mxu2 %v7171_v45 }
 0xecf   : > { %v4123_v35 = vpop.f32.mrf.mxu3 }
 0xed1   : > { %v4219_v27 = vpop.f32.mrf.mxu1 }
 0xed2   : > { %v4225_v43 = vpack.c.bf16 %v4219_v27, %v4217_v34  ;;  %v7807_v34 = vld [vmem:[%s10676_s7 + $0x54] sm:$0xf0] }
 0xed3   : > { %v7179_v27 = vor.u32 %v7807_v34, %v7178_v28  ;;  %v7826_v34 = vld [vmem:[%s10561_s12 + $0xec] sm:$0xf0] }
 0xed4   : > { %4538 = vmatmul.bf16.vlgmr.msrb.gmra.mxu1 %v4225_v43  ;;  %v7805_v43 = vld [vmem:[%s10676_s7 + $0x4c] sm:$0xf] }
 0xed5   : > { %4703 = vmatpush.bf16.msra.mxu0 %v7179_v27 }
 0xed7   : > { %v4125_v46 = vpop.f32.mrf.mxu3 }
 0xed8   : > { %v4224_v60 = vpack.c.bf16 %v4125_v46, %v4123_v35  ;;  %v7175_v35 = vor.u32 %v7804_v32, %v7172_v55  ;;  %v7180_v46 = vld [vmem:[%s10676_s7 + $0x58] sm:$0xf0]  ;;  %s8114_s7 = sshra.s32 %s6138_s0, 4  ;;  %s8115_s7 = int_to_ptr.hbm [resolvable:$true] %s8114_s7 }
 0xed9   : > { %s8116_s4 = scalar_lea.hbm %s8115_s7, 16  ;;  %p8121_p0 = scmp.lt.s32.totalorder %s8115_s7, %s10702_s1 }
 0xeda   : > { %4524 = vmatmul.bf16.vlgmr.msrb.gmra.mxu0 %v4224_v60  ;;  %v7183_v60 = vor.u32 %v7805_v43, %v7180_v46  ;;  %4689 = vmatpush.bf16.msrb.mxu3 %v7175_v35  ;;  %v7822_v35 = vld [vmem:[%s10561_s12 + $0xd4] sm:$0xf]  ;;  %p8117_p11 = scmp.ne.s32.totalorder %s8115_s7, %s8116_s4  ;;  %p8122_p1 = scmp.lt.s32.totalorder %s8120_s8, %s8116_s4 }
 0xedb   : > { %v7273_v43 = vld [vmem:[%s10561_s12 + $0xf0] sm:$0xf0] }
 0xedc   : > { %4717 = vmatpush.bf16.msra.mxu1 %v7183_v60  ;;  %v7276_v46 = vor.u32 %v7822_v35, %v7273_v43  ;;  %v7239_v60 = vld [vmem:[%s10561_s12 + $0x90] sm:$0xf]  ;;  %p8118_p12 = pnand %p8117_p11, %p8331_p5  ;;  %p8123_p2 = por %p8122_p1, %p8121_p0 }
 0xede   : > { %p8119_p13 = pneg %p8118_p12 }
 0xee0   : > { %p8124_p3 = pnand %p8123_p2, %p8119_p13 }
 0xf46   : > { %v4511_v7 = vpop.f32.mrf.mxu3 }
 0xf4d   : > { %v4497_v39 = vpop.f32.mrf.mxu2 }
 0xf4e   : > { %v4498_v20 = vadd.f32 %v7934_v53, %v4497_v39  ;;  %v4513_v12 = vpop.f32.mrf.mxu3 }
 0xf50   : > { %v4512_v58 = vadd.f32 %v4511_v7, %v4498_v20  ;;  %v7824_v20 = vld [vmem:[%s10561_s12 + $0xdc] sm:$0xf0]  ;;  %v7820_v7 = vld [vmem:[%s10561_s12 + $0xc4] sm:$0xf] }
 0xf51   : > { %v4539_v33 = vpop.f32.mrf.mxu1 }
 0xf55   : > { %v4499_v25 = vpop.f32.mrf.mxu2 }
 0xf56   : > { %v4500_v62 = vadd.f32 %v7934_v53, %v4499_v25  ;;  %v7255_v53 = vld [vmem:[%s10561_s12 + $0xc0] sm:$0xf]  ;;  %v7257_v25 = vld [vmem:[%s10561_s12 + $0xe0] sm:$0xf0] }
 0xf57   : > { %v4525_v15 = vpop.f32.mrf.mxu0 }
 0xf58   : > { %v4526_v44 = vadd.f32 %v4525_v15, %v4512_v58  ;;  %v4514_v0 = vadd.f32 %v4513_v12, %v4500_v62  ;;  %v7256_v58 = vor.u32 %v7824_v20, %v7255_v53  ;;  %v7223_v15 = vld [vmem:[%s10561_s12 + $0x80] sm:$0xf]  ;;  %v7260_v62 = vor.u32 %v7820_v7, %v7257_v25  ;;  %v7814_v53 = vld [vmem:[%s10561_s12 + $0x94] sm:$0xf]  ;;  %v7827_v25 = vld [vmem:[%s10561_s12 + $0xf4] sm:$0xf0] }
 0xf59   : > { %v4541_v47 = vpop.f32.mrf.mxu1  ;;  %v7241_v7 = vld [vmem:[%s10561_s12 + $0xb0] sm:$0xf0] }
 0xf5a   : > { %v4540_v52 = vadd.f32 %v4539_v33, %v4526_v44  ;;  %v7816_v44 = vld [vmem:[%s10561_s12 + $0x9c] sm:$0xf0]  ;;  %4850 = vmatpush.bf16.msra.mxu2 %v7256_v58  ;;  %4864 = vmatpush.bf16.msra.mxu3 %v7260_v62  ;;  %v7279_v58 = vld [vmem:[%s10561_s12 + $0xd8] sm:$0xf] }
 0xf5b   : > { %v7819_v62 = vld [vmem:[%s10561_s12 + $0xb4] sm:$0xf0] }
 0xf5c   : > { %v4544_v3 = vadd.f32 %v4540_v52, %v9562_v30  ;;  %v7812_v52 = vld [vmem:[%s10561_s12 + $0x84] sm:$0xf] }
 0xf5e   : > { %v4550_v5 = vsel %vm1009_vm0, %v4544_v3, 0.0 }
 0xf5f   : > { %v4527_v4 = vpop.f32.mrf.mxu0  ;;  %4551 = vadd.xlane.f32.xlu1 %v4550_v5  ;;  %v7224_v5 = vor.u32 %v7816_v44, %v7223_v15  ;;  %v7280_v15 = vor.u32 %v7827_v25, %v7279_v58  ;;  %v7247_v44 = vld [vmem:[%s10561_s12 + $0x98] sm:$0xf] }
 0xf60   : > { %v4528_v2 = vadd.f32 %v4527_v4, %v4514_v0 }
 0xf61   : > { %4851 = vmatpush.bf16.msra.mxu2 %v7224_v5 }
 0xf62   : > { %v4542_v48 = vadd.f32 %v4541_v47, %v4528_v2 }
 0xf64   : > { %v4545_v21 = vadd.f32 %v4542_v48, %v9564_v1 }
 0xf66   : > { %v4553_v10 = vsel %vm1009_vm0, %v4545_v21, 0.0 }
 0xf67   : > { %4554 = vadd.xlane.f32.xlu0 %v4553_v10 }
 0xfd2   : > { %v4552_v36 = vpop.xlane.xlu1 %4551 }
 0xfd3   : > { %v4556_v61 = vmul.f32 %v4552_v36, %v8824_v24 }
 0xfd5   : > { %v9908_v38 = vsub.f32 %v4544_v3, %v4556_v61  ;;  %v7225_v3 = vld [vmem:[%s10561_s12 + $0xa0] sm:$0xf0] }
 0xfd6   : > { %v7228_v2 = vor.u32 %v7812_v52, %v7225_v3  ;;  %v7248_v52 = vor.u32 %v7819_v62, %v7247_v44  ;;  %v7823_v3 = vld [vmem:[%s10561_s12 + $0xdc] sm:$0xf] }
 0xfd7   : > { %v4560_v30 = vmul.f32 %v9908_v38, %v9908_v38 }
 0xfd8   : > { %4865 = vmatpush.bf16.msra.mxu3 %v7228_v2  ;;  %v7815_v2 = vld [vmem:[%s10561_s12 + $0x9c] sm:$0xf] }
 0xfd9   : > { %v4562_v49 = vsel %vm1009_vm0, %v4560_v30, 0.0 }
 0xfda   : > { %v4555_v50 = vpop.xlane.xlu0 %4554  ;;  %4563 = vadd.xlane.f32.xlu2 %v4562_v49 }
 0xfdb   : > { %v4557_v54 = vmul.f32 %v4555_v50, %v8824_v24  ;;  %v7263_v50 = vld [vmem:[%s10561_s12 + $0xc8] sm:$0xf] }
 0xfdd   : > { %v9914_v14 = vsub.f32 %v4545_v21, %v4557_v54  ;;  %v7825_v54 = vld [vmem:[%s10561_s12 + $0xe4] sm:$0xf0] }
 0xfde   : > { %v7264_v23 = vor.u32 %v7825_v54, %v7263_v50 }
 0xfdf   : > { %v4561_v1 = vmul.f32 %v9914_v14, %v9914_v14 }
 0xfe0   : > { %4878 = vmatpush.bf16.msrb.mxu0 %v7264_v23 }
 0xfe1   : > { %v4565_v57 = vsel %vm1009_vm0, %v4561_v1, 0.0  ;;  %v7821_v1 = vld [vmem:[%s10561_s12 + $0xcc] sm:$0xf] }
 0xfe2   : > { %4566 = vadd.xlane.f32.xlu1 %v4565_v57 }
 0xfe4   : > { %4879 = vmatpush.bf16.msrb.mxu0 %v7232_v16 }
0x104d   : > { %v4564_v40 = vpop.xlane.xlu2 %4563 }
0x104e   : > { %v4568_v19 = vmul.f32 %v4564_v40, %v8824_v24 }
0x1050   : > { %v4570_v8 = vadd.f32 1e-05, %v4568_v19  ;;  %v7268_v19 = vor.u32 %v7821_v1, %v7265_v42  ;;  %v10116_v1 = vld [vmem:[%s10562_s13 + $0x8] sm:$0xff] }
0x1051   : > { %v4749_v59 = vperm.slane %v10116_v1, 1 }
0x1052   : > { %8054 = vrsqrt.f32 %v4570_v8  ;;  %vm4578_vm12 = vweird.f32 %v4570_v8  ;;  %4892 = vmatpush.bf16.msrb.mxu1 %v7268_v19 }
0x1055   : > { %v4567_v39 = vpop.xlane.xlu1 %4566 }
0x1056   : > { %v4569_v33 = vmul.f32 %v4567_v39, %v8824_v24  ;;  %4893 = vmatpush.bf16.msrb.mxu1 %v7236_v17  ;;  %v7818_v39 = vld [vmem:[%s10561_s12 + $0xac] sm:$0xf0] }
0x1057   : > { %v7240_v20 = vor.u32 %v7818_v39, %v7239_v60 }
0x1058   : > { %v8055_v12 = vpop.eup %8054  ;;  %v4571_v0 = vadd.f32 1e-05, %v4569_v33  ;;  %v7244_v33 = vor.u32 %v7814_v53, %v7241_v7 }
0x1059   : > { %v4573_v4 = vmul.f32 %v8055_v12, %v4570_v8  ;;  %vm4579_vm2 = vweird.f32 %v8055_v12 }
0x105a   : > { %8056 = vrsqrt.f32 %v4571_v0  ;;  %vm9993_vm15 = vmor %vm4578_vm12, %vm4579_vm2  ;;  %vm4588_vm1 = vweird.f32 %v4571_v0 }
0x105b   : > { %v4574_v47 = vmul.f32 %v8055_v12, %v4573_v4 }
0x105d   : > { %v4575_v48 = vmul.f32 0.5, %v4574_v47  ;;  %v7249_v47 = vld [vmem:[%s10561_s12 + $0xb8] sm:$0xf0] }
0x105f   : > { %v4576_v21 = vsub.f32 1.5, %v4575_v48  ;;  %v7252_v48 = vor.u32 %v7815_v2, %v7249_v47 }
0x1060   : > { %v8057_v10 = vpop.eup %8056 }
0x1061   : > { %v4577_v36 = vmul.f32 %v8055_v12, %v4576_v21  ;;  %v4583_v61 = vmul.f32 %v8057_v10, %v4571_v0  ;;  %vm4589_vm6 = vweird.f32 %v8057_v10 }
0x1062   : > { %vm4590_vm3 = vmor %vm4588_vm1, %vm4589_vm6 }
0x1063   : > { %v4584_v49 = vmul.f32 %v8057_v10, %v4583_v61  ;;  %v4581_v57 = vsel %vm9993_vm15, %v8055_v12, %v4577_v36  ;;  %v7281_v12 = vld [vmem:[%s10561_s12 + $0xf8] sm:$0xf0] }
0x1064   : > { %v4592_v9 = vmul.f32 %v4581_v57, %v9908_v38  ;;  %v7284_v0 = vor.u32 %v7823_v3, %v7281_v12  ;;  %v4750_v57 = vperm.slane %v10116_v1, 2 }
0x1065   : > { %v4585_v40 = vmul.f32 0.5, %v4584_v49 }
0x1066   : > { %v4597_v31 = vmul.f32 %v7935_v29, %v4592_v9 }
0x1067   : > { %v4586_v13 = vsub.f32 1.5, %v4585_v40  ;;  %v4751_v40 = vperm.slane %v10116_v1, 3 }
0x1068   : > { %v10031_v55 = vadd.f32 %v7936_v6, %v4597_v31 }
0x1069   : > { %v4587_v8 = vmul.f32 %v8057_v10, %v4586_v13 }
0x106b   : > { %v4591_v26 = vsel %vm4590_vm3, %v8057_v10, %v4587_v8 }
0x106c   : > { %v4593_v32 = vmul.f32 %v4591_v26, %v9914_v14  ;;  %v7271_v14 = vld [vmem:[%s10561_s12 + $0xd0] sm:$0xf] }
0x106d   : > { %v7272_v27 = vor.u32 %v7826_v34, %v7271_v14 }
0x106e   : > { %v4598_v45 = vmul.f32 %v7935_v29, %v4593_v32  ;;  %v7167_v29 = vld [vmem:[%s10645_s11 + $0x4] sm:$0xf] }
0x106f   : > { %v4617_v8 = vperm.slane %v7167_v29, 0  ;;  %v4618_v31 = vperm.slane %v7167_v29, 1 }
0x1070   : > { %v10033_v28 = vadd.f32 %v7936_v6, %v4598_v45 }
0x1072   : > { %v4604_v38 = vpack.c.bf16 %v10033_v28, %v10031_v55 }
0x1074   : > { %7200 = vmatmul.msk.bf16.vlgmr.msrb.gmra.mxu2 %vm1009_vm0, %v4604_v38  ;;  %7201 = vmatmul.msk.bf16.vlgmr.msrb.gmra.mxu3 %vm1009_vm0, %v4604_v38 }
0x1075   : > { %7202 = vmatmul.msk.bf16.vlgmr.msra.gmra.mxu0 %vm1009_vm0, %v4604_v38  ;;  %7203 = vmatmul.msk.bf16.vlgmr.msra.gmra.mxu1 %vm1009_vm0, %v4604_v38 }
0x1076   : > { %4906 = vmatpush.bf16.msrb.mxu2 %v7272_v27  ;;  %4920 = vmatpush.bf16.msrb.mxu3 %v7276_v46 }
0x1077   : > { %4934 = vmatpush.bf16.msra.mxu0 %v7280_v15  ;;  %4948 = vmatpush.bf16.msra.mxu1 %v7284_v0 }
0x107a   : > { %4907 = vmatpush.bf16.msrb.mxu2 %v7240_v20  ;;  %4921 = vmatpush.bf16.msrb.mxu3 %v7244_v33 }
0x107b   : > { %4935 = vmatpush.bf16.msra.mxu0 %v7248_v52  ;;  %4949 = vmatpush.bf16.msra.mxu1 %v7252_v48 }
0x1084   : > { %7285 = vmatmul.msk.bf16.vlgmr.msra.gmra.mxu2 %vm1009_vm0, %v8964_v11  ;;  %7286 = vmatmul.msk.bf16.vlgmr.msra.gmra.mxu3 %vm1009_vm0, %v8964_v11 }
0x1085   : > { %7287 = vmatmul.msk.bf16.vlgmr.msrb.gmra.mxu0 %vm1009_vm0, %v8964_v11  ;;  %7288 = vmatmul.msk.bf16.vlgmr.msrb.gmra.mxu1 %vm1009_vm0, %v8964_v11 }
0x1094   : > { %7289 = vmatmul.msk.bf16.vlgmr.msrb.gmra.mxu2 %vm1009_vm0, %v8964_v11  ;;  %7290 = vmatmul.msk.bf16.vlgmr.msrb.gmra.mxu3 %vm1009_vm0, %v8964_v11 }
0x1095   : > { %7291 = vmatmul.msk.bf16.vlgmr.msra.gmra.mxu0 %vm1009_vm0, %v8964_v11  ;;  %7292 = vmatmul.msk.bf16.vlgmr.msra.gmra.mxu1 %vm1009_vm0, %v8964_v11  ;;  %v4748_v11 = vperm.slane %v10116_v1, 0 }
0x10f2   : > { %v10095_v5 = vpop.f32.mrf.mxu0  ;;  %v10097_v4 = vpop.f32.mrf.mxu1 }
0x10f7   : > { %v4677_v21 = vpop.f32.mrf.mxu2  ;;  %v4691_v10 = vpop.f32.mrf.mxu3 }
0x10f8   : > { %v4678_v20 = vadd.f32 %v4677_v21, %v4617_v8  ;;  %v4692_v7 = vadd.f32 %v4691_v10, %v4618_v31 }
0x10fa   : > { %v10109_v36 = vpop.f32.mrf.mxu0  ;;  %v10111_v61 = vpop.f32.mrf.mxu1  ;;  %v4724_v0 = vpack.c.bf16 %v4692_v7, %v4678_v20 }
0x10fc   : > { %v4966_v48 = vunpack.c.l.b16 %v4724_v0 }
0x10ff   : > { %v4679_v30 = vpop.f32.mrf.mxu2  ;;  %v4693_v49 = vpop.f32.mrf.mxu3 }
0x1100   : > { %v4680_v32 = vadd.f32 %v4679_v30, %v4617_v8  ;;  %v4694_v14 = vadd.f32 %v4693_v49, %v4618_v31  ;;  %v5066_v30 = vunpack.c.h.b16 %v4724_v0  ;;  %v4619_v49 = vperm.slane %v7167_v29, 2 }
0x1101   : > { %v4755_v8 = vperm.slane %v10116_v1, 7 }
0x1102   : > { %v4881_v50 = vpop.f32.mrf.mxu0  ;;  %v4895_v54 = vpop.f32.mrf.mxu1  ;;  %v4726_v44 = vpack.c.bf16 %v4694_v14, %v4680_v32 }
0x1103   : > { %v4882_v19 = vadd.f32 %v4881_v50, %v4750_v57  ;;  %v4896_v37 = vadd.f32 %v4895_v54, %v4751_v40  ;;  %v4620_v50 = vperm.slane %v7167_v29, 3  ;;  %v4708_v54 = vadd.f32 %v10109_v36, %v4619_v49 }
0x1104   : > { %v4967_v2 = vunpack.c.l.b16 %v4726_v44  ;;  %v5067_v47 = vunpack.c.h.b16 %v4726_v44  ;;  %v4753_v36 = vperm.slane %v10116_v1, 5 }
0x1105   : > { %v4957_v26 = vpack.c.bf16 %v4896_v37, %v4882_v19 }
0x1106   : > { %v4968_v21 = vpack.c.b16 %v4967_v2, %v4966_v48  ;;  %v5068_v10 = vpack.c.b16 %v5067_v47, %v5066_v30 }
0x1107   : > { %v4853_v23 = vpop.f32.mrf.mxu2  ;;  %v4867_v42 = vpop.f32.mrf.mxu3  ;;  %v5170_v43 = vunpack.c.l.b16 %v4957_v26  ;;  %v5268_v46 = vunpack.c.h.b16 %v4957_v26 }
0x1108   : > { %v4854_v9 = vadd.f32 %v4853_v23, %v4748_v11  ;;  %v4868_v17 = vadd.f32 %v4867_v42, %v4749_v59  ;;  %v4720_v23 = vadd.f32 %v10097_v4, %v4620_v50  ;;  %v4754_v4 = vperm.slane %v10116_v1, 6 }
0x110a   : > { %v4883_v18 = vpop.f32.mrf.mxu0  ;;  %v4897_v22 = vpop.f32.mrf.mxu1  ;;  %v4956_v34 = vpack.c.bf16 %v4868_v17, %v4854_v9 }
0x110b   : > { %v4884_v13 = vadd.f32 %v4883_v18, %v4750_v57  ;;  %v4898_v16 = vadd.f32 %v4897_v22, %v4751_v40  ;;  %v4722_v57 = vadd.f32 %v10111_v61, %v4620_v50  ;;  %v4706_v40 = vadd.f32 %v10095_v5, %v4619_v49 }
0x110c   : > { %v4972_v33 = vunpack.c.l.b16 %v4956_v34  ;;  %v5070_v58 = vunpack.c.h.b16 %v4956_v34 }
0x110d   : > { %v4961_v6 = vpack.c.bf16 %v4898_v16, %v4884_v13  ;;  %v4727_v42 = vpack.c.bf16 %v4722_v57, %v4708_v54  ;;  %v4752_v16 = vperm.slane %v10116_v1, 4 }
0x110f   : > { %v4855_v45 = vpop.f32.mrf.mxu2  ;;  %v4869_v38 = vpop.f32.mrf.mxu3  ;;  %v5171_v60 = vunpack.c.l.b16 %v4961_v6  ;;  %v5269_v39 = vunpack.c.h.b16 %v4961_v6  ;;  %v5265_v19 = vunpack.c.h.b16 %v4727_v42 }
0x1110   : > { %v4856_v35 = vadd.f32 %v4855_v45, %v4748_v11  ;;  %v4870_v27 = vadd.f32 %v4869_v38, %v4749_v59  ;;  %v4725_v11 = vpack.c.bf16 %v4720_v23, %v4706_v40  ;;  %v5165_v59 = vunpack.c.l.b16 %v4727_v42 }
0x1111   : > { %v5172_v62 = vpack.c.b16 %v5171_v60, %v5170_v43  ;;  %v5270_v52 = vpack.c.b16 %v5269_v39, %v5268_v46 }
0x1112   : > { %v4960_v53 = vpack.c.bf16 %v4870_v27, %v4856_v35  ;;  %v5164_v37 = vunpack.c.l.b16 %v4725_v11  ;;  %v5264_v18 = vunpack.c.h.b16 %v4725_v11  ;;  %v4937_v9 = vpop.f32.mrf.mxu0  ;;  %v4951_v31 = vpop.f32.mrf.mxu1 }
0x1113   : > { %v4938_v14 = vadd.f32 %v4937_v9, %v4754_v4  ;;  %v4952_v34 = vadd.f32 %v4951_v31, %v4755_v8 }
0x1114   : > { %v4973_v25 = vunpack.c.l.b16 %v4960_v53  ;;  %v5071_v15 = vunpack.c.h.b16 %v4960_v53  ;;  %v5166_v22 = vpack.c.b16 %v5165_v59, %v5164_v37  ;;  %v5266_v13 = vpack.c.b16 %v5265_v19, %v5264_v18 }
0x1115   : > { %v4959_v20 = vpack.c.bf16 %v4952_v34, %v4938_v14 }
0x1116   : > { %v4974_v3 = vpack.c.b16 %v4973_v25, %v4972_v33  ;;  %v5072_v12 = vpack.c.b16 %v5071_v15, %v5070_v58 }
0x1117   : > { %v4909_v29 = vpop.f32.mrf.mxu2  ;;  %v4923_v61 = vpop.f32.mrf.mxu3  ;;  %v5241_v44 = vunpack.c.l.b16 %v4959_v20 }
0x1118   : > { %4983 = vmatpush.bf16.xpose.msra.mxu2 %v4974_v3  ;;  %5081 = vmatpush.bf16.xpose.msrb.mxu0 %v5072_v12  ;;  %v4910_v5 = vadd.f32 %v4909_v29, %v4752_v16  ;;  %v4924_v17 = vadd.f32 %v4923_v61, %v4753_v36 }
0x111a   : > { %v4958_v26 = vpack.c.bf16 %v4924_v17, %v4910_v5  ;;  %v4939_v46 = vpop.f32.mrf.mxu0  ;;  %v4953_v7 = vpop.f32.mrf.mxu1 }
0x111b   : > { %v4940_v53 = vadd.f32 %v4939_v46, %v4754_v4  ;;  %v4954_v1 = vadd.f32 %v4953_v7, %v4755_v8 }
0x111c   : > { %v5043_v35 = vunpack.c.l.b16 %v4958_v26  ;;  %v5139_v27 = vunpack.c.h.b16 %v4958_v26 }
0x111f   : > { %4984 = vmatmul.bf16.vlgmr.msra.gmra.mxu2 %v4968_v21  ;;  %5082 = vmatmul.bf16.vlgmr.msrb.gmra.mxu0 %v5068_v10  ;;  %v4911_v6 = vpop.f32.mrf.mxu2  ;;  %v4925_v45 = vpop.f32.mrf.mxu3 }
0x1120   : > { %5181 = vmatpush.bf16.xpose.msrb.mxu2 %v5172_v62  ;;  %5279 = vmatpush.bf16.xpose.msra.mxu0 %v5270_v52  ;;  %v4912_v32 = vadd.f32 %v4911_v6, %v4752_v16  ;;  %v4926_v38 = vadd.f32 %v4925_v45, %v4753_v36  ;;  %v5337_v62 = vunpack.c.h.b16 %v4959_v20  ;;  %v4963_v52 = vpack.c.bf16 %v4954_v1, %v4940_v53 }
0x1122   : > { %v4962_v43 = vpack.c.bf16 %v4926_v38, %v4912_v32  ;;  %v5242_v3 = vunpack.c.l.b16 %v4963_v52  ;;  %v5338_v12 = vunpack.c.h.b16 %v4963_v52 }
0x1124   : > { %v5044_v60 = vunpack.c.l.b16 %v4962_v43  ;;  %v5140_v39 = vunpack.c.h.b16 %v4962_v43  ;;  %v5243_v0 = vpack.c.b16 %v5242_v3, %v5241_v44  ;;  %v5339_v2 = vpack.c.b16 %v5338_v12, %v5337_v62 }
0x1126   : > { %v5045_v33 = vpack.c.b16 %v5044_v60, %v5043_v35  ;;  %v5141_v58 = vpack.c.b16 %v5140_v39, %v5139_v27  ;;  %v5248_v47 = vsel %vm2412_vm9, %v5243_v0, 0  ;;  %v5344_v48 = vsel %vm2412_vm9, %v5339_v2, 0 }
0x1128   : > { %v5050_v25 = vsel %vm2412_vm9, %v5045_v33, 0  ;;  %v5146_v15 = vsel %vm2412_vm9, %v5141_v58, 0 }
0x1129   : > { %5059 = vmatpush.bf16.msra.mxu3 %v5050_v25  ;;  %5155 = vmatpush.bf16.msrb.mxu1 %v5146_v15 }
0x112d   : > { %5257 = vmatpush.bf16.msrb.mxu3 %v5248_v47  ;;  %5353 = vmatpush.bf16.msra.mxu1 %v5344_v48 }
0x112f   : > { %5182 = vmatmul.bf16.vlgmr.msrb.gmra.mxu2 %v5166_v22  ;;  %5280 = vmatmul.bf16.vlgmr.msra.gmra.mxu0 %v5266_v13 }
0x119c   : > { %v5083_v30 = vpop.f32.mrf.mxu0 }
0x119d   : > { %v5088_v21 = vsel %vm9075_vm14, %v5083_v30, -10000.0 }
0x119e   : > { %v5090_v10 = vsel %vm2354_vm13, %v5088_v21, -inf }
0x119f   : > { %5091 = vmax.xlane.f32.xlu1 %v5090_v10 }
0x11a2   : > { %v4985_v49 = vpop.f32.mrf.mxu2 }
0x11a3   : > { %v4990_v50 = vsel %vm9075_vm14, %v4985_v49, -10000.0 }
0x11a4   : > { %v5085_v54 = vpop.f32.mrf.mxu0  ;;  %v4992_v57 = vsel %vm2354_vm13, %v4990_v50, -inf }
0x11a5   : > { %4993 = vmax.xlane.f32.xlu0 %v4992_v57  ;;  %v5089_v40 = vsel %vm9085_vm4, %v5085_v54, -10000.0 }
0x11a6   : > { %v5093_v59 = vsel %vm2354_vm13, %v5089_v40, -inf }
0x11aa   : > { %v4987_v23 = vpop.f32.mrf.mxu2 }
0x11ab   : > { %v4991_v42 = vsel %vm9085_vm4, %v4987_v23, -10000.0 }
0x11ac   : > { %v5281_v11 = vpop.f32.mrf.mxu0  ;;  %v4995_v19 = vsel %vm2354_vm13, %v4991_v42, -inf }
0x11ad   : > { %5094 = vmax.xlane.f32.xlu0 %v5093_v59  ;;  %4996 = vmax.xlane.f32.xlu2 %v4995_v19  ;;  %v5286_v37 = vsel %vm9075_vm14, %v5281_v11, -10000.0 }
0x11ae   : > { %v5288_v13 = vsel %vm2354_vm13, %v5286_v37, -inf }
0x11b2   : > { %v5183_v18 = vpop.f32.mrf.mxu2 }
0x11b3   : > { %v5188_v22 = vsel %vm9075_vm14, %v5183_v18, -10000.0 }
0x11b4   : > { %v5190_v16 = vsel %vm2354_vm13, %v5188_v22, -inf  ;;  %v5283_v29 = vpop.f32.mrf.mxu0 }
0x11b5   : > { %5289 = vmax.xlane.f32.xlu0 %v5288_v13  ;;  %5191 = vmax.xlane.f32.xlu2 %v5190_v16  ;;  %v5287_v36 = vsel %vm9085_vm4, %v5283_v29, -10000.0 }
0x11b6   : > { %v5291_v17 = vsel %vm2354_vm13, %v5287_v36, -inf }
0x11ba   : > { %v5185_v61 = vpop.f32.mrf.mxu2 }
0x11bb   : > { %v5189_v9 = vsel %vm9085_vm4, %v5185_v61, -10000.0 }
0x11bc   : > { %v5193_v5 = vsel %vm2354_vm13, %v5189_v9, -inf }
0x11bd   : > { %5194 = vmax.xlane.f32.xlu1 %v5193_v5  ;;  %5292 = vmax.xlane.f32.xlu2 %v5291_v17 }
0x1212   : > { %v5092_v41 = vpop.xlane.xlu1 %5091 }
0x1213   : > { %v5096_v4 = vsub.f32 %v5088_v21, %v5092_v41 }
0x1215   : > { %v5098_v8 = vmul.f32 1.442695, %v5096_v4 }
0x1217   : > { %8058 = vpow2.f32 %v5098_v8 }
0x1218   : > { %v4994_v26 = vpop.xlane.xlu0 %4993 }
0x1219   : > { %v4998_v6 = vsub.f32 %v4990_v50, %v4994_v26 }
0x121b   : > { %v5000_v31 = vmul.f32 1.442695, %v4998_v6  ;;  %v7835_v6 = vld [vmem:[%s10563_s14 + $0x138] sm:$0xff] }
0x121c   : > { %5626 = vmatpush.bf16.msra.mxu2 %v7835_v6 }
0x121d   : > { %v10161_v32 = vpop.eup %8058  ;;  %8060 = vpow2.f32 %v5000_v31 }
0x121e   : > { %v5102_v63 = vsel %vm2354_vm13, %v10161_v32, 0.0 }
0x121f   : > { %5103 = vadd.xlane.f32.xlu2 %v5102_v63 }
0x1220   : > { %v5095_v45 = vpop.xlane.xlu0 %5094  ;;  %v4997_v38 = vpop.xlane.xlu2 %4996 }
0x1221   : > { %v5097_v14 = vsub.f32 %v5089_v40, %v5095_v45  ;;  %v4999_v34 = vsub.f32 %v4991_v42, %v4997_v38 }
0x1223   : > { %v10165_v35 = vpop.eup %8060  ;;  %v5100_v27 = vmul.f32 1.442695, %v5097_v14  ;;  %v5002_v43 = vmul.f32 1.442695, %v4999_v34 }
0x1224   : > { %v5004_v46 = vsel %vm2354_vm13, %v10165_v35, 0.0 }
0x1225   : > { %8062 = vpow2.f32 %v5100_v27  ;;  %5005 = vadd.xlane.f32.xlu1 %v5004_v46 }
0x1226   : > { %8064 = vpow2.f32 %v5002_v43  ;;  %v7834_v43 = vld [vmem:[%s10563_s14 + $0x130] sm:$0xff] }
0x1227   : > { %5627 = vmatpush.bf16.msra.mxu2 %v7834_v43 }
0x1228   : > { %v5290_v60 = vpop.xlane.xlu0 %5289  ;;  %v5192_v39 = vpop.xlane.xlu2 %5191 }
0x1229   : > { %v5294_v53 = vsub.f32 %v5286_v37, %v5290_v60  ;;  %v5196_v20 = vsub.f32 %v5188_v22, %v5192_v39 }
0x122b   : > { %v10169_v7 = vpop.eup %8062  ;;  %v5296_v33 = vmul.f32 1.442695, %v5294_v53  ;;  %v5198_v58 = vmul.f32 1.442695, %v5196_v20 }
0x122c   : > { %v10171_v1 = vpop.eup %8064  ;;  %v5105_v25 = vsel %vm2354_vm13, %v10169_v7, 0.0 }
0x122d   : > { %8066 = vpow2.f32 %v5296_v33  ;;  %5106 = vadd.xlane.f32.xlu1 %v5105_v25  ;;  %v5007_v15 = vsel %vm2354_vm13, %v10171_v1, 0.0 }
0x122e   : > { %8068 = vpow2.f32 %v5198_v58  ;;  %5008 = vadd.xlane.f32.xlu0 %v5007_v15 }
0x1230   : > { %v5195_v44 = vpop.xlane.xlu1 %5194  ;;  %v5293_v62 = vpop.xlane.xlu2 %5292 }
0x1231   : > { %v5197_v52 = vsub.f32 %v5189_v9, %v5195_v44  ;;  %v5295_v3 = vsub.f32 %v5287_v36, %v5293_v62 }
0x1233   : > { %v10177_v12 = vpop.eup %8066  ;;  %v5200_v0 = vmul.f32 1.442695, %v5197_v52  ;;  %v5298_v2 = vmul.f32 1.442695, %v5295_v3  ;;  %v7833_v3 = vld [vmem:[%s10563_s14 + $0x128] sm:$0xff] }
0x1234   : > { %v10179_v47 = vpop.eup %8068  ;;  %v5300_v48 = vsel %vm2354_vm13, %v10177_v12, 0.0  ;;  %5628 = vmatpush.bf16.msra.mxu2 %v7833_v3 }
0x1235   : > { %8070 = vpow2.f32 %v5200_v0  ;;  %5301 = vadd.xlane.f32.xlu1 %v5300_v48  ;;  %v5202_v30 = vsel %vm2354_vm13, %v10179_v47, 0.0 }
0x1236   : > { %8072 = vpow2.f32 %v5298_v2  ;;  %5203 = vadd.xlane.f32.xlu0 %v5202_v30 }
0x123b   : > { %v10185_v21 = vpop.eup %8070 }
0x123c   : > { %v10187_v10 = vpop.eup %8072  ;;  %v5205_v49 = vsel %vm2354_vm13, %v10185_v21, 0.0 }
0x123d   : > { %5206 = vadd.xlane.f32.xlu2 %v5205_v49  ;;  %v5303_v50 = vsel %vm2354_vm13, %v10187_v10, 0.0 }
0x123e   : > { %5304 = vadd.xlane.f32.xlu0 %v5303_v50 }
0x1292   : > { %v5104_v54 = vpop.xlane.xlu2 %5103 }
0x1293   : > { %8074 = vrcp.f32 %v5104_v54  ;;  %v5117_v13 = vand.u32 2147483647, %v5104_v54  ;;  %v5119_v16 = vand.u32 2147483648, %v5104_v54  ;;  %vm5113_vm14 = vweird.f32 %v5104_v54 }
0x1295   : > { %vm10200_vm11 = vcmp.eq.f32.partialorder %v5117_v13, 8.507059e+37  ;;  %v5120_v4 = vor.u32 1.1754944e-38, %v5119_v16 }
0x1298   : > { %v5006_v57 = vpop.xlane.xlu1 %5005 }
0x1299   : > { %v8075_v40 = vpop.eup %8074  ;;  %8076 = vrcp.f32 %v5006_v57  ;;  %v5019_v61 = vand.u32 2147483647, %v5006_v57  ;;  %vm5015_vm7 = vweird.f32 %v5006_v57  ;;  %v5021_v34 = vand.u32 2147483648, %v5006_v57 }
0x129a   : > { %v5109_v23 = vmul.f32 %v8075_v40, %v5104_v54  ;;  %vm5114_vm9 = vweird.f32 %v8075_v40 }
0x129b   : > { %vm10196_vm4 = vmor %vm5113_vm14, %vm5114_vm9  ;;  %vm10215_vm8 = vcmp.eq.f32.partialorder %v5019_v61, 8.507059e+37  ;;  %v5022_v62 = vor.u32 1.1754944e-38, %v5021_v34  ;;  %v7843_v61 = vld [vmem:[%s10563_s14 + $0x178] sm:$0xff] }
0x129c   : > { %v5110_v42 = vsub.f32 1.0, %v5109_v23 }
0x129e   : > { %v5111_v37 = vmul.f32 %v8075_v40, %v5110_v42 }
0x129f   : > { %v8077_v11 = vpop.eup %8076 }
0x12a0   : > { %v5011_v59 = vmul.f32 %v8077_v11, %v5006_v57  ;;  %v5107_v19 = vpop.xlane.xlu1 %5106  ;;  %v5112_v29 = vadd.f32 %v8075_v40, %v5111_v37  ;;  %vm5016_vm5 = vweird.f32 %v8077_v11 }
0x12a1   : > { %8078 = vrcp.f32 %v5107_v19  ;;  %v10193_v18 = vpop.xlane.xlu0 %5008  ;;  %v5132_v46 = vand.u32 2147483647, %v5107_v19  ;;  %v5134_v60 = vand.u32 2147483648, %v5107_v19  ;;  %vm10226_vm10 = vmor %vm5015_vm7, %vm5016_vm5  ;;  %vm5128_vm15 = vweird.f32 %v5107_v19 }
0x12a2   : > { %v5012_v22 = vsub.f32 1.0, %v5011_v59  ;;  %8080 = vrcp.f32 %v10193_v18  ;;  %v5116_v31 = vsel %vm10196_vm4, %v8075_v40, %v5112_v29  ;;  %v5036_v58 = vand.u32 2147483648, %v10193_v18 }
0x12a3   : > { %v5121_v53 = vsel %vm10200_vm11, %v5120_v4, %v5116_v31  ;;  %v5034_v44 = vand.u32 2147483647, %v10193_v18  ;;  %vm5030_vm6 = vweird.f32 %v10193_v18  ;;  %vm5133_vm3 = vcmp.eq.f32.partialorder %v5132_v46, 8.507059e+37 }
0x12a4   : > { %v5013_v36 = vmul.f32 %v8077_v11, %v5012_v22  ;;  %v5122_v2 = vmul.f32 %v10161_v32, %v5121_v53  ;;  %v5135_v48 = vor.u32 1.1754944e-38, %v5134_v60  ;;  %v5037_v54 = vor.u32 1.1754944e-38, %v5036_v58  ;;  %v7832_v22 = vld [vmem:[%s10563_s14 + $0x120] sm:$0xff] }
0x12a5   : > { %vm5035_vm14 = vcmp.eq.f32.partialorder %v5034_v44, 8.507059e+37  ;;  %5629 = vmatpush.bf16.msra.mxu2 %v7832_v22  ;;  %v7837_v22 = vld [vmem:[%s10563_s14 + $0x148] sm:$0xff] }
0x12a6   : > { %v5014_v63 = vadd.f32 %v8077_v11, %v5013_v36 }
0x12a7   : > { %v8079_v9 = vpop.eup %8078 }
0x12a8   : > { %v8081_v5 = vpop.eup %8080  ;;  %v5124_v8 = vmul.f32 %v8079_v9, %v5107_v19  ;;  %v10204_v26 = vpop.xlane.xlu1 %5301  ;;  %vm5129_vm2 = vweird.f32 %v8079_v9  ;;  %v5018_v25 = vsel %vm10226_vm10, %v8077_v11, %v5014_v63 }
0x12a9   : > { %v5026_v45 = vmul.f32 %v8081_v5, %v10193_v18  ;;  %8082 = vrcp.f32 %v10204_v26  ;;  %v10213_v38 = vpop.xlane.xlu0 %5203  ;;  %vm5031_vm12 = vweird.f32 %v8081_v5  ;;  %vm5130_vm1 = vmor %vm5128_vm15, %vm5129_vm2  ;;  %v5023_v49 = vsel %vm10215_vm8, %v5022_v62, %v5018_v25 }
0x12aa   : > { %v5125_v27 = vsub.f32 1.0, %v5124_v8  ;;  %8084 = vrcp.f32 %v10213_v38  ;;  %vm5032_vm9 = vmor %vm5030_vm6, %vm5031_vm12  ;;  %v5024_v13 = vmul.f32 %v10165_v35, %v5023_v49  ;;  %v5219_v41 = vand.u32 2147483648, %v10213_v38  ;;  %v7842_v8 = vld [vmem:[%s10563_s14 + $0x170] sm:$0xff] }
0x12ab   : > { %v5027_v39 = vsub.f32 1.0, %v5026_v45  ;;  %vm5311_vm4 = vweird.f32 %v10204_v26  ;;  %v5317_v45 = vand.u32 2147483648, %v10204_v26  ;;  %vm5213_vm8 = vweird.f32 %v10213_v38 }
0x12ac   : > { %v5126_v33 = vmul.f32 %v8079_v9, %v5125_v27  ;;  %v5217_v27 = vand.u32 2147483647, %v10213_v38  ;;  %v5220_v60 = vor.u32 1.1754944e-38, %v5219_v41  ;;  %v7847_v41 = vld [vmem:[%s10563_s14 + $0x198] sm:$0xff] }
0x12ad   : > { %v5028_v15 = vmul.f32 %v8081_v5, %v5027_v39 }
0x12ae   : > { %v5127_v52 = vadd.f32 %v8079_v9, %v5126_v33  ;;  %v7841_v33 = vld [vmem:[%s10563_s14 + $0x168] sm:$0xff]  ;;  %vm5218_vm6 = vcmp.eq.f32.partialorder %v5217_v27, 8.507059e+37 }
0x12af   : > { %v10238_v0 = vpop.eup %8082  ;;  %v5029_v30 = vadd.f32 %v8081_v5, %v5028_v15 }
0x12b0   : > { %v5131_v50 = vsel %vm5130_vm1, %v8079_v9, %v5127_v52  ;;  %v5307_v57 = vmul.f32 %v10238_v0, %v10204_v26  ;;  %v10246_v40 = vpop.xlane.xlu2 %5206  ;;  %v10248_v23 = vpop.eup %8084  ;;  %vm5312_vm5 = vweird.f32 %v10238_v0  ;;  %v5318_v52 = vor.u32 1.1754944e-38, %v5317_v45  ;;  %v7844_v45 = vld [vmem:[%s10563_s14 + $0x180] sm:$0xff] }
0x12b1   : > { %v5136_v42 = vsel %vm5133_vm3, %v5135_v48, %v5131_v50  ;;  %v5033_v32 = vsel %vm5032_vm9, %v8081_v5, %v5029_v30  ;;  %v10250_v11 = vpop.xlane.xlu0 %5304  ;;  %8086 = vrcp.f32 %v10246_v40  ;;  %v5209_v18 = vmul.f32 %v10248_v23, %v10213_v38  ;;  %vm10302_vm2 = vmor %vm5311_vm4, %vm5312_vm5 }
0x12b2   : > { %v5137_v59 = vmul.f32 %v10169_v7, %v5136_v42  ;;  %v5038_v19 = vsel %vm5035_vm14, %v5037_v54, %v5033_v32  ;;  %v5308_v37 = vsub.f32 1.0, %v5307_v57  ;;  %8088 = vrcp.f32 %v10250_v11  ;;  %v7859_v7 = vld [vmem:[%s10563_s14 + $0x1f8] sm:$0xff] }
0x12b3   : > { %v5039_v16 = vmul.f32 %v10171_v1, %v5038_v19  ;;  %v5210_v36 = vsub.f32 1.0, %v5209_v18  ;;  %v5315_v1 = vand.u32 2147483647, %v10204_v26  ;;  %vm5214_vm11 = vweird.f32 %v10248_v23  ;;  %v7839_v19 = vld [vmem:[%s10563_s14 + $0x158] sm:$0xff] }
0x12b4   : > { %v5138_v29 = vpack.c.bf16 %v5137_v59, %v5122_v2  ;;  %v5309_v5 = vmul.f32 %v10238_v0, %v5308_v37  ;;  %vm10291_vm10 = vmor %vm5213_vm8, %vm5214_vm11  ;;  %v5332_v53 = vand.u32 2147483648, %v10250_v11  ;;  %v5234_v20 = vand.u32 2147483648, %v10246_v40 }
0x12b5   : > { %v5040_v9 = vpack.c.bf16 %v5039_v16, %v5024_v13  ;;  %v5211_v17 = vmul.f32 %v10248_v23, %v5210_v36  ;;  %vm10285_vm7 = vcmp.eq.f32.partialorder %v5315_v1, 8.507059e+37  ;;  %v5232_v15 = vand.u32 2147483647, %v10246_v40  ;;  %v7857_v13 = vld [vmem:[%s10563_s14 + $0x1e8] sm:$0xff]  ;;  %v7830_v16 = vld [vmem:[%s10563_s14 + $0x110] sm:$0xff]  ;;  %v7856_v36 = vld [vmem:[%s10563_s14 + $0x1e0] sm:$0xff] }
0x12b6   : > { %7294 = vmatmul.msk.bf16.vlgmr.msrb.gmra.mxu1 %vm2354_vm13, %v5138_v29  ;;  %v5310_v63 = vadd.f32 %v10238_v0, %v5309_v5  ;;  %v5330_v26 = vand.u32 2147483647, %v10250_v11  ;;  %vm5228_vm1 = vweird.f32 %v10246_v40  ;;  %vm5326_vm3 = vweird.f32 %v10250_v11  ;;  %v7836_v29 = vld [vmem:[%s10563_s14 + $0x140] sm:$0xff]  ;;  %v7855_v5 = vld [vmem:[%s10563_s14 + $0x1d8] sm:$0xff]  ;;  %v7854_v1 = vld [vmem:[%s10563_s14 + $0x1d0] sm:$0xff] }
0x12b7   : > { %v8087_v35 = vpop.eup %8086  ;;  %7293 = vmatmul.msk.bf16.vlgmr.msra.gmra.mxu3 %vm2354_vm13, %v5040_v9  ;;  %5668 = vmatpush.bf16.msrb.mxu1 %v7859_v7  ;;  %v5212_v31 = vadd.f32 %v10248_v23, %v5211_v17  ;;  %v5235_v30 = vor.u32 1.1754944e-38, %v5234_v20  ;;  %v5333_v50 = vor.u32 1.1754944e-38, %v5332_v53  ;;  %vm5233_vm4 = vcmp.eq.f32.partialorder %v5232_v15, 8.507059e+37  ;;  %v7850_v7 = vld [vmem:[%s10563_s14 + $0x1b0] sm:$0xff]  ;;  %v7849_v9 = vld [vmem:[%s10563_s14 + $0x1a8] sm:$0xff]  ;;  %v7828_v17 = vld [vmem:[%s10563_s14 + $0x100] sm:$0xff] }
0x12b8   : > { %v5224_v4 = vmul.f32 %v8087_v35, %v10246_v40  ;;  %5640 = vmatpush.bf16.msra.mxu3 %v7843_v61  ;;  %v8089_v6 = vpop.eup %8088  ;;  %vm5229_vm12 = vweird.f32 %v8087_v35  ;;  %v5314_v44 = vsel %vm10302_vm2, %v10238_v0, %v5310_v63  ;;  %v7840_v0 = vld [vmem:[%s10563_s14 + $0x160] sm:$0xff]  ;;  %vm5331_vm11 = vcmp.eq.f32.partialorder %v5330_v26, 8.507059e+37  ;;  %v7829_v61 = vld [vmem:[%s10563_s14 + $0x108] sm:$0xff] }
0x12b9   : > { %v5322_v14 = vmul.f32 %v8089_v6, %v10250_v11  ;;  %v5216_v58 = vsel %vm10291_vm10, %v10248_v23, %v5212_v31  ;;  %vm5327_vm15 = vweird.f32 %v8089_v6  ;;  %vm5230_vm9 = vmor %vm5228_vm1, %vm5229_vm12  ;;  %v5319_v49 = vsel %vm10285_vm7, %v5318_v52, %v5314_v44  ;;  %v7845_v31 = vld [vmem:[%s10563_s14 + $0x188] sm:$0xff] }
0x12ba   : > { %v5225_v43 = vsub.f32 1.0, %v5224_v4  ;;  %v5221_v2 = vsel %vm5218_vm6, %v5220_v60, %v5216_v58  ;;  %vm5328_vm14 = vmor %vm5326_vm3, %vm5327_vm15  ;;  %v5320_v11 = vmul.f32 %v10177_v12, %v5319_v49  ;;  %v7858_v12 = vld [vmem:[%s10563_s14 + $0x1f0] sm:$0xff]  ;;  %v7853_v4 = vld [vmem:[%s10563_s14 + $0x1c8] sm:$0xff]  ;;  %vm10693_vm12 = vcmask 1040384  }
0x12bb   : > { %v5323_v39 = vsub.f32 1.0, %v5322_v14  ;;  %v5222_v23 = vmul.f32 %v10179_v47, %v5221_v2  ;;  %v7838_v47 = vld [vmem:[%s10563_s14 + $0x150] sm:$0xff]  ;;  %5669 = vmatpush.bf16.msrb.mxu1 %v7858_v12  ;;  %vm10694_vm15 = vsmask.f32 7424  ;;  %vm10695_vm6 = vcmask 523264   ;;  %vm10696_vm1 = vmmov %vm10693_vm12 }
0x12bc   : > { %5641 = vmatpush.bf16.msra.mxu3 %v7842_v8  ;;  %v5226_v25 = vmul.f32 %v8087_v35, %v5225_v43  ;;  %v7846_v8 = vld [vmem:[%s10563_s14 + $0x190] sm:$0xff]  ;;  %vm10697_vm3 = vmmov %vm10695_vm6 }
0x12bd   : > { %v5324_v62 = vmul.f32 %v8089_v6, %v5323_v39 }
0x12be   : > { %v5227_v3 = vadd.f32 %v8087_v35, %v5226_v25  ;;  %v7937_v25 = vld [vmem:[%s10564_s15 + $0x1] ss:$0 sm:$0xff] }
0x12bf   : > { %v5325_v48 = vadd.f32 %v8089_v6, %v5324_v62  ;;  %5670 = vmatpush.bf16.msrb.mxu1 %v7857_v13 }
0x12c0   : > { %5642 = vmatpush.bf16.msra.mxu3 %v7841_v33  ;;  %v5231_v54 = vsel %vm5230_vm9, %v8087_v35, %v5227_v3  ;;  %v7848_v35 = vld [vmem:[%s10563_s14 + $0x1a0] sm:$0xff]  ;;  %vm10698_vm9 = vmmov %vm10694_vm15 }
0x12c1   : > { %v5329_v57 = vsel %vm5328_vm14, %v8089_v6, %v5325_v48  ;;  %v5236_v40 = vsel %vm5233_vm4, %v5235_v30, %v5231_v54  ;;  %v7852_v6 = vld [vmem:[%s10563_s14 + $0x1c0] sm:$0xff]  ;;  %vm10699_vm14 = vmmov %vm10697_vm3 }
0x12c2   : > { %v5334_v42 = vsel %vm5331_vm11, %v5333_v50, %v5329_v57  ;;  %v5237_v32 = vmul.f32 %v10185_v21, %v5236_v40  ;;  %v7831_v21 = vld [vmem:[%s10563_s14 + $0x118] sm:$0xff] }
0x12c3   : > { %v5335_v59 = vmul.f32 %v10187_v10, %v5334_v42  ;;  %v7851_v10 = vld [vmem:[%s10563_s14 + $0x1b8] sm:$0xff]  ;;  %5630 = vmatpush.bf16.msra.mxu2 %v7831_v21  ;;  %5671 = vmatpush.bf16.msrb.mxu1 %v7856_v36 }
0x12c4   : > { %5643 = vmatpush.bf16.msra.mxu3 %v7840_v0  ;;  %v5238_v37 = vpack.c.bf16 %v5237_v32, %v5222_v23  ;;  %5654 = vmatpush.bf16.msrb.mxu0 %v7851_v10 }
0x12c5   : > { %v5336_v18 = vpack.c.bf16 %v5335_v59, %v5320_v11 }
0x12c7   : > { %7295 = vmatmul.msk.bf16.vlgmr.msrb.gmra.mxu3 %vm2354_vm13, %v5238_v37  ;;  %7296 = vmatmul.msk.bf16.vlgmr.msra.gmra.mxu1 %vm2354_vm13, %v5336_v18 }
0x12c8   : > { %5644 = vmatpush.bf16.msra.mxu3 %v7839_v19  ;;  %5631 = vmatpush.bf16.msra.mxu2 %v7830_v16 }
0x12c9   : > { %5655 = vmatpush.bf16.msrb.mxu0 %v7850_v7  ;;  %5672 = vmatpush.bf16.msrb.mxu1 %v7855_v5  ;;  %v7861_v7 = vld [vmem:[%s10567_s18 + $0x58] sm:$0xff] }
0x12cc   : > { %5645 = vmatpush.bf16.msra.mxu3 %v7838_v47  ;;  %5632 = vmatpush.bf16.msra.mxu2 %v7829_v61  ;;  %v7863_v61 = vld [vmem:[%s10567_s18 + $0x38] sm:$0xff] }
0x12cd   : > { %5656 = vmatpush.bf16.msrb.mxu0 %v7849_v9  ;;  %5673 = vmatpush.bf16.msrb.mxu1 %v7854_v1  ;;  %v7860_v9 = vld [vmem:[%s10567_s18 + $0x50] sm:$0xff] }
0x12ce   : > { %v7862_v1 = vld [vmem:[%s10567_s18 + $0x30] sm:$0xff] }
0x12d0   : > { %5646 = vmatpush.bf16.msra.mxu3 %v7837_v22  ;;  %5633 = vmatpush.bf16.msra.mxu2 %v7828_v17 }
0x12d1   : > { %5657 = vmatpush.bf16.msrb.mxu0 %v7848_v35  ;;  %5674 = vmatpush.bf16.msrb.mxu1 %v7853_v4 }
0x12d4   : > { %5647 = vmatpush.bf16.msra.mxu3 %v7836_v29  ;;  %5782 = vmatpush.bf16.msrb.mxu2 %v7861_v7  ;;  %v7874_v7 = vld [vmem:[%s10569_s20 + $0x80] sm:$0xff] }
0x12d5   : > { %5658 = vmatpush.bf16.msrb.mxu0 %v7847_v41  ;;  %5675 = vmatpush.bf16.msrb.mxu1 %v7852_v6 }
0x12d8   : > { %5818 = vmatpush.bf16.msrb.mxu3 %v7863_v61  ;;  %5783 = vmatpush.bf16.msrb.mxu2 %v7860_v9 }
0x12d9   : > { %5659 = vmatpush.bf16.msrb.mxu0 %v7846_v8  ;;  %v7865_v8 = vld [vmem:[%s10567_s18 + $0x48] sm:$0xff] }
0x12dc   : > { %5819 = vmatpush.bf16.msrb.mxu3 %v7862_v1 }
0x12dd   : > { %5660 = vmatpush.bf16.msrb.mxu0 %v7845_v31 }
0x12e1   : > { %5661 = vmatpush.bf16.msrb.mxu0 %v7844_v45 }
0x12e5   : > { %5864 = vmatpush.bf16.msra.mxu0 %v7865_v8 }
0x1333   : > { %v5157_v63 = vpop.f32.mrf.mxu1 }
0x133a   : > { %v5061_v14 = vpop.f32.mrf.mxu3 }
0x133b   : > { %v5159_v34 = vpop.f32.mrf.mxu1 }
0x133c   : > { %v5361_v27 = vpack.c.bf16 %v5159_v34, %v5157_v63  ;;  %v7938_v34 = vld [vmem:[%s10565_s16 + $0x1] ss:$0 sm:$0xff] }
0x133e   : > { %5648 = vmatmul.bf16.vlgmr.msra.gmra.mxu3 %v5361_v27 }
0x1342   : > { %v5063_v43 = vpop.f32.mrf.mxu3 }
0x1343   : > { %v5360_v46 = vpack.c.bf16 %v5063_v43, %v5061_v14  ;;  %v7864_v14 = vld [vmem:[%s10567_s18 + $0x40] sm:$0xff] }
0x1344   : > { %v5355_v60 = vpop.f32.mrf.mxu1  ;;  %5865 = vmatpush.bf16.msra.mxu0 %v7864_v14 }
0x1345   : > { %5634 = vmatmul.bf16.vlgmr.msra.gmra.mxu2 %v5360_v46 }
0x134a   : > { %v5259_v39 = vpop.f32.mrf.mxu3 }
0x134c   : > { %v5357_v53 = vpop.f32.mrf.mxu1 }
0x134d   : > { %v5363_v20 = vpack.c.bf16 %v5357_v53, %v5355_v60 }
0x134f   : > { %5676 = vmatmul.bf16.vlgmr.msrb.gmra.mxu1 %v5363_v20 }
0x1352   : > { %v5261_v33 = vpop.f32.mrf.mxu3 }
0x1353   : > { %v5362_v38 = vpack.c.bf16 %v5261_v33, %v5259_v39  ;;  %v7939_v39 = vld [vmem:[%s10566_s17 + $0x1] ss:$0 sm:$0xff] }
0x1355   : > { %5662 = vmatmul.bf16.vlgmr.msrb.gmra.mxu0 %v5362_v38 }
0x13c1   : > { %v5649_v44 = vpop.f32.mrf.mxu3 }
0x13c8   : > { %v5635_v58 = vpop.f32.mrf.mxu2 }
0x13c9   : > { %v5636_v15 = vadd.f32 %v7937_v25, %v5635_v58  ;;  %v5651_v49 = vpop.f32.mrf.mxu3 }
0x13cb   : > { %v5650_v26 = vadd.f32 %v5649_v44, %v5636_v15 }
0x13cc   : > { %v5677_v62 = vpop.f32.mrf.mxu1 }
0x13d0   : > { %v5637_v52 = vpop.f32.mrf.mxu2 }
0x13d1   : > { %v5638_v48 = vadd.f32 %v7937_v25, %v5637_v52 }
0x13d2   : > { %v5663_v3 = vpop.f32.mrf.mxu0 }
0x13d3   : > { %v5664_v2 = vadd.f32 %v5663_v3, %v5650_v26  ;;  %v5652_v50 = vadd.f32 %v5651_v49, %v5638_v48 }
0x13d4   : > { %v5679_v23 = vpop.f32.mrf.mxu1 }
0x13d5   : > { %v5678_v30 = vadd.f32 %v5677_v62, %v5664_v2 }
0x13d7   : > { %v5682_v0 = vadd.f32 %v5678_v30, %v10031_v55 }
0x13d9   : > { %v5688_v54 = vsel %vm1009_vm0, %v5682_v0, 0.0 }
0x13da   : > { %v5665_v57 = vpop.f32.mrf.mxu0  ;;  %5689 = vadd.xlane.f32.xlu2 %v5688_v54 }
0x13db   : > { %v5666_v40 = vadd.f32 %v5665_v57, %v5652_v50 }
0x13dd   : > { %v5680_v42 = vadd.f32 %v5679_v23, %v5666_v40 }
0x13df   : > { %v5683_v32 = vadd.f32 %v5680_v42, %v10033_v28 }
0x13e1   : > { %v5691_v11 = vsel %vm1009_vm0, %v5683_v32, 0.0 }
0x13e2   : > { %5692 = vadd.xlane.f32.xlu1 %v5691_v11  ;;  %v7869_v11 = vld [vmem:[%s10569_s20 + $0xb8] sm:$0xff] }
0x13e3   : > { %5930 = vmatpush.bf16.msra.mxu1 %v7869_v11 }
0x144d   : > { %v5690_v59 = vpop.xlane.xlu2 %5689 }
0x144e   : > { %v5694_v19 = vmul.f32 %v5690_v59, %v8824_v24  ;;  %v7873_v59 = vld [vmem:[%s10569_s20 + $0x78] sm:$0xff] }
0x144f   : > { %5982 = vmatpush.bf16.msra.mxu2 %v7873_v59 }
0x1450   : > { %v5696_v37 = vsub.f32 %v5682_v0, %v5694_v19  ;;  %v7868_v19 = vld [vmem:[%s10569_s20 + $0xb0] sm:$0xff] }
0x1451   : > { %5931 = vmatpush.bf16.msra.mxu1 %v7868_v19 }
0x1452   : > { %v5698_v18 = vmul.f32 %v5696_v37, %v5696_v37 }
0x1454   : > { %v5700_v55 = vsel %vm1009_vm0, %v5698_v18, 0.0  ;;  %v7867_v18 = vld [vmem:[%s10569_s20 + $0xa8] sm:$0xff] }
0x1455   : > { %v5693_v47 = vpop.xlane.xlu1 %5692  ;;  %5701 = vadd.xlane.f32.xlu0 %v5700_v55  ;;  %5932 = vmatpush.bf16.msra.mxu1 %v7867_v18  ;;  %v7877_v55 = vld [vmem:[%s10569_s20 + $0x98] sm:$0xff] }
0x1456   : > { %v5695_v12 = vmul.f32 %v5693_v47, %v8824_v24  ;;  %v7871_v47 = vld [vmem:[%s10569_s20 + $0x68] sm:$0xff]  ;;  %6044 = vmatpush.bf16.msra.mxu3 %v7877_v55 }
0x1458   : > { %v5697_v21 = vsub.f32 %v5683_v32, %v5695_v12  ;;  %v7866_v12 = vld [vmem:[%s10569_s20 + $0xa0] sm:$0xff] }
0x1459   : > { %5933 = vmatpush.bf16.msra.mxu1 %v7866_v12 }
0x145a   : > { %v5699_v10 = vmul.f32 %v5697_v21, %v5697_v21 }
0x145c   : > { %v5703_v22 = vsel %vm1009_vm0, %v5699_v10, 0.0  ;;  %v7870_v10 = vld [vmem:[%s10569_s20 + $0x60] sm:$0xff] }
0x145d   : > { %5704 = vadd.xlane.f32.xlu2 %v5703_v22  ;;  %v7940_v22 = vld [vmem:[%s10568_s19 + $0x1] ss:$0 sm:$0xff] }
0x14c8   : > { %v5702_v28 = vpop.xlane.xlu0 %5701 }
0x14c9   : > { %v5706_v13 = vmul.f32 %v5702_v28, %v8824_v24  ;;  %v7875_v28 = vld [vmem:[%s10569_s20 + $0x88] sm:$0xff] }
0x14cb   : > { %v5708_v16 = vadd.f32 1e-05, %v5706_v13 }
0x14cd   : > { %8090 = vrsqrt.f32 %v5708_v16  ;;  %vm5716_vm5 = vweird.f32 %v5708_v16 }
0x14d0   : > { %v5705_v29 = vpop.xlane.xlu2 %5704 }
0x14d1   : > { %v5707_v36 = vmul.f32 %v5705_v29, %v8824_v24 }
0x14d3   : > { %v8091_v5 = vpop.eup %8090  ;;  %v5709_v17 = vadd.f32 1e-05, %v5707_v36 }
0x14d4   : > { %v5711_v35 = vmul.f32 %v8091_v5, %v5708_v16  ;;  %vm5717_vm13 = vweird.f32 %v8091_v5 }
0x14d5   : > { %8092 = vrsqrt.f32 %v5709_v17  ;;  %vm5718_vm7 = vmor %vm5716_vm5, %vm5717_vm13  ;;  %vm5726_vm10 = vweird.f32 %v5709_v17 }
0x14d6   : > { %v5712_v41 = vmul.f32 %v8091_v5, %v5711_v35 }
0x14d8   : > { %v5713_v4 = vmul.f32 0.5, %v5712_v41 }
0x14da   : > { %v5714_v6 = vsub.f32 1.5, %v5713_v4 }
0x14db   : > { %v8093_v31 = vpop.eup %8092 }
0x14dc   : > { %v5715_v63 = vmul.f32 %v8091_v5, %v5714_v6  ;;  %v5721_v45 = vmul.f32 %v8093_v31, %v5709_v17  ;;  %vm5727_vm8 = vweird.f32 %v8093_v31 }
0x14dd   : > { %vm5728_vm2 = vmor %vm5726_vm10, %vm5727_vm8 }
0x14de   : > { %v5719_v27 = vsel %vm5718_vm7, %v8091_v5, %v5715_v63  ;;  %v5722_v43 = vmul.f32 %v8093_v31, %v5721_v45 }
0x14df   : > { %v5730_v46 = vmul.f32 %v5719_v27, %v5696_v37  ;;  %v7872_v37 = vld [vmem:[%s10569_s20 + $0x70] sm:$0xff] }
0x14e0   : > { %v5723_v60 = vmul.f32 0.5, %v5722_v43  ;;  %5983 = vmatpush.bf16.msra.mxu2 %v7872_v37 }
0x14e1   : > { %v5735_v53 = vmul.f32 %v7938_v34, %v5730_v46 }
0x14e2   : > { %v5724_v20 = vsub.f32 1.5, %v5723_v60 }
0x14e3   : > { %v10433_v38 = vadd.f32 %v7939_v39, %v5735_v53 }
0x14e4   : > { %v5725_v33 = vmul.f32 %v8093_v31, %v5724_v20  ;;  %5984 = vmatpush.bf16.msra.mxu2 %v7871_v47 }
0x14e5   : > { %v5742_v15 = vmul.f32 %v10433_v38, %v8454_v51 }
0x14e6   : > { %v5729_v58 = vsel %vm5728_vm2, %v8093_v31, %v5725_v33 }
0x14e7   : > { %v5731_v25 = vmul.f32 %v5729_v58, %v5697_v21  ;;  %v5744_v26 = vpack.c.bf16 %v5742_v15, %v5742_v15  ;;  %v7876_v21 = vld [vmem:[%s10569_s20 + $0x90] sm:$0xff] }
0x14e8   : > { %6045 = vmatpush.bf16.msra.mxu3 %v7876_v21  ;;  %5985 = vmatpush.bf16.msra.mxu2 %v7870_v10 }
0x14e9   : > { %v5736_v44 = vmul.f32 %v7938_v34, %v5731_v25  ;;  %v5758_v2 = vunpack.c.l.b16 %v5744_v26  ;;  %v7941_v26 = vld [vmem:[%s10570_s21 + $0x1] ss:$0 sm:$0xff] }
0x14eb   : > { %v10437_v62 = vadd.f32 %v7939_v39, %v5736_v44 }
0x14ec   : > { %6046 = vmatpush.bf16.msra.mxu3 %v7875_v28 }
0x14ed   : > { %v5743_v52 = vmul.f32 %v10437_v62, %v8466_v56 }
0x14ef   : > { %v5745_v3 = vpack.c.bf16 %v5743_v52, %v5743_v52 }
0x14f0   : > { %6047 = vmatpush.bf16.msra.mxu3 %v7874_v7 }
0x14f1   : > { %v5759_v48 = vunpack.c.l.b16 %v5745_v3 }
0x14f3   : > { %v5760_v30 = vpack.c.b16 %v5759_v48, %v5758_v2 }
0x14f5   : > { %7505 = vmatmul.msk.bf16.vlgmr.msrb.gmra.mxu2 %vm1009_vm0, %v5760_v30  ;;  %v5790_v0 = vrot.slane %v5760_v30, 7 }
0x14f7   : > { %v5792_v49 = vsel %vm10693_vm12, 0, %v5790_v0  ;;  %v5839_v54 = vshll.u32 %v5790_v0, 16 }
0x14f8   : > { %7518 = vmatmul.msk.bf16.vlgmr.msrb.gmra.mxu3 %vm1009_vm0, %v5792_v49  ;;  %v5835_v50 = vshll.u32 %v5792_v49, 16  ;;  %v5833_v57 = vshrl.u32 %v5792_v49, 16 }
0x14f9   : > { %v5841_v42 = vrot.slane %v5839_v54, 1 }
0x14fa   : > { %v5837_v40 = vrot.slane %v5835_v50, 1 }
0x14fc   : > { %v5838_v23 = vor.u32 %v5837_v40, %v5833_v57 }
0x14fe   : > { %v5842_v32 = vsel %vm10694_vm15, %v5838_v23, %v5841_v42 }
0x14ff   : > { %7531 = vmatmul.msk.bf16.vlgmr.msra.gmra.mxu0 %vm1009_vm0, %v5842_v32 }
0x1578   : > { %v5785_v13 = vpop.f32.mrf.mxu2 }
0x1579   : > { %v5786_v16 = vadd.f32 %v7940_v22, %v5785_v13 }
0x157b   : > { %v5821_v29 = vpop.f32.mrf.mxu3 }
0x157c   : > { %v5826_v36 = vadd.f32 %v5821_v29, %v5786_v16  ;;  %v5867_v61 = vpop.f32.mrf.mxu0 }
0x157e   : > { %v5872_v9 = vadd.f32 %v5867_v61, %v5826_v36 }
0x1580   : > { %v5787_v5 = vpop.f32.mrf.mxu2  ;;  %v5874_v35 = vmax.f32 %v5872_v9, 0.0 }
0x1581   : > { %v5788_v17 = vadd.f32 %v7940_v22, %v5787_v5 }
0x1582   : > { %v5876_v8 = vmul.f32 %v5874_v35, %v8454_v51 }
0x1583   : > { %v5823_v1 = vpop.f32.mrf.mxu3 }
0x1584   : > { %v5827_v41 = vadd.f32 %v5823_v1, %v5788_v17  ;;  %v5869_v4 = vpop.f32.mrf.mxu0  ;;  %v5878_v63 = vpack.c.bf16 %v5876_v8, %v5876_v8  ;;  %v7942_v8 = vld [vmem:[%s10571_s22 + $0x1] ss:$0 sm:$0xff] }
0x1586   : > { %v5873_v6 = vadd.f32 %v5869_v4, %v5827_v41  ;;  %v5896_v34 = vunpack.c.l.b16 %v5878_v63 }
0x1588   : > { %v5875_v31 = vmax.f32 %v5873_v6, 0.0 }
0x158a   : > { %v5877_v45 = vmul.f32 %v5875_v31, %v8466_v56  ;;  %v7943_v31 = vld [vmem:[%s10572_s23 + $0x1] ss:$0 sm:$0xff] }
0x158c   : > { %v5879_v14 = vpack.c.bf16 %v5877_v45, %v5877_v45 }
0x158e   : > { %v5897_v27 = vunpack.c.l.b16 %v5879_v14 }
0x1590   : > { %v5898_v43 = vpack.c.b16 %v5897_v27, %v5896_v34 }
0x1592   : > { %v5940_v46 = vrot.slane %v5898_v43, 7  ;;  %7557 = vmatmul.msk.bf16.vlgmr.msra.gmra.mxu1 %vm10695_vm6, %v5898_v43 }
0x1594   : > { %v5942_v60 = vsel %vm10696_vm1, 0, %v5940_v46  ;;  %v6009_v39 = vshll.u32 %v5940_v46, 16 }
0x1595   : > { %7582 = vmatmul.msk.bf16.vlgmr.msra.gmra.mxu2 %vm10697_vm3, %v5942_v60  ;;  %v6005_v53 = vshll.u32 %v5942_v60, 16  ;;  %v6003_v20 = vshrl.u32 %v5942_v60, 16 }
0x1596   : > { %v6011_v58 = vrot.slane %v6009_v39, 1 }
0x1597   : > { %v6007_v33 = vrot.slane %v6005_v53, 1 }
0x1599   : > { %v6008_v25 = vor.u32 %v6007_v33, %v6003_v20 }
0x159b   : > { %v6012_v15 = vsel %vm10698_vm9, %v6008_v25, %v6011_v58 }
0x159c   : > { %7607 = vmatmul.msk.bf16.vlgmr.msra.gmra.mxu3 %vm10699_vm14, %v6012_v15 }
0x160f   : > { %v5935_v44 = vpop.f32.mrf.mxu1 }
0x1610   : > { %v5936_v3 = vadd.f32 %v7941_v26, %v5935_v44 }
0x1617   : > { %v5937_v0 = vpop.f32.mrf.mxu1 }
0x1618   : > { %v5987_v52 = vpop.f32.mrf.mxu2  ;;  %v5938_v54 = vadd.f32 %v7941_v26, %v5937_v0 }
0x1619   : > { %v5992_v2 = vadd.f32 %v5987_v52, %v5936_v3 }
0x161f   : > { %v6049_v48 = vpop.f32.mrf.mxu3 }
0x1620   : > { %v6054_v30 = vadd.f32 %v6049_v48, %v5992_v2  ;;  %v5989_v50 = vpop.f32.mrf.mxu2 }
0x1621   : > { %v5993_v40 = vadd.f32 %v5989_v50, %v5938_v54 }
0x1622   : > { %v6056_v49 = vmul.f32 %v6054_v30, %v8454_v51 }
0x1624   : > { %v6058_v57 = vadd.f32 %v6056_v49, %v10433_v38 }
0x1626   : > { %v6064_v23 = vsel %vm1009_vm0, %v6058_v57, 0.0 }
0x1627   : > { %v6051_v42 = vpop.f32.mrf.mxu3  ;;  %6065 = vadd.xlane.f32.xlu1 %v6064_v23 }
0x1628   : > { %v6055_v32 = vadd.f32 %v6051_v42, %v5993_v40 }
0x162a   : > { %v6057_v11 = vmul.f32 %v6055_v32, %v8466_v56 }
0x162c   : > { %v6059_v59 = vadd.f32 %v6057_v11, %v10437_v62 }
0x162e   : > { %v6067_v19 = vsel %vm1009_vm0, %v6059_v59, 0.0 }
0x162f   : > { %6068 = vadd.xlane.f32.xlu0 %v6067_v19 }
0x169a   : > { %v6066_v37 = vpop.xlane.xlu1 %6065 }
0x169b   : > { %v6070_v18 = vmul.f32 %v6066_v37, %v8824_v24 }
0x169d   : > { %v6072_v55 = vsub.f32 %v6058_v57, %v6070_v18 }
0x169f   : > { %v6074_v47 = vmul.f32 %v6072_v55, %v6072_v55 }
0x16a1   : > { %v6076_v38 = vsel %vm1009_vm0, %v6074_v47, 0.0 }
0x16a2   : > { %v6069_v12 = vpop.xlane.xlu0 %6068  ;;  %6077 = vadd.xlane.f32.xlu2 %v6076_v38 }
0x16a3   : > { %v6071_v21 = vmul.f32 %v6069_v12, %v8824_v24 }
0x16a5   : > { %v6073_v10 = vsub.f32 %v6059_v59, %v6071_v21 }
0x16a7   : > { %v6075_v22 = vmul.f32 %v6073_v10, %v6073_v10 }
0x16a9   : > { %v6079_v28 = vsel %vm1009_vm0, %v6075_v22, 0.0 }
0x16aa   : > { %6080 = vadd.xlane.f32.xlu1 %v6079_v28 }
0x1715   : > { %v6078_v62 = vpop.xlane.xlu2 %6077 }
0x1716   : > { %v6082_v13 = vmul.f32 %v6078_v62, %v8824_v24 }
0x1718   : > { %v6084_v16 = vadd.f32 1e-05, %v6082_v13 }
0x171a   : > { %8094 = vrsqrt.f32 %v6084_v16  ;;  %vm6092_vm11 = vweird.f32 %v6084_v16 }
0x171d   : > { %v6081_v7 = vpop.xlane.xlu1 %6080 }
0x171e   : > { %v6083_v29 = vmul.f32 %v6081_v7, %v8824_v24 }
0x1720   : > { %v8095_v36 = vpop.eup %8094  ;;  %v6085_v61 = vadd.f32 1e-05, %v6083_v29 }
0x1721   : > { %v6087_v9 = vmul.f32 %v8095_v36, %v6084_v16  ;;  %vm6093_vm4 = vweird.f32 %v8095_v36 }
0x1722   : > { %8096 = vrsqrt.f32 %v6085_v61  ;;  %vm6094_vm13 = vmor %vm6092_vm11, %vm6093_vm4  ;;  %vm6102_vm7 = vweird.f32 %v6085_v61 }
0x1723   : > { %v6088_v5 = vmul.f32 %v8095_v36, %v6087_v9 }
0x1725   : > { %v6089_v17 = vmul.f32 0.5, %v6088_v5 }
0x1727   : > { %v6090_v35 = vsub.f32 1.5, %v6089_v17 }
0x1728   : > { %v8097_v1 = vpop.eup %8096 }
0x1729   : > { %v6091_v41 = vmul.f32 %v8095_v36, %v6090_v35  ;;  %v6097_v4 = vmul.f32 %v8097_v1, %v6085_v61  ;;  %vm6103_vm5 = vweird.f32 %v8097_v1 }
0x172a   : > { %vm6104_vm8 = vmor %vm6102_vm7, %vm6103_vm5 }
0x172b   : > { %v6095_v24 = vsel %vm6094_vm13, %v8095_v36, %v6091_v41  ;;  %v6098_v6 = vmul.f32 %v8097_v1, %v6097_v4 }
0x172c   : > { %v6106_v63 = vmul.f32 %v6095_v24, %v6072_v55 }
0x172d   : > { %v6099_v45 = vmul.f32 0.5, %v6098_v6 }
0x172e   : > { %v6111_v14 = vmul.f32 %v7942_v8, %v6106_v63 }
0x172f   : > { %v6100_v34 = vsub.f32 1.5, %v6099_v45 }
0x1730   : > { %v6116_v27 = vadd.f32 %v7943_v31, %v6111_v14 }
0x1731   : > { %v6101_v43 = vmul.f32 %v8097_v1, %v6100_v34 }
0x1732   : > { %v6118_v46 = vmul.f32 %v6116_v27, %v8454_v51 }
0x1733   : > { %v6105_v60 = vsel %vm6104_vm8, %v8097_v1, %v6101_v43 }
0x1734   : > { %v6107_v39 = vmul.f32 %v6105_v60, %v6073_v10  ;;  %6120 = vst.msk [vmem:[%s771_s28] sm:$0xff] %vm1009_vm0, %v6118_v46 }
0x1736   : > { %v6112_v53 = vmul.f32 %v7942_v8, %v6107_v39 }
0x1738   : > { %v6117_v20 = vadd.f32 %v7943_v31, %v6112_v53 }
0x173a   : > { %v6119_v33 = vmul.f32 %v6117_v20, %v8466_v56 }
0x173c   : > { %6121 = vst.msk [vmem:[%s771_s28 + $0x8] sm:$0xff] %vm1009_vm0, %v6119_v33 }
0x173d   : > { %8127 = shalt.err (!%p8124_p3)
}
0x173e   : > { %s8166_s25 = smov 128   ;;  %s8167_s28 = smov 8  }
0x173f   : > { %7879 = dma.vmem_to_hbm [thread:$0]  (%p8331_p5), %s6136_s26, 256, %s6138_s0, %s6123_s5, %s8166_s25, %s8166_s25, %s8167_s28  }
0x1740 PF: > { %s10704_s9 = sld [smem:[#allocation8_spill]] }
0x1741   : > { %s10705_s10 = sld [smem:[#allocation5_spill]] }
0x1746   : > { %p7885_p4 = scmp.ge.s32.totalorder %s10704_s9, 2 }
0x1747   : > { %s6152_s6 = sand.u32 1, %s10705_s10  }
0x1748   : > { %p7882_p7 = pnand %p7885_p4, %p8335_p6  ;;  %s6153_s3 = scalar_lea.sflag [#allocation3], %s6152_s6 }
0x174a   : > { %p7883_p8 = pneg %p7882_p7 }
0x174c   : > { %8145 = dma.done.wait (%p7883_p8), %s6153_s3, 256  }
0x174d   : > { %8147 = vsyncadd (%p7883_p8), %s6153_s3, 4294967040  ;;  %s10707_s28 = sld [smem:[#allocation10_spill]] }
0x174e   : > { %s10708_s5 = sld [smem:[#allocation6_spill]] }
0x174f   : > { %s10709_s26 = sld [smem:[#allocation7_spill]] }
0x1750   : > { %s10710_s27 = sld [smem:[#allocation11_spill]] }
0x1753   : > { %p34_p9 = scmp.ge.s32.totalorder %s10707_s28, 4  }
0x1755   :  { %36 = sbr.rel (!%p34_p9) target bundleno = 17 (0x11), region = 188 }
0x175a   :  { %6159 = vsyncpa [#allocation3], 1 }
0x175b   :  { %6161 = vsyncpa [#allocation3 + $0x1], 1 }

</bundles_post_ra>
